<compile_context>
chip_gen: v5e
topology: v5e:2x2
jax: 0.10.0
libtpu: 0.0.40
codegen_flags: <defaults>
</compile_context>

<pallas_src>
import functools

import numpy as np

import jax
import jax.numpy as jnp
from jax import lax
from jax.experimental import pallas as pl
from jax.experimental.pallas import tpu as pltpu


# ----------------------------------------------------------------------------
# Host-side helpers (pure layout / constant generation — no device compute).
# ----------------------------------------------------------------------------
def get_positional_embeddings(sequence_length, d):
    """Same table as the PyTorch helper (sin on even dims, cos on odd dims)."""
    i = np.arange(sequence_length, dtype=np.float64)[:, None]
    j = np.arange(d)[None, :]
    jj = np.where(j % 2 == 0, j, j - 1).astype(np.float64)
    angle = i / np.power(10000.0, jj / float(d))
    emb = np.where(j % 2 == 0, np.sin(angle), np.cos(angle))
    return jnp.asarray(emb, dtype=jnp.float32)


def patchify(images, n_patches):
    """Layout-only equivalent of the PyTorch patchify() loops."""
    n, c, h, w = images.shape
    assert h == w, "Patchify method is implemented for square images only"
    ps = h // n_patches
    x = images.reshape(n, c, n_patches, ps, n_patches, ps)
    x = x.transpose(0, 2, 4, 1, 3, 5)               # (n, pi, pj, c, ps, ps)
    return x.reshape(n, n_patches * n_patches, c * ps * ps)


def _cdiv(a, b):
    return (a + b - 1) // b


# ----------------------------------------------------------------------------
# In-kernel math helpers (plain jnp, traced inside the Pallas kernel).
# ----------------------------------------------------------------------------
def _layernorm(x, g, b, eps):
    mu = jnp.mean(x, axis=-1, keepdims=True)
    xc = x - mu
    var = jnp.mean(xc * xc, axis=-1, keepdims=True)
    return xc * lax.rsqrt(var + eps) * g + b


def _erf(x):
    # Abramowitz & Stegun 7.1.26 rational approximation, |err| < 1.5e-7, built only from
    # ops with guaranteed Mosaic lowerings (abs/exp/mul/add/div/where).
    a1, a2, a3, a4, a5 = 0.254829592, -0.284496736, 1.421413741, -1.453152027, 1.061405429
    pp = 0.3275911
    ax = jnp.abs(x)
    t = 1.0 / (1.0 + pp * ax)
    poly = ((((a5 * t + a4) * t + a3) * t + a2) * t + a1) * t
    y = 1.0 - poly * jnp.exp(-ax * ax)
    return jnp.where(x >= 0, y, -y)


def _gelu_exact(x):
    # nn.GELU() default = erf-based GELU (not the tanh approximation).
    return 0.5 * x * (1.0 + _erf(x * 0.7071067811865476))


# ----------------------------------------------------------------------------
# Fused ViT forward kernel: one grid step = a block of `block_images` images.
# ----------------------------------------------------------------------------
def vit_forward_kernel(p_ref, clsmask_ref, cls_ref, pos_ref, wmap_ref, bmap_ref,
                       ln_ref, wqkv_ref, bqkv_ref,
                       wm1_ref, bm1_ref, wm2_ref, bm2_ref,
                       sel_ref, whead_ref, bhead_ref, o_ref,
                       *, n_blocks, n_heads, d_head, n_tokens, tokens_pad,
                       block_images, eps):
    BS, d = pos_ref.shape            # BS = block_images * tokens_pad, d = hidden_d
    S_pad = tokens_pad

    # ---- patch embedding (batch folded into M) + class token + positional embedding ----
    proj = jnp.dot(p_ref[...], wmap_ref[...],
                   preferred_element_type=jnp.float32) + bmap_ref[...]       # (BS, d)
    x = jnp.where(clsmask_ref[...] > 0.5, cls_ref[...], proj) + pos_ref[...]  # (BS, d)

    # ---- masks / constants hoisted out of the block loop (JAX does not CSE these) ----
    col = lax.broadcasted_iota(jnp.int32, (1, d), 1)
    head_masks = [(col >= h * d_head) & (col < (h + 1) * d_head) for h in range(n_heads)]
    key_col = lax.broadcasted_iota(jnp.int32, (1, S_pad), 1)
    key_neg = jnp.where(key_col >= n_tokens, -1e30, 0.0).astype(jnp.float32)  # pad-key mask
    scale = 1.0 / (float(d_head) ** 0.5)

    # ---- encoder blocks (statically unrolled; all weights resident in VMEM) ----
    for blk in range(n_blocks):
        ln = ln_ref[blk]                                  # (4, d): [g1, b1, g2, b2]
        g1, b1 = ln[0:1, :], ln[1:2, :]
        g2, b2 = ln[2:3, :], ln[3:4, :]

        # --- Multi-head self-attention ---
        xn = _layernorm(x, g1, b1, eps)
        # One block-diagonal (d, 3d) projection = q/k/v for every head, all images, one MXU op.
        qkv = jnp.dot(xn, wqkv_ref[blk],
                      preferred_element_type=jnp.float32) + bqkv_ref[blk]     # (BS, 3d)
        q_all = qkv[:, 0:d]
        k_all = qkv[:, d:2 * d]
        v_all = qkv[:, 2 * d:3 * d]

        msa_rows = []
        for img in range(block_images):                   # per-image attention (scores are per image)
            r0 = img * S_pad                               # sublane-aligned static slice
            q_img = q_all[r0:r0 + S_pad, :]
            k_img = k_all[r0:r0 + S_pad, :]
            v_img = v_all[r0:r0 + S_pad, :]
            acc = jnp.zeros((S_pad, d), jnp.float32)
            for h in range(n_heads):
                hm = head_masks[h]
                qh = jnp.where(hm, q_img, 0.0)             # masked full-width operands:
                kh = jnp.where(hm, k_img, 0.0)             #   no per-head relayout, output
                vh = jnp.where(hm, v_img, 0.0)             #   lands in its hstack() columns
                # q @ k^T without materializing k^T; padded key rows masked to -1e30.
                s = lax.dot_general(qh, kh, (((1,), (1,)), ((), ())),
                                    preferred_element_type=jnp.float32) * scale + key_neg
                m = jnp.max(s, axis=-1, keepdims=True)
                e = jnp.exp(s - m)
                att = e * pl.reciprocal(jnp.sum(e, axis=-1, keepdims=True), approx=True)
                acc = acc + jnp.dot(att, vh, preferred_element_type=jnp.float32)
            msa_rows.append(acc)
        msa = msa_rows[0] if block_images == 1 else jnp.concatenate(msa_rows, axis=0)
        x = x + msa                                       # residual 1

        # --- MLP (batch folded into M) ---
        xn2 = _layernorm(x, g2, b2, eps)
        h1 = jnp.dot(xn2, wm1_ref[blk],
                     preferred_element_type=jnp.float32) + bm1_ref[blk]       # (BS, 4d)
        h1 = _gelu_exact(h1)
        h2 = jnp.dot(h1, wm2_ref[blk],
                     preferred_element_type=jnp.float32) + bm2_ref[blk]       # (BS, d)
        x = x + h2                                        # residual 2

    # ---- classification head -----------------------------------------------------
    # Gather the class-token row of every image with a one-hot selector matmul (MXU,
    # no strided sublane gather), then project to a lane-dense 128-wide logits slab.
    cls_tok = jnp.dot(sel_ref[...], x, preferred_element_type=jnp.float32)    # (B_blk, d)
    logits = jnp.dot(cls_tok, whead_ref[...],
                     preferred_element_type=jnp.float32) + bhead_ref[...]     # (B_blk, out_pad)
    lm = jnp.max(logits, axis=-1, keepdims=True)
    le = jnp.exp(logits - lm)                             # pad lanes carry bias -1e30 -> exp = 0
    probs = le / jnp.sum(le, axis=-1, keepdims=True)      # exact div for the final output
    o_ref[...] = probs.astype(o_ref.dtype)


# ----------------------------------------------------------------------------
# Wrapper: patchify + weight packing (layout plumbing) + single pallas_call.
# ----------------------------------------------------------------------------
def my_vit_pallas(images, params, *, n_patches, n_blocks, n_heads):
    """Full MyViT forward. images: (N, C, H, W). Returns (N, out_d) class probabilities."""
    N = images.shape[0]
    patches = patchify(images, n_patches)                 # (N, S-1, input_d)
    d = params["w_map"].shape[0]
    dh = d // n_heads
    out_d = params["w_head"].shape[0]
    input_d = patches.shape[2]
    S = patches.shape[1] + 1                              # true tokens: cls + patches
    S_pad = _cdiv(S, 8) * 8                               # sublane-aligned token rows

    # Block of images per grid step: fold batch into M to amortize ~0.35us/step overhead
    # and raise MXU row occupancy, but keep >= 2 grid steps so both v7x TCs get work.
    max_rows = 1024                                       # cap activation rows per step
    B_blk = max(1, min(_cdiv(N, 2), max(1, max_rows // S_pad)))
    n_steps = _cdiv(N, B_blk)
    N_pad = n_steps * B_blk
    BS = B_blk * S_pad

    # Tokens per image: [zero row for cls][patch rows][zero pad rows] -> then fold the
    # image block into the row (M) dimension: (n_steps, B_blk*S_pad, input_d).
    patches_p = jnp.pad(patches, ((0, N_pad - N), (1, S_pad - S), (0, 0)))
    patches_2d = patches_p.reshape(n_steps, BS, input_d)

    # ---- pre-transpose / pack all weights (wrapper-side layout plumbing) ----
    w_map = params["w_map"].T                             # (input_d, d)
    b_map = params["b_map"].reshape(1, d)
    cls = params["cls"].reshape(1, d)
    pos_pad = jnp.pad(params["pos"], ((0, S_pad - S), (0, 0)))        # (S_pad, d)
    pos_tab = jnp.tile(pos_pad, (B_blk, 1))                           # (BS, d)
    cls_mask = jnp.zeros((BS, 1), jnp.float32).at[
        jnp.arange(B_blk) * S_pad, 0].set(1.0)                        # 1.0 at each cls row
    sel = jnp.zeros((B_blk, BS), jnp.float32).at[
        jnp.arange(B_blk), jnp.arange(B_blk) * S_pad].set(1.0)        # one-hot cls gather

    ln_l, wqkv_l, bqkv_l, wm1_l, bm1_l, wm2_l, bm2_l = [], [], [], [], [], [], []
    for blk in range(n_blocks):
        p = params["blocks"][blk]
        ln_l.append(jnp.stack([p["g1"], p["b1"], p["g2"], p["b2"]], axis=0))   # (4, d)
        # Fused block-diagonal q/k/v: columns [0:d]=q, [d:2d]=k, [2d:3d]=v, head h in
        # rows/cols [h*dh:(h+1)*dh] of each d x d block (weights stored as (in, out)).
        wbig = jnp.zeros((d, 3 * d), jnp.float32)
        for h in range(n_heads):
            r = slice(h * dh, (h + 1) * dh)
            wbig = wbig.at[r, 0 * d + h * dh:0 * d + (h + 1) * dh].set(p["wq"][h].T)
            wbig = wbig.at[r, 1 * d + h * dh:1 * d + (h + 1) * dh].set(p["wk"][h].T)
            wbig = wbig.at[r, 2 * d + h * dh:2 * d + (h + 1) * dh].set(p["wv"][h].T)
        wqkv_l.append(wbig)
        bqkv_l.append(jnp.concatenate(
            [p["bq"].reshape(-1), p["bk"].reshape(-1), p["bv"].reshape(-1)]
        ).reshape(1, 3 * d))
        wm1_l.append(p["w1"].T)                           # (d, 4d)
        bm1_l.append(p["b1m"].reshape(1, -1))
        wm2_l.append(p["w2"].T)                           # (4d, d)
        bm2_l.append(p["b2m"].reshape(1, -1))

    ln_params = jnp.stack(ln_l)                           # (n_blocks, 4, d)
    w_qkv = jnp.stack(wqkv_l)                             # (n_blocks, d, 3d)
    b_qkv = jnp.stack(bqkv_l)                             # (n_blocks, 1, 3d)
    w_m1 = jnp.stack(wm1_l)                               # (n_blocks, d, 4d)
    b_m1 = jnp.stack(bm1_l)                               # (n_blocks, 1, 4d)
    w_m2 = jnp.stack(wm2_l)                               # (n_blocks, 4d, d)
    b_m2 = jnp.stack(bm2_l)                               # (n_blocks, 1, d)

    # Lane-dense class head: pad out_d up to a 128-lane multiple; pad-column bias = -1e30
    # so the in-kernel softmax assigns them exactly 0 probability (no extra masking op).
    out_pad = _cdiv(out_d, 128) * 128
    w_head = jnp.pad(params["w_head"].T, ((0, 0), (0, out_pad - out_d)))       # (d, out_pad)
    b_head = jnp.concatenate(
        [params["b_head"].astype(jnp.float32),
         jnp.full((out_pad - out_d,), -1e30, jnp.float32)]).reshape(1, out_pad)

    def const_spec(arr):
        # Full-extent block + constant index_map -> resident in VMEM across the grid.
        if arr.ndim == 2:
            return pl.BlockSpec(arr.shape, lambda b: (0, 0))
        return pl.BlockSpec(arr.shape, lambda b: (0, 0, 0))

    consts = (cls_mask, cls, pos_tab, w_map, b_map, ln_params, w_qkv, b_qkv,
              w_m1, b_m1, w_m2, b_m2, sel, w_head, b_head)
    in_specs = [pl.BlockSpec((None, BS, input_d), lambda b: (b, 0, 0))] + \
               [const_spec(a) for a in consts]

    # Rough cost hint for XLA scheduling around the custom call.
    flops_step = 2 * BS * input_d * d + 2 * B_blk * BS * d + 2 * B_blk * d * out_pad
    flops_step += n_blocks * (2 * BS * d * 3 * d + 2 * 2 * BS * d * 4 * d
                              + B_blk * n_heads * 2 * 2 * S_pad * S_pad * d)
    trans_step = n_blocks * (B_blk * n_heads * S_pad * S_pad + BS * 4 * d) + B_blk * out_pad
    bytes_step = (BS * input_d + sum(int(np.prod(a.shape)) for a in consts)
                  + B_blk * out_pad) * 4
    ce = pl.CostEstimate(flops=n_steps * flops_step,
                         transcendentals=n_steps * trans_step,
                         bytes_accessed=n_steps * bytes_step)

    out = pl.pallas_call(
        functools.partial(vit_forward_kernel, n_blocks=n_blocks, n_heads=n_heads,
                          d_head=dh, n_tokens=S, tokens_pad=S_pad,
                          block_images=B_blk, eps=1e-5),
        out_shape=jax.ShapeDtypeStruct((n_steps, B_blk, out_pad), jnp.float32),
        grid_spec=pltpu.PrefetchScalarGridSpec(
            num_scalar_prefetch=0,
            grid=(n_steps,),
            in_specs=in_specs,
            out_specs=pl.BlockSpec((None, B_blk, out_pad), lambda b: (b, 0, 0)),
        ),
        compiler_params=pltpu.CompilerParams(dimension_semantics=("parallel",)),
        cost_estimate=ce,
    )(patches_2d, *consts)
    return out.reshape(N_pad, out_pad)[:N, :out_d]


# ----------------------------------------------------------------------------
# Pure-JAX reference mirroring the PyTorch module loop-for-loop.
# ----------------------------------------------------------------------------
def _layernorm_ref(x, g, b, eps=1e-5):
    mu = jnp.mean(x, axis=-1, keepdims=True)
    var = jnp.mean((x - mu) ** 2, axis=-1, keepdims=True)
    return (x - mu) / jnp.sqrt(var + eps) * g + b


def my_vit_ref(images, params, *, n_patches, n_blocks, n_heads):
    N = images.shape[0]
    patches = patchify(images, n_patches)
    d = params["w_map"].shape[0]
    dh = d // n_heads
    tokens = patches @ params["w_map"].T + params["b_map"]
    cls = jnp.broadcast_to(params["cls"][None], (N, 1, d))
    x = jnp.concatenate([cls, tokens], axis=1) + params["pos"][None]
    for blk in range(n_blocks):
        p = params["blocks"][blk]
        xn = _layernorm_ref(x, p["g1"], p["b1"])
        seq_results = []
        for b in range(N):
            heads = []
            for h in range(n_heads):
                seq = xn[b, :, h * dh:(h + 1) * dh]
                q = seq @ p["wq"][h].T + p["bq"][h]
                k = seq @ p["wk"][h].T + p["bk"][h]
                v = seq @ p["wv"][h].T + p["bv"][h]
                att = jax.nn.softmax(q @ k.T / (dh ** 0.5), axis=-1)
                heads.append(att @ v)
            seq_results.append(jnp.concatenate(heads, axis=-1))
        x = x + jnp.stack(seq_results, axis=0)
        xn2 = _layernorm_ref(x, p["g2"], p["b2"])
        h1 = jax.nn.gelu(xn2 @ p["w1"].T + p["b1m"], approximate=False)
        x = x + h1 @ p["w2"].T + p["b2m"]
    logits = x[:, 0] @ params["w_head"].T + params["b_head"]
    return jax.nn.softmax(logits, axis=-1)


if __name__ == "__main__":
    # Small config consistent with the module: 16x16 images, 4 channels, 4x4 patches,
    # hidden_d=32, 2 heads, 2 blocks, 10 classes -> S = 17 tokens, input_d = 64.
    # N = 8 so the batched grid (B_blk = 4 images/step, 2 steps for v7x) is exercised.
    N = 8
    chw = (4, 16, 16)
    n_patches = 4
    n_blocks = 2
    hidden_d = 32
    n_heads = 2
    out_d = 10
    mlp_ratio = 4
    d_head = hidden_d // n_heads
    patch = chw[1] // n_patches
    input_d = chw[0] * patch * patch
    S = n_patches ** 2 + 1

    key = jax.random.PRNGKey(0)
    keys = iter(jax.random.split(key, 64))

    def lin_init(k, shape, fan_in):
        bound = 1.0 / float(np.sqrt(fan_in))
        return jax.random.uniform(k, shape, jnp.float32, -bound, bound)

    blocks = []
    for _ in range(n_blocks):
        blocks.append(dict(
            g1=1.0 + 0.05 * jax.random.normal(next(keys), (hidden_d,), jnp.float32),
            b1=0.05 * jax.random.normal(next(keys), (hidden_d,), jnp.float32),
            g2=1.0 + 0.05 * jax.random.normal(next(keys), (hidden_d,), jnp.float32),
            b2=0.05 * jax.random.normal(next(keys), (hidden_d,), jnp.float32),
            wq=lin_init(next(keys), (n_heads, d_head, d_head), d_head),
            bq=lin_init(next(keys), (n_heads, d_head), d_head),
            wk=lin_init(next(keys), (n_heads, d_head, d_head), d_head),
            bk=lin_init(next(keys), (n_heads, d_head), d_head),
            wv=lin_init(next(keys), (n_heads, d_head, d_head), d_head),
            bv=lin_init(next(keys), (n_heads, d_head), d_head),
            w1=lin_init(next(keys), (mlp_ratio * hidden_d, hidden_d), hidden_d),
            b1m=lin_init(next(keys), (mlp_ratio * hidden_d,), hidden_d),
            w2=lin_init(next(keys), (hidden_d, mlp_ratio * hidden_d), mlp_ratio * hidden_d),
            b2m=lin_init(next(keys), (hidden_d,), mlp_ratio * hidden_d),
        ))

    params = dict(
        w_map=lin_init(next(keys), (hidden_d, input_d), input_d),
        b_map=lin_init(next(keys), (hidden_d,), input_d),
        cls=jax.random.uniform(next(keys), (1, hidden_d), jnp.float32),   # torch.rand
        pos=get_positional_embeddings(S, hidden_d),
        blocks=blocks,
        w_head=lin_init(next(keys), (out_d, hidden_d), hidden_d),
        b_head=lin_init(next(keys), (out_d,), hidden_d),
    )

    images = jax.random.normal(next(keys), (N,) + chw, jnp.float32)

    out = my_vit_pallas(images, params, n_patches=n_patches,
                        n_blocks=n_blocks, n_heads=n_heads)
    out = jax.block_until_ready(out)

    with jax.default_matmul_precision("highest"):
        ref = my_vit_ref(images, params, n_patches=n_patches,
                         n_blocks=n_blocks, n_heads=n_heads)
    ref = jax.block_until_ready(ref)

    assert out.shape == (N, out_d)
    # Tolerance accounts for the approximate EUP reciprocal in the attention softmax and
    # the polynomial erf (both << 1e-3 on [0,1]-scale probabilities).
    assert jnp.allclose(out, ref, atol=1e-3, rtol=1e-3), float(jnp.max(jnp.abs(out - ref)))

    print("KERNEL_OK")
</pallas_src>

<mosaic_0001>
module attributes {stable_mosaic.version = 11 : i64} {
  func.func @vit_forward_kernel(%arg0: i32, %arg1: memref<1x96x64xf32, #tpu.memory_space<vmem>>, %arg2: memref<96x1xf32, #tpu.memory_space<vmem>>, %arg3: memref<1x32xf32, #tpu.memory_space<vmem>>, %arg4: memref<96x32xf32, #tpu.memory_space<vmem>>, %arg5: memref<64x32xf32, #tpu.memory_space<vmem>>, %arg6: memref<1x32xf32, #tpu.memory_space<vmem>>, %arg7: memref<2x4x32xf32, #tpu.memory_space<vmem>>, %arg8: memref<2x32x96xf32, #tpu.memory_space<vmem>>, %arg9: memref<2x1x96xf32, #tpu.memory_space<vmem>>, %arg10: memref<2x32x128xf32, #tpu.memory_space<vmem>>, %arg11: memref<2x1x128xf32, #tpu.memory_space<vmem>>, %arg12: memref<2x128x32xf32, #tpu.memory_space<vmem>>, %arg13: memref<2x1x32xf32, #tpu.memory_space<vmem>>, %arg14: memref<4x96xf32, #tpu.memory_space<vmem>>, %arg15: memref<32x128xf32, #tpu.memory_space<vmem>>, %arg16: memref<1x128xf32, #tpu.memory_space<vmem>>, %arg17: memref<1x4x128xf32, #tpu.memory_space<vmem>>) attributes {dimension_semantics = [#tpu.dimension_semantics<parallel>], iteration_bounds = array<i64: 2>, scalar_prefetch = 0 : i64, scratch_operands = 0 : i64, tpu.core_type = #tpu.core_type<tc>, window_params = [{transform_indices = @transform_0, window_bounds = array<i64: 1, 96, 64>}, {pipeline_mode = #tpu.pipeline_mode<synchronous>, transform_indices = @transform_1, window_bounds = array<i64: 96, 1>}, {pipeline_mode = #tpu.pipeline_mode<synchronous>, transform_indices = @transform_2, window_bounds = array<i64: 1, 32>}, {pipeline_mode = #tpu.pipeline_mode<synchronous>, transform_indices = @transform_3, window_bounds = array<i64: 96, 32>}, {pipeline_mode = #tpu.pipeline_mode<synchronous>, transform_indices = @transform_4, window_bounds = array<i64: 64, 32>}, {pipeline_mode = #tpu.pipeline_mode<synchronous>, transform_indices = @transform_5, window_bounds = array<i64: 1, 32>}, {pipeline_mode = #tpu.pipeline_mode<synchronous>, transform_indices = @transform_6, window_bounds = array<i64: 2, 4, 32>}, {pipeline_mode = #tpu.pipeline_mode<synchronous>, transform_indices = @transform_7, window_bounds = array<i64: 2, 32, 96>}, {pipeline_mode = #tpu.pipeline_mode<synchronous>, transform_indices = @transform_8, window_bounds = array<i64: 2, 1, 96>}, {pipeline_mode = #tpu.pipeline_mode<synchronous>, transform_indices = @transform_9, window_bounds = array<i64: 2, 32, 128>}, {pipeline_mode = #tpu.pipeline_mode<synchronous>, transform_indices = @transform_10, window_bounds = array<i64: 2, 1, 128>}, {pipeline_mode = #tpu.pipeline_mode<synchronous>, transform_indices = @transform_11, window_bounds = array<i64: 2, 128, 32>}, {pipeline_mode = #tpu.pipeline_mode<synchronous>, transform_indices = @transform_12, window_bounds = array<i64: 2, 1, 32>}, {pipeline_mode = #tpu.pipeline_mode<synchronous>, transform_indices = @transform_13, window_bounds = array<i64: 4, 96>}, {pipeline_mode = #tpu.pipeline_mode<synchronous>, transform_indices = @transform_14, window_bounds = array<i64: 32, 128>}, {pipeline_mode = #tpu.pipeline_mode<synchronous>, transform_indices = @transform_15, window_bounds = array<i64: 1, 128>}, {transform_indices = @transform_16, window_bounds = array<i64: 1, 4, 128>}]} {
    %c0 = arith.constant 0 : index
    %c0_0 = arith.constant 0 : index
    %c0_1 = arith.constant 0 : index
    %0 = vector.load %arg1[%c0, %c0_0, %c0_1] : memref<1x96x64xf32, #tpu.memory_space<vmem>>, vector<1x96x64xf32>
    %1 = vector.shape_cast %0 : vector<1x96x64xf32> to vector<96x64xf32>
    %c0_2 = arith.constant 0 : index
    %c0_3 = arith.constant 0 : index
    %2 = vector.load %arg5[%c0_2, %c0_3] : memref<64x32xf32, #tpu.memory_space<vmem>>, vector<64x32xf32>
    %cst = arith.constant dense<0.000000e+00> : vector<96x32xf32>
    %3 = tpu.matmul %1, %2, %cst {dimension_numbers = #tpu.dot_dimension_numbers<[1], [0], [0], [1], [0, 0, 1, 1], [], []>} : vector<96x64xf32>, vector<64x32xf32>, vector<96x32xf32> -> vector<96x32xf32>
    %c0_4 = arith.constant 0 : index
    %c0_5 = arith.constant 0 : index
    %4 = vector.load %arg6[%c0_4, %c0_5] : memref<1x32xf32, #tpu.memory_space<vmem>>, vector<1x32xf32>
    %5 = vector.broadcast %4 : vector<1x32xf32> to vector<96x32xf32>
    %6 = arith.addf %3, %5 : vector<96x32xf32>
    %c0_6 = arith.constant 0 : index
    %c0_7 = arith.constant 0 : index
    %7 = vector.load %arg2[%c0_6, %c0_7] : memref<96x1xf32, #tpu.memory_space<vmem>>, vector<96x1xf32>
    %cst_8 = arith.constant 5.000000e-01 : f32
    %8 = vector.broadcast %cst_8 : f32 to vector<96x1xf32>
    %9 = arith.cmpf ogt, %7, %8 : vector<96x1xf32>
    %c0_9 = arith.constant 0 : index
    %c0_10 = arith.constant 0 : index
    %10 = vector.load %arg3[%c0_9, %c0_10] : memref<1x32xf32, #tpu.memory_space<vmem>>, vector<1x32xf32>
    %11 = vector.shape_cast %9 : vector<96x1xi1> to vector<96x1xi1>
    %12 = vector.broadcast %11 : vector<96x1xi1> to vector<96x32xi1>
    %13 = vector.shape_cast %10 : vector<1x32xf32> to vector<1x32xf32>
    %14 = vector.broadcast %13 : vector<1x32xf32> to vector<96x32xf32>
    %15 = arith.select %12, %14, %6 : vector<96x32xi1>, vector<96x32xf32>
    %c0_11 = arith.constant 0 : index
    %c0_12 = arith.constant 0 : index
    %16 = vector.load %arg4[%c0_11, %c0_12] : memref<96x32xf32, #tpu.memory_space<vmem>>, vector<96x32xf32>
    %17 = arith.addf %15, %16 : vector<96x32xf32>
    %18 = tpu.iota {dimensions = array<i32: 1>} : vector<1x32xi32>
    %c0_i32 = arith.constant 0 : i32
    %19 = vector.broadcast %c0_i32 : i32 to vector<1x32xi32>
    %20 = arith.cmpi sge, %18, %19 : vector<1x32xi32>
    %c16_i32 = arith.constant 16 : i32
    %21 = vector.broadcast %c16_i32 : i32 to vector<1x32xi32>
    %22 = arith.cmpi slt, %18, %21 : vector<1x32xi32>
    %23 = arith.andi %20, %22 : vector<1x32xi1>
    %c16_i32_13 = arith.constant 16 : i32
    %24 = vector.broadcast %c16_i32_13 : i32 to vector<1x32xi32>
    %25 = arith.cmpi sge, %18, %24 : vector<1x32xi32>
    %c32_i32 = arith.constant 32 : i32
    %26 = vector.broadcast %c32_i32 : i32 to vector<1x32xi32>
    %27 = arith.cmpi slt, %18, %26 : vector<1x32xi32>
    %28 = arith.andi %25, %27 : vector<1x32xi1>
    %29 = tpu.iota {dimensions = array<i32: 1>} : vector<1x24xi32>
    %c17_i32 = arith.constant 17 : i32
    %30 = vector.broadcast %c17_i32 : i32 to vector<1x24xi32>
    %31 = arith.cmpi sge, %29, %30 : vector<1x24xi32>
    %cst_14 = arith.constant -1.000000e+30 : f32
    %cst_15 = arith.constant 0.000000e+00 : f32
    %32 = vector.broadcast %cst_14 : f32 to vector<1x24xf32>
    %33 = vector.broadcast %cst_15 : f32 to vector<1x24xf32>
    %34 = arith.select %31, %32, %33 : vector<1x24xi1>, vector<1x24xf32>
    %c0_16 = arith.constant 0 : index
    %c0_17 = arith.constant 0 : index
    %c0_18 = arith.constant 0 : index
    %35 = vector.load %arg7[%c0_16, %c0_17, %c0_18] : memref<2x4x32xf32, #tpu.memory_space<vmem>>, vector<1x4x32xf32>
    %36 = vector.shape_cast %35 : vector<1x4x32xf32> to vector<4x32xf32>
    %37 = vector.extract_strided_slice %36 {offsets = [0, 0], sizes = [1, 32], strides = [1, 1]} : vector<4x32xf32> to vector<1x32xf32>
    %38 = vector.extract_strided_slice %36 {offsets = [1, 0], sizes = [1, 32], strides = [1, 1]} : vector<4x32xf32> to vector<1x32xf32>
    %39 = vector.extract_strided_slice %36 {offsets = [2, 0], sizes = [1, 32], strides = [1, 1]} : vector<4x32xf32> to vector<1x32xf32>
    %40 = vector.extract_strided_slice %36 {offsets = [3, 0], sizes = [1, 32], strides = [1, 1]} : vector<4x32xf32> to vector<1x32xf32>
    %cst_19 = arith.constant dense<0.000000e+00> : vector<96xf32>
    %41 = vector.multi_reduction <add>, %17, %cst_19 [1] : vector<96x32xf32> to vector<96xf32>
    %42 = vector.shape_cast %41 : vector<96xf32> to vector<96x1xf32>
    %cst_20 = arith.constant 3.200000e+01 : f32
    %43 = vector.broadcast %cst_20 : f32 to vector<96x1xf32>
    %44 = arith.divf %42, %43 : vector<96x1xf32>
    %45 = vector.broadcast %44 : vector<96x1xf32> to vector<96x32xf32>
    %46 = arith.subf %17, %45 : vector<96x32xf32>
    %47 = arith.mulf %46, %46 : vector<96x32xf32>
    %cst_21 = arith.constant dense<0.000000e+00> : vector<96xf32>
    %48 = vector.multi_reduction <add>, %47, %cst_21 [1] : vector<96x32xf32> to vector<96xf32>
    %49 = vector.shape_cast %48 : vector<96xf32> to vector<96x1xf32>
    %cst_22 = arith.constant 3.200000e+01 : f32
    %50 = vector.broadcast %cst_22 : f32 to vector<96x1xf32>
    %51 = arith.divf %49, %50 : vector<96x1xf32>
    %cst_23 = arith.constant 9.99999974E-6 : f32
    %52 = vector.broadcast %cst_23 : f32 to vector<96x1xf32>
    %53 = arith.addf %51, %52 : vector<96x1xf32>
    %54 = math.rsqrt %53 : vector<96x1xf32>
    %55 = vector.broadcast %54 : vector<96x1xf32> to vector<96x32xf32>
    %56 = arith.mulf %46, %55 : vector<96x32xf32>
    %57 = vector.broadcast %37 : vector<1x32xf32> to vector<96x32xf32>
    %58 = arith.mulf %56, %57 : vector<96x32xf32>
    %59 = vector.broadcast %38 : vector<1x32xf32> to vector<96x32xf32>
    %60 = arith.addf %58, %59 : vector<96x32xf32>
    %c0_24 = arith.constant 0 : index
    %c0_25 = arith.constant 0 : index
    %c0_26 = arith.constant 0 : index
    %61 = vector.load %arg8[%c0_24, %c0_25, %c0_26] : memref<2x32x96xf32, #tpu.memory_space<vmem>>, vector<1x32x96xf32>
    %62 = vector.shape_cast %61 : vector<1x32x96xf32> to vector<32x96xf32>
    %cst_27 = arith.constant dense<0.000000e+00> : vector<96x96xf32>
    %63 = tpu.matmul %60, %62, %cst_27 {dimension_numbers = #tpu.dot_dimension_numbers<[1], [0], [0], [1], [0, 0, 1, 1], [], []>} : vector<96x32xf32>, vector<32x96xf32>, vector<96x96xf32> -> vector<96x96xf32>
    %c0_28 = arith.constant 0 : index
    %c0_29 = arith.constant 0 : index
    %c0_30 = arith.constant 0 : index
    %64 = vector.load %arg9[%c0_28, %c0_29, %c0_30] : memref<2x1x96xf32, #tpu.memory_space<vmem>>, vector<1x1x96xf32>
    %65 = vector.shape_cast %64 : vector<1x1x96xf32> to vector<1x96xf32>
    %66 = vector.broadcast %65 : vector<1x96xf32> to vector<96x96xf32>
    %67 = arith.addf %63, %66 : vector<96x96xf32>
    %68 = vector.extract_strided_slice %67 {offsets = [0, 0], sizes = [96, 32], strides = [1, 1]} : vector<96x96xf32> to vector<96x32xf32>
    %69 = vector.extract_strided_slice %67 {offsets = [0, 32], sizes = [96, 32], strides = [1, 1]} : vector<96x96xf32> to vector<96x32xf32>
    %70 = vector.extract_strided_slice %67 {offsets = [0, 64], sizes = [96, 32], strides = [1, 1]} : vector<96x96xf32> to vector<96x32xf32>
    %71 = vector.extract_strided_slice %68 {offsets = [0, 0], sizes = [24, 32], strides = [1, 1]} : vector<96x32xf32> to vector<24x32xf32>
    %72 = vector.extract_strided_slice %69 {offsets = [0, 0], sizes = [24, 32], strides = [1, 1]} : vector<96x32xf32> to vector<24x32xf32>
    %73 = vector.extract_strided_slice %70 {offsets = [0, 0], sizes = [24, 32], strides = [1, 1]} : vector<96x32xf32> to vector<24x32xf32>
    %cst_31 = arith.constant 0.000000e+00 : f32
    %74 = vector.broadcast %cst_31 : f32 to vector<24x32xf32>
    %cst_32 = arith.constant 0.000000e+00 : f32
    %75 = vector.shape_cast %23 : vector<1x32xi1> to vector<1x32xi1>
    %76 = vector.broadcast %75 : vector<1x32xi1> to vector<24x32xi1>
    %77 = vector.broadcast %cst_32 : f32 to vector<24x32xf32>
    %78 = arith.select %76, %71, %77 : vector<24x32xi1>, vector<24x32xf32>
    %cst_33 = arith.constant 0.000000e+00 : f32
    %79 = vector.shape_cast %23 : vector<1x32xi1> to vector<1x32xi1>
    %80 = vector.broadcast %79 : vector<1x32xi1> to vector<24x32xi1>
    %81 = vector.broadcast %cst_33 : f32 to vector<24x32xf32>
    %82 = arith.select %80, %72, %81 : vector<24x32xi1>, vector<24x32xf32>
    %cst_34 = arith.constant 0.000000e+00 : f32
    %83 = vector.shape_cast %23 : vector<1x32xi1> to vector<1x32xi1>
    %84 = vector.broadcast %83 : vector<1x32xi1> to vector<24x32xi1>
    %85 = vector.broadcast %cst_34 : f32 to vector<24x32xf32>
    %86 = arith.select %84, %73, %85 : vector<24x32xi1>, vector<24x32xf32>
    %cst_35 = arith.constant dense<0.000000e+00> : vector<24x24xf32>
    %87 = tpu.matmul %78, %82, %cst_35 {dimension_numbers = #tpu.dot_dimension_numbers<[1], [1], [0], [0], [0, 0, 1, 0], [], []>} : vector<24x32xf32>, vector<24x32xf32>, vector<24x24xf32> -> vector<24x24xf32>
    %cst_36 = arith.constant 2.500000e-01 : f32
    %88 = vector.broadcast %cst_36 : f32 to vector<24x24xf32>
    %89 = arith.mulf %87, %88 : vector<24x24xf32>
    %90 = vector.broadcast %34 : vector<1x24xf32> to vector<24x24xf32>
    %91 = arith.addf %89, %90 : vector<24x24xf32>
    %cst_37 = arith.constant dense<0xFF800000> : vector<24xf32>
    %92 = vector.multi_reduction <maximumf>, %91, %cst_37 [1] : vector<24x24xf32> to vector<24xf32>
    %93 = vector.shape_cast %92 : vector<24xf32> to vector<24x1xf32>
    %94 = vector.broadcast %93 : vector<24x1xf32> to vector<24x24xf32>
    %95 = arith.subf %91, %94 : vector<24x24xf32>
    %96 = math.exp %95 : vector<24x24xf32>
    %cst_38 = arith.constant dense<0.000000e+00> : vector<24xf32>
    %97 = vector.multi_reduction <add>, %96, %cst_38 [1] : vector<24x24xf32> to vector<24xf32>
    %98 = vector.shape_cast %97 : vector<24xf32> to vector<24x1xf32>
    %99 = tpu.reciprocal %98 {approx = true} : vector<24x1xf32> -> vector<24x1xf32>
    %100 = vector.broadcast %99 : vector<24x1xf32> to vector<24x24xf32>
    %101 = arith.mulf %96, %100 : vector<24x24xf32>
    %cst_39 = arith.constant dense<0.000000e+00> : vector<24x32xf32>
    %102 = tpu.matmul %101, %86, %cst_39 {dimension_numbers = #tpu.dot_dimension_numbers<[1], [0], [0], [1], [0, 0, 1, 1], [], []>} : vector<24x24xf32>, vector<24x32xf32>, vector<24x32xf32> -> vector<24x32xf32>
    %103 = arith.addf %74, %102 : vector<24x32xf32>
    %cst_40 = arith.constant 0.000000e+00 : f32
    %104 = vector.shape_cast %28 : vector<1x32xi1> to vector<1x32xi1>
    %105 = vector.broadcast %104 : vector<1x32xi1> to vector<24x32xi1>
    %106 = vector.broadcast %cst_40 : f32 to vector<24x32xf32>
    %107 = arith.select %105, %71, %106 : vector<24x32xi1>, vector<24x32xf32>
    %cst_41 = arith.constant 0.000000e+00 : f32
    %108 = vector.shape_cast %28 : vector<1x32xi1> to vector<1x32xi1>
    %109 = vector.broadcast %108 : vector<1x32xi1> to vector<24x32xi1>
    %110 = vector.broadcast %cst_41 : f32 to vector<24x32xf32>
    %111 = arith.select %109, %72, %110 : vector<24x32xi1>, vector<24x32xf32>
    %cst_42 = arith.constant 0.000000e+00 : f32
    %112 = vector.shape_cast %28 : vector<1x32xi1> to vector<1x32xi1>
    %113 = vector.broadcast %112 : vector<1x32xi1> to vector<24x32xi1>
    %114 = vector.broadcast %cst_42 : f32 to vector<24x32xf32>
    %115 = arith.select %113, %73, %114 : vector<24x32xi1>, vector<24x32xf32>
    %cst_43 = arith.constant dense<0.000000e+00> : vector<24x24xf32>
    %116 = tpu.matmul %107, %111, %cst_43 {dimension_numbers = #tpu.dot_dimension_numbers<[1], [1], [0], [0], [0, 0, 1, 0], [], []>} : vector<24x32xf32>, vector<24x32xf32>, vector<24x24xf32> -> vector<24x24xf32>
    %cst_44 = arith.constant 2.500000e-01 : f32
    %117 = vector.broadcast %cst_44 : f32 to vector<24x24xf32>
    %118 = arith.mulf %116, %117 : vector<24x24xf32>
    %119 = vector.broadcast %34 : vector<1x24xf32> to vector<24x24xf32>
    %120 = arith.addf %118, %119 : vector<24x24xf32>
    %cst_45 = arith.constant dense<0xFF800000> : vector<24xf32>
    %121 = vector.multi_reduction <maximumf>, %120, %cst_45 [1] : vector<24x24xf32> to vector<24xf32>
    %122 = vector.shape_cast %121 : vector<24xf32> to vector<24x1xf32>
    %123 = vector.broadcast %122 : vector<24x1xf32> to vector<24x24xf32>
    %124 = arith.subf %120, %123 : vector<24x24xf32>
    %125 = math.exp %124 : vector<24x24xf32>
    %cst_46 = arith.constant dense<0.000000e+00> : vector<24xf32>
    %126 = vector.multi_reduction <add>, %125, %cst_46 [1] : vector<24x24xf32> to vector<24xf32>
    %127 = vector.shape_cast %126 : vector<24xf32> to vector<24x1xf32>
    %128 = tpu.reciprocal %127 {approx = true} : vector<24x1xf32> -> vector<24x1xf32>
    %129 = vector.broadcast %128 : vector<24x1xf32> to vector<24x24xf32>
    %130 = arith.mulf %125, %129 : vector<24x24xf32>
    %cst_47 = arith.constant dense<0.000000e+00> : vector<24x32xf32>
    %131 = tpu.matmul %130, %115, %cst_47 {dimension_numbers = #tpu.dot_dimension_numbers<[1], [0], [0], [1], [0, 0, 1, 1], [], []>} : vector<24x24xf32>, vector<24x32xf32>, vector<24x32xf32> -> vector<24x32xf32>
    %132 = arith.addf %103, %131 : vector<24x32xf32>
    %133 = vector.extract_strided_slice %68 {offsets = [24, 0], sizes = [24, 32], strides = [1, 1]} : vector<96x32xf32> to vector<24x32xf32>
    %134 = vector.extract_strided_slice %69 {offsets = [24, 0], sizes = [24, 32], strides = [1, 1]} : vector<96x32xf32> to vector<24x32xf32>
    %135 = vector.extract_strided_slice %70 {offsets = [24, 0], sizes = [24, 32], strides = [1, 1]} : vector<96x32xf32> to vector<24x32xf32>
    %cst_48 = arith.constant 0.000000e+00 : f32
    %136 = vector.broadcast %cst_48 : f32 to vector<24x32xf32>
    %cst_49 = arith.constant 0.000000e+00 : f32
    %137 = vector.shape_cast %23 : vector<1x32xi1> to vector<1x32xi1>
    %138 = vector.broadcast %137 : vector<1x32xi1> to vector<24x32xi1>
    %139 = vector.broadcast %cst_49 : f32 to vector<24x32xf32>
    %140 = arith.select %138, %133, %139 : vector<24x32xi1>, vector<24x32xf32>
    %cst_50 = arith.constant 0.000000e+00 : f32
    %141 = vector.shape_cast %23 : vector<1x32xi1> to vector<1x32xi1>
    %142 = vector.broadcast %141 : vector<1x32xi1> to vector<24x32xi1>
    %143 = vector.broadcast %cst_50 : f32 to vector<24x32xf32>
    %144 = arith.select %142, %134, %143 : vector<24x32xi1>, vector<24x32xf32>
    %cst_51 = arith.constant 0.000000e+00 : f32
    %145 = vector.shape_cast %23 : vector<1x32xi1> to vector<1x32xi1>
    %146 = vector.broadcast %145 : vector<1x32xi1> to vector<24x32xi1>
    %147 = vector.broadcast %cst_51 : f32 to vector<24x32xf32>
    %148 = arith.select %146, %135, %147 : vector<24x32xi1>, vector<24x32xf32>
    %cst_52 = arith.constant dense<0.000000e+00> : vector<24x24xf32>
    %149 = tpu.matmul %140, %144, %cst_52 {dimension_numbers = #tpu.dot_dimension_numbers<[1], [1], [0], [0], [0, 0, 1, 0], [], []>} : vector<24x32xf32>, vector<24x32xf32>, vector<24x24xf32> -> vector<24x24xf32>
    %cst_53 = arith.constant 2.500000e-01 : f32
    %150 = vector.broadcast %cst_53 : f32 to vector<24x24xf32>
    %151 = arith.mulf %149, %150 : vector<24x24xf32>
    %152 = vector.broadcast %34 : vector<1x24xf32> to vector<24x24xf32>
    %153 = arith.addf %151, %152 : vector<24x24xf32>
    %cst_54 = arith.constant dense<0xFF800000> : vector<24xf32>
    %154 = vector.multi_reduction <maximumf>, %153, %cst_54 [1] : vector<24x24xf32> to vector<24xf32>
    %155 = vector.shape_cast %154 : vector<24xf32> to vector<24x1xf32>
    %156 = vector.broadcast %155 : vector<24x1xf32> to vector<24x24xf32>
    %157 = arith.subf %153, %156 : vector<24x24xf32>
    %158 = math.exp %157 : vector<24x24xf32>
    %cst_55 = arith.constant dense<0.000000e+00> : vector<24xf32>
    %159 = vector.multi_reduction <add>, %158, %cst_55 [1] : vector<24x24xf32> to vector<24xf32>
    %160 = vector.shape_cast %159 : vector<24xf32> to vector<24x1xf32>
    %161 = tpu.reciprocal %160 {approx = true} : vector<24x1xf32> -> vector<24x1xf32>
    %162 = vector.broadcast %161 : vector<24x1xf32> to vector<24x24xf32>
    %163 = arith.mulf %158, %162 : vector<24x24xf32>
    %cst_56 = arith.constant dense<0.000000e+00> : vector<24x32xf32>
    %164 = tpu.matmul %163, %148, %cst_56 {dimension_numbers = #tpu.dot_dimension_numbers<[1], [0], [0], [1], [0, 0, 1, 1], [], []>} : vector<24x24xf32>, vector<24x32xf32>, vector<24x32xf32> -> vector<24x32xf32>
    %165 = arith.addf %136, %164 : vector<24x32xf32>
    %cst_57 = arith.constant 0.000000e+00 : f32
    %166 = vector.shape_cast %28 : vector<1x32xi1> to vector<1x32xi1>
    %167 = vector.broadcast %166 : vector<1x32xi1> to vector<24x32xi1>
    %168 = vector.broadcast %cst_57 : f32 to vector<24x32xf32>
    %169 = arith.select %167, %133, %168 : vector<24x32xi1>, vector<24x32xf32>
    %cst_58 = arith.constant 0.000000e+00 : f32
    %170 = vector.shape_cast %28 : vector<1x32xi1> to vector<1x32xi1>
    %171 = vector.broadcast %170 : vector<1x32xi1> to vector<24x32xi1>
    %172 = vector.broadcast %cst_58 : f32 to vector<24x32xf32>
    %173 = arith.select %171, %134, %172 : vector<24x32xi1>, vector<24x32xf32>
    %cst_59 = arith.constant 0.000000e+00 : f32
    %174 = vector.shape_cast %28 : vector<1x32xi1> to vector<1x32xi1>
    %175 = vector.broadcast %174 : vector<1x32xi1> to vector<24x32xi1>
    %176 = vector.broadcast %cst_59 : f32 to vector<24x32xf32>
    %177 = arith.select %175, %135, %176 : vector<24x32xi1>, vector<24x32xf32>
    %cst_60 = arith.constant dense<0.000000e+00> : vector<24x24xf32>
    %178 = tpu.matmul %169, %173, %cst_60 {dimension_numbers = #tpu.dot_dimension_numbers<[1], [1], [0], [0], [0, 0, 1, 0], [], []>} : vector<24x32xf32>, vector<24x32xf32>, vector<24x24xf32> -> vector<24x24xf32>
    %cst_61 = arith.constant 2.500000e-01 : f32
    %179 = vector.broadcast %cst_61 : f32 to vector<24x24xf32>
    %180 = arith.mulf %178, %179 : vector<24x24xf32>
    %181 = vector.broadcast %34 : vector<1x24xf32> to vector<24x24xf32>
    %182 = arith.addf %180, %181 : vector<24x24xf32>
    %cst_62 = arith.constant dense<0xFF800000> : vector<24xf32>
    %183 = vector.multi_reduction <maximumf>, %182, %cst_62 [1] : vector<24x24xf32> to vector<24xf32>
    %184 = vector.shape_cast %183 : vector<24xf32> to vector<24x1xf32>
    %185 = vector.broadcast %184 : vector<24x1xf32> to vector<24x24xf32>
    %186 = arith.subf %182, %185 : vector<24x24xf32>
    %187 = math.exp %186 : vector<24x24xf32>
    %cst_63 = arith.constant dense<0.000000e+00> : vector<24xf32>
    %188 = vector.multi_reduction <add>, %187, %cst_63 [1] : vector<24x24xf32> to vector<24xf32>
    %189 = vector.shape_cast %188 : vector<24xf32> to vector<24x1xf32>
    %190 = tpu.reciprocal %189 {approx = true} : vector<24x1xf32> -> vector<24x1xf32>
    %191 = vector.broadcast %190 : vector<24x1xf32> to vector<24x24xf32>
    %192 = arith.mulf %187, %191 : vector<24x24xf32>
    %cst_64 = arith.constant dense<0.000000e+00> : vector<24x32xf32>
    %193 = tpu.matmul %192, %177, %cst_64 {dimension_numbers = #tpu.dot_dimension_numbers<[1], [0], [0], [1], [0, 0, 1, 1], [], []>} : vector<24x24xf32>, vector<24x32xf32>, vector<24x32xf32> -> vector<24x32xf32>
    %194 = arith.addf %165, %193 : vector<24x32xf32>
    %195 = vector.extract_strided_slice %68 {offsets = [48, 0], sizes = [24, 32], strides = [1, 1]} : vector<96x32xf32> to vector<24x32xf32>
    %196 = vector.extract_strided_slice %69 {offsets = [48, 0], sizes = [24, 32], strides = [1, 1]} : vector<96x32xf32> to vector<24x32xf32>
    %197 = vector.extract_strided_slice %70 {offsets = [48, 0], sizes = [24, 32], strides = [1, 1]} : vector<96x32xf32> to vector<24x32xf32>
    %cst_65 = arith.constant 0.000000e+00 : f32
    %198 = vector.broadcast %cst_65 : f32 to vector<24x32xf32>
    %cst_66 = arith.constant 0.000000e+00 : f32
    %199 = vector.shape_cast %23 : vector<1x32xi1> to vector<1x32xi1>
    %200 = vector.broadcast %199 : vector<1x32xi1> to vector<24x32xi1>
    %201 = vector.broadcast %cst_66 : f32 to vector<24x32xf32>
    %202 = arith.select %200, %195, %201 : vector<24x32xi1>, vector<24x32xf32>
    %cst_67 = arith.constant 0.000000e+00 : f32
    %203 = vector.shape_cast %23 : vector<1x32xi1> to vector<1x32xi1>
    %204 = vector.broadcast %203 : vector<1x32xi1> to vector<24x32xi1>
    %205 = vector.broadcast %cst_67 : f32 to vector<24x32xf32>
    %206 = arith.select %204, %196, %205 : vector<24x32xi1>, vector<24x32xf32>
    %cst_68 = arith.constant 0.000000e+00 : f32
    %207 = vector.shape_cast %23 : vector<1x32xi1> to vector<1x32xi1>
    %208 = vector.broadcast %207 : vector<1x32xi1> to vector<24x32xi1>
    %209 = vector.broadcast %cst_68 : f32 to vector<24x32xf32>
    %210 = arith.select %208, %197, %209 : vector<24x32xi1>, vector<24x32xf32>
    %cst_69 = arith.constant dense<0.000000e+00> : vector<24x24xf32>
    %211 = tpu.matmul %202, %206, %cst_69 {dimension_numbers = #tpu.dot_dimension_numbers<[1], [1], [0], [0], [0, 0, 1, 0], [], []>} : vector<24x32xf32>, vector<24x32xf32>, vector<24x24xf32> -> vector<24x24xf32>
    %cst_70 = arith.constant 2.500000e-01 : f32
    %212 = vector.broadcast %cst_70 : f32 to vector<24x24xf32>
    %213 = arith.mulf %211, %212 : vector<24x24xf32>
    %214 = vector.broadcast %34 : vector<1x24xf32> to vector<24x24xf32>
    %215 = arith.addf %213, %214 : vector<24x24xf32>
    %cst_71 = arith.constant dense<0xFF800000> : vector<24xf32>
    %216 = vector.multi_reduction <maximumf>, %215, %cst_71 [1] : vector<24x24xf32> to vector<24xf32>
    %217 = vector.shape_cast %216 : vector<24xf32> to vector<24x1xf32>
    %218 = vector.broadcast %217 : vector<24x1xf32> to vector<24x24xf32>
    %219 = arith.subf %215, %218 : vector<24x24xf32>
    %220 = math.exp %219 : vector<24x24xf32>
    %cst_72 = arith.constant dense<0.000000e+00> : vector<24xf32>
    %221 = vector.multi_reduction <add>, %220, %cst_72 [1] : vector<24x24xf32> to vector<24xf32>
    %222 = vector.shape_cast %221 : vector<24xf32> to vector<24x1xf32>
    %223 = tpu.reciprocal %222 {approx = true} : vector<24x1xf32> -> vector<24x1xf32>
    %224 = vector.broadcast %223 : vector<24x1xf32> to vector<24x24xf32>
    %225 = arith.mulf %220, %224 : vector<24x24xf32>
    %cst_73 = arith.constant dense<0.000000e+00> : vector<24x32xf32>
    %226 = tpu.matmul %225, %210, %cst_73 {dimension_numbers = #tpu.dot_dimension_numbers<[1], [0], [0], [1], [0, 0, 1, 1], [], []>} : vector<24x24xf32>, vector<24x32xf32>, vector<24x32xf32> -> vector<24x32xf32>
    %227 = arith.addf %198, %226 : vector<24x32xf32>
    %cst_74 = arith.constant 0.000000e+00 : f32
    %228 = vector.shape_cast %28 : vector<1x32xi1> to vector<1x32xi1>
    %229 = vector.broadcast %228 : vector<1x32xi1> to vector<24x32xi1>
    %230 = vector.broadcast %cst_74 : f32 to vector<24x32xf32>
    %231 = arith.select %229, %195, %230 : vector<24x32xi1>, vector<24x32xf32>
    %cst_75 = arith.constant 0.000000e+00 : f32
    %232 = vector.shape_cast %28 : vector<1x32xi1> to vector<1x32xi1>
    %233 = vector.broadcast %232 : vector<1x32xi1> to vector<24x32xi1>
    %234 = vector.broadcast %cst_75 : f32 to vector<24x32xf32>
    %235 = arith.select %233, %196, %234 : vector<24x32xi1>, vector<24x32xf32>
    %cst_76 = arith.constant 0.000000e+00 : f32
    %236 = vector.shape_cast %28 : vector<1x32xi1> to vector<1x32xi1>
    %237 = vector.broadcast %236 : vector<1x32xi1> to vector<24x32xi1>
    %238 = vector.broadcast %cst_76 : f32 to vector<24x32xf32>
    %239 = arith.select %237, %197, %238 : vector<24x32xi1>, vector<24x32xf32>
    %cst_77 = arith.constant dense<0.000000e+00> : vector<24x24xf32>
    %240 = tpu.matmul %231, %235, %cst_77 {dimension_numbers = #tpu.dot_dimension_numbers<[1], [1], [0], [0], [0, 0, 1, 0], [], []>} : vector<24x32xf32>, vector<24x32xf32>, vector<24x24xf32> -> vector<24x24xf32>
    %cst_78 = arith.constant 2.500000e-01 : f32
    %241 = vector.broadcast %cst_78 : f32 to vector<24x24xf32>
    %242 = arith.mulf %240, %241 : vector<24x24xf32>
    %243 = vector.broadcast %34 : vector<1x24xf32> to vector<24x24xf32>
    %244 = arith.addf %242, %243 : vector<24x24xf32>
    %cst_79 = arith.constant dense<0xFF800000> : vector<24xf32>
    %245 = vector.multi_reduction <maximumf>, %244, %cst_79 [1] : vector<24x24xf32> to vector<24xf32>
    %246 = vector.shape_cast %245 : vector<24xf32> to vector<24x1xf32>
    %247 = vector.broadcast %246 : vector<24x1xf32> to vector<24x24xf32>
    %248 = arith.subf %244, %247 : vector<24x24xf32>
    %249 = math.exp %248 : vector<24x24xf32>
    %cst_80 = arith.constant dense<0.000000e+00> : vector<24xf32>
    %250 = vector.multi_reduction <add>, %249, %cst_80 [1] : vector<24x24xf32> to vector<24xf32>
    %251 = vector.shape_cast %250 : vector<24xf32> to vector<24x1xf32>
    %252 = tpu.reciprocal %251 {approx = true} : vector<24x1xf32> -> vector<24x1xf32>
    %253 = vector.broadcast %252 : vector<24x1xf32> to vector<24x24xf32>
    %254 = arith.mulf %249, %253 : vector<24x24xf32>
    %cst_81 = arith.constant dense<0.000000e+00> : vector<24x32xf32>
    %255 = tpu.matmul %254, %239, %cst_81 {dimension_numbers = #tpu.dot_dimension_numbers<[1], [0], [0], [1], [0, 0, 1, 1], [], []>} : vector<24x24xf32>, vector<24x32xf32>, vector<24x32xf32> -> vector<24x32xf32>
    %256 = arith.addf %227, %255 : vector<24x32xf32>
    %257 = vector.extract_strided_slice %68 {offsets = [72, 0], sizes = [24, 32], strides = [1, 1]} : vector<96x32xf32> to vector<24x32xf32>
    %258 = vector.extract_strided_slice %69 {offsets = [72, 0], sizes = [24, 32], strides = [1, 1]} : vector<96x32xf32> to vector<24x32xf32>
    %259 = vector.extract_strided_slice %70 {offsets = [72, 0], sizes = [24, 32], strides = [1, 1]} : vector<96x32xf32> to vector<24x32xf32>
    %cst_82 = arith.constant 0.000000e+00 : f32
    %260 = vector.broadcast %cst_82 : f32 to vector<24x32xf32>
    %cst_83 = arith.constant 0.000000e+00 : f32
    %261 = vector.shape_cast %23 : vector<1x32xi1> to vector<1x32xi1>
    %262 = vector.broadcast %261 : vector<1x32xi1> to vector<24x32xi1>
    %263 = vector.broadcast %cst_83 : f32 to vector<24x32xf32>
    %264 = arith.select %262, %257, %263 : vector<24x32xi1>, vector<24x32xf32>
    %cst_84 = arith.constant 0.000000e+00 : f32
    %265 = vector.shape_cast %23 : vector<1x32xi1> to vector<1x32xi1>
    %266 = vector.broadcast %265 : vector<1x32xi1> to vector<24x32xi1>
    %267 = vector.broadcast %cst_84 : f32 to vector<24x32xf32>
    %268 = arith.select %266, %258, %267 : vector<24x32xi1>, vector<24x32xf32>
    %cst_85 = arith.constant 0.000000e+00 : f32
    %269 = vector.shape_cast %23 : vector<1x32xi1> to vector<1x32xi1>
    %270 = vector.broadcast %269 : vector<1x32xi1> to vector<24x32xi1>
    %271 = vector.broadcast %cst_85 : f32 to vector<24x32xf32>
    %272 = arith.select %270, %259, %271 : vector<24x32xi1>, vector<24x32xf32>
    %cst_86 = arith.constant dense<0.000000e+00> : vector<24x24xf32>
    %273 = tpu.matmul %264, %268, %cst_86 {dimension_numbers = #tpu.dot_dimension_numbers<[1], [1], [0], [0], [0, 0, 1, 0], [], []>} : vector<24x32xf32>, vector<24x32xf32>, vector<24x24xf32> -> vector<24x24xf32>
    %cst_87 = arith.constant 2.500000e-01 : f32
    %274 = vector.broadcast %cst_87 : f32 to vector<24x24xf32>
    %275 = arith.mulf %273, %274 : vector<24x24xf32>
    %276 = vector.broadcast %34 : vector<1x24xf32> to vector<24x24xf32>
    %277 = arith.addf %275, %276 : vector<24x24xf32>
    %cst_88 = arith.constant dense<0xFF800000> : vector<24xf32>
    %278 = vector.multi_reduction <maximumf>, %277, %cst_88 [1] : vector<24x24xf32> to vector<24xf32>
    %279 = vector.shape_cast %278 : vector<24xf32> to vector<24x1xf32>
    %280 = vector.broadcast %279 : vector<24x1xf32> to vector<24x24xf32>
    %281 = arith.subf %277, %280 : vector<24x24xf32>
    %282 = math.exp %281 : vector<24x24xf32>
    %cst_89 = arith.constant dense<0.000000e+00> : vector<24xf32>
    %283 = vector.multi_reduction <add>, %282, %cst_89 [1] : vector<24x24xf32> to vector<24xf32>
    %284 = vector.shape_cast %283 : vector<24xf32> to vector<24x1xf32>
    %285 = tpu.reciprocal %284 {approx = true} : vector<24x1xf32> -> vector<24x1xf32>
    %286 = vector.broadcast %285 : vector<24x1xf32> to vector<24x24xf32>
    %287 = arith.mulf %282, %286 : vector<24x24xf32>
    %cst_90 = arith.constant dense<0.000000e+00> : vector<24x32xf32>
    %288 = tpu.matmul %287, %272, %cst_90 {dimension_numbers = #tpu.dot_dimension_numbers<[1], [0], [0], [1], [0, 0, 1, 1], [], []>} : vector<24x24xf32>, vector<24x32xf32>, vector<24x32xf32> -> vector<24x32xf32>
    %289 = arith.addf %260, %288 : vector<24x32xf32>
    %cst_91 = arith.constant 0.000000e+00 : f32
    %290 = vector.shape_cast %28 : vector<1x32xi1> to vector<1x32xi1>
    %291 = vector.broadcast %290 : vector<1x32xi1> to vector<24x32xi1>
    %292 = vector.broadcast %cst_91 : f32 to vector<24x32xf32>
    %293 = arith.select %291, %257, %292 : vector<24x32xi1>, vector<24x32xf32>
    %cst_92 = arith.constant 0.000000e+00 : f32
    %294 = vector.shape_cast %28 : vector<1x32xi1> to vector<1x32xi1>
    %295 = vector.broadcast %294 : vector<1x32xi1> to vector<24x32xi1>
    %296 = vector.broadcast %cst_92 : f32 to vector<24x32xf32>
    %297 = arith.select %295, %258, %296 : vector<24x32xi1>, vector<24x32xf32>
    %cst_93 = arith.constant 0.000000e+00 : f32
    %298 = vector.shape_cast %28 : vector<1x32xi1> to vector<1x32xi1>
    %299 = vector.broadcast %298 : vector<1x32xi1> to vector<24x32xi1>
    %300 = vector.broadcast %cst_93 : f32 to vector<24x32xf32>
    %301 = arith.select %299, %259, %300 : vector<24x32xi1>, vector<24x32xf32>
    %cst_94 = arith.constant dense<0.000000e+00> : vector<24x24xf32>
    %302 = tpu.matmul %293, %297, %cst_94 {dimension_numbers = #tpu.dot_dimension_numbers<[1], [1], [0], [0], [0, 0, 1, 0], [], []>} : vector<24x32xf32>, vector<24x32xf32>, vector<24x24xf32> -> vector<24x24xf32>
    %cst_95 = arith.constant 2.500000e-01 : f32
    %303 = vector.broadcast %cst_95 : f32 to vector<24x24xf32>
    %304 = arith.mulf %302, %303 : vector<24x24xf32>
    %305 = vector.broadcast %34 : vector<1x24xf32> to vector<24x24xf32>
    %306 = arith.addf %304, %305 : vector<24x24xf32>
    %cst_96 = arith.constant dense<0xFF800000> : vector<24xf32>
    %307 = vector.multi_reduction <maximumf>, %306, %cst_96 [1] : vector<24x24xf32> to vector<24xf32>
    %308 = vector.shape_cast %307 : vector<24xf32> to vector<24x1xf32>
    %309 = vector.broadcast %308 : vector<24x1xf32> to vector<24x24xf32>
    %310 = arith.subf %306, %309 : vector<24x24xf32>
    %311 = math.exp %310 : vector<24x24xf32>
    %cst_97 = arith.constant dense<0.000000e+00> : vector<24xf32>
    %312 = vector.multi_reduction <add>, %311, %cst_97 [1] : vector<24x24xf32> to vector<24xf32>
    %313 = vector.shape_cast %312 : vector<24xf32> to vector<24x1xf32>
    %314 = tpu.reciprocal %313 {approx = true} : vector<24x1xf32> -> vector<24x1xf32>
    %315 = vector.broadcast %314 : vector<24x1xf32> to vector<24x24xf32>
    %316 = arith.mulf %311, %315 : vector<24x24xf32>
    %cst_98 = arith.constant dense<0.000000e+00> : vector<24x32xf32>
    %317 = tpu.matmul %316, %301, %cst_98 {dimension_numbers = #tpu.dot_dimension_numbers<[1], [0], [0], [1], [0, 0, 1, 1], [], []>} : vector<24x24xf32>, vector<24x32xf32>, vector<24x32xf32> -> vector<24x32xf32>
    %318 = arith.addf %289, %317 : vector<24x32xf32>
    %319 = tpu.concatenate %132, %194, %256, %318 in 0 : vector<24x32xf32>, vector<24x32xf32>, vector<24x32xf32>, vector<24x32xf32> -> vector<96x32xf32>
    %320 = arith.addf %17, %319 : vector<96x32xf32>
    %cst_99 = arith.constant dense<0.000000e+00> : vector<96xf32>
    %321 = vector.multi_reduction <add>, %320, %cst_99 [1] : vector<96x32xf32> to vector<96xf32>
    %322 = vector.shape_cast %321 : vector<96xf32> to vector<96x1xf32>
    %cst_100 = arith.constant 3.200000e+01 : f32
    %323 = vector.broadcast %cst_100 : f32 to vector<96x1xf32>
    %324 = arith.divf %322, %323 : vector<96x1xf32>
    %325 = vector.broadcast %324 : vector<96x1xf32> to vector<96x32xf32>
    %326 = arith.subf %320, %325 : vector<96x32xf32>
    %327 = arith.mulf %326, %326 : vector<96x32xf32>
    %cst_101 = arith.constant dense<0.000000e+00> : vector<96xf32>
    %328 = vector.multi_reduction <add>, %327, %cst_101 [1] : vector<96x32xf32> to vector<96xf32>
    %329 = vector.shape_cast %328 : vector<96xf32> to vector<96x1xf32>
    %cst_102 = arith.constant 3.200000e+01 : f32
    %330 = vector.broadcast %cst_102 : f32 to vector<96x1xf32>
    %331 = arith.divf %329, %330 : vector<96x1xf32>
    %cst_103 = arith.constant 9.99999974E-6 : f32
    %332 = vector.broadcast %cst_103 : f32 to vector<96x1xf32>
    %333 = arith.addf %331, %332 : vector<96x1xf32>
    %334 = math.rsqrt %333 : vector<96x1xf32>
    %335 = vector.broadcast %334 : vector<96x1xf32> to vector<96x32xf32>
    %336 = arith.mulf %326, %335 : vector<96x32xf32>
    %337 = vector.broadcast %39 : vector<1x32xf32> to vector<96x32xf32>
    %338 = arith.mulf %336, %337 : vector<96x32xf32>
    %339 = vector.broadcast %40 : vector<1x32xf32> to vector<96x32xf32>
    %340 = arith.addf %338, %339 : vector<96x32xf32>
    %c0_104 = arith.constant 0 : index
    %c0_105 = arith.constant 0 : index
    %c0_106 = arith.constant 0 : index
    %341 = vector.load %arg10[%c0_104, %c0_105, %c0_106] : memref<2x32x128xf32, #tpu.memory_space<vmem>>, vector<1x32x128xf32>
    %342 = vector.shape_cast %341 : vector<1x32x128xf32> to vector<32x128xf32>
    %cst_107 = arith.constant dense<0.000000e+00> : vector<96x128xf32>
    %343 = tpu.matmul %340, %342, %cst_107 {dimension_numbers = #tpu.dot_dimension_numbers<[1], [0], [0], [1], [0, 0, 1, 1], [], []>} : vector<96x32xf32>, vector<32x128xf32>, vector<96x128xf32> -> vector<96x128xf32>
    %c0_108 = arith.constant 0 : index
    %c0_109 = arith.constant 0 : index
    %c0_110 = arith.constant 0 : index
    %344 = vector.load %arg11[%c0_108, %c0_109, %c0_110] : memref<2x1x128xf32, #tpu.memory_space<vmem>>, vector<1x1x128xf32>
    %345 = vector.shape_cast %344 : vector<1x1x128xf32> to vector<1x128xf32>
    %346 = vector.broadcast %345 : vector<1x128xf32> to vector<96x128xf32>
    %347 = arith.addf %343, %346 : vector<96x128xf32>
    %cst_111 = arith.constant 5.000000e-01 : f32
    %348 = vector.broadcast %cst_111 : f32 to vector<96x128xf32>
    %349 = arith.mulf %348, %347 : vector<96x128xf32>
    %cst_112 = arith.constant 0.707106769 : f32
    %350 = vector.broadcast %cst_112 : f32 to vector<96x128xf32>
    %351 = arith.mulf %347, %350 : vector<96x128xf32>
    %352 = math.absf %351 : vector<96x128xf32>
    %cst_113 = arith.constant 0.327591091 : f32
    %353 = vector.broadcast %cst_113 : f32 to vector<96x128xf32>
    %354 = arith.mulf %353, %352 : vector<96x128xf32>
    %cst_114 = arith.constant 1.000000e+00 : f32
    %355 = vector.broadcast %cst_114 : f32 to vector<96x128xf32>
    %356 = arith.addf %355, %354 : vector<96x128xf32>
    %cst_115 = arith.constant 1.000000e+00 : f32
    %357 = vector.broadcast %cst_115 : f32 to vector<96x128xf32>
    %358 = arith.divf %357, %356 : vector<96x128xf32>
    %cst_116 = arith.constant 1.06140542 : f32
    %359 = vector.broadcast %cst_116 : f32 to vector<96x128xf32>
    %360 = arith.mulf %359, %358 : vector<96x128xf32>
    %cst_117 = arith.constant -1.45315206 : f32
    %361 = vector.broadcast %cst_117 : f32 to vector<96x128xf32>
    %362 = arith.addf %360, %361 : vector<96x128xf32>
    %363 = arith.mulf %362, %358 : vector<96x128xf32>
    %cst_118 = arith.constant 1.42141378 : f32
    %364 = vector.broadcast %cst_118 : f32 to vector<96x128xf32>
    %365 = arith.addf %363, %364 : vector<96x128xf32>
    %366 = arith.mulf %365, %358 : vector<96x128xf32>
    %cst_119 = arith.constant -0.284496725 : f32
    %367 = vector.broadcast %cst_119 : f32 to vector<96x128xf32>
    %368 = arith.addf %366, %367 : vector<96x128xf32>
    %369 = arith.mulf %368, %358 : vector<96x128xf32>
    %cst_120 = arith.constant 0.254829586 : f32
    %370 = vector.broadcast %cst_120 : f32 to vector<96x128xf32>
    %371 = arith.addf %369, %370 : vector<96x128xf32>
    %372 = arith.mulf %371, %358 : vector<96x128xf32>
    %cst_121 = arith.constant 0.000000e+00 : f32
    %373 = vector.broadcast %cst_121 : f32 to vector<96x128xf32>
    %374 = arith.subf %373, %352 : vector<96x128xf32>
    %375 = arith.mulf %374, %352 : vector<96x128xf32>
    %376 = math.exp %375 : vector<96x128xf32>
    %377 = arith.mulf %372, %376 : vector<96x128xf32>
    %cst_122 = arith.constant 1.000000e+00 : f32
    %378 = vector.broadcast %cst_122 : f32 to vector<96x128xf32>
    %379 = arith.subf %378, %377 : vector<96x128xf32>
    %cst_123 = arith.constant 0.000000e+00 : f32
    %380 = vector.broadcast %cst_123 : f32 to vector<96x128xf32>
    %381 = arith.cmpf oge, %351, %380 : vector<96x128xf32>
    %cst_124 = arith.constant 0.000000e+00 : f32
    %382 = vector.broadcast %cst_124 : f32 to vector<96x128xf32>
    %383 = arith.subf %382, %379 : vector<96x128xf32>
    %384 = arith.select %381, %379, %383 : vector<96x128xi1>, vector<96x128xf32>
    %cst_125 = arith.constant 1.000000e+00 : f32
    %385 = vector.broadcast %cst_125 : f32 to vector<96x128xf32>
    %386 = arith.addf %385, %384 : vector<96x128xf32>
    %387 = arith.mulf %349, %386 : vector<96x128xf32>
    %c0_126 = arith.constant 0 : index
    %c0_127 = arith.constant 0 : index
    %c0_128 = arith.constant 0 : index
    %388 = vector.load %arg12[%c0_126, %c0_127, %c0_128] : memref<2x128x32xf32, #tpu.memory_space<vmem>>, vector<1x128x32xf32>
    %389 = vector.shape_cast %388 : vector<1x128x32xf32> to vector<128x32xf32>
    %cst_129 = arith.constant dense<0.000000e+00> : vector<96x32xf32>
    %390 = tpu.matmul %387, %389, %cst_129 {dimension_numbers = #tpu.dot_dimension_numbers<[1], [0], [0], [1], [0, 0, 1, 1], [], []>} : vector<96x128xf32>, vector<128x32xf32>, vector<96x32xf32> -> vector<96x32xf32>
    %c0_130 = arith.constant 0 : index
    %c0_131 = arith.constant 0 : index
    %c0_132 = arith.constant 0 : index
    %391 = vector.load %arg13[%c0_130, %c0_131, %c0_132] : memref<2x1x32xf32, #tpu.memory_space<vmem>>, vector<1x1x32xf32>
    %392 = vector.shape_cast %391 : vector<1x1x32xf32> to vector<1x32xf32>
    %393 = vector.broadcast %392 : vector<1x32xf32> to vector<96x32xf32>
    %394 = arith.addf %390, %393 : vector<96x32xf32>
    %395 = arith.addf %320, %394 : vector<96x32xf32>
    %c1 = arith.constant 1 : index
    %c0_133 = arith.constant 0 : index
    %c0_134 = arith.constant 0 : index
    %396 = vector.load %arg7[%c1, %c0_133, %c0_134] : memref<2x4x32xf32, #tpu.memory_space<vmem>>, vector<1x4x32xf32>
    %397 = vector.shape_cast %396 : vector<1x4x32xf32> to vector<4x32xf32>
    %398 = vector.extract_strided_slice %397 {offsets = [0, 0], sizes = [1, 32], strides = [1, 1]} : vector<4x32xf32> to vector<1x32xf32>
    %399 = vector.extract_strided_slice %397 {offsets = [1, 0], sizes = [1, 32], strides = [1, 1]} : vector<4x32xf32> to vector<1x32xf32>
    %400 = vector.extract_strided_slice %397 {offsets = [2, 0], sizes = [1, 32], strides = [1, 1]} : vector<4x32xf32> to vector<1x32xf32>
    %401 = vector.extract_strided_slice %397 {offsets = [3, 0], sizes = [1, 32], strides = [1, 1]} : vector<4x32xf32> to vector<1x32xf32>
    %cst_135 = arith.constant dense<0.000000e+00> : vector<96xf32>
    %402 = vector.multi_reduction <add>, %395, %cst_135 [1] : vector<96x32xf32> to vector<96xf32>
    %403 = vector.shape_cast %402 : vector<96xf32> to vector<96x1xf32>
    %cst_136 = arith.constant 3.200000e+01 : f32
    %404 = vector.broadcast %cst_136 : f32 to vector<96x1xf32>
    %405 = arith.divf %403, %404 : vector<96x1xf32>
    %406 = vector.broadcast %405 : vector<96x1xf32> to vector<96x32xf32>
    %407 = arith.subf %395, %406 : vector<96x32xf32>
    %408 = arith.mulf %407, %407 : vector<96x32xf32>
    %cst_137 = arith.constant dense<0.000000e+00> : vector<96xf32>
    %409 = vector.multi_reduction <add>, %408, %cst_137 [1] : vector<96x32xf32> to vector<96xf32>
    %410 = vector.shape_cast %409 : vector<96xf32> to vector<96x1xf32>
    %cst_138 = arith.constant 3.200000e+01 : f32
    %411 = vector.broadcast %cst_138 : f32 to vector<96x1xf32>
    %412 = arith.divf %410, %411 : vector<96x1xf32>
    %cst_139 = arith.constant 9.99999974E-6 : f32
    %413 = vector.broadcast %cst_139 : f32 to vector<96x1xf32>
    %414 = arith.addf %412, %413 : vector<96x1xf32>
    %415 = math.rsqrt %414 : vector<96x1xf32>
    %416 = vector.broadcast %415 : vector<96x1xf32> to vector<96x32xf32>
    %417 = arith.mulf %407, %416 : vector<96x32xf32>
    %418 = vector.broadcast %398 : vector<1x32xf32> to vector<96x32xf32>
    %419 = arith.mulf %417, %418 : vector<96x32xf32>
    %420 = vector.broadcast %399 : vector<1x32xf32> to vector<96x32xf32>
    %421 = arith.addf %419, %420 : vector<96x32xf32>
    %c1_140 = arith.constant 1 : index
    %c0_141 = arith.constant 0 : index
    %c0_142 = arith.constant 0 : index
    %422 = vector.load %arg8[%c1_140, %c0_141, %c0_142] : memref<2x32x96xf32, #tpu.memory_space<vmem>>, vector<1x32x96xf32>
    %423 = vector.shape_cast %422 : vector<1x32x96xf32> to vector<32x96xf32>
    %cst_143 = arith.constant dense<0.000000e+00> : vector<96x96xf32>
    %424 = tpu.matmul %421, %423, %cst_143 {dimension_numbers = #tpu.dot_dimension_numbers<[1], [0], [0], [1], [0, 0, 1, 1], [], []>} : vector<96x32xf32>, vector<32x96xf32>, vector<96x96xf32> -> vector<96x96xf32>
    %c1_144 = arith.constant 1 : index
    %c0_145 = arith.constant 0 : index
    %c0_146 = arith.constant 0 : index
    %425 = vector.load %arg9[%c1_144, %c0_145, %c0_146] : memref<2x1x96xf32, #tpu.memory_space<vmem>>, vector<1x1x96xf32>
    %426 = vector.shape_cast %425 : vector<1x1x96xf32> to vector<1x96xf32>
    %427 = vector.broadcast %426 : vector<1x96xf32> to vector<96x96xf32>
    %428 = arith.addf %424, %427 : vector<96x96xf32>
    %429 = vector.extract_strided_slice %428 {offsets = [0, 0], sizes = [96, 32], strides = [1, 1]} : vector<96x96xf32> to vector<96x32xf32>
    %430 = vector.extract_strided_slice %428 {offsets = [0, 32], sizes = [96, 32], strides = [1, 1]} : vector<96x96xf32> to vector<96x32xf32>
    %431 = vector.extract_strided_slice %428 {offsets = [0, 64], sizes = [96, 32], strides = [1, 1]} : vector<96x96xf32> to vector<96x32xf32>
    %432 = vector.extract_strided_slice %429 {offsets = [0, 0], sizes = [24, 32], strides = [1, 1]} : vector<96x32xf32> to vector<24x32xf32>
    %433 = vector.extract_strided_slice %430 {offsets = [0, 0], sizes = [24, 32], strides = [1, 1]} : vector<96x32xf32> to vector<24x32xf32>
    %434 = vector.extract_strided_slice %431 {offsets = [0, 0], sizes = [24, 32], strides = [1, 1]} : vector<96x32xf32> to vector<24x32xf32>
    %cst_147 = arith.constant 0.000000e+00 : f32
    %435 = vector.broadcast %cst_147 : f32 to vector<24x32xf32>
    %cst_148 = arith.constant 0.000000e+00 : f32
    %436 = vector.shape_cast %23 : vector<1x32xi1> to vector<1x32xi1>
    %437 = vector.broadcast %436 : vector<1x32xi1> to vector<24x32xi1>
    %438 = vector.broadcast %cst_148 : f32 to vector<24x32xf32>
    %439 = arith.select %437, %432, %438 : vector<24x32xi1>, vector<24x32xf32>
    %cst_149 = arith.constant 0.000000e+00 : f32
    %440 = vector.shape_cast %23 : vector<1x32xi1> to vector<1x32xi1>
    %441 = vector.broadcast %440 : vector<1x32xi1> to vector<24x32xi1>
    %442 = vector.broadcast %cst_149 : f32 to vector<24x32xf32>
    %443 = arith.select %441, %433, %442 : vector<24x32xi1>, vector<24x32xf32>
    %cst_150 = arith.constant 0.000000e+00 : f32
    %444 = vector.shape_cast %23 : vector<1x32xi1> to vector<1x32xi1>
    %445 = vector.broadcast %444 : vector<1x32xi1> to vector<24x32xi1>
    %446 = vector.broadcast %cst_150 : f32 to vector<24x32xf32>
    %447 = arith.select %445, %434, %446 : vector<24x32xi1>, vector<24x32xf32>
    %cst_151 = arith.constant dense<0.000000e+00> : vector<24x24xf32>
    %448 = tpu.matmul %439, %443, %cst_151 {dimension_numbers = #tpu.dot_dimension_numbers<[1], [1], [0], [0], [0, 0, 1, 0], [], []>} : vector<24x32xf32>, vector<24x32xf32>, vector<24x24xf32> -> vector<24x24xf32>
    %cst_152 = arith.constant 2.500000e-01 : f32
    %449 = vector.broadcast %cst_152 : f32 to vector<24x24xf32>
    %450 = arith.mulf %448, %449 : vector<24x24xf32>
    %451 = vector.broadcast %34 : vector<1x24xf32> to vector<24x24xf32>
    %452 = arith.addf %450, %451 : vector<24x24xf32>
    %cst_153 = arith.constant dense<0xFF800000> : vector<24xf32>
    %453 = vector.multi_reduction <maximumf>, %452, %cst_153 [1] : vector<24x24xf32> to vector<24xf32>
    %454 = vector.shape_cast %453 : vector<24xf32> to vector<24x1xf32>
    %455 = vector.broadcast %454 : vector<24x1xf32> to vector<24x24xf32>
    %456 = arith.subf %452, %455 : vector<24x24xf32>
    %457 = math.exp %456 : vector<24x24xf32>
    %cst_154 = arith.constant dense<0.000000e+00> : vector<24xf32>
    %458 = vector.multi_reduction <add>, %457, %cst_154 [1] : vector<24x24xf32> to vector<24xf32>
    %459 = vector.shape_cast %458 : vector<24xf32> to vector<24x1xf32>
    %460 = tpu.reciprocal %459 {approx = true} : vector<24x1xf32> -> vector<24x1xf32>
    %461 = vector.broadcast %460 : vector<24x1xf32> to vector<24x24xf32>
    %462 = arith.mulf %457, %461 : vector<24x24xf32>
    %cst_155 = arith.constant dense<0.000000e+00> : vector<24x32xf32>
    %463 = tpu.matmul %462, %447, %cst_155 {dimension_numbers = #tpu.dot_dimension_numbers<[1], [0], [0], [1], [0, 0, 1, 1], [], []>} : vector<24x24xf32>, vector<24x32xf32>, vector<24x32xf32> -> vector<24x32xf32>
    %464 = arith.addf %435, %463 : vector<24x32xf32>
    %cst_156 = arith.constant 0.000000e+00 : f32
    %465 = vector.shape_cast %28 : vector<1x32xi1> to vector<1x32xi1>
    %466 = vector.broadcast %465 : vector<1x32xi1> to vector<24x32xi1>
    %467 = vector.broadcast %cst_156 : f32 to vector<24x32xf32>
    %468 = arith.select %466, %432, %467 : vector<24x32xi1>, vector<24x32xf32>
    %cst_157 = arith.constant 0.000000e+00 : f32
    %469 = vector.shape_cast %28 : vector<1x32xi1> to vector<1x32xi1>
    %470 = vector.broadcast %469 : vector<1x32xi1> to vector<24x32xi1>
    %471 = vector.broadcast %cst_157 : f32 to vector<24x32xf32>
    %472 = arith.select %470, %433, %471 : vector<24x32xi1>, vector<24x32xf32>
    %cst_158 = arith.constant 0.000000e+00 : f32
    %473 = vector.shape_cast %28 : vector<1x32xi1> to vector<1x32xi1>
    %474 = vector.broadcast %473 : vector<1x32xi1> to vector<24x32xi1>
    %475 = vector.broadcast %cst_158 : f32 to vector<24x32xf32>
    %476 = arith.select %474, %434, %475 : vector<24x32xi1>, vector<24x32xf32>
    %cst_159 = arith.constant dense<0.000000e+00> : vector<24x24xf32>
    %477 = tpu.matmul %468, %472, %cst_159 {dimension_numbers = #tpu.dot_dimension_numbers<[1], [1], [0], [0], [0, 0, 1, 0], [], []>} : vector<24x32xf32>, vector<24x32xf32>, vector<24x24xf32> -> vector<24x24xf32>
    %cst_160 = arith.constant 2.500000e-01 : f32
    %478 = vector.broadcast %cst_160 : f32 to vector<24x24xf32>
    %479 = arith.mulf %477, %478 : vector<24x24xf32>
    %480 = vector.broadcast %34 : vector<1x24xf32> to vector<24x24xf32>
    %481 = arith.addf %479, %480 : vector<24x24xf32>
    %cst_161 = arith.constant dense<0xFF800000> : vector<24xf32>
    %482 = vector.multi_reduction <maximumf>, %481, %cst_161 [1] : vector<24x24xf32> to vector<24xf32>
    %483 = vector.shape_cast %482 : vector<24xf32> to vector<24x1xf32>
    %484 = vector.broadcast %483 : vector<24x1xf32> to vector<24x24xf32>
    %485 = arith.subf %481, %484 : vector<24x24xf32>
    %486 = math.exp %485 : vector<24x24xf32>
    %cst_162 = arith.constant dense<0.000000e+00> : vector<24xf32>
    %487 = vector.multi_reduction <add>, %486, %cst_162 [1] : vector<24x24xf32> to vector<24xf32>
    %488 = vector.shape_cast %487 : vector<24xf32> to vector<24x1xf32>
    %489 = tpu.reciprocal %488 {approx = true} : vector<24x1xf32> -> vector<24x1xf32>
    %490 = vector.broadcast %489 : vector<24x1xf32> to vector<24x24xf32>
    %491 = arith.mulf %486, %490 : vector<24x24xf32>
    %cst_163 = arith.constant dense<0.000000e+00> : vector<24x32xf32>
    %492 = tpu.matmul %491, %476, %cst_163 {dimension_numbers = #tpu.dot_dimension_numbers<[1], [0], [0], [1], [0, 0, 1, 1], [], []>} : vector<24x24xf32>, vector<24x32xf32>, vector<24x32xf32> -> vector<24x32xf32>
    %493 = arith.addf %464, %492 : vector<24x32xf32>
    %494 = vector.extract_strided_slice %429 {offsets = [24, 0], sizes = [24, 32], strides = [1, 1]} : vector<96x32xf32> to vector<24x32xf32>
    %495 = vector.extract_strided_slice %430 {offsets = [24, 0], sizes = [24, 32], strides = [1, 1]} : vector<96x32xf32> to vector<24x32xf32>
    %496 = vector.extract_strided_slice %431 {offsets = [24, 0], sizes = [24, 32], strides = [1, 1]} : vector<96x32xf32> to vector<24x32xf32>
    %cst_164 = arith.constant 0.000000e+00 : f32
    %497 = vector.broadcast %cst_164 : f32 to vector<24x32xf32>
    %cst_165 = arith.constant 0.000000e+00 : f32
    %498 = vector.shape_cast %23 : vector<1x32xi1> to vector<1x32xi1>
    %499 = vector.broadcast %498 : vector<1x32xi1> to vector<24x32xi1>
    %500 = vector.broadcast %cst_165 : f32 to vector<24x32xf32>
    %501 = arith.select %499, %494, %500 : vector<24x32xi1>, vector<24x32xf32>
    %cst_166 = arith.constant 0.000000e+00 : f32
    %502 = vector.shape_cast %23 : vector<1x32xi1> to vector<1x32xi1>
    %503 = vector.broadcast %502 : vector<1x32xi1> to vector<24x32xi1>
    %504 = vector.broadcast %cst_166 : f32 to vector<24x32xf32>
    %505 = arith.select %503, %495, %504 : vector<24x32xi1>, vector<24x32xf32>
    %cst_167 = arith.constant 0.000000e+00 : f32
    %506 = vector.shape_cast %23 : vector<1x32xi1> to vector<1x32xi1>
    %507 = vector.broadcast %506 : vector<1x32xi1> to vector<24x32xi1>
    %508 = vector.broadcast %cst_167 : f32 to vector<24x32xf32>
    %509 = arith.select %507, %496, %508 : vector<24x32xi1>, vector<24x32xf32>
    %cst_168 = arith.constant dense<0.000000e+00> : vector<24x24xf32>
    %510 = tpu.matmul %501, %505, %cst_168 {dimension_numbers = #tpu.dot_dimension_numbers<[1], [1], [0], [0], [0, 0, 1, 0], [], []>} : vector<24x32xf32>, vector<24x32xf32>, vector<24x24xf32> -> vector<24x24xf32>
    %cst_169 = arith.constant 2.500000e-01 : f32
    %511 = vector.broadcast %cst_169 : f32 to vector<24x24xf32>
    %512 = arith.mulf %510, %511 : vector<24x24xf32>
    %513 = vector.broadcast %34 : vector<1x24xf32> to vector<24x24xf32>
    %514 = arith.addf %512, %513 : vector<24x24xf32>
    %cst_170 = arith.constant dense<0xFF800000> : vector<24xf32>
    %515 = vector.multi_reduction <maximumf>, %514, %cst_170 [1] : vector<24x24xf32> to vector<24xf32>
    %516 = vector.shape_cast %515 : vector<24xf32> to vector<24x1xf32>
    %517 = vector.broadcast %516 : vector<24x1xf32> to vector<24x24xf32>
    %518 = arith.subf %514, %517 : vector<24x24xf32>
    %519 = math.exp %518 : vector<24x24xf32>
    %cst_171 = arith.constant dense<0.000000e+00> : vector<24xf32>
    %520 = vector.multi_reduction <add>, %519, %cst_171 [1] : vector<24x24xf32> to vector<24xf32>
    %521 = vector.shape_cast %520 : vector<24xf32> to vector<24x1xf32>
    %522 = tpu.reciprocal %521 {approx = true} : vector<24x1xf32> -> vector<24x1xf32>
    %523 = vector.broadcast %522 : vector<24x1xf32> to vector<24x24xf32>
    %524 = arith.mulf %519, %523 : vector<24x24xf32>
    %cst_172 = arith.constant dense<0.000000e+00> : vector<24x32xf32>
    %525 = tpu.matmul %524, %509, %cst_172 {dimension_numbers = #tpu.dot_dimension_numbers<[1], [0], [0], [1], [0, 0, 1, 1], [], []>} : vector<24x24xf32>, vector<24x32xf32>, vector<24x32xf32> -> vector<24x32xf32>
    %526 = arith.addf %497, %525 : vector<24x32xf32>
    %cst_173 = arith.constant 0.000000e+00 : f32
    %527 = vector.shape_cast %28 : vector<1x32xi1> to vector<1x32xi1>
    %528 = vector.broadcast %527 : vector<1x32xi1> to vector<24x32xi1>
    %529 = vector.broadcast %cst_173 : f32 to vector<24x32xf32>
    %530 = arith.select %528, %494, %529 : vector<24x32xi1>, vector<24x32xf32>
    %cst_174 = arith.constant 0.000000e+00 : f32
    %531 = vector.shape_cast %28 : vector<1x32xi1> to vector<1x32xi1>
    %532 = vector.broadcast %531 : vector<1x32xi1> to vector<24x32xi1>
    %533 = vector.broadcast %cst_174 : f32 to vector<24x32xf32>
    %534 = arith.select %532, %495, %533 : vector<24x32xi1>, vector<24x32xf32>
    %cst_175 = arith.constant 0.000000e+00 : f32
    %535 = vector.shape_cast %28 : vector<1x32xi1> to vector<1x32xi1>
    %536 = vector.broadcast %535 : vector<1x32xi1> to vector<24x32xi1>
    %537 = vector.broadcast %cst_175 : f32 to vector<24x32xf32>
    %538 = arith.select %536, %496, %537 : vector<24x32xi1>, vector<24x32xf32>
    %cst_176 = arith.constant dense<0.000000e+00> : vector<24x24xf32>
    %539 = tpu.matmul %530, %534, %cst_176 {dimension_numbers = #tpu.dot_dimension_numbers<[1], [1], [0], [0], [0, 0, 1, 0], [], []>} : vector<24x32xf32>, vector<24x32xf32>, vector<24x24xf32> -> vector<24x24xf32>
    %cst_177 = arith.constant 2.500000e-01 : f32
    %540 = vector.broadcast %cst_177 : f32 to vector<24x24xf32>
    %541 = arith.mulf %539, %540 : vector<24x24xf32>
    %542 = vector.broadcast %34 : vector<1x24xf32> to vector<24x24xf32>
    %543 = arith.addf %541, %542 : vector<24x24xf32>
    %cst_178 = arith.constant dense<0xFF800000> : vector<24xf32>
    %544 = vector.multi_reduction <maximumf>, %543, %cst_178 [1] : vector<24x24xf32> to vector<24xf32>
    %545 = vector.shape_cast %544 : vector<24xf32> to vector<24x1xf32>
    %546 = vector.broadcast %545 : vector<24x1xf32> to vector<24x24xf32>
    %547 = arith.subf %543, %546 : vector<24x24xf32>
    %548 = math.exp %547 : vector<24x24xf32>
    %cst_179 = arith.constant dense<0.000000e+00> : vector<24xf32>
    %549 = vector.multi_reduction <add>, %548, %cst_179 [1] : vector<24x24xf32> to vector<24xf32>
    %550 = vector.shape_cast %549 : vector<24xf32> to vector<24x1xf32>
    %551 = tpu.reciprocal %550 {approx = true} : vector<24x1xf32> -> vector<24x1xf32>
    %552 = vector.broadcast %551 : vector<24x1xf32> to vector<24x24xf32>
    %553 = arith.mulf %548, %552 : vector<24x24xf32>
    %cst_180 = arith.constant dense<0.000000e+00> : vector<24x32xf32>
    %554 = tpu.matmul %553, %538, %cst_180 {dimension_numbers = #tpu.dot_dimension_numbers<[1], [0], [0], [1], [0, 0, 1, 1], [], []>} : vector<24x24xf32>, vector<24x32xf32>, vector<24x32xf32> -> vector<24x32xf32>
    %555 = arith.addf %526, %554 : vector<24x32xf32>
    %556 = vector.extract_strided_slice %429 {offsets = [48, 0], sizes = [24, 32], strides = [1, 1]} : vector<96x32xf32> to vector<24x32xf32>
    %557 = vector.extract_strided_slice %430 {offsets = [48, 0], sizes = [24, 32], strides = [1, 1]} : vector<96x32xf32> to vector<24x32xf32>
    %558 = vector.extract_strided_slice %431 {offsets = [48, 0], sizes = [24, 32], strides = [1, 1]} : vector<96x32xf32> to vector<24x32xf32>
    %cst_181 = arith.constant 0.000000e+00 : f32
    %559 = vector.broadcast %cst_181 : f32 to vector<24x32xf32>
    %cst_182 = arith.constant 0.000000e+00 : f32
    %560 = vector.shape_cast %23 : vector<1x32xi1> to vector<1x32xi1>
    %561 = vector.broadcast %560 : vector<1x32xi1> to vector<24x32xi1>
    %562 = vector.broadcast %cst_182 : f32 to vector<24x32xf32>
    %563 = arith.select %561, %556, %562 : vector<24x32xi1>, vector<24x32xf32>
    %cst_183 = arith.constant 0.000000e+00 : f32
    %564 = vector.shape_cast %23 : vector<1x32xi1> to vector<1x32xi1>
    %565 = vector.broadcast %564 : vector<1x32xi1> to vector<24x32xi1>
    %566 = vector.broadcast %cst_183 : f32 to vector<24x32xf32>
    %567 = arith.select %565, %557, %566 : vector<24x32xi1>, vector<24x32xf32>
    %cst_184 = arith.constant 0.000000e+00 : f32
    %568 = vector.shape_cast %23 : vector<1x32xi1> to vector<1x32xi1>
    %569 = vector.broadcast %568 : vector<1x32xi1> to vector<24x32xi1>
    %570 = vector.broadcast %cst_184 : f32 to vector<24x32xf32>
    %571 = arith.select %569, %558, %570 : vector<24x32xi1>, vector<24x32xf32>
    %cst_185 = arith.constant dense<0.000000e+00> : vector<24x24xf32>
    %572 = tpu.matmul %563, %567, %cst_185 {dimension_numbers = #tpu.dot_dimension_numbers<[1], [1], [0], [0], [0, 0, 1, 0], [], []>} : vector<24x32xf32>, vector<24x32xf32>, vector<24x24xf32> -> vector<24x24xf32>
    %cst_186 = arith.constant 2.500000e-01 : f32
    %573 = vector.broadcast %cst_186 : f32 to vector<24x24xf32>
    %574 = arith.mulf %572, %573 : vector<24x24xf32>
    %575 = vector.broadcast %34 : vector<1x24xf32> to vector<24x24xf32>
    %576 = arith.addf %574, %575 : vector<24x24xf32>
    %cst_187 = arith.constant dense<0xFF800000> : vector<24xf32>
    %577 = vector.multi_reduction <maximumf>, %576, %cst_187 [1] : vector<24x24xf32> to vector<24xf32>
    %578 = vector.shape_cast %577 : vector<24xf32> to vector<24x1xf32>
    %579 = vector.broadcast %578 : vector<24x1xf32> to vector<24x24xf32>
    %580 = arith.subf %576, %579 : vector<24x24xf32>
    %581 = math.exp %580 : vector<24x24xf32>
    %cst_188 = arith.constant dense<0.000000e+00> : vector<24xf32>
    %582 = vector.multi_reduction <add>, %581, %cst_188 [1] : vector<24x24xf32> to vector<24xf32>
    %583 = vector.shape_cast %582 : vector<24xf32> to vector<24x1xf32>
    %584 = tpu.reciprocal %583 {approx = true} : vector<24x1xf32> -> vector<24x1xf32>
    %585 = vector.broadcast %584 : vector<24x1xf32> to vector<24x24xf32>
    %586 = arith.mulf %581, %585 : vector<24x24xf32>
    %cst_189 = arith.constant dense<0.000000e+00> : vector<24x32xf32>
    %587 = tpu.matmul %586, %571, %cst_189 {dimension_numbers = #tpu.dot_dimension_numbers<[1], [0], [0], [1], [0, 0, 1, 1], [], []>} : vector<24x24xf32>, vector<24x32xf32>, vector<24x32xf32> -> vector<24x32xf32>
    %588 = arith.addf %559, %587 : vector<24x32xf32>
    %cst_190 = arith.constant 0.000000e+00 : f32
    %589 = vector.shape_cast %28 : vector<1x32xi1> to vector<1x32xi1>
    %590 = vector.broadcast %589 : vector<1x32xi1> to vector<24x32xi1>
    %591 = vector.broadcast %cst_190 : f32 to vector<24x32xf32>
    %592 = arith.select %590, %556, %591 : vector<24x32xi1>, vector<24x32xf32>
    %cst_191 = arith.constant 0.000000e+00 : f32
    %593 = vector.shape_cast %28 : vector<1x32xi1> to vector<1x32xi1>
    %594 = vector.broadcast %593 : vector<1x32xi1> to vector<24x32xi1>
    %595 = vector.broadcast %cst_191 : f32 to vector<24x32xf32>
    %596 = arith.select %594, %557, %595 : vector<24x32xi1>, vector<24x32xf32>
    %cst_192 = arith.constant 0.000000e+00 : f32
    %597 = vector.shape_cast %28 : vector<1x32xi1> to vector<1x32xi1>
    %598 = vector.broadcast %597 : vector<1x32xi1> to vector<24x32xi1>
    %599 = vector.broadcast %cst_192 : f32 to vector<24x32xf32>
    %600 = arith.select %598, %558, %599 : vector<24x32xi1>, vector<24x32xf32>
    %cst_193 = arith.constant dense<0.000000e+00> : vector<24x24xf32>
    %601 = tpu.matmul %592, %596, %cst_193 {dimension_numbers = #tpu.dot_dimension_numbers<[1], [1], [0], [0], [0, 0, 1, 0], [], []>} : vector<24x32xf32>, vector<24x32xf32>, vector<24x24xf32> -> vector<24x24xf32>
    %cst_194 = arith.constant 2.500000e-01 : f32
    %602 = vector.broadcast %cst_194 : f32 to vector<24x24xf32>
    %603 = arith.mulf %601, %602 : vector<24x24xf32>
    %604 = vector.broadcast %34 : vector<1x24xf32> to vector<24x24xf32>
    %605 = arith.addf %603, %604 : vector<24x24xf32>
    %cst_195 = arith.constant dense<0xFF800000> : vector<24xf32>
    %606 = vector.multi_reduction <maximumf>, %605, %cst_195 [1] : vector<24x24xf32> to vector<24xf32>
    %607 = vector.shape_cast %606 : vector<24xf32> to vector<24x1xf32>
    %608 = vector.broadcast %607 : vector<24x1xf32> to vector<24x24xf32>
    %609 = arith.subf %605, %608 : vector<24x24xf32>
    %610 = math.exp %609 : vector<24x24xf32>
    %cst_196 = arith.constant dense<0.000000e+00> : vector<24xf32>
    %611 = vector.multi_reduction <add>, %610, %cst_196 [1] : vector<24x24xf32> to vector<24xf32>
    %612 = vector.shape_cast %611 : vector<24xf32> to vector<24x1xf32>
    %613 = tpu.reciprocal %612 {approx = true} : vector<24x1xf32> -> vector<24x1xf32>
    %614 = vector.broadcast %613 : vector<24x1xf32> to vector<24x24xf32>
    %615 = arith.mulf %610, %614 : vector<24x24xf32>
    %cst_197 = arith.constant dense<0.000000e+00> : vector<24x32xf32>
    %616 = tpu.matmul %615, %600, %cst_197 {dimension_numbers = #tpu.dot_dimension_numbers<[1], [0], [0], [1], [0, 0, 1, 1], [], []>} : vector<24x24xf32>, vector<24x32xf32>, vector<24x32xf32> -> vector<24x32xf32>
    %617 = arith.addf %588, %616 : vector<24x32xf32>
    %618 = vector.extract_strided_slice %429 {offsets = [72, 0], sizes = [24, 32], strides = [1, 1]} : vector<96x32xf32> to vector<24x32xf32>
    %619 = vector.extract_strided_slice %430 {offsets = [72, 0], sizes = [24, 32], strides = [1, 1]} : vector<96x32xf32> to vector<24x32xf32>
    %620 = vector.extract_strided_slice %431 {offsets = [72, 0], sizes = [24, 32], strides = [1, 1]} : vector<96x32xf32> to vector<24x32xf32>
    %cst_198 = arith.constant 0.000000e+00 : f32
    %621 = vector.broadcast %cst_198 : f32 to vector<24x32xf32>
    %cst_199 = arith.constant 0.000000e+00 : f32
    %622 = vector.shape_cast %23 : vector<1x32xi1> to vector<1x32xi1>
    %623 = vector.broadcast %622 : vector<1x32xi1> to vector<24x32xi1>
    %624 = vector.broadcast %cst_199 : f32 to vector<24x32xf32>
    %625 = arith.select %623, %618, %624 : vector<24x32xi1>, vector<24x32xf32>
    %cst_200 = arith.constant 0.000000e+00 : f32
    %626 = vector.shape_cast %23 : vector<1x32xi1> to vector<1x32xi1>
    %627 = vector.broadcast %626 : vector<1x32xi1> to vector<24x32xi1>
    %628 = vector.broadcast %cst_200 : f32 to vector<24x32xf32>
    %629 = arith.select %627, %619, %628 : vector<24x32xi1>, vector<24x32xf32>
    %cst_201 = arith.constant 0.000000e+00 : f32
    %630 = vector.shape_cast %23 : vector<1x32xi1> to vector<1x32xi1>
    %631 = vector.broadcast %630 : vector<1x32xi1> to vector<24x32xi1>
    %632 = vector.broadcast %cst_201 : f32 to vector<24x32xf32>
    %633 = arith.select %631, %620, %632 : vector<24x32xi1>, vector<24x32xf32>
    %cst_202 = arith.constant dense<0.000000e+00> : vector<24x24xf32>
    %634 = tpu.matmul %625, %629, %cst_202 {dimension_numbers = #tpu.dot_dimension_numbers<[1], [1], [0], [0], [0, 0, 1, 0], [], []>} : vector<24x32xf32>, vector<24x32xf32>, vector<24x24xf32> -> vector<24x24xf32>
    %cst_203 = arith.constant 2.500000e-01 : f32
    %635 = vector.broadcast %cst_203 : f32 to vector<24x24xf32>
    %636 = arith.mulf %634, %635 : vector<24x24xf32>
    %637 = vector.broadcast %34 : vector<1x24xf32> to vector<24x24xf32>
    %638 = arith.addf %636, %637 : vector<24x24xf32>
    %cst_204 = arith.constant dense<0xFF800000> : vector<24xf32>
    %639 = vector.multi_reduction <maximumf>, %638, %cst_204 [1] : vector<24x24xf32> to vector<24xf32>
    %640 = vector.shape_cast %639 : vector<24xf32> to vector<24x1xf32>
    %641 = vector.broadcast %640 : vector<24x1xf32> to vector<24x24xf32>
    %642 = arith.subf %638, %641 : vector<24x24xf32>
    %643 = math.exp %642 : vector<24x24xf32>
    %cst_205 = arith.constant dense<0.000000e+00> : vector<24xf32>
    %644 = vector.multi_reduction <add>, %643, %cst_205 [1] : vector<24x24xf32> to vector<24xf32>
    %645 = vector.shape_cast %644 : vector<24xf32> to vector<24x1xf32>
    %646 = tpu.reciprocal %645 {approx = true} : vector<24x1xf32> -> vector<24x1xf32>
    %647 = vector.broadcast %646 : vector<24x1xf32> to vector<24x24xf32>
    %648 = arith.mulf %643, %647 : vector<24x24xf32>
    %cst_206 = arith.constant dense<0.000000e+00> : vector<24x32xf32>
    %649 = tpu.matmul %648, %633, %cst_206 {dimension_numbers = #tpu.dot_dimension_numbers<[1], [0], [0], [1], [0, 0, 1, 1], [], []>} : vector<24x24xf32>, vector<24x32xf32>, vector<24x32xf32> -> vector<24x32xf32>
    %650 = arith.addf %621, %649 : vector<24x32xf32>
    %cst_207 = arith.constant 0.000000e+00 : f32
    %651 = vector.shape_cast %28 : vector<1x32xi1> to vector<1x32xi1>
    %652 = vector.broadcast %651 : vector<1x32xi1> to vector<24x32xi1>
    %653 = vector.broadcast %cst_207 : f32 to vector<24x32xf32>
    %654 = arith.select %652, %618, %653 : vector<24x32xi1>, vector<24x32xf32>
    %cst_208 = arith.constant 0.000000e+00 : f32
    %655 = vector.shape_cast %28 : vector<1x32xi1> to vector<1x32xi1>
    %656 = vector.broadcast %655 : vector<1x32xi1> to vector<24x32xi1>
    %657 = vector.broadcast %cst_208 : f32 to vector<24x32xf32>
    %658 = arith.select %656, %619, %657 : vector<24x32xi1>, vector<24x32xf32>
    %cst_209 = arith.constant 0.000000e+00 : f32
    %659 = vector.shape_cast %28 : vector<1x32xi1> to vector<1x32xi1>
    %660 = vector.broadcast %659 : vector<1x32xi1> to vector<24x32xi1>
    %661 = vector.broadcast %cst_209 : f32 to vector<24x32xf32>
    %662 = arith.select %660, %620, %661 : vector<24x32xi1>, vector<24x32xf32>
    %cst_210 = arith.constant dense<0.000000e+00> : vector<24x24xf32>
    %663 = tpu.matmul %654, %658, %cst_210 {dimension_numbers = #tpu.dot_dimension_numbers<[1], [1], [0], [0], [0, 0, 1, 0], [], []>} : vector<24x32xf32>, vector<24x32xf32>, vector<24x24xf32> -> vector<24x24xf32>
    %cst_211 = arith.constant 2.500000e-01 : f32
    %664 = vector.broadcast %cst_211 : f32 to vector<24x24xf32>
    %665 = arith.mulf %663, %664 : vector<24x24xf32>
    %666 = vector.broadcast %34 : vector<1x24xf32> to vector<24x24xf32>
    %667 = arith.addf %665, %666 : vector<24x24xf32>
    %cst_212 = arith.constant dense<0xFF800000> : vector<24xf32>
    %668 = vector.multi_reduction <maximumf>, %667, %cst_212 [1] : vector<24x24xf32> to vector<24xf32>
    %669 = vector.shape_cast %668 : vector<24xf32> to vector<24x1xf32>
    %670 = vector.broadcast %669 : vector<24x1xf32> to vector<24x24xf32>
    %671 = arith.subf %667, %670 : vector<24x24xf32>
    %672 = math.exp %671 : vector<24x24xf32>
    %cst_213 = arith.constant dense<0.000000e+00> : vector<24xf32>
    %673 = vector.multi_reduction <add>, %672, %cst_213 [1] : vector<24x24xf32> to vector<24xf32>
    %674 = vector.shape_cast %673 : vector<24xf32> to vector<24x1xf32>
    %675 = tpu.reciprocal %674 {approx = true} : vector<24x1xf32> -> vector<24x1xf32>
    %676 = vector.broadcast %675 : vector<24x1xf32> to vector<24x24xf32>
    %677 = arith.mulf %672, %676 : vector<24x24xf32>
    %cst_214 = arith.constant dense<0.000000e+00> : vector<24x32xf32>
    %678 = tpu.matmul %677, %662, %cst_214 {dimension_numbers = #tpu.dot_dimension_numbers<[1], [0], [0], [1], [0, 0, 1, 1], [], []>} : vector<24x24xf32>, vector<24x32xf32>, vector<24x32xf32> -> vector<24x32xf32>
    %679 = arith.addf %650, %678 : vector<24x32xf32>
    %680 = tpu.concatenate %493, %555, %617, %679 in 0 : vector<24x32xf32>, vector<24x32xf32>, vector<24x32xf32>, vector<24x32xf32> -> vector<96x32xf32>
    %681 = arith.addf %395, %680 : vector<96x32xf32>
    %cst_215 = arith.constant dense<0.000000e+00> : vector<96xf32>
    %682 = vector.multi_reduction <add>, %681, %cst_215 [1] : vector<96x32xf32> to vector<96xf32>
    %683 = vector.shape_cast %682 : vector<96xf32> to vector<96x1xf32>
    %cst_216 = arith.constant 3.200000e+01 : f32
    %684 = vector.broadcast %cst_216 : f32 to vector<96x1xf32>
    %685 = arith.divf %683, %684 : vector<96x1xf32>
    %686 = vector.broadcast %685 : vector<96x1xf32> to vector<96x32xf32>
    %687 = arith.subf %681, %686 : vector<96x32xf32>
    %688 = arith.mulf %687, %687 : vector<96x32xf32>
    %cst_217 = arith.constant dense<0.000000e+00> : vector<96xf32>
    %689 = vector.multi_reduction <add>, %688, %cst_217 [1] : vector<96x32xf32> to vector<96xf32>
    %690 = vector.shape_cast %689 : vector<96xf32> to vector<96x1xf32>
    %cst_218 = arith.constant 3.200000e+01 : f32
    %691 = vector.broadcast %cst_218 : f32 to vector<96x1xf32>
    %692 = arith.divf %690, %691 : vector<96x1xf32>
    %cst_219 = arith.constant 9.99999974E-6 : f32
    %693 = vector.broadcast %cst_219 : f32 to vector<96x1xf32>
    %694 = arith.addf %692, %693 : vector<96x1xf32>
    %695 = math.rsqrt %694 : vector<96x1xf32>
    %696 = vector.broadcast %695 : vector<96x1xf32> to vector<96x32xf32>
    %697 = arith.mulf %687, %696 : vector<96x32xf32>
    %698 = vector.broadcast %400 : vector<1x32xf32> to vector<96x32xf32>
    %699 = arith.mulf %697, %698 : vector<96x32xf32>
    %700 = vector.broadcast %401 : vector<1x32xf32> to vector<96x32xf32>
    %701 = arith.addf %699, %700 : vector<96x32xf32>
    %c1_220 = arith.constant 1 : index
    %c0_221 = arith.constant 0 : index
    %c0_222 = arith.constant 0 : index
    %702 = vector.load %arg10[%c1_220, %c0_221, %c0_222] : memref<2x32x128xf32, #tpu.memory_space<vmem>>, vector<1x32x128xf32>
    %703 = vector.shape_cast %702 : vector<1x32x128xf32> to vector<32x128xf32>
    %cst_223 = arith.constant dense<0.000000e+00> : vector<96x128xf32>
    %704 = tpu.matmul %701, %703, %cst_223 {dimension_numbers = #tpu.dot_dimension_numbers<[1], [0], [0], [1], [0, 0, 1, 1], [], []>} : vector<96x32xf32>, vector<32x128xf32>, vector<96x128xf32> -> vector<96x128xf32>
    %c1_224 = arith.constant 1 : index
    %c0_225 = arith.constant 0 : index
    %c0_226 = arith.constant 0 : index
    %705 = vector.load %arg11[%c1_224, %c0_225, %c0_226] : memref<2x1x128xf32, #tpu.memory_space<vmem>>, vector<1x1x128xf32>
    %706 = vector.shape_cast %705 : vector<1x1x128xf32> to vector<1x128xf32>
    %707 = vector.broadcast %706 : vector<1x128xf32> to vector<96x128xf32>
    %708 = arith.addf %704, %707 : vector<96x128xf32>
    %cst_227 = arith.constant 5.000000e-01 : f32
    %709 = vector.broadcast %cst_227 : f32 to vector<96x128xf32>
    %710 = arith.mulf %709, %708 : vector<96x128xf32>
    %cst_228 = arith.constant 0.707106769 : f32
    %711 = vector.broadcast %cst_228 : f32 to vector<96x128xf32>
    %712 = arith.mulf %708, %711 : vector<96x128xf32>
    %713 = math.absf %712 : vector<96x128xf32>
    %cst_229 = arith.constant 0.327591091 : f32
    %714 = vector.broadcast %cst_229 : f32 to vector<96x128xf32>
    %715 = arith.mulf %714, %713 : vector<96x128xf32>
    %cst_230 = arith.constant 1.000000e+00 : f32
    %716 = vector.broadcast %cst_230 : f32 to vector<96x128xf32>
    %717 = arith.addf %716, %715 : vector<96x128xf32>
    %cst_231 = arith.constant 1.000000e+00 : f32
    %718 = vector.broadcast %cst_231 : f32 to vector<96x128xf32>
    %719 = arith.divf %718, %717 : vector<96x128xf32>
    %cst_232 = arith.constant 1.06140542 : f32
    %720 = vector.broadcast %cst_232 : f32 to vector<96x128xf32>
    %721 = arith.mulf %720, %719 : vector<96x128xf32>
    %cst_233 = arith.constant -1.45315206 : f32
    %722 = vector.broadcast %cst_233 : f32 to vector<96x128xf32>
    %723 = arith.addf %721, %722 : vector<96x128xf32>
    %724 = arith.mulf %723, %719 : vector<96x128xf32>
    %cst_234 = arith.constant 1.42141378 : f32
    %725 = vector.broadcast %cst_234 : f32 to vector<96x128xf32>
    %726 = arith.addf %724, %725 : vector<96x128xf32>
    %727 = arith.mulf %726, %719 : vector<96x128xf32>
    %cst_235 = arith.constant -0.284496725 : f32
    %728 = vector.broadcast %cst_235 : f32 to vector<96x128xf32>
    %729 = arith.addf %727, %728 : vector<96x128xf32>
    %730 = arith.mulf %729, %719 : vector<96x128xf32>
    %cst_236 = arith.constant 0.254829586 : f32
    %731 = vector.broadcast %cst_236 : f32 to vector<96x128xf32>
    %732 = arith.addf %730, %731 : vector<96x128xf32>
    %733 = arith.mulf %732, %719 : vector<96x128xf32>
    %cst_237 = arith.constant 0.000000e+00 : f32
    %734 = vector.broadcast %cst_237 : f32 to vector<96x128xf32>
    %735 = arith.subf %734, %713 : vector<96x128xf32>
    %736 = arith.mulf %735, %713 : vector<96x128xf32>
    %737 = math.exp %736 : vector<96x128xf32>
    %738 = arith.mulf %733, %737 : vector<96x128xf32>
    %cst_238 = arith.constant 1.000000e+00 : f32
    %739 = vector.broadcast %cst_238 : f32 to vector<96x128xf32>
    %740 = arith.subf %739, %738 : vector<96x128xf32>
    %cst_239 = arith.constant 0.000000e+00 : f32
    %741 = vector.broadcast %cst_239 : f32 to vector<96x128xf32>
    %742 = arith.cmpf oge, %712, %741 : vector<96x128xf32>
    %cst_240 = arith.constant 0.000000e+00 : f32
    %743 = vector.broadcast %cst_240 : f32 to vector<96x128xf32>
    %744 = arith.subf %743, %740 : vector<96x128xf32>
    %745 = arith.select %742, %740, %744 : vector<96x128xi1>, vector<96x128xf32>
    %cst_241 = arith.constant 1.000000e+00 : f32
    %746 = vector.broadcast %cst_241 : f32 to vector<96x128xf32>
    %747 = arith.addf %746, %745 : vector<96x128xf32>
    %748 = arith.mulf %710, %747 : vector<96x128xf32>
    %c1_242 = arith.constant 1 : index
    %c0_243 = arith.constant 0 : index
    %c0_244 = arith.constant 0 : index
    %749 = vector.load %arg12[%c1_242, %c0_243, %c0_244] : memref<2x128x32xf32, #tpu.memory_space<vmem>>, vector<1x128x32xf32>
    %750 = vector.shape_cast %749 : vector<1x128x32xf32> to vector<128x32xf32>
    %cst_245 = arith.constant dense<0.000000e+00> : vector<96x32xf32>
    %751 = tpu.matmul %748, %750, %cst_245 {dimension_numbers = #tpu.dot_dimension_numbers<[1], [0], [0], [1], [0, 0, 1, 1], [], []>} : vector<96x128xf32>, vector<128x32xf32>, vector<96x32xf32> -> vector<96x32xf32>
    %c1_246 = arith.constant 1 : index
    %c0_247 = arith.constant 0 : index
    %c0_248 = arith.constant 0 : index
    %752 = vector.load %arg13[%c1_246, %c0_247, %c0_248] : memref<2x1x32xf32, #tpu.memory_space<vmem>>, vector<1x1x32xf32>
    %753 = vector.shape_cast %752 : vector<1x1x32xf32> to vector<1x32xf32>
    %754 = vector.broadcast %753 : vector<1x32xf32> to vector<96x32xf32>
    %755 = arith.addf %751, %754 : vector<96x32xf32>
    %756 = arith.addf %681, %755 : vector<96x32xf32>
    %c0_249 = arith.constant 0 : index
    %c0_250 = arith.constant 0 : index
    %757 = vector.load %arg14[%c0_249, %c0_250] : memref<4x96xf32, #tpu.memory_space<vmem>>, vector<4x96xf32>
    %cst_251 = arith.constant dense<0.000000e+00> : vector<4x32xf32>
    %758 = tpu.matmul %757, %756, %cst_251 {dimension_numbers = #tpu.dot_dimension_numbers<[1], [0], [0], [1], [0, 0, 1, 1], [], []>} : vector<4x96xf32>, vector<96x32xf32>, vector<4x32xf32> -> vector<4x32xf32>
    %c0_252 = arith.constant 0 : index
    %c0_253 = arith.constant 0 : index
    %759 = vector.load %arg15[%c0_252, %c0_253] : memref<32x128xf32, #tpu.memory_space<vmem>>, vector<32x128xf32>
    %cst_254 = arith.constant dense<0.000000e+00> : vector<4x128xf32>
    %760 = tpu.matmul %758, %759, %cst_254 {dimension_numbers = #tpu.dot_dimension_numbers<[1], [0], [0], [1], [0, 0, 1, 1], [], []>} : vector<4x32xf32>, vector<32x128xf32>, vector<4x128xf32> -> vector<4x128xf32>
    %c0_255 = arith.constant 0 : index
    %c0_256 = arith.constant 0 : index
    %761 = vector.load %arg16[%c0_255, %c0_256] : memref<1x128xf32, #tpu.memory_space<vmem>>, vector<1x128xf32>
    %762 = vector.broadcast %761 : vector<1x128xf32> to vector<4x128xf32>
    %763 = arith.addf %760, %762 : vector<4x128xf32>
    %cst_257 = arith.constant dense<0xFF800000> : vector<4xf32>
    %764 = vector.multi_reduction <maximumf>, %763, %cst_257 [1] : vector<4x128xf32> to vector<4xf32>
    %765 = vector.shape_cast %764 : vector<4xf32> to vector<4x1xf32>
    %766 = vector.broadcast %765 : vector<4x1xf32> to vector<4x128xf32>
    %767 = arith.subf %763, %766 : vector<4x128xf32>
    %768 = math.exp %767 : vector<4x128xf32>
    %cst_258 = arith.constant dense<0.000000e+00> : vector<4xf32>
    %769 = vector.multi_reduction <add>, %768, %cst_258 [1] : vector<4x128xf32> to vector<4xf32>
    %770 = vector.shape_cast %769 : vector<4xf32> to vector<4x1xf32>
    %771 = vector.broadcast %770 : vector<4x1xf32> to vector<4x128xf32>
    %772 = arith.divf %768, %771 : vector<4x128xf32>
    %c0_259 = arith.constant 0 : index
    %c0_260 = arith.constant 0 : index
    %c0_261 = arith.constant 0 : index
    %773 = vector.load %arg17[%c0_259, %c0_260, %c0_261] : memref<1x4x128xf32, #tpu.memory_space<vmem>>, vector<1x4x128xf32>
    %774 = vector.shape_cast %773 : vector<1x4x128xf32> to vector<4x128xf32>
    %775 = vector.shape_cast %772 : vector<4x128xf32> to vector<1x4x128xf32>
    tpu.vector_store %arg17[%c0_259, %c0_260, %c0_261], %775 {strides = array<i32>} : memref<1x4x128xf32, #tpu.memory_space<vmem>>, vector<1x4x128xf32>,
    return
  }
  func.func @transform_0(%arg0: i32) -> (i32, i32, i32) {
    %c0_i32 = arith.constant 0 : i32
    %c0_i32_0 = arith.constant 0 : i32
    %c0_i32_1 = arith.constant 0 : i32
    return %arg0, %c0_i32, %c0_i32_0 : i32, i32, i32
  }
  func.func @transform_1(%arg0: i32) -> (i32, i32) {
    %c0_i32 = arith.constant 0 : i32
    %c0_i32_0 = arith.constant 0 : i32
    %c0_i32_1 = arith.constant 0 : i32
    return %c0_i32, %c0_i32_0 : i32, i32
  }
  func.func @transform_2(%arg0: i32) -> (i32, i32) {
    %c0_i32 = arith.constant 0 : i32
    %c0_i32_0 = arith.constant 0 : i32
    %c0_i32_1 = arith.constant 0 : i32
    return %c0_i32, %c0_i32_0 : i32, i32
  }
  func.func @transform_3(%arg0: i32) -> (i32, i32) {
    %c0_i32 = arith.constant 0 : i32
    %c0_i32_0 = arith.constant 0 : i32
    %c0_i32_1 = arith.constant 0 : i32
    return %c0_i32, %c0_i32_0 : i32, i32
  }
  func.func @transform_4(%arg0: i32) -> (i32, i32) {
    %c0_i32 = arith.constant 0 : i32
    %c0_i32_0 = arith.constant 0 : i32
    %c0_i32_1 = arith.constant 0 : i32
    return %c0_i32, %c0_i32_0 : i32, i32
  }
  func.func @transform_5(%arg0: i32) -> (i32, i32) {
    %c0_i32 = arith.constant 0 : i32
    %c0_i32_0 = arith.constant 0 : i32
    %c0_i32_1 = arith.constant 0 : i32
    return %c0_i32, %c0_i32_0 : i32, i32
  }
  func.func @transform_6(%arg0: i32) -> (i32, i32, i32) {
    %c0_i32 = arith.constant 0 : i32
    %c0_i32_0 = arith.constant 0 : i32
    %c0_i32_1 = arith.constant 0 : i32
    %c0_i32_2 = arith.constant 0 : i32
    return %c0_i32, %c0_i32_0, %c0_i32_1 : i32, i32, i32
  }
  func.func @transform_7(%arg0: i32) -> (i32, i32, i32) {
    %c0_i32 = arith.constant 0 : i32
    %c0_i32_0 = arith.constant 0 : i32
    %c0_i32_1 = arith.constant 0 : i32
    %c0_i32_2 = arith.constant 0 : i32
    return %c0_i32, %c0_i32_0, %c0_i32_1 : i32, i32, i32
  }
  func.func @transform_8(%arg0: i32) -> (i32, i32, i32) {
    %c0_i32 = arith.constant 0 : i32
    %c0_i32_0 = arith.constant 0 : i32
    %c0_i32_1 = arith.constant 0 : i32
    %c0_i32_2 = arith.constant 0 : i32
    return %c0_i32, %c0_i32_0, %c0_i32_1 : i32, i32, i32
  }
  func.func @transform_9(%arg0: i32) -> (i32, i32, i32) {
    %c0_i32 = arith.constant 0 : i32
    %c0_i32_0 = arith.constant 0 : i32
    %c0_i32_1 = arith.constant 0 : i32
    %c0_i32_2 = arith.constant 0 : i32
    return %c0_i32, %c0_i32_0, %c0_i32_1 : i32, i32, i32
  }
  func.func @transform_10(%arg0: i32) -> (i32, i32, i32) {
    %c0_i32 = arith.constant 0 : i32
    %c0_i32_0 = arith.constant 0 : i32
    %c0_i32_1 = arith.constant 0 : i32
    %c0_i32_2 = arith.constant 0 : i32
    return %c0_i32, %c0_i32_0, %c0_i32_1 : i32, i32, i32
  }
  func.func @transform_11(%arg0: i32) -> (i32, i32, i32) {
    %c0_i32 = arith.constant 0 : i32
    %c0_i32_0 = arith.constant 0 : i32
    %c0_i32_1 = arith.constant 0 : i32
    %c0_i32_2 = arith.constant 0 : i32
    return %c0_i32, %c0_i32_0, %c0_i32_1 : i32, i32, i32
  }
  func.func @transform_12(%arg0: i32) -> (i32, i32, i32) {
    %c0_i32 = arith.constant 0 : i32
    %c0_i32_0 = arith.constant 0 : i32
    %c0_i32_1 = arith.constant 0 : i32
    %c0_i32_2 = arith.constant 0 : i32
    return %c0_i32, %c0_i32_0, %c0_i32_1 : i32, i32, i32
  }
  func.func @transform_13(%arg0: i32) -> (i32, i32) {
    %c0_i32 = arith.constant 0 : i32
    %c0_i32_0 = arith.constant 0 : i32
    %c0_i32_1 = arith.constant 0 : i32
    return %c0_i32, %c0_i32_0 : i32, i32
  }
  func.func @transform_14(%arg0: i32) -> (i32, i32) {
    %c0_i32 = arith.constant 0 : i32
    %c0_i32_0 = arith.constant 0 : i32
    %c0_i32_1 = arith.constant 0 : i32
    return %c0_i32, %c0_i32_0 : i32, i32
  }
  func.func @transform_15(%arg0: i32) -> (i32, i32) {
    %c0_i32 = arith.constant 0 : i32
    %c0_i32_0 = arith.constant 0 : i32
    %c0_i32_1 = arith.constant 0 : i32
    return %c0_i32, %c0_i32_0 : i32, i32
  }
  func.func @transform_16(%arg0: i32) -> (i32, i32, i32) {
    %c0_i32 = arith.constant 0 : i32
    %c0_i32_0 = arith.constant 0 : i32
    %c0_i32_1 = arith.constant 0 : i32
    return %arg0, %c0_i32, %c0_i32_0 : i32, i32, i32
  }
}

</mosaic_0001>

<bundles_post_ra>
// kernel: tpu_custom_call.1
= control target key start
LH: loop header
LB: loop body
LE: loop exit
PB: predicated region body
PF: predicated region fallthrough
CT: control target
= control target key end

     0   :  { %s9583_s0 = inlined_call_operand.vmem [shape: f32[2,96,64], index: 0, kind: input, shape index: {}]   ;;  %s9584_s1 = inlined_call_operand.vmem [shape: f32[96,1], index: 1, kind: input, shape index: {}]   ;;  %s9585_s2 = inlined_call_operand.vmem [shape: f32[1,32], index: 2, kind: input, shape index: {}]   ;;  %s9586_s3 = inlined_call_operand.vmem [shape: f32[96,32], index: 3, kind: input, shape index: {}]   ;;  %s9587_s4 = inlined_call_operand.vmem [shape: f32[64,32], index: 4, kind: input, shape index: {}]   ;;  %s9588_s5 = inlined_call_operand.vmem [shape: f32[1,32], index: 5, kind: input, shape index: {}]   ;;  %s9589_s6 = inlined_call_operand.vmem [shape: f32[2,4,32], index: 6, kind: input, shape index: {}]   ;;  %s9590_s7 = inlined_call_operand.vmem [shape: f32[2,32,96], index: 7, kind: input, shape index: {}]   ;;  %s9591_s8 = inlined_call_operand.vmem [shape: f32[2,1,96], index: 8, kind: input, shape index: {}]   ;;  %s9592_s9 = inlined_call_operand.vmem [shape: f32[2,32,128], index: 9, kind: input, shape index: {}]   ;;  %s9593_s10 = inlined_call_operand.vmem [shape: f32[2,1,128], index: 10, kind: input, shape index: {}]   ;;  %s9594_s11 = inlined_call_operand.vmem [shape: f32[2,128,32], index: 11, kind: input, shape index: {}]   ;;  %s9595_s12 = inlined_call_operand.vmem [shape: f32[2,1,32], index: 12, kind: input, shape index: {}]   ;;  %s9596_s13 = inlined_call_operand.vmem [shape: f32[4,96], index: 13, kind: input, shape index: {}]   ;;  %s9597_s14 = inlined_call_operand.vmem [shape: f32[32,128], index: 14, kind: input, shape index: {}]   ;;  %s9598_s15 = inlined_call_operand.vmem [shape: f32[1,128], index: 15, kind: input, shape index: {}]   ;;  %s9599_s16 = inlined_call_operand.hbm [shape: f32[2,4,128], index: 16, kind: output, shape index: {}]  }
   0x1   :  { %9604 = sst [smem:[#allocation9_spill]] %s9583_s0 }
   0x2   :  { %9605 = sst [smem:[#allocation10_spill]] %s9584_s1 }
   0x3   :  { %21 = vsyncpa [#allocation3], 0 }
   0x4   :  { %23 = vsyncpa [#allocation3 + $0x1], 0  ;;  %s6757_s21 = smov 0   ;;  %s6759_s22 = smov 0  }
   0x5   :  { %s6761_s23 = smov 0   ;;  %s6763_s24 = smov 0  }
   0x6 LB: > { %9606 = sst [smem:[#allocation5_spill]] %s6661_s23  ;;  %s6778_s25 = sadd.s32 4294967295, %s6665_s24   ;;  %s6665_s24 = sphi %s6763_s24, %s9617_s24   ;;  %s6661_s23 = sphi %s6761_s23, %s9619_s23   ;;  %s6657_s22 = sphi %s6759_s22, %s9621_s22   ;;  %s6653_s21 = sphi %s6757_s21, %s9620_s21  }
   0x7   : > { %s5849_s26 = sadd.s32 4294967294, %s6665_s24   ;;  %s6782_s27 = sadd.s32 1, %s6665_s24  }
   0x8   : > { %9607 = sst [smem:[#allocation6_spill]] %s6782_s27  ;;  %s377_s28 = sadd.s32 1, %s6661_s23 }
   0x9   : > { %s374_s29 = ssub.s32 %s6665_s24, %s6782_s27  ;;  %p387_p0 = scmp.ne.s32.totalorder %s6661_s23, %s6657_s22 }
   0xa   : > { %p375_p1 = scmp.eq.s32.totalorder %s374_s29, 0  ;;  %p388_p2 = scmp.eq.s32.totalorder %s6778_s25, 1 }
   0xb   : > { %p393_p3 = scmp.ne.s32.totalorder %s6657_s22, %s6653_s21  ;;  %p394_p4 = scmp.eq.s32.totalorder %s5849_s26, 1 }
   0xc   : > { %s6793_s30 = scalar_select %p375_p1, %s6661_s23, %s377_s28  }
   0xd   : > { %p6795_p5 = por %p388_p2, %p387_p0  ;;  %p6799_p6 = por %p394_p4, %p393_p3 }
   0xe   : > { %9608 = sst [smem:[#allocation7_spill]] %s6793_s30  ;;  %p5852_p7 = scmp.ge.s32.totalorder %s6665_s24, 1 }
   0xf   : > { %s9610_s17 = scalar_select %p6799_p6, 1, 0 }
  0x10   : > { %p465_p8 = scmp.lt.s32.totalorder %s6665_s24, 3 }
  0x11   : > { %9611 = sst [smem:[#allocation8_spill]] %s9610_s17 }
  0x12   : > { %p466_p9 = pnand %p5852_p7, %p465_p8 }
  0x13   : > { %p515_p10 = scmp.lt.s32.totalorder (!%p466_p9), %s6778_s25, 1  ;;  %s9612_s1 = sld [smem:[#allocation10_spill]] (!%p466_p9) }
  0x14   : > { %469 = sbr.rel (%p466_p9) target bundleno = 5456 (0x1550), region = 84  ;;  %s9613_s23 = sld [smem:[#allocation9_spill]] (!%p466_p9) }
  0x15   : > { %s6670_s28 = smov (!%p466_p9), 64  }
  0x19   : > { %v539_v0 = vld [vmem:[%s9587_s4 + $0x38] sm:$0xff]  ;;  %v538_v1 = vld [vmem:[%s9587_s4 + $0x30] sm:$0xff]  ;;  %v6667_v2 = vmov 0   ;;  %v537_v3 = vld [vmem:[%s9587_s4 + $0x28] sm:$0xff]  ;;  %s516_s30 = scalar_select %p515_p10, %s6778_s25, 1  ;;  %vm544_vm3 = vcmask 523264  }
  0x1a   : > { %589 = vmatpush.msra.mxu0 %v539_v0  ;;  %6197 = vset.pattern.permute.xlu0 %v6667_v2  ;;  %v634_v4 = vld [vmem:[%s9612_s1] sm:$0xff]  ;;  %v636_v6 = vld [vmem:[%s9612_s1 + $0x10] sm:$0xff]  ;;  %v535_v7 = vld [vmem:[%s9587_s4 + $0x18] sm:$0xff]  ;;  %vm769_vm5 = vcmask 261120   ;;  %v6668_v55 = vmov 32.0  }
  0x1b   : > { %6198 = vset.pattern.permute.xlu1 %v6667_v2  ;;  %6199 = vset.pattern.permute.xlu2 %v6667_v2  ;;  %v536_v5 = vld [vmem:[%s9587_s4 + $0x20] sm:$0xff]  ;;  %vm646_vm0 = vcmp.gt.f32.partialorder %v634_v4, 0.5  ;;  %v635_v9 = vld [vmem:[%s9612_s1 + $0x8] sm:$0xff]  ;;  %vm648_vm1 = vcmp.gt.f32.partialorder %v636_v6, 0.5  ;;  %s6152_s17 = smul.u32 96, %s516_s30  ;;  %v534_v11 = vld [vmem:[%s9587_s4 + $0x10] sm:$0xff]  ;;  %6209 = vrcp.f32 %v6668_v55 }
  0x1c   : > { %590 = vmatpush.msra.mxu0 %v538_v1  ;;  %v659_v8 = vsel %vm646_vm0, 1, %v6667_v2  ;;  %v661_v10 = vsel %vm648_vm1, 1, %v6667_v2  ;;  %vm647_vm2 = vcmp.gt.f32.partialorder %v635_v9, 0.5  ;;  %v533_v12 = vld [vmem:[%s9587_s4 + $0x8] sm:$0xff]  ;;  %v532_v14 = vld [vmem:[%s9587_s4] sm:$0xff]  ;;  %v736_v44 = vld [vmem:[%s9586_s3 + $0x10] sm:$0xff] }
  0x1d   : > { %672 = vperm.xlu0 %6197, %v659_v8   ;;  %678 = vperm.xlu1 %6198, %v661_v10   ;;  %s6845_s27 = scalar_lea.vmem %s9613_s23, %s6152_s17  ;;  %v660_v13 = vsel %vm647_vm2, 1, %v6667_v2  ;;  %v6874_v26 = vld [vmem:[%s9588_s5] ss:$0 sm:$0xff]  ;;  %v735_v37 = vld [vmem:[%s9586_s3 + $0x8] sm:$0xff]  ;;  %s6669_s23 = smov 96  }
  0x1e   : > { %591 = vmatpush.msra.mxu0 %v537_v3  ;;  %v520_v15 = vld [vmem:[%s6845_s27] sm:$0xff]  ;;  %v521_v16 = vld [vmem:[%s6845_s27 + $0x8] sm:$0xff]  ;;  %v522_v17 = vld [vmem:[%s6845_s27 + $0x10] sm:$0xff]  ;;  %s6138_s30 = sshll.u32 %s6778_s25, 2 }
  0x1f   : > { %v523_v18 = vld [vmem:[%s6845_s27 + $0x18] sm:$0xff]  ;;  %v524_v19 = vld [vmem:[%s6845_s27 + $0x20] sm:$0xff]  ;;  %v525_v20 = vld [vmem:[%s6845_s27 + $0x28] sm:$0xff]  ;;  %s5785_s19 = scalar_lea.hbm %s9599_s16, %s6138_s30 }
  0x20   : > { %592 = vmatpush.msra.mxu0 %v536_v5  ;;  %v526_v21 = vld [vmem:[%s6845_s27 + $0x30] sm:$0xff]  ;;  %v527_v22 = vld [vmem:[%s6845_s27 + $0x38] sm:$0xff]  ;;  %v528_v23 = vld [vmem:[%s6845_s27 + $0x40] sm:$0xff] }
  0x21   : > { %v529_v24 = vld [vmem:[%s6845_s27 + $0x48] sm:$0xff]  ;;  %v6879_v27 = vld [vmem:[%s9585_s2] ss:$0 sm:$0xff]  ;;  %v530_v54 = vld [vmem:[%s6845_s27 + $0x50] sm:$0xff]  ;;  %v6210_v56 = vpop.eup %6209 }
  0x22   : > { %593 = vmatpush.msra.mxu0 %v535_v7  ;;  %v734_v30 = vld [vmem:[%s9586_s3] sm:$0xff]  ;;  %v643_v48 = vld [vmem:[%s9612_s1 + $0x48] sm:$0xff]  ;;  %v531_v58 = vld [vmem:[%s6845_s27 + $0x58] sm:$0xff]  ;;  %v807_v59 = vmul.f32 32.0, %v6210_v56  ;;  %vm811_vm10 = vweird.f32 %v6210_v56  ;;  %s5789_s27 = sshll.u32 %s5785_s19, 4  ;;  %s5790_s27 = int_to_ptr.hbm [resolvable:$true] %s5789_s27 }
  0x23   : > { %vm655_vm8 = vcmp.gt.f32.partialorder %v643_v48, 0.5  ;;  %v642_v50 = vld [vmem:[%s9612_s1 + $0x40] sm:$0xff]  ;;  %s6617_s29 = sshra.s32 %s5790_s27, 4  ;;  %s6618_s29 = int_to_ptr.hbm [resolvable:$true] %s6617_s29 }
  0x24   : > { %594 = vmatpush.msra.mxu0 %v534_v11  ;;  %v668_v49 = vsel %vm655_vm8, 1, %v6667_v2  ;;  %vm654_vm9 = vcmp.gt.f32.partialorder %v642_v50, 0.5  ;;  %v808_v60 = vsub.f32 1.0, %v807_v59  ;;  %s6619_s18 = scalar_lea.hbm %s6618_s29, 4  ;;  %p6624_p0 = scmp.lt.s32.totalorder %s6618_s29, %s9599_s16 }
  0x25   : > { %675 = vperm.xlu0 %6197, %v660_v13   ;;  %v667_v51 = vsel %vm654_vm9, 1, %v6667_v2  ;;  %p6620_p11 = scmp.ne.s32.totalorder %s6618_s29, %s6619_s18 }
  0x26   : > { %595 = vmatpush.msra.mxu0 %v533_v12  ;;  %v809_v62 = vmul.f32 %v6210_v56, %v808_v60 }
  0x27   : > { %p6621_p12 = pnand %p6620_p11, %p6795_p5 }
  0x28   : > { %596 = vmatpush.msra.mxu0 %v532_v14  ;;  %v810_v63 = vadd.f32 %v6210_v56, %v809_v62 }
  0x29   : > { %5855 = vmatmul.msk.f32.vlgmr.msra.gmra.mxu0 %vm544_vm3, %v520_v15  ;;  %p6622_p13 = pneg %p6621_p12 }
  0x2a   : > { %v6928_v0 = vsel %vm811_vm10, %v6210_v56, %v810_v63 }
  0x31   : > { %5856 = vmatmul.msk.f32.gmra.mxu0 %vm544_vm3, %v521_v16 }
  0x39   : > { %5857 = vmatmul.msk.f32.gmra.mxu0 %vm544_vm3, %v522_v17 }
  0x41   : > { %5858 = vmatmul.msk.f32.gmra.mxu0 %vm544_vm3, %v523_v18  ;;  %v645_v18 = vld [vmem:[%s9612_s1 + $0x58] sm:$0xff] }
  0x42   : > { %vm657_vm11 = vcmp.gt.f32.partialorder %v645_v18, 0.5 }
  0x49   : > { %5859 = vmatmul.msk.f32.gmra.mxu0 %vm544_vm3, %v524_v19 }
  0x51   : > { %5860 = vmatmul.msk.f32.gmra.mxu0 %vm544_vm3, %v525_v20 }
  0x59   : > { %5861 = vmatmul.msk.f32.gmra.mxu0 %vm544_vm3, %v526_v21 }
  0x61   : > { %5862 = vmatmul.msk.f32.gmra.mxu0 %vm544_vm3, %v527_v22 }
  0x69   : > { %5863 = vmatmul.msk.f32.gmra.mxu0 %vm544_vm3, %v528_v23  ;;  %v743_v23 = vld [vmem:[%s9586_s3 + $0x48] sm:$0xff] }
  0x71   : > { %5864 = vmatmul.msk.f32.gmra.mxu0 %vm544_vm3, %v529_v24  ;;  %v670_v24 = vsel %vm657_vm11, 1, %v6667_v2 }
  0x79   : > { %5865 = vmatmul.msk.f32.gmra.mxu0 %vm544_vm3, %v530_v54 }
  0x81   : > { %5866 = vmatmul.msk.f32.gmra.mxu0 %vm544_vm3, %v531_v58 }
  0x8f   : > { %v673_v25 = vpop.permute.xlu0 %672  ;;  %v679_v40 = vpop.permute.xlu1 %678 }
  0x90   : > { %vm707_vm4 = vcmp.eq.s32.totalorder %v673_v25, 1  ;;  %vm709_vm7 = vcmp.eq.s32.totalorder %v679_v40, 1 }
  0x97   : > { %v676_v34 = vpop.permute.xlu0 %675 }
  0x98   : > { %vm708_vm6 = vcmp.eq.s32.totalorder %v676_v34, 1 }
  0xa6   : > { %v598_v28 = vpop.f32.mrf.mxu0 }
  0xa7   : > { %v599_v29 = vadd.f32 %v6874_v26, %v598_v28 }
  0xa9   : > { %v722_v31 = vsel %vm707_vm4, %v6879_v27, %v599_v29 }
  0xaa   : > { %v6886_v32 = vadd.f32 %v734_v30, %v722_v31  ;;  %v644_v30 = vld [vmem:[%s9612_s1 + $0x50] sm:$0xff] }
  0xab   : > { %vm656_vm13 = vcmp.gt.f32.partialorder %v644_v30, 0.5  ;;  %v744_v30 = vld [vmem:[%s9586_s3 + $0x50] sm:$0xff] }
  0xac   : > { %v770_v33 = vsel %vm769_vm5, %v6886_v32, 0.0  ;;  %v669_v31 = vsel %vm656_vm13, 1, %v6667_v2 }
  0xad   : > { %771 = vadd.xlane.f32.xlu1 %v770_v33  ;;  %v637_v33 = vld [vmem:[%s9612_s1 + $0x18] sm:$0xff] }
  0xae   : > { %v601_v35 = vpop.f32.mrf.mxu0  ;;  %vm649_vm14 = vcmp.gt.f32.partialorder %v637_v33, 0.5 }
  0xaf   : > { %v602_v36 = vadd.f32 %v6874_v26, %v601_v35  ;;  %v662_v34 = vsel %vm649_vm14, 1, %v6667_v2 }
  0xb1   : > { %v723_v38 = vsel %vm708_vm6, %v6879_v27, %v602_v36 }
  0xb2   : > { %v6895_v39 = vadd.f32 %v735_v37, %v723_v38  ;;  %v742_v38 = vld [vmem:[%s9586_s3 + $0x40] sm:$0xff] }
  0xb4   : > { %v773_v41 = vsel %vm769_vm5, %v6895_v39, 0.0 }
  0xb5   : > { %774 = vadd.xlane.f32.xlu2 %v773_v41 }
  0xb6   : > { %v604_v42 = vpop.f32.mrf.mxu0 }
  0xb7   : > { %v605_v43 = vadd.f32 %v6874_v26, %v604_v42  ;;  %v1070_v42 = vld [vmem:[%s9590_s7 + $0x18] sm:$0xff] }
  0xb8   : > { %1123 = vmatpush.msra.mxu1 %v1070_v42  ;;  %6141 = vmatpush.msra.mxu2 %v1070_v42 }
  0xb9   : > { %v724_v45 = vsel %vm709_vm7, %v6879_v27, %v605_v43  ;;  %v1069_v43 = vld [vmem:[%s9590_s7 + $0x10] sm:$0xff] }
  0xba   : > { %v6904_v46 = vadd.f32 %v736_v44, %v724_v45  ;;  %1124 = vmatpush.msra.mxu1 %v1069_v43  ;;  %6142 = vmatpush.msra.mxu2 %v1069_v43  ;;  %v1068_v44 = vld [vmem:[%s9590_s7 + $0x8] sm:$0xff]  ;;  %v1067_v45 = vld [vmem:[%s9590_s7] sm:$0xff] }
  0xbc   : > { %v776_v47 = vsel %vm769_vm5, %v6904_v46, 0.0  ;;  %1125 = vmatpush.msra.mxu1 %v1068_v44  ;;  %6143 = vmatpush.msra.mxu2 %v1068_v44 }
  0xbd   : > { %777 = vadd.xlane.f32.xlu2 %v776_v47 }
  0xbe   : > { %v6916_v52 = vpop.f32.mrf.mxu0  ;;  %1126 = vmatpush.msra.mxu1 %v1067_v45  ;;  %6144 = vmatpush.msra.mxu2 %v1067_v45 }
  0xc6   : > { %699 = vperm.xlu1 %6198, %v668_v49   ;;  %v6918_v53 = vpop.f32.mrf.mxu0 }
  0xce   : > { %v6922_v57 = vpop.f32.mrf.mxu0 }
  0xd5   : > { %696 = vperm.xlu2 %6199, %v667_v51  }
  0xd6   : > { %v6926_v61 = vpop.f32.mrf.mxu0 }
  0xde   : > { %v6930_v1 = vpop.f32.mrf.mxu0 }
  0xe6   : > { %v622_v10 = vpop.f32.mrf.mxu0 }
  0xe7   : > { %v623_v36 = vadd.f32 %v6874_v26, %v622_v10 }
  0xee   : > { %v625_v17 = vpop.f32.mrf.mxu0 }
  0xef   : > { %v626_v20 = vadd.f32 %v6874_v26, %v625_v17 }
  0xf6   : > { %v628_v50 = vpop.f32.mrf.mxu0 }
  0xfe   : > { %v631_v60 = vpop.f32.mrf.mxu0 }
 0x120   : > { %v772_v3 = vpop.xlane.xlu1 %771 }
 0x121   : > { %v813_v4 = vmul.f32 %v6928_v0, %v772_v3 }
 0x123   : > { %v6934_v5 = vsub.f32 %v6886_v32, %v813_v4  ;;  %v632_v4 = vadd.f32 %v6874_v26, %v631_v60 }
 0x125   : > { %v837_v6 = vmul.f32 %v6934_v5, %v6934_v5 }
 0x127   : > { %v849_v7 = vsel %vm769_vm5, %v837_v6, 0.0 }
 0x128   : > { %v775_v8 = vpop.xlane.xlu2 %774  ;;  %850 = vadd.xlane.f32.xlu0 %v849_v7  ;;  %v768_v7 = vld [vmem:[%s9589_s6] sm:$0xf] }
 0x129   : > { %v814_v9 = vmul.f32 %v6928_v0, %v775_v8  ;;  %v7006_v17 = vperm.slane %v768_v7, 0 }
 0x12b   : > { %v6941_v11 = vsub.f32 %v6895_v39, %v814_v9 }
 0x12d   : > { %v838_v12 = vmul.f32 %v6941_v11, %v6941_v11 }
 0x12f   : > { %v852_v13 = vsel %vm769_vm5, %v838_v12, 0.0  ;;  %v745_v12 = vld [vmem:[%s9586_s3 + $0x58] sm:$0xff] }
 0x130   : > { %853 = vadd.xlane.f32.xlu2 %v852_v13  ;;  %v778_v14 = vpop.xlane.xlu2 %777 }
 0x131   : > { %v815_v15 = vmul.f32 %v6928_v0, %v778_v14 }
 0x133   : > { %v6948_v16 = vsub.f32 %v6904_v46, %v815_v15 }
 0x135   : > { %v839_v19 = vmul.f32 %v6948_v16, %v6948_v16 }
 0x137   : > { %v855_v21 = vsel %vm769_vm5, %v839_v19, 0.0  ;;  %v629_v19 = vadd.f32 %v6874_v26, %v628_v50 }
 0x138   : > { %856 = vadd.xlane.f32.xlu2 %v855_v21  ;;  %v700_v22 = vpop.permute.xlu1 %699  ;;  %v697_v35 = vpop.permute.xlu2 %696 }
 0x139   : > { %vm716_vm12 = vcmp.eq.s32.totalorder %v700_v22, 1  ;;  %vm715_vm15 = vcmp.eq.s32.totalorder %v697_v35, 1 }
 0x13a   : > { %v731_v25 = vsel %vm716_vm12, %v6879_v27, %v626_v20  ;;  %v730_v37 = vsel %vm715_vm15, %v6879_v27, %v623_v36 }
 0x13b   : > { %v6962_v28 = vadd.f32 %v743_v23, %v731_v25  ;;  %v6979_v40 = vadd.f32 %v742_v38, %v730_v37  ;;  %v7012_v23 = vperm.slane %v768_v7, 1 }
 0x13c   : > { %705 = vperm.xlu0 %6197, %v670_v24  }
 0x13d   : > { %v797_v29 = vsel %vm769_vm5, %v6962_v28, 0.0  ;;  %v794_v41 = vsel %vm769_vm5, %v6979_v40, 0.0 }
 0x13e   : > { %798 = vadd.xlane.f32.xlu1 %v797_v29 }
 0x150   : > { %702 = vperm.xlu2 %6199, %v669_v31  }
 0x157   : > { %681 = vperm.xlu1 %6198, %v662_v34  }
 0x179   : > { %795 = vadd.xlane.f32.xlu2 %v794_v41 }
 0x19b   : > { %v851_v47 = vpop.xlane.xlu0 %850 }
 0x19c   : > { %v885_v48 = vmul.f32 %v851_v47, %v6928_v0 }
 0x19e   : > { %v897_v49 = vadd.f32 1e-05, %v885_v48 }
 0x1a0   : > { %6211 = vrsqrt.f32 %v897_v49  ;;  %vm915_vm1 = vweird.f32 %v897_v49 }
 0x1a3   : > { %v854_v51 = vpop.xlane.xlu2 %853 }
 0x1a4   : > { %v886_v54 = vmul.f32 %v854_v51, %v6928_v0 }
 0x1a6   : > { %v6212_v55 = vpop.eup %6211  ;;  %v898_v56 = vadd.f32 1e-05, %v886_v54 }
 0x1a7   : > { %v910_v58 = vmul.f32 %v6212_v55, %v897_v49  ;;  %vm916_vm0 = vweird.f32 %v6212_v55 }
 0x1a8   : > { %6213 = vrsqrt.f32 %v898_v56  ;;  %vm917_vm3 = vmor %vm915_vm1, %vm916_vm0  ;;  %vm925_vm7 = vweird.f32 %v898_v56 }
 0x1a9   : > { %v911_v59 = vmul.f32 %v6212_v55, %v910_v58 }
 0x1ab   : > { %v912_v62 = vmul.f32 0.5, %v911_v59  ;;  %v857_v63 = vpop.xlane.xlu2 %856 }
 0x1ac   : > { %v887_v3 = vmul.f32 %v857_v63, %v6928_v0 }
 0x1ad   : > { %v913_v6 = vsub.f32 1.5, %v912_v62 }
 0x1ae   : > { %v6214_v8 = vpop.eup %6213  ;;  %v899_v9 = vadd.f32 1e-05, %v887_v3  ;;  %v706_v10 = vpop.permute.xlu0 %705 }
 0x1af   : > { %v914_v13 = vmul.f32 %v6212_v55, %v913_v6  ;;  %v920_v14 = vmul.f32 %v6214_v8, %v898_v56  ;;  %vm718_vm2 = vcmp.eq.s32.totalorder %v706_v10, 1  ;;  %vm926_vm6 = vweird.f32 %v6214_v8  ;;  %v639_v56 = vld [vmem:[%s9612_s1 + $0x28] sm:$0xff] }
 0x1b0   : > { %6215 = vrsqrt.f32 %v899_v9  ;;  %v733_v15 = vsel %vm718_vm2, %v6879_v27, %v632_v4  ;;  %vm927_vm8 = vmor %vm925_vm7, %vm926_vm6  ;;  %vm935_vm10 = vweird.f32 %v899_v9  ;;  %vm651_vm13 = vcmp.gt.f32.partialorder %v639_v56, 0.5 }
 0x1b1   : > { %v921_v18 = vmul.f32 %v6214_v8, %v920_v14  ;;  %v7009_v20 = vadd.f32 %v745_v12, %v733_v15  ;;  %v918_v21 = vsel %vm917_vm3, %v6212_v55, %v914_v13  ;;  %v638_v55 = vld [vmem:[%s9612_s1 + $0x20] sm:$0xff]  ;;  %v799_v60 = vpop.xlane.xlu1 %798 }
 0x1b2   : > { %v1029_v22 = vmul.f32 %v918_v21, %v6934_v5  ;;  %vm650_vm12 = vcmp.gt.f32.partialorder %v638_v55, 0.5  ;;  %v822_v62 = vmul.f32 %v6928_v0, %v799_v60  ;;  %v738_v60 = vld [vmem:[%s9586_s3 + $0x20] sm:$0xff] }
 0x1b3   : > { %v922_v24 = vmul.f32 0.5, %v921_v18  ;;  %v703_v25 = vpop.permute.xlu2 %702  ;;  %v803_v29 = vsel %vm769_vm5, %v7009_v20, 0.0  ;;  %v663_v59 = vsel %vm650_vm12, 1, %v6667_v2 }
 0x1b4   : > { %vm717_vm4 = vcmp.eq.s32.totalorder %v703_v25, 1  ;;  %804 = vadd.xlane.f32.xlu2 %v803_v29  ;;  %v1042_v31 = vmul.f32 %v7006_v17, %v1029_v22  ;;  %v7046_v4 = vsub.f32 %v6962_v28, %v822_v62 }
 0x1b5   : > { %v923_v33 = vsub.f32 1.5, %v922_v24  ;;  %v732_v34 = vsel %vm717_vm4, %v6879_v27, %v629_v19 }
 0x1b6   : > { %v6216_v5 = vpop.eup %6215  ;;  %v1055_v35 = vadd.f32 %v7012_v23, %v1042_v31  ;;  %v7022_v36 = vadd.f32 %v744_v30, %v732_v34  ;;  %v614_v31 = vadd.f32 %v6874_v26, %v6922_v57  ;;  %v739_v34 = vld [vmem:[%s9586_s3 + $0x28] sm:$0xff] }
 0x1b7   : > { %v924_v37 = vmul.f32 %v6214_v8, %v923_v33  ;;  %v930_v38 = vmul.f32 %v6216_v5, %v899_v9  ;;  %vm936_vm9 = vweird.f32 %v6216_v5 }
 0x1b8   : > { %5867 = vmatmul.msk.f32.vlgmr.msra.gmra.mxu1 %vm769_vm5, %v1055_v35  ;;  %v800_v41 = vsel %vm769_vm5, %v7022_v36, 0.0  ;;  %vm937_vm11 = vmor %vm935_vm10, %vm936_vm9 }
 0x1b9   : > { %v931_v42 = vmul.f32 %v6216_v5, %v930_v38  ;;  %801 = vadd.xlane.f32.xlu0 %v800_v41  ;;  %v928_v43 = vsel %vm927_vm8, %v6214_v8, %v924_v37  ;;  %v846_v8 = vmul.f32 %v7046_v4, %v7046_v4  ;;  %v7082_v37 = vld [vmem:[%s9591_s8] ss:$0 sm:$0xff] }
 0x1ba   : > { %v1030_v44 = vmul.f32 %v928_v43, %v6941_v11 }
 0x1bb   : > { %v932_v45 = vmul.f32 0.5, %v931_v42  ;;  %v876_v10 = vsel %vm769_vm5, %v846_v8, 0.0 }
 0x1bc   : > { %v1043_v47 = vmul.f32 %v7006_v17, %v1030_v44 }
 0x1bd   : > { %v933_v48 = vsub.f32 1.5, %v932_v45 }
 0x1be   : > { %v1056_v49 = vadd.f32 %v7012_v23, %v1043_v47  ;;  %v608_v47 = vadd.f32 %v6874_v26, %v6916_v52  ;;  %v611_v52 = vadd.f32 %v6874_v26, %v6918_v53 }
 0x1bf   : > { %v934_v50 = vmul.f32 %v6216_v5, %v933_v48 }
 0x1c0   : > { %5868 = vmatmul.msk.f32.gmra.mxu1 %vm769_vm5, %v1056_v49 }
 0x1c1   : > { %v938_v51 = vsel %vm937_vm11, %v6216_v5, %v934_v50 }
 0x1c2   : > { %v1031_v54 = vmul.f32 %v938_v51, %v6948_v16  ;;  %v664_v16 = vsel %vm651_vm13, 1, %v6667_v2  ;;  %v737_v51 = vld [vmem:[%s9586_s3 + $0x18] sm:$0xff] }
 0x1c4   : > { %v1044_v11 = vmul.f32 %v7006_v17, %v1031_v54 }
 0x1c6   : > { %v1057_v58 = vadd.f32 %v7012_v23, %v1044_v11 }
 0x1c8   : > { %5869 = vmatmul.msk.f32.gmra.mxu1 %vm769_vm5, %v1057_v58 }
 0x1c9   : > { %v682_v45 = vpop.permute.xlu1 %681 }
 0x1ca   : > { %vm710_vm15 = vcmp.eq.s32.totalorder %v682_v45, 1 }
 0x1cb   : > { %v725_v49 = vsel %vm710_vm15, %v6879_v27, %v608_v47 }
 0x1cc   : > { %684 = vperm.xlu2 %6199, %v663_v59   ;;  %v7109_v56 = vadd.f32 %v737_v51, %v725_v49 }
 0x1cd   : > { %687 = vperm.xlu0 %6197, %v664_v16  }
 0x1ce   : > { %v779_v59 = vsel %vm769_vm5, %v7109_v56, 0.0 }
 0x1ec   : > { %v796_v63 = vpop.xlane.xlu2 %795 }
 0x1ed   : > { %v821_v3 = vmul.f32 %v6928_v0, %v796_v63 }
 0x1ef   : > { %v7049_v6 = vsub.f32 %v6979_v40, %v821_v3 }
 0x1f1   : > { %v845_v7 = vmul.f32 %v7049_v6, %v7049_v6 }
 0x1f3   : > { %v873_v9 = vsel %vm769_vm5, %v845_v7, 0.0 }
 0x1f5   : > { %874 = vadd.xlane.f32.xlu2 %v873_v9 }
 0x1f7   : > { %877 = vadd.xlane.f32.xlu0 %v876_v10 }
 0x227   : > { %v805_v12 = vpop.xlane.xlu2 %804 }
 0x228   : > { %v824_v13 = vmul.f32 %v6928_v0, %v805_v12 }
 0x22a   : > { %v7059_v14 = vsub.f32 %v7009_v20, %v824_v13 }
 0x22c   : > { %v802_v15 = vpop.xlane.xlu0 %801  ;;  %v848_v18 = vmul.f32 %v7059_v14, %v7059_v14 }
 0x22d   : > { %v823_v19 = vmul.f32 %v6928_v0, %v802_v15 }
 0x22e   : > { %v882_v21 = vsel %vm769_vm5, %v848_v18, 0.0 }
 0x22f   : > { %v7066_v22 = vsub.f32 %v7022_v36, %v823_v19  ;;  %883 = vadd.xlane.f32.xlu1 %v882_v21  ;;  %v685_v44 = vpop.permute.xlu2 %684 }
 0x230   : > { %vm711_vm0 = vcmp.eq.s32.totalorder %v685_v44, 1 }
 0x231   : > { %v847_v24 = vmul.f32 %v7066_v22, %v7066_v22  ;;  %v726_v16 = vsel %vm711_vm0, %v6879_v27, %v611_v52 }
 0x232   : > { %v7119_v7 = vadd.f32 %v738_v60, %v726_v16 }
 0x233   : > { %v879_v25 = vsel %vm769_vm5, %v847_v24, 0.0 }
 0x234   : > { %880 = vadd.xlane.f32.xlu0 %v879_v25  ;;  %v782_v53 = vsel %vm769_vm5, %v7119_v7, 0.0 }
 0x235   : > { %v1128_v29 = vpop.f32.mrf.mxu1 }
 0x236   : > { %v7097_v43 = vadd.f32 %v7082_v37, %v1128_v29 }
 0x23d   : > { %v1131_v30 = vpop.f32.mrf.mxu1 }
 0x23e   : > { %v7087_v57 = vadd.f32 %v7082_v37, %v1131_v30 }
 0x23f   : > { %v688_v33 = vpop.permute.xlu0 %687 }
 0x240   : > { %vm712_vm14 = vcmp.eq.s32.totalorder %v688_v33, 1 }
 0x241   : > { %v727_v5 = vsel %vm712_vm14, %v6879_v27, %v614_v31 }
 0x242   : > { %v7077_v35 = vadd.f32 %v739_v34, %v727_v5  ;;  %v640_v34 = vld [vmem:[%s9612_s1 + $0x30] sm:$0xff] }
 0x243   : > { %vm652_vm8 = vcmp.gt.f32.partialorder %v640_v34, 0.5 }
 0x244   : > { %v785_v38 = vsel %vm769_vm5, %v7077_v35, 0.0 }
 0x245   : > { %v1134_v41 = vpop.f32.mrf.mxu1  ;;  %786 = vadd.xlane.f32.xlu1 %v785_v38 }
 0x246   : > { %v7090_v42 = vadd.f32 %v7082_v37, %v1134_v41 }
 0x248   : > { %1176 = vrot.lane.b32.xlu2 %v7090_v42, %s6669_s23  ;;  %1174 = vrot.lane.b32.xlu0 %v7087_v57, %s6669_s23 }
 0x250   : > { %1172 = vrot.lane.b32.xlu0 %v7097_v43, %s6669_s23 }
 0x268   : > { %v875_v48 = vpop.xlane.xlu2 %874 }
 0x269   : > { %v893_v50 = vmul.f32 %v875_v48, %v6928_v0 }
 0x26a   : > { %v878_v54 = vpop.xlane.xlu0 %877 }
 0x26b   : > { %v905_v55 = vadd.f32 1e-05, %v893_v50  ;;  %v894_v11 = vmul.f32 %v878_v54, %v6928_v0 }
 0x26d   : > { %6217 = vrsqrt.f32 %v905_v55  ;;  %v906_v58 = vadd.f32 1e-05, %v894_v11  ;;  %vm995_vm2 = vweird.f32 %v905_v55 }
 0x26f   : > { %6219 = vrsqrt.f32 %v906_v58  ;;  %vm1005_vm6 = vweird.f32 %v906_v58 }
 0x271   : > { %780 = vadd.xlane.f32.xlu2 %v779_v59 }
 0x273   : > { %v6218_v62 = vpop.eup %6217 }
 0x274   : > { %v990_v63 = vmul.f32 %v6218_v62, %v905_v55  ;;  %vm996_vm1 = vweird.f32 %v6218_v62 }
 0x275   : > { %v6220_v3 = vpop.eup %6219  ;;  %vm997_vm4 = vmor %vm995_vm2, %vm996_vm1 }
 0x276   : > { %v991_v8 = vmul.f32 %v6218_v62, %v990_v63  ;;  %v1000_v9 = vmul.f32 %v6220_v3, %v906_v58  ;;  %vm1006_vm3 = vweird.f32 %v6220_v3 }
 0x277   : > { %vm1007_vm7 = vmor %vm1005_vm6, %vm1006_vm3  ;;  %vm1246_vm6 = vcmask 195584  }
 0x278   : > { %v992_v10 = vmul.f32 0.5, %v991_v8  ;;  %v1001_v12 = vmul.f32 %v6220_v3, %v1000_v9 }
 0x27a   : > { %v993_v13 = vsub.f32 1.5, %v992_v10  ;;  %v1002_v15 = vmul.f32 0.5, %v1001_v12  ;;  %783 = vadd.xlane.f32.xlu0 %v782_v53 }
 0x27c   : > { %v994_v18 = vmul.f32 %v6218_v62, %v993_v13  ;;  %v1003_v19 = vsub.f32 1.5, %v1002_v15 }
 0x27e   : > { %v1004_v21 = vmul.f32 %v6220_v3, %v1003_v19  ;;  %v998_v24 = vsel %vm997_vm4, %v6218_v62, %v994_v18 }
 0x27f   : > { %v1037_v25 = vmul.f32 %v998_v24, %v7049_v6  ;;  %v665_v6 = vsel %vm652_vm8, 1, %v6667_v2 }
 0x280   : > { %v1008_v29 = vsel %vm1007_vm7, %v6220_v3, %v1004_v21 }
 0x281   : > { %v1050_v30 = vmul.f32 %v7006_v17, %v1037_v25  ;;  %v1038_v33 = vmul.f32 %v1008_v29, %v7046_v4  ;;  %v758_v4 = vlaneseq }
 0x283   : > { %v1063_v31 = vadd.f32 %v7012_v23, %v1050_v30  ;;  %v1051_v5 = vmul.f32 %v7006_v17, %v1038_v33  ;;  %v7137_v41 = vand.u32 127, %v758_v4 }
 0x285   : > { %5875 = vmatmul.msk.f32.vlgmr.msra.gmra.mxu2 %vm769_vm5, %v1063_v31  ;;  %v1064_v38 = vadd.f32 %v7012_v23, %v1051_v5  ;;  %vm763_vm9 = vcmp.ge.s32.totalorder %v7137_v41, 16  ;;  %vm764_vm10 = vcmp.lt.s32.totalorder %v7137_v41, 32  ;;  %vm761_vm11 = vcmp.lt.s32.totalorder %v7137_v41, 16 }
 0x286   : > { %vm7142_vm12 = vmand %vm763_vm9, %vm764_vm10  ;;  %v1167_v4 = vsel %vm761_vm11, %v7087_v57, 0.0  ;;  %vm766_vm4 = vcmp.ge.s32.totalorder %v7137_v41, 17 }
 0x287   : > { %v1283_v5 = vsel %vm7142_vm12, %v7087_v57, 0.0 }
 0x28d   : > { %5876 = vmatmul.msk.f32.gmra.mxu2 %vm769_vm5, %v1064_v38  ;;  %v1166_v38 = vsel %vm761_vm11, %v7097_v43, 0.0 }
 0x28e   : > { %690 = vperm.xlu0 %6197, %v665_v6   ;;  %v1284_v6 = vsel %vm7142_vm12, %v7090_v42, 0.0 }
 0x296   : > { %1186 = vrot.lane.b32.xlu0 %v7087_v57, %s6670_s28 }
 0x2a2   : > { %v1177_v44 = vpop.permute.xlu2 %1176  ;;  %v884_v45 = vpop.xlane.xlu1 %883 }
 0x2a3   : > { %v896_v48 = vmul.f32 %v884_v45, %v6928_v0  ;;  %v1183_v49 = vsel %vm761_vm11, %v1177_v44, 0.0  ;;  %v1287_v50 = vsel %vm7142_vm12, %v1177_v44, 0.0  ;;  %v1168_v44 = vsel %vm761_vm11, %v7090_v42, 0.0 }
 0x2a4   : > { %5879 = vmatpush.xpose.msk.msrb.mxu2 %vm769_vm5, %v1183_v49  ;;  %5885 = vmatpush.xpose.msk.msra.mxu3 %vm769_vm5, %v1287_v50 }
 0x2a5   : > { %v908_v51 = vadd.f32 1e-05, %v896_v48 }
 0x2a7   : > { %6221 = vrsqrt.f32 %v908_v51  ;;  %v881_v54 = vpop.xlane.xlu0 %880  ;;  %vm1025_vm1 = vweird.f32 %v908_v51 }
 0x2a8   : > { %v895_v55 = vmul.f32 %v881_v54, %v6928_v0 }
 0x2aa   : > { %v907_v11 = vadd.f32 1e-05, %v895_v55 }
 0x2ac   : > { %6223 = vrsqrt.f32 %v907_v11  ;;  %vm1015_vm15 = vweird.f32 %v907_v11 }
 0x2ad   : > { %v6222_v58 = vpop.eup %6221 }
 0x2ae   : > { %v1020_v52 = vmul.f32 %v6222_v58, %v908_v51  ;;  %vm1026_vm14 = vweird.f32 %v6222_v58 }
 0x2af   : > { %vm1027_vm2 = vmor %vm1025_vm1, %vm1026_vm14 }
 0x2b0   : > { %v1021_v59 = vmul.f32 %v6222_v58, %v1020_v52 }
 0x2b2   : > { %v6224_v16 = vpop.eup %6223  ;;  %v1022_v60 = vmul.f32 0.5, %v1021_v59 }
 0x2b3   : > { %v1010_v62 = vmul.f32 %v6224_v16, %v907_v11  ;;  %vm1016_vm13 = vweird.f32 %v6224_v16 }
 0x2b4   : > { %v1023_v3 = vsub.f32 1.5, %v1022_v60  ;;  %vm1017_vm0 = vmor %vm1015_vm15, %vm1016_vm13 }
 0x2b5   : > { %v1011_v63 = vmul.f32 %v6224_v16, %v1010_v62 }
 0x2b6   : > { %v1024_v12 = vmul.f32 %v6222_v58, %v1023_v3 }
 0x2b7   : > { %v1012_v8 = vmul.f32 0.5, %v1011_v63  ;;  %v641_v63 = vld [vmem:[%s9612_s1 + $0x38] sm:$0xff] }
 0x2b8   : > { %v1028_v21 = vsel %vm1027_vm2, %v6222_v58, %v1024_v12  ;;  %v787_v45 = vpop.xlane.xlu1 %786  ;;  %vm653_vm3 = vcmp.gt.f32.partialorder %v641_v63, 0.5 }
 0x2b9   : > { %v1013_v9 = vsub.f32 1.5, %v1012_v8  ;;  %v1040_v30 = vmul.f32 %v1028_v21, %v7059_v14  ;;  %v818_v50 = vmul.f32 %v6928_v0, %v787_v45  ;;  %v666_v3 = vsel %vm653_vm3, 1, %v6667_v2 }
 0x2ba   : > { %v1175_v10 = vpop.permute.xlu0 %1174 }
 0x2bb   : > { %v1014_v53 = vmul.f32 %v6224_v16, %v1013_v9  ;;  %v1182_v13 = vsel %vm761_vm11, %v1175_v10, 0.0  ;;  %v1286_v15 = vsel %vm7142_vm12, %v1175_v10, 0.0  ;;  %v1053_v34 = vmul.f32 %v7006_v17, %v1040_v30 }
 0x2bc   : > { %5880 = vmatpush.xpose.msk.msrb.mxu2 %vm769_vm5, %v1182_v13  ;;  %5886 = vmatpush.xpose.msk.msra.mxu3 %vm769_vm5, %v1286_v15  ;;  %v7206_v54 = vsub.f32 %v7077_v35, %v818_v50  ;;  %v6671_v15 = vmov 0.0  }
 0x2bd   : > { %v1018_v18 = vsel %vm1017_vm0, %v6224_v16, %v1014_v53  ;;  %v1066_v14 = vadd.f32 %v7012_v23, %v1053_v34 }
 0x2be   : > { %v1039_v19 = vmul.f32 %v1018_v18, %v7066_v22  ;;  %v1282_v22 = vsel %vm7142_vm12, %v7097_v43, 0.0  ;;  %v842_v52 = vmul.f32 %v7206_v54, %v7206_v54  ;;  %v7232_v18 = vsel %vm766_vm4, -1e+30, %v6671_v15 }
 0x2c0   : > { %v1052_v24 = vmul.f32 %v7006_v17, %v1039_v19  ;;  %v864_v60 = vsel %vm769_vm5, %v842_v52, 0.0 }
 0x2c2   : > { %v1173_v25 = vpop.permute.xlu0 %1172  ;;  %v1065_v29 = vadd.f32 %v7012_v23, %v1052_v24 }
 0x2c3   : > { %v1181_v31 = vsel %vm761_vm11, %v1173_v25, 0.0  ;;  %v1285_v33 = vsel %vm7142_vm12, %v1173_v25, 0.0 }
 0x2c4   : > { %5877 = vmatmul.msk.f32.gmra.mxu2 %vm769_vm5, %v1065_v29  ;;  %5887 = vmatpush.xpose.msk.msra.mxu3 %vm769_vm5, %v1285_v33 }
 0x2c5   : > { %5881 = vmatpush.xpose.msk.msrb.mxu2 %vm769_vm5, %v1181_v31 }
 0x2c7   : > { %5888 = vmatmul.msk.f32.vlgmr.msra.gmra.mxu3 %vm769_vm5, %v1282_v22 }
 0x2cc   : > { %5878 = vmatmul.msk.f32.gmra.mxu2 %vm769_vm5, %v1066_v14 }
 0x2cf   : > { %5889 = vmatmul.msk.f32.gmra.mxu3 %vm769_vm5, %v1283_v5 }
 0x2d4   : > { %5882 = vmatmul.msk.f32.vlgmr.msrb.gmra.mxu2 %vm769_vm5, %v1166_v38 }
 0x2d7   : > { %5890 = vmatmul.msk.f32.gmra.mxu3 %vm769_vm5, %v1284_v6 }
 0x2dc   : > { %5883 = vmatmul.msk.f32.gmra.mxu2 %vm769_vm5, %v1167_v4 }
 0x2e4   : > { %v781_v48 = vpop.xlane.xlu2 %780  ;;  %5884 = vmatmul.msk.f32.gmra.mxu2 %vm769_vm5, %v1168_v44 }
 0x2e5   : > { %v816_v49 = vmul.f32 %v6928_v0, %v781_v48 }
 0x2e7   : > { %v7201_v51 = vsub.f32 %v7109_v56, %v816_v49 }
 0x2e9   : > { %v840_v57 = vmul.f32 %v7201_v51, %v7201_v51 }
 0x2eb   : > { %v858_v55 = vsel %vm769_vm5, %v840_v57, 0.0 }
 0x2ec   : > { %859 = vadd.xlane.f32.xlu1 %v858_v55 }
 0x2ed   : > { %v784_v11 = vpop.xlane.xlu0 %783 }
 0x2ee   : > { %v817_v58 = vmul.f32 %v6928_v0, %v784_v11 }
 0x2f0   : > { %v7213_v59 = vsub.f32 %v7119_v7, %v817_v58 }
 0x2f2   : > { %v841_v16 = vmul.f32 %v7213_v59, %v7213_v59 }
 0x2f4   : > { %865 = vadd.xlane.f32.xlu1 %v864_v60  ;;  %v861_v62 = vsel %vm769_vm5, %v841_v16, 0.0 }
 0x2f5   : > { %862 = vadd.xlane.f32.xlu2 %v861_v62 }
 0x308   : > { %v7223_v8 = vpop.f32.mrf.mxu2 }
 0x30d   : > { %693 = vperm.xlu2 %6199, %v666_v3  }
 0x310   : > { %v7225_v9 = vpop.f32.mrf.mxu2 }
 0x347   : > { %v7227_v10 = vpop.f32.mrf.mxu2 }
 0x34f   : > { %v7229_v12 = vpop.f32.mrf.mxu2 }
 0x357   : > { %v1231_v53 = vpop.f32.mrf.mxu2 }
 0x358   : > { %v1240_v13 = vmul.f32 0.25, %v1231_v53 }
 0x35a   : > { %v7235_v19 = vadd.f32 %v1240_v13, %v7232_v18 }
 0x35c   : > { %v1247_v2 = vsel %vm1246_vm6, %v7235_v19, -inf }
 0x35d   : > { %1248 = vmax.xlane.f32.xlu2 %v1247_v2 }
 0x35f   : > { %v1234_v21 = vpop.f32.mrf.mxu2  ;;  %v860_v24 = vpop.xlane.xlu1 %859 }
 0x360   : > { %v1241_v25 = vmul.f32 0.25, %v1234_v21  ;;  %v888_v29 = vmul.f32 %v860_v24, %v6928_v0 }
 0x362   : > { %v900_v30 = vadd.f32 1e-05, %v888_v29  ;;  %v7241_v31 = vadd.f32 %v1241_v25, %v7232_v18 }
 0x364   : > { %6225 = vrsqrt.f32 %v900_v30  ;;  %v1250_v33 = vsel %vm1246_vm6, %v7241_v31, -inf  ;;  %vm945_vm8 = vweird.f32 %v900_v30 }
 0x365   : > { %1251 = vmax.xlane.f32.xlu1 %v1250_v33 }
 0x367   : > { %v1237_v22 = vpop.f32.mrf.mxu2  ;;  %v866_v34 = vpop.xlane.xlu1 %865 }
 0x368   : > { %v1242_v14 = vmul.f32 0.25, %v1237_v22  ;;  %v890_v5 = vmul.f32 %v866_v34, %v6928_v0  ;;  %v863_v38 = vpop.xlane.xlu2 %862 }
 0x369   : > { %v889_v6 = vmul.f32 %v863_v38, %v6928_v0 }
 0x36a   : > { %v6226_v4 = vpop.eup %6225  ;;  %v902_v44 = vadd.f32 1e-05, %v890_v5  ;;  %v7248_v45 = vadd.f32 %v1242_v14, %v7232_v18 }
 0x36b   : > { %v940_v48 = vmul.f32 %v6226_v4, %v900_v30  ;;  %v901_v49 = vadd.f32 1e-05, %v889_v6  ;;  %vm946_vm7 = vweird.f32 %v6226_v4 }
 0x36c   : > { %6227 = vrsqrt.f32 %v902_v44  ;;  %v1253_v50 = vsel %vm1246_vm6, %v7248_v45, -inf  ;;  %vm947_vm9 = vmor %vm945_vm8, %vm946_vm7  ;;  %vm965_vm0 = vweird.f32 %v902_v44 }
 0x36d   : > { %v941_v57 = vmul.f32 %v6226_v4, %v940_v48  ;;  %6229 = vrsqrt.f32 %v901_v49  ;;  %1254 = vmax.xlane.f32.xlu2 %v1253_v50  ;;  %vm955_vm14 = vweird.f32 %v901_v49 }
 0x36f   : > { %v942_v55 = vmul.f32 0.5, %v941_v57 }
 0x371   : > { %v943_v11 = vsub.f32 1.5, %v942_v55 }
 0x372   : > { %v6228_v58 = vpop.eup %6227 }
 0x373   : > { %v6230_v52 = vpop.eup %6229  ;;  %v944_v16 = vmul.f32 %v6226_v4, %v943_v11  ;;  %v960_v60 = vmul.f32 %v6228_v58, %v902_v44  ;;  %vm966_vm13 = vweird.f32 %v6228_v58  ;;  %v694_v44 = vpop.permute.xlu2 %693 }
 0x374   : > { %v950_v62 = vmul.f32 %v6230_v52, %v901_v49  ;;  %vm956_vm10 = vweird.f32 %v6230_v52  ;;  %vm967_vm1 = vmor %vm965_vm0, %vm966_vm13  ;;  %vm714_vm2 = vcmp.eq.s32.totalorder %v694_v44, 1 }
 0x375   : > { %v961_v63 = vmul.f32 %v6228_v58, %v960_v60  ;;  %v948_v3 = vsel %vm947_vm9, %v6226_v4, %v944_v16  ;;  %vm957_vm15 = vmor %vm955_vm14, %vm956_vm10 }
 0x376   : > { %v951_v53 = vmul.f32 %v6230_v52, %v950_v62  ;;  %v1032_v13 = vmul.f32 %v948_v3, %v7201_v51 }
 0x377   : > { %v962_v15 = vmul.f32 0.5, %v961_v63 }
 0x378   : > { %v952_v2 = vmul.f32 0.5, %v951_v53  ;;  %v1045_v21 = vmul.f32 %v7006_v17, %v1032_v13 }
 0x379   : > { %v963_v24 = vsub.f32 1.5, %v962_v15 }
 0x37a   : > { %v953_v25 = vsub.f32 1.5, %v952_v2  ;;  %v1058_v29 = vadd.f32 %v7012_v23, %v1045_v21 }
 0x37b   : > { %v964_v33 = vmul.f32 %v6228_v58, %v963_v24 }
 0x37c   : > { %v954_v30 = vmul.f32 %v6230_v52, %v953_v25  ;;  %5870 = vmatmul.msk.f32.gmra.mxu1 %vm769_vm5, %v1058_v29  ;;  %v691_v25 = vpop.permute.xlu0 %690 }
 0x37d   : > { %v968_v34 = vsel %vm967_vm1, %v6228_v58, %v964_v33  ;;  %v620_v58 = vadd.f32 %v6874_v26, %v6930_v1  ;;  %vm713_vm3 = vcmp.eq.s32.totalorder %v691_v25, 1  ;;  %v740_v33 = vld [vmem:[%s9586_s3 + $0x30] sm:$0xff] }
 0x37e   : > { %v958_v22 = vsel %vm957_vm15, %v6230_v52, %v954_v30  ;;  %v1034_v38 = vmul.f32 %v968_v34, %v7206_v54 }
 0x37f   : > { %v1033_v51 = vmul.f32 %v958_v22, %v7213_v59  ;;  %v729_v52 = vsel %vm714_vm2, %v6879_v27, %v620_v58 }
 0x380   : > { %v1047_v6 = vmul.f32 %v7006_v17, %v1034_v38 }
 0x381   : > { %v1046_v14 = vmul.f32 %v7006_v17, %v1033_v51 }
 0x382   : > { %v1060_v4 = vadd.f32 %v7012_v23, %v1047_v6 }
 0x383   : > { %v1059_v5 = vadd.f32 %v7012_v23, %v1046_v14  ;;  %v1326_v14 = vpop.f32.mrf.mxu3 }
 0x384   : > { %v1187_v51 = vpop.permute.xlu0 %1186 }
 0x385   : > { %1184 = vrot.lane.b32.xlu2 %v7097_v43, %s6670_s28  ;;  %5871 = vmatmul.msk.f32.gmra.mxu1 %vm769_vm5, %v1059_v5 }
 0x38d   : > { %5872 = vmatmul.msk.f32.gmra.mxu1 %vm769_vm5, %v1060_v4 }
 0x3d0   : > { %v1249_v59 = vpop.xlane.xlu2 %1248 }
 0x3d1   : > { %v1256_v48 = vsub.f32 %v7235_v19, %v1249_v59 }
 0x3d3   : > { %v1259_v49 = vmul.f32 1.442695, %v1256_v48 }
 0x3d5   : > { %6231 = vpow2.f32 %v1259_v49 }
 0x3d8   : > { %v1252_v50 = vpop.xlane.xlu1 %1251 }
 0x3d9   : > { %v1257_v54 = vsub.f32 %v7241_v31, %v1252_v50  ;;  %v741_v31 = vld [vmem:[%s9586_s3 + $0x38] sm:$0xff] }
 0x3da   : > { %v7282_v16 = vadd.f32 %v741_v31, %v729_v52 }
 0x3db   : > { %v7268_v57 = vpop.eup %6231  ;;  %v1261_v43 = vmul.f32 1.442695, %v1257_v54 }
 0x3dc   : > { %v1265_v55 = vsel %vm1246_vm6, %v7268_v57, 0.0  ;;  %v791_v60 = vsel %vm769_vm5, %v7282_v16, 0.0 }
 0x3dd   : > { %6233 = vpow2.f32 %v1261_v43  ;;  %1266 = vadd.xlane.f32.xlu1 %v1265_v55 }
 0x3e0   : > { %v1255_v3 = vpop.xlane.xlu2 %1254 }
 0x3e1   : > { %v1258_v13 = vsub.f32 %v7248_v45, %v1255_v3  ;;  %v617_v45 = vadd.f32 %v6874_v26, %v6926_v61  ;;  %v1329_v61 = vpop.f32.mrf.mxu3 }
 0x3e2   : > { %v1336_v44 = vmul.f32 0.25, %v1329_v61 }
 0x3e3   : > { %v7272_v11 = vpop.eup %6233  ;;  %v1263_v15 = vmul.f32 1.442695, %v1258_v13  ;;  %v728_v29 = vsel %vm713_vm3, %v6879_v27, %v617_v45 }
 0x3e4   : > { %v1268_v19 = vsel %vm1246_vm6, %v7272_v11, 0.0  ;;  %v7311_v30 = vadd.f32 %v740_v33, %v728_v29  ;;  %v1339_v54 = vadd.f32 %v1336_v44, %v7232_v18 }
 0x3e5   : > { %1269 = vadd.xlane.f32.xlu0 %v1268_v19  ;;  %6235 = vpow2.f32 %v1263_v15 }
 0x3e6   : > { %v788_v22 = vsel %vm769_vm5, %v7311_v30, 0.0 }
 0x3e8   : > { %v1185_v5 = vpop.permute.xlu2 %1184 }
 0x3eb   : > { %v6236_v21 = vpop.eup %6235 }
 0x3ec   : > { %v1271_v24 = vsel %vm1246_vm6, %v6236_v21, 0.0 }
 0x3ed   : > { %792 = vadd.xlane.f32.xlu0 %v791_v60 }
 0x3f6   : > { %1188 = vrot.lane.b32.xlu1 %v7090_v42, %s6670_s28 }
 0x3f9   : > { %v1137_v1 = vpop.f32.mrf.mxu1 }
 0x3fa   : > { %v7300_v42 = vadd.f32 %v7082_v37, %v1137_v1 }
 0x402   : > { %v1140_v62 = vpop.f32.mrf.mxu1 }
 0x403   : > { %v7295_v2 = vadd.f32 %v7082_v37, %v1140_v62 }
 0x405   : > { %v1558_v25 = vsel %vm7142_vm12, %v7295_v2, 0.0 }
 0x40a   : > { %v1143_v63 = vpop.f32.mrf.mxu1 }
 0x40b   : > { %v7289_v53 = vadd.f32 %v7082_v37, %v1143_v63 }
 0x40d   : > { %1454 = vrot.lane.b32.xlu2 %v7289_v53, %s6669_s23  ;;  %v1559_v45 = vsel %vm7142_vm12, %v7289_v53, 0.0 }
 0x415   : > { %1452 = vrot.lane.b32.xlu2 %v7295_v2, %s6669_s23 }
 0x41d   : > { %1450 = vrot.lane.b32.xlu2 %v7300_v42, %s6669_s23 }
 0x420   : > { %1272 = vadd.xlane.f32.xlu1 %v1271_v24 }
 0x446   : > { %789 = vadd.xlane.f32.xlu2 %v788_v22 }
 0x450   : > { %v1267_v38 = vpop.xlane.xlu1 %1266 }
 0x451   : > { %6237 = vrcp.f32 %v1267_v38  ;;  %v1332_v38 = vpop.f32.mrf.mxu3 }
 0x457   : > { %v6238_v50 = vpop.eup %6237 }
 0x458   : > { %v1270_v34 = vpop.xlane.xlu0 %1269  ;;  %v1277_v43 = vmul.f32 %v6238_v50, %v7268_v57  ;;  %v1344_v57 = vsel %vm1246_vm6, %v1339_v54, -inf }
 0x459   : > { %6239 = vrcp.f32 %v1270_v34 }
 0x45f   : > { %v6240_v60 = vpop.eup %6239 }
 0x460   : > { %v793_v6 = vpop.xlane.xlu0 %792  ;;  %v1278_v1 = vmul.f32 %v6240_v60, %v7272_v11  ;;  %v1557_v11 = vsel %vm7142_vm12, %v7300_v42, 0.0 }
 0x461   : > { %v820_v26 = vmul.f32 %v6928_v0, %v793_v6  ;;  %v1337_v6 = vmul.f32 0.25, %v1332_v38 }
 0x463   : > { %v7317_v27 = vsub.f32 %v7282_v16, %v820_v26  ;;  %v1340_v61 = vadd.f32 %v1337_v6, %v7232_v18 }
 0x465   : > { %v844_v4 = vmul.f32 %v7317_v27, %v7317_v27 }
 0x467   : > { %v1455_v59 = vpop.permute.xlu2 %1454  ;;  %v870_v48 = vsel %vm769_vm5, %v844_v4, 0.0  ;;  %v1347_v4 = vsel %vm1246_vm6, %v1340_v61, -inf }
 0x468   : > { %871 = vadd.xlane.f32.xlu0 %v870_v48  ;;  %v1189_v49 = vpop.permute.xlu1 %1188  ;;  %v1461_v55 = vsel %vm761_vm11, %v1455_v59, 0.0  ;;  %v1562_v58 = vsel %vm7142_vm12, %v1455_v59, 0.0 }
 0x469   : > { %5891 = vmatpush.msk.msra.mxu2 %vm7142_vm12, %v1189_v49  ;;  %5897 = vmatpush.msk.msrb.mxu3 %vm761_vm11, %v1189_v49 }
 0x46b   : > { %5892 = vmatpush.msk.msra.mxu2 %vm7142_vm12, %v1187_v51  ;;  %5898 = vmatpush.msk.msrb.mxu3 %vm761_vm11, %v1187_v51  ;;  %v1335_v51 = vmul.f32 0.25, %v1326_v14 }
 0x46d   : > { %5893 = vmatpush.msk.msra.mxu2 %vm7142_vm12, %v1185_v5  ;;  %5899 = vmatpush.msk.msrb.mxu3 %vm761_vm11, %v1185_v5  ;;  %v1338_v5 = vadd.f32 %v1335_v51, %v7232_v18 }
 0x46e   : > { %5900 = vmatmul.msk.f32.vlgmr.msrb.gmra.mxu3 %vm1246_vm6, %v1277_v43 }
 0x46f   : > { %5903 = vmatpush.xpose.msk.msrb.mxu2 %vm769_vm5, %v1461_v55  ;;  %5909 = vmatpush.xpose.msk.msra.mxu3 %vm769_vm5, %v1562_v58  ;;  %v1453_v19 = vpop.permute.xlu2 %1452  ;;  %v1341_v26 = vsel %vm1246_vm6, %v1338_v5, -inf }
 0x470   : > { %1345 = vmax.xlane.f32.xlu0 %v1344_v57  ;;  %v1460_v52 = vsel %vm761_vm11, %v1453_v19, 0.0  ;;  %v1561_v31 = vsel %vm7142_vm12, %v1453_v19, 0.0 }
 0x473   : > { %5904 = vmatpush.xpose.msk.msrb.mxu2 %vm769_vm5, %v1460_v52  ;;  %5910 = vmatpush.xpose.msk.msra.mxu3 %vm769_vm5, %v1561_v31 }
 0x476   : > { %5901 = vmatmul.msk.f32.gmra.mxu3 %vm1246_vm6, %v1278_v1 }
 0x477   : > { %v1451_v62 = vpop.permute.xlu2 %1450 }
 0x478   : > { %v1459_v63 = vsel %vm761_vm11, %v1451_v62, 0.0  ;;  %v1560_v3 = vsel %vm7142_vm12, %v1451_v62, 0.0 }
 0x479   : > { %5905 = vmatpush.xpose.msk.msrb.mxu2 %vm769_vm5, %v1459_v63  ;;  %5911 = vmatpush.xpose.msk.msra.mxu3 %vm769_vm5, %v1560_v3 }
 0x493   : > { %v1273_v13 = vpop.xlane.xlu1 %1272 }
 0x494   : > { %6241 = vrcp.f32 %v1273_v13 }
 0x49a   : > { %v6242_v15 = vpop.eup %6241 }
 0x49b   : > { %v1279_v24 = vmul.f32 %v6242_v15, %v6236_v21 }
 0x49d   : > { %5902 = vmatmul.msk.f32.gmra.mxu3 %vm1246_vm6, %v1279_v24 }
 0x4a5   : > { %5912 = vmatmul.msk.f32.vlgmr.msra.gmra.mxu3 %vm769_vm5, %v1557_v11 }
 0x4ad   : > { %5913 = vmatmul.msk.f32.gmra.mxu3 %vm769_vm5, %v1558_v25 }
 0x4b5   : > { %5914 = vmatmul.msk.f32.gmra.mxu3 %vm769_vm5, %v1559_v45 }
 0x4b9   : > { %v790_v21 = vpop.xlane.xlu2 %789 }
 0x4ba   : > { %v819_v29 = vmul.f32 %v6928_v0, %v790_v21 }
 0x4bc   : > { %v7373_v33 = vsub.f32 %v7311_v30, %v819_v29 }
 0x4be   : > { %v843_v22 = vmul.f32 %v7373_v33, %v7373_v33 }
 0x4c0   : > { %v867_v34 = vsel %vm769_vm5, %v843_v22, 0.0 }
 0x4c1   : > { %868 = vadd.xlane.f32.xlu1 %v867_v34 }
 0x4c9   : > { %1342 = vmax.xlane.f32.xlu1 %v1341_v26 }
 0x4d1   : > { %1348 = vmax.xlane.f32.xlu1 %v1347_v4 }
 0x4db   : > { %v872_v44 = vpop.xlane.xlu0 %871 }
 0x4dc   : > { %v892_v19 = vmul.f32 %v872_v44, %v6928_v0 }
 0x4de   : > { %v904_v31 = vadd.f32 1e-05, %v892_v19 }
 0x4e0   : > { %vm985_vm10 = vweird.f32 %v904_v31 }
 0x4e3   : > { %v1346_v59 = vpop.xlane.xlu0 %1345 }
 0x4e4   : > { %v1351_v48 = vsub.f32 %v1339_v54, %v1346_v59 }
 0x4e6   : > { %v1355_v49 = vmul.f32 1.442695, %v1351_v48 }
 0x4e8   : > { %6243 = vpow2.f32 %v1355_v49 }
 0x4e9   : > { %6245 = vrsqrt.f32 %v904_v31 }
 0x4ee   : > { %v7382_v14 = vpop.eup %6243 }
 0x4ef   : > { %v1362_v50 = vsel %vm1246_vm6, %v7382_v14, 0.0  ;;  %v6246_v1 = vpop.eup %6245 }
 0x4f0   : > { %1363 = vadd.xlane.f32.xlu0 %v1362_v50  ;;  %v980_v3 = vmul.f32 %v6246_v1, %v904_v31  ;;  %vm986_vm7 = vweird.f32 %v6246_v1 }
 0x4f1   : > { %v7386_v43 = vpop.f32.mrf.mxu3  ;;  %vm987_vm13 = vmor %vm985_vm10, %vm986_vm7 }
 0x4f2   : > { %v981_v15 = vmul.f32 %v6246_v1, %v980_v3 }
 0x4f4   : > { %v982_v21 = vmul.f32 0.5, %v981_v15 }
 0x4f6   : > { %v983_v34 = vsub.f32 1.5, %v982_v21 }
 0x4f8   : > { %v984_v48 = vmul.f32 %v6246_v1, %v983_v34 }
 0x4f9   : > { %v7388_v55 = vpop.f32.mrf.mxu3 }
 0x520   : > { %v7390_v58 = vpop.f32.mrf.mxu3 }
 0x528   : > { %v1601_v57 = vpop.f32.mrf.mxu3 }
 0x529   : > { %v1610_v52 = vmul.f32 0.25, %v1601_v57 }
 0x52b   : > { %v7394_v54 = vadd.f32 %v1610_v52, %v7232_v18 }
 0x52d   : > { %v1616_v60 = vsel %vm1246_vm6, %v7394_v54, -inf }
 0x52e   : > { %1617 = vmax.xlane.f32.xlu0 %v1616_v60  ;;  %v988_v60 = vsel %vm987_vm13, %v6246_v1, %v984_v48 }
 0x530   : > { %v1604_v24 = vpop.f32.mrf.mxu3 }
 0x534   : > { %v869_v62 = vpop.xlane.xlu1 %868 }
 0x535   : > { %v891_v63 = vmul.f32 %v869_v62, %v6928_v0 }
 0x537   : > { %v903_v13 = vadd.f32 1e-05, %v891_v63 }
 0x538   : > { %v1607_v26 = vpop.f32.mrf.mxu3 }
 0x539   : > { %6247 = vrsqrt.f32 %v903_v13  ;;  %vm975_vm8 = vweird.f32 %v903_v13  ;;  %v1612_v50 = vmul.f32 0.25, %v1607_v26 }
 0x53c   : > { %v1343_v11 = vpop.xlane.xlu1 %1342 }
 0x53d   : > { %v1350_v25 = vsub.f32 %v1338_v5, %v1343_v11 }
 0x53f   : > { %v6248_v45 = vpop.eup %6247  ;;  %v1353_v29 = vmul.f32 1.442695, %v1350_v25  ;;  %v1611_v25 = vmul.f32 0.25, %v1604_v24 }
 0x540   : > { %v970_v22 = vmul.f32 %v6248_v45, %v903_v13  ;;  %vm976_vm4 = vweird.f32 %v6248_v45  ;;  %v1036_v13 = vmul.f32 %v988_v60, %v7317_v27  ;;  %v7419_v27 = vadd.f32 %v7082_v37, %v7223_v8 }
 0x541   : > { %6249 = vpow2.f32 %v1353_v29  ;;  %vm977_vm9 = vmor %vm975_vm8, %vm976_vm4  ;;  %v1614_v31 = vadd.f32 %v1611_v25, %v7232_v18 }
 0x542   : > { %v971_v51 = vmul.f32 %v6248_v45, %v970_v22  ;;  %1462 = vrot.lane.b32.xlu0 %v7300_v42, %s6670_s28 }
 0x544   : > { %v972_v38 = vmul.f32 0.5, %v971_v51  ;;  %v1349_v6 = vpop.xlane.xlu1 %1348 }
 0x545   : > { %v1352_v4 = vsub.f32 %v1340_v61, %v1349_v6  ;;  %v1615_v61 = vadd.f32 %v1612_v50, %v7232_v18 }
 0x546   : > { %v973_v44 = vsub.f32 1.5, %v972_v38 }
 0x547   : > { %v6250_v59 = vpop.eup %6249  ;;  %v1357_v5 = vmul.f32 1.442695, %v1352_v4  ;;  %v1622_v15 = vsel %vm1246_vm6, %v1615_v61, -inf }
 0x548   : > { %v974_v49 = vmul.f32 %v6248_v45, %v973_v44  ;;  %v1359_v19 = vsel %vm1246_vm6, %v6250_v59, 0.0 }
 0x549   : > { %6251 = vpow2.f32 %v1357_v5  ;;  %1360 = vadd.xlane.f32.xlu1 %v1359_v19 }
 0x54a   : > { %v978_v57 = vsel %vm977_vm9, %v6248_v45, %v974_v49  ;;  %v1619_v45 = vsel %vm1246_vm6, %v1614_v31, -inf }
 0x54b   : > { %v1035_v52 = vmul.f32 %v978_v57, %v7373_v33  ;;  %v1049_v33 = vmul.f32 %v7006_v17, %v1036_v13 }
 0x54d   : > { %v1048_v62 = vmul.f32 %v7006_v17, %v1035_v52  ;;  %v1062_v1 = vadd.f32 %v7012_v23, %v1049_v33 }
 0x54f   : > { %v6252_v63 = vpop.eup %6251  ;;  %v1061_v3 = vadd.f32 %v7012_v23, %v1048_v62 }
 0x550   : > { %v1365_v11 = vsel %vm1246_vm6, %v6252_v63, 0.0 }
 0x551   : > { %5873 = vmatmul.msk.f32.gmra.mxu1 %vm769_vm5, %v1061_v3  ;;  %1623 = vmax.xlane.f32.xlu1 %v1622_v15 }
 0x552   : > { %1366 = vadd.xlane.f32.xlu2 %v1365_v11  ;;  %v1445_v11 = vsel %vm761_vm11, %v7295_v2, 0.0 }
 0x559   : > { %5874 = vmatmul.msk.f32.gmra.mxu1 %vm769_vm5, %v1062_v1  ;;  %v1446_v1 = vsel %vm761_vm11, %v7289_v53, 0.0 }
 0x55a   : > { %1620 = vmax.xlane.f32.xlu2 %v1619_v45  ;;  %v7490_v45 = vadd.f32 %v7082_v37, %v7225_v9 }
 0x563   : > { %v1364_v17 = vpop.xlane.xlu0 %1363 }
 0x56a   : > { %1466 = vrot.lane.b32.xlu1 %v7289_v53, %s6670_s28 }
 0x572   : > { %1464 = vrot.lane.b32.xlu2 %v7295_v2, %s6670_s28  ;;  %1729 = vrot.lane.b32.xlu1 %v7419_v27, %s6669_s23  ;;  %v7484_v2 = vadd.f32 %v7082_v37, %v7229_v12 }
 0x5a1   : > { %v1618_v23 = vpop.xlane.xlu0 %1617 }
 0x5a2   : > { %v1625_v24 = vsub.f32 %v7394_v54, %v1618_v23 }
 0x5a4   : > { %v1628_v21 = vmul.f32 1.442695, %v1625_v24 }
 0x5a6   : > { %6253 = vpow2.f32 %v1628_v21 }
 0x5ac   : > { %v7426_v29 = vpop.eup %6253 }
 0x5ad   : > { %v1634_v22 = vsel %vm1246_vm6, %v7426_v29, 0.0 }
 0x5ae   : > { %1635 = vadd.xlane.f32.xlu0 %v1634_v22 }
 0x5b4   : > { %v1463_v13 = vpop.permute.xlu0 %1462 }
 0x5bc   : > { %v1361_v8 = vpop.xlane.xlu1 %1360 }
 0x5bd   : > { %6255 = vrcp.f32 %v1361_v8 }
 0x5be   : > { %6257 = vrcp.f32 %v1364_v17 }
 0x5c3   : > { %v6256_v51 = vpop.eup %6255 }
 0x5c4   : > { %v1371_v34 = vmul.f32 %v6256_v51, %v6250_v59  ;;  %v1624_v38 = vpop.xlane.xlu1 %1623  ;;  %v6258_v54 = vpop.eup %6257 }
 0x5c5   : > { %v1367_v6 = vpop.xlane.xlu2 %1366  ;;  %v1627_v26 = vsub.f32 %v1615_v61, %v1624_v38  ;;  %v1372_v44 = vmul.f32 %v6258_v54, %v7382_v14  ;;  %v7442_v14 = vadd.f32 %v7082_v37, %v7227_v10 }
 0x5c6   : > { %5894 = vmatmul.msk.f32.vlgmr.msra.gmra.mxu2 %vm1246_vm6, %v1371_v34 }
 0x5c7   : > { %v1632_v4 = vmul.f32 1.442695, %v1627_v26 }
 0x5c9   : > { %6259 = vpow2.f32 %v1632_v4 }
 0x5ca   : > { %6261 = vrcp.f32 %v1367_v6 }
 0x5cd   : > { %v1621_v48 = vpop.xlane.xlu2 %1620 }
 0x5ce   : > { %v1626_v5 = vsub.f32 %v1614_v31, %v1621_v48  ;;  %v1146_v49 = vpop.f32.mrf.mxu1  ;;  %5895 = vmatmul.msk.f32.gmra.mxu2 %vm1246_vm6, %v1372_v44 }
 0x5cf   : > { %v6260_v50 = vpop.eup %6259  ;;  %v7434_v19 = vadd.f32 %v7082_v37, %v1146_v49 }
 0x5d0   : > { %v1630_v59 = vmul.f32 1.442695, %v1626_v5  ;;  %v1640_v57 = vsel %vm1246_vm6, %v6260_v50, 0.0  ;;  %v6262_v52 = vpop.eup %6261 }
 0x5d1   : > { %1725 = vrot.lane.b32.xlu1 %v7434_v19, %s6669_s23  ;;  %1641 = vadd.xlane.f32.xlu2 %v1640_v57  ;;  %v1373_v61 = vmul.f32 %v6262_v52, %v6252_v63  ;;  %v1444_v63 = vsel %vm761_vm11, %v7300_v42, 0.0  ;;  %v1832_v57 = vsel %vm7142_vm12, %v7434_v19, 0.0 }
 0x5d2   : > { %6263 = vpow2.f32 %v1630_v59  ;;  %v1719_v59 = vsel %vm761_vm11, %v7434_v19, 0.0 }
 0x5d5   : > { %v1465_v10 = vpop.permute.xlu2 %1464 }
 0x5d6   : > { %5896 = vmatmul.msk.f32.gmra.mxu2 %vm1246_vm6, %v1373_v61  ;;  %v1149_v33 = vpop.f32.mrf.mxu1 }
 0x5d7   : > { %v7474_v31 = vadd.f32 %v7082_v37, %v1149_v33 }
 0x5d8   : > { %v6264_v60 = vpop.eup %6263 }
 0x5d9   : > { %2002 = vrot.lane.b32.xlu1 %v7442_v14, %s6669_s23  ;;  %v1637_v62 = vsel %vm1246_vm6, %v6264_v60, 0.0 }
 0x5da   : > { %1638 = vadd.xlane.f32.xlu0 %v1637_v62 }
 0x5dc   : > { %v1467_v3 = vpop.permute.xlu1 %1466 }
 0x5dd   : > { %5915 = vmatpush.msk.msra.mxu2 %vm7142_vm12, %v1467_v3  ;;  %5921 = vmatpush.msk.msrb.mxu3 %vm761_vm11, %v1467_v3 }
 0x5de   : > { %5906 = vmatmul.msk.f32.vlgmr.msrb.gmra.mxu2 %vm769_vm5, %v1444_v63 }
 0x5df   : > { %5916 = vmatpush.msk.msra.mxu2 %vm7142_vm12, %v1465_v10  ;;  %5922 = vmatpush.msk.msrb.mxu3 %vm761_vm11, %v1465_v10 }
 0x5e1   : > { %5917 = vmatpush.msk.msra.mxu2 %vm7142_vm12, %v1463_v13  ;;  %5923 = vmatpush.msk.msrb.mxu3 %vm761_vm11, %v1463_v13 }
 0x5e4   : > { %v1730_v15 = vpop.permute.xlu1 %1729 }
 0x5e5   : > { %v1837_v42 = vsel %vm7142_vm12, %v1730_v15, 0.0  ;;  %v1736_v25 = vsel %vm761_vm11, %v1730_v15, 0.0 }
 0x5e6   : > { %5907 = vmatmul.msk.f32.gmra.mxu2 %vm769_vm5, %v1445_v11  ;;  %5927 = vmatpush.xpose.msk.msrb.mxu1 %vm769_vm5, %v1736_v25  ;;  %v1720_v11 = vsel %vm761_vm11, %v7474_v31, 0.0  ;;  %v1833_v25 = vsel %vm7142_vm12, %v7474_v31, 0.0 }
 0x5e7   : > { %5933 = vmatpush.xpose.msk.msrb.mxu2 %vm769_vm5, %v1837_v42 }
 0x5ee   : > { %1727 = vrot.lane.b32.xlu0 %v7474_v31, %s6669_s23  ;;  %5908 = vmatmul.msk.f32.gmra.mxu2 %vm769_vm5, %v1446_v1 }
 0x5f6   : > { %2004 = vrot.lane.b32.xlu0 %v7484_v2, %s6669_s23 }
 0x5fe   : > { %2000 = vrot.lane.b32.xlu0 %v7490_v45, %s6669_s23 }
 0x621   : > { %v1636_v53 = vpop.xlane.xlu0 %1635 }
 0x622   : > { %6265 = vrcp.f32 %v1636_v53 }
 0x628   : > { %v6266_v17 = vpop.eup %6265 }
 0x629   : > { %v1646_v23 = vmul.f32 %v6266_v17, %v7426_v29 }
 0x62b   : > { %5918 = vmatmul.msk.f32.vlgmr.msra.gmra.mxu2 %vm1246_vm6, %v1646_v23 }
 0x643   : > { %v1726_v29 = vpop.permute.xlu1 %1725 }
 0x644   : > { %v1642_v21 = vpop.xlane.xlu2 %1641  ;;  %v1734_v48 = vsel %vm761_vm11, %v1726_v29, 0.0  ;;  %v1835_v5 = vsel %vm7142_vm12, %v1726_v29, 0.0  ;;  %v2108_v29 = vsel %vm7142_vm12, %v7442_v14, 0.0 }
 0x649   : > { %v7496_v24 = vpop.f32.mrf.mxu2 }
 0x64b   : > { %v2003_v62 = vpop.permute.xlu1 %2002 }
 0x64c   : > { %v2010_v10 = vsel %vm761_vm11, %v2003_v62, 0.0  ;;  %v2111_v13 = vsel %vm7142_vm12, %v2003_v62, 0.0 }
 0x64d   : > { %v1639_v12 = vpop.xlane.xlu0 %1638 }
 0x64e   : > { %6267 = vrcp.f32 %v1639_v12 }
 0x64f   : > { %6269 = vrcp.f32 %v1642_v21  ;;  %v1721_v21 = vsel %vm761_vm11, %v7419_v27, 0.0 }
 0x651   : > { %v7498_v22 = vpop.f32.mrf.mxu2 }
 0x654   : > { %v6268_v8 = vpop.eup %6267 }
 0x655   : > { %v1647_v37 = vmul.f32 %v6268_v8, %v6264_v60  ;;  %v6270_v51 = vpop.eup %6269  ;;  %v1834_v8 = vsel %vm7142_vm12, %v7419_v27, 0.0 }
 0x656   : > { %v1648_v34 = vmul.f32 %v6270_v51, %v6260_v50  ;;  %v2107_v51 = vsel %vm7142_vm12, %v7490_v45, 0.0 }
 0x657   : > { %5919 = vmatmul.msk.f32.gmra.mxu2 %vm1246_vm6, %v1647_v37  ;;  %v1994_v37 = vsel %vm761_vm11, %v7490_v45, 0.0 }
 0x659   : > { %v7501_v9 = vpop.f32.mrf.mxu2 }
 0x65f   : > { %5920 = vmatmul.msk.f32.gmra.mxu2 %vm1246_vm6, %v1648_v34  ;;  %v1995_v34 = vsel %vm761_vm11, %v7442_v14, 0.0 }
 0x660   : > { %v1728_v38 = vpop.permute.xlu0 %1727 }
 0x661   : > { %v1509_v6 = vpop.f32.mrf.mxu2  ;;  %v1735_v26 = vsel %vm761_vm11, %v1728_v38, 0.0  ;;  %v1836_v4 = vsel %vm7142_vm12, %v1728_v38, 0.0  ;;  %v1996_v38 = vsel %vm761_vm11, %v7484_v2, 0.0 }
 0x662   : > { %v1518_v54 = vmul.f32 0.25, %v1509_v6  ;;  %5928 = vmatpush.xpose.msk.msrb.mxu1 %vm769_vm5, %v1735_v26  ;;  %5934 = vmatpush.xpose.msk.msrb.mxu2 %vm769_vm5, %v1836_v4  ;;  %v2109_v6 = vsel %vm7142_vm12, %v7484_v2, 0.0 }
 0x664   : > { %v1521_v44 = vadd.f32 %v1518_v54, %v7232_v18 }
 0x666   : > { %5929 = vmatpush.xpose.msk.msrb.mxu1 %vm769_vm5, %v1734_v48  ;;  %5935 = vmatpush.xpose.msk.msrb.mxu2 %vm769_vm5, %v1835_v5  ;;  %v1524_v49 = vsel %vm1246_vm6, %v1521_v44, -inf }
 0x667   : > { %1525 = vmax.xlane.f32.xlu1 %v1524_v49 }
 0x668   : > { %v2005_v50 = vpop.permute.xlu0 %2004 }
 0x669   : > { %v2011_v52 = vsel %vm761_vm11, %v2005_v50, 0.0  ;;  %v2112_v61 = vsel %vm7142_vm12, %v2005_v50, 0.0  ;;  %5930 = vmatmul.msk.f32.vlgmr.msrb.gmra.mxu1 %vm769_vm5, %v1719_v59  ;;  %5936 = vmatmul.msk.f32.vlgmr.msrb.gmra.mxu2 %vm769_vm5, %v1832_v57  ;;  %v1512_v60 = vpop.f32.mrf.mxu2 }
 0x66a   : > { %v1519_v3 = vmul.f32 0.25, %v1512_v60  ;;  %5951 = vmatpush.xpose.msk.msra.mxu1 %vm769_vm5, %v2011_v52  ;;  %5957 = vmatpush.xpose.msk.msra.mxu2 %vm769_vm5, %v2112_v61 }
 0x66c   : > { %v1522_v63 = vadd.f32 %v1519_v3, %v7232_v18 }
 0x66e   : > { %5952 = vmatpush.xpose.msk.msra.mxu1 %vm769_vm5, %v2010_v10  ;;  %5958 = vmatpush.xpose.msk.msra.mxu2 %vm769_vm5, %v2111_v13  ;;  %v1527_v15 = vsel %vm1246_vm6, %v1522_v63, -inf }
 0x66f   : > { %1528 = vmax.xlane.f32.xlu0 %v1527_v15 }
 0x670   : > { %v2001_v42 = vpop.permute.xlu0 %2000 }
 0x671   : > { %5931 = vmatmul.msk.f32.gmra.mxu1 %vm769_vm5, %v1720_v11  ;;  %5937 = vmatmul.msk.f32.gmra.mxu2 %vm769_vm5, %v1833_v25  ;;  %v1515_v33 = vpop.f32.mrf.mxu2  ;;  %v2009_v1 = vsel %vm761_vm11, %v2001_v42, 0.0  ;;  %v2110_v53 = vsel %vm7142_vm12, %v2001_v42, 0.0 }
 0x672   : > { %v1520_v17 = vmul.f32 0.25, %v1515_v33  ;;  %5953 = vmatpush.xpose.msk.msra.mxu1 %vm769_vm5, %v2009_v1  ;;  %5959 = vmatpush.xpose.msk.msra.mxu2 %vm769_vm5, %v2110_v53 }
 0x674   : > { %v7555_v23 = vadd.f32 %v1520_v17, %v7232_v18 }
 0x676   : > { %v1530_v12 = vsel %vm1246_vm6, %v7555_v23, -inf }
 0x677   : > { %1531 = vmax.xlane.f32.xlu2 %v1530_v12 }
 0x679   : > { %5932 = vmatmul.msk.f32.gmra.mxu1 %vm769_vm5, %v1721_v21  ;;  %5938 = vmatmul.msk.f32.gmra.mxu2 %vm769_vm5, %v1834_v8 }
 0x681   : > { %5954 = vmatmul.msk.f32.vlgmr.msra.gmra.mxu1 %vm769_vm5, %v1994_v37  ;;  %5960 = vmatmul.msk.f32.vlgmr.msra.gmra.mxu2 %vm769_vm5, %v2107_v51 }
 0x689   : > { %5955 = vmatmul.msk.f32.gmra.mxu1 %vm769_vm5, %v1995_v34  ;;  %5961 = vmatmul.msk.f32.gmra.mxu2 %vm769_vm5, %v2108_v29 }
 0x691   : > { %5956 = vmatmul.msk.f32.gmra.mxu1 %vm769_vm5, %v1996_v38  ;;  %5962 = vmatmul.msk.f32.gmra.mxu2 %vm769_vm5, %v2109_v6 }
 0x6da   : > { %v1526_v26 = vpop.xlane.xlu1 %1525 }
 0x6db   : > { %v1533_v4 = vsub.f32 %v1521_v44, %v1526_v26 }
 0x6dd   : > { %v1536_v54 = vmul.f32 1.442695, %v1533_v4 }
 0x6df   : > { %6271 = vpow2.f32 %v1536_v54 }
 0x6e2   : > { %v1529_v48 = vpop.xlane.xlu0 %1528 }
 0x6e3   : > { %v1534_v5 = vsub.f32 %v1522_v63, %v1529_v48  ;;  %v7604_v63 = vpop.f32.mrf.mxu2 }
 0x6e5   : > { %v7591_v49 = vpop.eup %6271  ;;  %v1538_v50 = vmul.f32 1.442695, %v1534_v5 }
 0x6e6   : > { %v1784_v59 = vpop.f32.mrf.mxu1  ;;  %v1542_v57 = vsel %vm1246_vm6, %v7591_v49, 0.0 }
 0x6e7   : > { %6273 = vpow2.f32 %v1538_v50  ;;  %v1793_v52 = vmul.f32 0.25, %v1784_v59  ;;  %1543 = vadd.xlane.f32.xlu0 %v1542_v57 }
 0x6e9   : > { %v7596_v61 = vadd.f32 %v1793_v52, %v7232_v18 }
 0x6ea   : > { %v1532_v48 = vpop.xlane.xlu2 %1531 }
 0x6eb   : > { %v1799_v44 = vsel %vm1246_vm6, %v7596_v61, -inf  ;;  %v7611_v11 = vpop.f32.mrf.mxu2  ;;  %v1535_v5 = vsub.f32 %v7555_v23, %v1532_v48 }
 0x6ec   : > { %1800 = vmax.xlane.f32.xlu2 %v1799_v44 }
 0x6ed   : > { %v7600_v60 = vpop.eup %6273  ;;  %v1540_v59 = vmul.f32 1.442695, %v1535_v5 }
 0x6ee   : > { %v1787_v62 = vpop.f32.mrf.mxu1  ;;  %v1545_v3 = vsel %vm1246_vm6, %v7600_v60, 0.0 }
 0x6ef   : > { %v1794_v10 = vmul.f32 0.25, %v1787_v62  ;;  %1546 = vadd.xlane.f32.xlu0 %v1545_v3  ;;  %6275 = vpow2.f32 %v1540_v59 }
 0x6f1   : > { %v7607_v13 = vadd.f32 %v1794_v10, %v7232_v18 }
 0x6f3   : > { %v1802_v15 = vsel %vm1246_vm6, %v7607_v13, -inf  ;;  %v7618_v12 = vpop.f32.mrf.mxu2 }
 0x6f4   : > { %1803 = vmax.xlane.f32.xlu1 %v1802_v15 }
 0x6f5   : > { %v7640_v52 = vpop.eup %6275 }
 0x6f6   : > { %v1790_v42 = vpop.f32.mrf.mxu1  ;;  %v1548_v44 = vsel %vm1246_vm6, %v7640_v52, 0.0 }
 0x6f7   : > { %v1795_v25 = vmul.f32 0.25, %v1790_v42 }
 0x6f9   : > { %v7614_v33 = vadd.f32 %v1795_v25, %v7232_v18 }
 0x6fb   : > { %v1805_v1 = vsel %vm1246_vm6, %v7614_v33, -inf  ;;  %v1876_v34 = vpop.f32.mrf.mxu2 }
 0x6fc   : > { %1806 = vmax.xlane.f32.xlu2 %v1805_v1 }
 0x6fe   : > { %v2059_v53 = vpop.f32.mrf.mxu1 }
 0x6ff   : > { %v2068_v17 = vmul.f32 0.25, %v2059_v53 }
 0x701   : > { %v7621_v21 = vadd.f32 %v2068_v17, %v7232_v18 }
 0x703   : > { %v2074_v8 = vsel %vm1246_vm6, %v7621_v21, -inf  ;;  %1741 = vrot.lane.b32.xlu0 %v7419_v27, %s6670_s28  ;;  %v1879_v27 = vpop.f32.mrf.mxu2 }
 0x704   : > { %2075 = vmax.xlane.f32.xlu2 %v2074_v8 }
 0x706   : > { %v2062_v37 = vpop.f32.mrf.mxu1 }
 0x707   : > { %v2069_v51 = vmul.f32 0.25, %v2062_v37 }
 0x709   : > { %v7628_v29 = vadd.f32 %v2069_v51, %v7232_v18 }
 0x70b   : > { %v2077_v38 = vsel %vm1246_vm6, %v7628_v29, -inf  ;;  %v1882_v50 = vpop.f32.mrf.mxu2 }
 0x70c   : > { %2078 = vmax.xlane.f32.xlu2 %v2077_v38 }
 0x70d   : > { %1739 = vrot.lane.b32.xlu1 %v7474_v31, %s6670_s28  ;;  %v1887_v31 = vmul.f32 0.25, %v1882_v50 }
 0x70e   : > { %v2065_v6 = vpop.f32.mrf.mxu1 }
 0x70f   : > { %v2070_v26 = vmul.f32 0.25, %v2065_v6  ;;  %v7645_v3 = vadd.f32 %v1887_v31, %v7232_v18 }
 0x711   : > { %v7635_v4 = vadd.f32 %v2070_v26, %v7232_v18  ;;  %v1897_v23 = vsel %vm1246_vm6, %v7645_v3, -inf }
 0x713   : > { %v2080_v54 = vsel %vm1246_vm6, %v7635_v4, -inf  ;;  %v2151_v57 = vpop.f32.mrf.mxu2 }
 0x714   : > { %2081 = vmax.xlane.f32.xlu2 %v2080_v54  ;;  %v2160_v62 = vmul.f32 0.25, %v2151_v57 }
 0x716   : > { %v2163_v15 = vadd.f32 %v2160_v62, %v7232_v18 }
 0x718   : > { %v2166_v25 = vsel %vm1246_vm6, %v2163_v15, -inf }
 0x71b   : > { %v2154_v10 = vpop.f32.mrf.mxu2 }
 0x71c   : > { %v2161_v42 = vmul.f32 0.25, %v2154_v10 }
 0x71e   : > { %v7652_v1 = vadd.f32 %v2161_v42, %v7232_v18 }
 0x720   : > { %v2169_v8 = vsel %vm1246_vm6, %v7652_v1, -inf }
 0x723   : > { %v2157_v53 = vpop.f32.mrf.mxu2 }
 0x724   : > { %v2162_v17 = vmul.f32 0.25, %v2157_v53 }
 0x726   : > { %v7657_v37 = vadd.f32 %v2162_v17, %v7232_v18 }
 0x728   : > { %v2172_v51 = vsel %vm1246_vm6, %v7657_v37, -inf }
 0x72d   : > { %1549 = vadd.xlane.f32.xlu0 %v1548_v44 }
 0x735   : > { %1898 = vmax.xlane.f32.xlu0 %v1897_v23  ;;  %v1885_v23 = vmul.f32 0.25, %v1876_v34 }
 0x737   : > { %2167 = vmax.xlane.f32.xlu1 %v2166_v25  ;;  %v1886_v25 = vmul.f32 0.25, %v1879_v27 }
 0x739   : > { %v1889_v34 = vadd.f32 %v1886_v25, %v7232_v18 }
 0x73b   : > { %v1894_v17 = vsel %vm1246_vm6, %v1889_v34, -inf }
 0x73f   : > { %2170 = vmax.xlane.f32.xlu1 %v2169_v8 }
 0x747   : > { %2173 = vmax.xlane.f32.xlu1 %v2172_v51 }
 0x75a   : > { %v1544_v38 = vpop.xlane.xlu0 %1543 }
 0x75b   : > { %6277 = vrcp.f32 %v1544_v38 }
 0x75f   : > { %v1801_v6 = vpop.xlane.xlu2 %1800 }
 0x760   : > { %v1808_v26 = vsub.f32 %v7596_v61, %v1801_v6 }
 0x761   : > { %v6278_v54 = vpop.eup %6277 }
 0x762   : > { %v1554_v48 = vmul.f32 %v6278_v54, %v7591_v49  ;;  %v1811_v5 = vmul.f32 1.442695, %v1808_v26  ;;  %v1547_v50 = vpop.xlane.xlu0 %1546  ;;  %v1888_v49 = vadd.f32 %v1885_v23, %v7232_v18 }
 0x763   : > { %6279 = vrcp.f32 %v1547_v50 }
 0x764   : > { %6281 = vpow2.f32 %v1811_v5  ;;  %5924 = vmatmul.msk.f32.vlgmr.msrb.gmra.mxu3 %vm1246_vm6, %v1554_v48 }
 0x767   : > { %v1804_v59 = vpop.xlane.xlu1 %1803 }
 0x768   : > { %v1809_v57 = vsub.f32 %v7607_v13, %v1804_v59  ;;  %v1891_v13 = vsel %vm1246_vm6, %v1888_v49, -inf }
 0x769   : > { %v6280_v31 = vpop.eup %6279 }
 0x76a   : > { %v7665_v44 = vpop.eup %6281  ;;  %v1813_v62 = vmul.f32 1.442695, %v1809_v57  ;;  %v1555_v10 = vmul.f32 %v6280_v31, %v7600_v60 }
 0x76b   : > { %v1817_v61 = vsel %vm1246_vm6, %v7665_v44, 0.0 }
 0x76c   : > { %6283 = vpow2.f32 %v1813_v62  ;;  %1818 = vadd.xlane.f32.xlu2 %v1817_v61  ;;  %5925 = vmatmul.msk.f32.gmra.mxu3 %vm1246_vm6, %v1555_v10 }
 0x76f   : > { %v1807_v50 = vpop.xlane.xlu2 %1806 }
 0x772   : > { %v7672_v42 = vpop.eup %6283 }
 0x773   : > { %v1820_v53 = vsel %vm1246_vm6, %v7672_v42, 0.0 }
 0x774   : > { %1892 = vmax.xlane.f32.xlu2 %v1891_v13  ;;  %1821 = vadd.xlane.f32.xlu0 %v1820_v53 }
 0x775   : > { %v1742_v60 = vpop.permute.xlu0 %1741 }
 0x776   : > { %5939 = vmatpush.msk.msra.mxu3 %vm7142_vm12, %v1742_v60  ;;  %5945 = vmatpush.msk.msrb.mxu0 %vm761_vm11, %v1742_v60 }
 0x777   : > { %v2076_v59 = vpop.xlane.xlu2 %2075 }
 0x778   : > { %v2083_v13 = vsub.f32 %v7621_v21, %v2076_v59 }
 0x77c   : > { %1895 = vmax.xlane.f32.xlu2 %v1894_v17 }
 0x77f   : > { %v1740_v27 = vpop.permute.xlu1 %1739 }
 0x780   : > { %5940 = vmatpush.msk.msra.mxu3 %vm7142_vm12, %v1740_v27  ;;  %5946 = vmatpush.msk.msrb.mxu0 %vm761_vm11, %v1740_v27 }
 0x788   : > { %2016 = vrot.lane.b32.xlu0 %v7484_v2, %s6670_s28  ;;  %v2079_v2 = vpop.xlane.xlu2 %2078 }
 0x7a0   : > { %v1550_v8 = vpop.xlane.xlu0 %1549 }
 0x7a1   : > { %6285 = vrcp.f32 %v1550_v8 }
 0x7a7   : > { %v6286_v51 = vpop.eup %6285 }
 0x7a8   : > { %v1556_v38 = vmul.f32 %v6286_v51, %v7640_v52  ;;  %v7697_v52 = vpop.xlane.xlu2 %2081  ;;  %v1899_v60 = vpop.xlane.xlu0 %1898 }
 0x7aa   : > { %v2168_v6 = vpop.xlane.xlu1 %2167  ;;  %5926 = vmatmul.msk.f32.gmra.mxu3 %vm1246_vm6, %v1556_v38 }
 0x7ab   : > { %v2175_v26 = vsub.f32 %v2163_v15, %v2168_v6 }
 0x7ad   : > { %v2178_v54 = vmul.f32 1.442695, %v2175_v26 }
 0x7af   : > { %6287 = vpow2.f32 %v2178_v54 }
 0x7b2   : > { %v2171_v57 = vpop.xlane.xlu1 %2170 }
 0x7b5   : > { %v7691_v48 = vpop.eup %6287 }
 0x7b6   : > { %v2184_v5 = vsel %vm1246_vm6, %v7691_v48, 0.0 }
 0x7b7   : > { %2185 = vadd.xlane.f32.xlu0 %v2184_v5 }
 0x7ba   : > { %v2174_v15 = vpop.xlane.xlu1 %2173 }
 0x7bb   : > { %v2177_v62 = vsub.f32 %v7657_v37, %v2174_v15  ;;  %v1902_v37 = vsub.f32 %v7645_v3, %v1899_v60 }
 0x7bd   : > { %v2182_v10 = vmul.f32 1.442695, %v2177_v62 }
 0x7bf   : > { %6289 = vpow2.f32 %v2182_v10  ;;  %v1810_v10 = vsub.f32 %v7614_v33, %v1807_v50 }
 0x7c5   : > { %v7705_v8 = vpop.eup %6289 }
 0x7c6   : > { %v2190_v26 = vsel %vm1246_vm6, %v7705_v8, 0.0 }
 0x7cb   : > { %2012 = vrot.lane.b32.xlu0 %v7490_v45, %s6670_s28  ;;  %v2086_v45 = vmul.f32 1.442695, %v2083_v13 }
 0x7df   : > { %v7699_v31 = vpop.xlane.xlu2 %1818 }
 0x7e7   : > { %v1893_v23 = vpop.xlane.xlu2 %1892  ;;  %v7702_v25 = vpop.f32.mrf.mxu3 }
 0x7e8   : > { %v1900_v61 = vsub.f32 %v1888_v49, %v1893_v23  ;;  %v1815_v23 = vmul.f32 1.442695, %v1810_v10 }
 0x7ea   : > { %v1903_v53 = vmul.f32 1.442695, %v1900_v61  ;;  %v2176_v61 = vsub.f32 %v7652_v1, %v2171_v57  ;;  %v2085_v1 = vsub.f32 %v7635_v4, %v7697_v52  ;;  %v1439_v4 = vadd.f32 %v7388_v55, %v7498_v22 }
 0x7ec   : > { %6291 = vpow2.f32 %v1903_v53  ;;  %v2180_v13 = vmul.f32 1.442695, %v2176_v61  ;;  %v7767_v52 = vadd.f32 %v1439_v4, %v6895_v39 }
 0x7ed   : > { %6293 = vpow2.f32 %v2086_v45  ;;  %v2084_v45 = vsub.f32 %v7628_v29, %v2079_v2  ;;  %v2090_v2 = vmul.f32 1.442695, %v2085_v1 }
 0x7ef   : > { %v1896_v17 = vpop.xlane.xlu2 %1895  ;;  %v1713_v51 = vpop.f32.mrf.mxu3 }
 0x7f0   : > { %v1901_v27 = vsub.f32 %v1889_v34, %v1896_v17  ;;  %v1714_v21 = vadd.f32 %v1713_v51, %v7611_v11  ;;  %v1907_v34 = vmul.f32 1.442695, %v1902_v37  ;;  %v2284_v51 = vsel %vm769_vm5, %v7767_v52, 0.0 }
 0x7f2   : > { %v7707_v38 = vpop.eup %6291  ;;  %v1905_v49 = vmul.f32 1.442695, %v1901_v27  ;;  %v7718_v5 = vadd.f32 %v1714_v21, %v7119_v7  ;;  %v1442_v27 = vadd.f32 %v7390_v58, %v7501_v9 }
 0x7f3   : > { %v1909_v6 = vsel %vm1246_vm6, %v7707_v38, 0.0  ;;  %v7715_v54 = vpop.eup %6293 }
 0x7f4   : > { %6295 = vpow2.f32 %v1905_v49  ;;  %1910 = vadd.xlane.f32.xlu1 %v1909_v6  ;;  %v2092_v3 = vsel %vm1246_vm6, %v7715_v54, 0.0  ;;  %v2293_v15 = vsel %vm769_vm5, %v7718_v5, 0.0  ;;  %v7774_v37 = vadd.f32 %v1442_v27, %v6904_v46  ;;  %v1822_v49 = vpop.xlane.xlu0 %1821 }
 0x7f5   : > { %2191 = vadd.xlane.f32.xlu0 %v2190_v26  ;;  %6297 = vpow2.f32 %v1907_v34  ;;  %v1711_v27 = vadd.f32 %v7702_v25, %v7604_v63 }
 0x7f6   : > { %6299 = vpow2.f32 %v1815_v23  ;;  %v2287_v55 = vsel %vm769_vm5, %v7774_v37, 0.0 }
 0x7f7   : > { %6301 = vpow2.f32 %v2180_v13 }
 0x7fa   : > { %v7720_v59 = vpop.eup %6295 }
 0x7fb   : > { %v1912_v11 = vsel %vm1246_vm6, %v7720_v59, 0.0  ;;  %v7728_v62 = vpop.eup %6297 }
 0x7fc   : > { %2093 = vadd.xlane.f32.xlu1 %v2092_v3  ;;  %1913 = vadd.xlane.f32.xlu2 %v1912_v11  ;;  %v1915_v7 = vsel %vm1246_vm6, %v7728_v62, 0.0  ;;  %v7738_v53 = vpop.eup %6299 }
 0x7fd   : > { %2294 = vadd.xlane.f32.xlu0 %v2293_v15  ;;  %v1823_v60 = vsel %vm1246_vm6, %v7738_v53, 0.0  ;;  %v7745_v17 = vpop.eup %6301 }
 0x7fe   : > { %v2187_v29 = vsel %vm1246_vm6, %v7745_v17, 0.0 }
 0x804   : > { %1916 = vadd.xlane.f32.xlu1 %v1915_v7 }
 0x814   : > { %1737 = vrot.lane.b32.xlu2 %v7434_v19, %s6670_s28  ;;  %v1436_v19 = vadd.f32 %v7386_v43, %v7496_v24 }
 0x816   : > { %v7748_v33 = vadd.f32 %v1436_v19, %v6886_v32 }
 0x818   : > { %v2281_v50 = vsel %vm769_vm5, %v7748_v33, 0.0 }
 0x81d   : > { %2014 = vrot.lane.b32.xlu1 %v7442_v14, %s6670_s28  ;;  %v2088_v14 = vmul.f32 1.442695, %v2084_v45 }
 0x81f   : > { %6303 = vpow2.f32 %v2088_v14 }
 0x820   : > { %6305 = vpow2.f32 %v2090_v2 }
 0x821   : > { %6307 = vrcp.f32 %v7699_v31  ;;  %v2017_v31 = vpop.permute.xlu0 %2016 }
 0x825   : > { %v7756_v43 = vpop.eup %6303 }
 0x826   : > { %v2095_v32 = vsel %vm1246_vm6, %v7756_v43, 0.0  ;;  %v7760_v24 = vpop.eup %6305 }
 0x827   : > { %v2098_v57 = vsel %vm1246_vm6, %v7760_v24, 0.0  ;;  %v6308_v21 = vpop.eup %6307 }
 0x828   : > { %v1829_v46 = vmul.f32 %v6308_v21, %v7665_v44 }
 0x82a   : > { %v2186_v7 = vpop.xlane.xlu0 %2185 }
 0x83d   : > { %1824 = vadd.xlane.f32.xlu2 %v1823_v60 }
 0x845   : > { %2188 = vadd.xlane.f32.xlu2 %v2187_v29 }
 0x847   : > { %2282 = vadd.xlane.f32.xlu1 %v2281_v50 }
 0x84d   : > { %2096 = vadd.xlane.f32.xlu2 %v2095_v32 }
 0x855   : > { %2099 = vadd.xlane.f32.xlu2 %v2098_v57 }
 0x85d   : > { %2285 = vadd.xlane.f32.xlu2 %v2284_v51 }
 0x865   : > { %2288 = vadd.xlane.f32.xlu2 %v2287_v55  ;;  %v7823_v55 = vadd.f32 %v1711_v27, %v7109_v56 }
 0x867   : > { %v1911_v22 = vpop.xlane.xlu1 %1910  ;;  %v2290_v63 = vsel %vm769_vm5, %v7823_v55, 0.0 }
 0x868   : > { %6309 = vrcp.f32 %v1911_v22 }
 0x869   : > { %6311 = vrcp.f32 %v1822_v49 }
 0x86e   : > { %v6310_v58 = vpop.eup %6309 }
 0x86f   : > { %v1914_v39 = vpop.xlane.xlu2 %1913  ;;  %v2094_v6 = vpop.xlane.xlu1 %2093  ;;  %v1921_v9 = vmul.f32 %v6310_v58, %v7707_v38 }
 0x870   : > { %6313 = vrcp.f32 %v1914_v39  ;;  %v6312_v38 = vpop.eup %6311 }
 0x871   : > { %v1830_v11 = vmul.f32 %v6312_v38, %v7672_v42 }
 0x876   : > { %v6314_v44 = vpop.eup %6313 }
 0x877   : > { %v1738_v26 = vpop.permute.xlu2 %1737  ;;  %v1917_v34 = vpop.xlane.xlu1 %1916  ;;  %v1922_v3 = vmul.f32 %v6314_v44, %v7720_v59 }
 0x878   : > { %5941 = vmatpush.msk.msra.mxu3 %vm7142_vm12, %v1738_v26  ;;  %5947 = vmatpush.msk.msrb.mxu0 %vm761_vm11, %v1738_v26  ;;  %6315 = vrcp.f32 %v1917_v34  ;;  %v2013_v59 = vpop.permute.xlu0 %2012 }
 0x879   : > { %5942 = vmatmul.msk.f32.vlgmr.msra.gmra.mxu3 %vm1246_vm6, %v1921_v9  ;;  %5948 = vmatmul.msk.f32.vlgmr.msrb.gmra.mxu0 %vm1246_vm6, %v1829_v46  ;;  %6317 = vrcp.f32 %v2186_v7 }
 0x87a   : > { %5963 = vmatpush.msk.msrb.mxu3 %vm7142_vm12, %v2017_v31  ;;  %5969 = vmatpush.msk.msra.mxu0 %vm761_vm11, %v2017_v31 }
 0x87e   : > { %v6316_v15 = vpop.eup %6315 }
 0x87f   : > { %v1923_v10 = vmul.f32 %v6316_v15, %v7728_v62  ;;  %v6318_v23 = vpop.eup %6317 }
 0x880   : > { %v2196_v42 = vmul.f32 %v6318_v23, %v7691_v48  ;;  %v2192_v14 = vpop.xlane.xlu0 %2191 }
 0x881   : > { %5943 = vmatmul.msk.f32.gmra.mxu3 %vm1246_vm6, %v1922_v3  ;;  %5949 = vmatmul.msk.f32.gmra.mxu0 %vm1246_vm6, %v1830_v11 }
 0x889   : > { %5944 = vmatmul.msk.f32.gmra.mxu3 %vm1246_vm6, %v1923_v10 }
 0x88f   : > { %v2015_v61 = vpop.permute.xlu1 %2014 }
 0x890   : > { %5964 = vmatpush.msk.msrb.mxu3 %vm7142_vm12, %v2015_v61  ;;  %5970 = vmatpush.msk.msra.mxu0 %vm761_vm11, %v2015_v61 }
 0x892   : > { %5965 = vmatpush.msk.msrb.mxu3 %vm7142_vm12, %v2013_v59  ;;  %5971 = vmatpush.msk.msra.mxu0 %vm761_vm11, %v2013_v59  ;;  %v2574_v59 = vld [vmem:[%s9592_s9 + $0x18] sm:$0xff] }
 0x893   : > { %5966 = vmatmul.msk.f32.vlgmr.msrb.gmra.mxu3 %vm1246_vm6, %v2196_v42  ;;  %2627 = vmatpush.msrb.mxu1 %v2574_v59 }
 0x8b0   : > { %v1825_v62 = vpop.xlane.xlu2 %1824 }
 0x8b1   : > { %6319 = vrcp.f32 %v1825_v62  ;;  %v2572_v62 = vld [vmem:[%s9592_s9 + $0x8] sm:$0xff] }
 0x8b2   : > { %6321 = vrcp.f32 %v2094_v6 }
 0x8b7   : > { %v6320_v13 = vpop.eup %6319 }
 0x8b8   : > { %v2189_v45 = vpop.xlane.xlu2 %2188  ;;  %v1831_v60 = vmul.f32 %v6320_v13, %v7738_v53  ;;  %v6322_v1 = vpop.eup %6321 }
 0x8b9   : > { %6323 = vrcp.f32 %v2189_v45  ;;  %v2104_v32 = vmul.f32 %v6322_v1, %v7715_v54  ;;  %v2295_v13 = vpop.xlane.xlu0 %2294 }
 0x8ba   : > { %5950 = vmatmul.msk.f32.gmra.mxu0 %vm1246_vm6, %v1831_v60  ;;  %v2283_v48 = vpop.xlane.xlu1 %2282  ;;  %6325 = vrcp.f32 %v2192_v14  ;;  %v2321_v14 = vmul.f32 %v2295_v13, %v6928_v0 }
 0x8bb   : > { %v2317_v19 = vmul.f32 %v2283_v48, %v6928_v0 }
 0x8bd   : > { %v7811_v29 = vsub.f32 %v7748_v33, %v2317_v19 }
 0x8bf   : > { %v6324_v50 = vpop.eup %6323  ;;  %v2341_v2 = vmul.f32 %v7811_v29, %v7811_v29 }
 0x8c0   : > { %v2097_v4 = vpop.xlane.xlu2 %2096  ;;  %v2197_v53 = vmul.f32 %v6324_v50, %v7745_v17  ;;  %v6326_v51 = vpop.eup %6325 }
 0x8c1   : > { %6327 = vrcp.f32 %v2097_v4  ;;  %v2353_v57 = vsel %vm769_vm5, %v2341_v2, 0.0  ;;  %v2198_v39 = vmul.f32 %v6326_v51, %v7705_v8 }
 0x8c2   : > { %5967 = vmatmul.msk.f32.gmra.mxu3 %vm1246_vm6, %v2197_v53  ;;  %5972 = vmatmul.msk.f32.vlgmr.msra.gmra.mxu0 %vm1246_vm6, %v2104_v32  ;;  %v7881_v32 = vsub.f32 %v7718_v5, %v2321_v14 }
 0x8c3   : > { %2354 = vadd.xlane.f32.xlu2 %v2353_v57 }
 0x8c7   : > { %v6328_v22 = vpop.eup %6327 }
 0x8c8   : > { %v2100_v54 = vpop.xlane.xlu2 %2099  ;;  %v2105_v17 = vmul.f32 %v6328_v22, %v7756_v43  ;;  %v1716_v43 = vpop.f32.mrf.mxu3 }
 0x8c9   : > { %6329 = vrcp.f32 %v2100_v54  ;;  %v1717_v58 = vadd.f32 %v1716_v43, %v7618_v12  ;;  %v2345_v54 = vmul.f32 %v7881_v32, %v7881_v32 }
 0x8ca   : > { %5968 = vmatmul.msk.f32.gmra.mxu3 %vm1246_vm6, %v2198_v39  ;;  %5973 = vmatmul.msk.f32.gmra.mxu0 %vm1246_vm6, %v2105_v17 }
 0x8cb   : > { %2291 = vadd.xlane.f32.xlu2 %v2290_v63 }
 0x8cf   : > { %v6330_v25 = vpop.eup %6329 }
 0x8d0   : > { %v2286_v49 = vpop.xlane.xlu2 %2285  ;;  %v2106_v56 = vmul.f32 %v6330_v25, %v7760_v24  ;;  %v7843_v24 = vadd.f32 %v1717_v58, %v7077_v35 }
 0x8d1   : > { %v2318_v6 = vmul.f32 %v2286_v49, %v6928_v0 }
 0x8d2   : > { %5974 = vmatmul.msk.f32.gmra.mxu0 %vm1246_vm6, %v2106_v56  ;;  %v2296_v12 = vsel %vm769_vm5, %v7843_v24, 0.0 }
 0x8d3   : > { %v7835_v8 = vsub.f32 %v7767_v52, %v2318_v6  ;;  %v2365_v6 = vsel %vm769_vm5, %v2345_v54, 0.0 }
 0x8d5   : > { %v2342_v21 = vmul.f32 %v7835_v8, %v7835_v8 }
 0x8d7   : > { %v2356_v9 = vsel %vm769_vm5, %v2342_v21, 0.0 }
 0x8d8   : > { %v2289_v26 = vpop.xlane.xlu2 %2288  ;;  %2357 = vadd.xlane.f32.xlu2 %v2356_v9 }
 0x8d9   : > { %v2319_v46 = vmul.f32 %v2289_v26, %v6928_v0 }
 0x8db   : > { %v7846_v31 = vsub.f32 %v7774_v37, %v2319_v46 }
 0x8dd   : > { %v2343_v38 = vmul.f32 %v7846_v31, %v7846_v31 }
 0x8df   : > { %v2359_v34 = vsel %vm769_vm5, %v2343_v38, 0.0 }
 0x8e0   : > { %2360 = vadd.xlane.f32.xlu1 %v2359_v34  ;;  %2297 = vadd.xlane.f32.xlu2 %v2296_v12  ;;  %v6599_v34 = vld [vmem:[%s9589_s6] sm:$0xf] }
 0x8e1   : > { %v7906_v12 = vperm.slane %v6599_v34, 2 }
 0x8f6   : > { %v1985_v44 = vpop.f32.mrf.mxu0 }
 0x8fc   : > { %v1950_v3 = vpop.f32.mrf.mxu3 }
 0x8fd   : > { %v1986_v11 = vadd.f32 %v1985_v44, %v1950_v3 }
 0x8fe   : > { %v1988_v7 = vpop.f32.mrf.mxu0 }
 0x8ff   : > { %v7854_v15 = vadd.f32 %v1986_v11, %v7311_v30  ;;  %v2573_v30 = vld [vmem:[%s9592_s9 + $0x10] sm:$0xff] }
 0x900   : > { %2628 = vmatpush.msrb.mxu1 %v2573_v30 }
 0x901   : > { %v2299_v35 = vsel %vm769_vm5, %v7854_v15, 0.0 }
 0x902   : > { %2300 = vadd.xlane.f32.xlu0 %v2299_v35  ;;  %2629 = vmatpush.msrb.mxu1 %v2572_v62 }
 0x904   : > { %v1953_v10 = vpop.f32.mrf.mxu3 }
 0x905   : > { %v1989_v23 = vadd.f32 %v1988_v7, %v1953_v10  ;;  %v7912_v10 = vperm.slane %v6599_v34, 3 }
 0x907   : > { %v7859_v61 = vadd.f32 %v1989_v23, %v7282_v16  ;;  %v2571_v16 = vld [vmem:[%s9592_s9] sm:$0xff] }
 0x908   : > { %2630 = vmatpush.msrb.mxu1 %v2571_v16 }
 0x909   : > { %v2302_v42 = vsel %vm769_vm5, %v7859_v61, 0.0 }
 0x90a   : > { %2303 = vadd.xlane.f32.xlu1 %v2302_v42 }
 0x90c   : > { %v1956_v45 = vpop.f32.mrf.mxu3 }
 0x916   : > { %v2225_v53 = vpop.f32.mrf.mxu3 }
 0x936   : > { %v2355_v60 = vpop.xlane.xlu2 %2354 }
 0x937   : > { %v2389_v48 = vmul.f32 %v2355_v60, %v6928_v0  ;;  %v1991_v19 = vpop.f32.mrf.mxu0 }
 0x938   : > { %v1992_v1 = vadd.f32 %v1991_v19, %v1956_v45 }
 0x939   : > { %v2401_v50 = vadd.f32 1e-05, %v2389_v48 }
 0x93a   : > { %v7878_v2 = vadd.f32 %v1992_v1, %v6979_v40 }
 0x93b   : > { %6331 = vrsqrt.f32 %v2401_v50  ;;  %vm2419_vm15 = vweird.f32 %v2401_v50 }
 0x93c   : > { %v2305_v4 = vsel %vm769_vm5, %v7878_v2, 0.0 }
 0x93d   : > { %2306 = vadd.xlane.f32.xlu2 %v2305_v4 }
 0x93e   : > { %v2292_v57 = vpop.xlane.xlu2 %2291 }
 0x93f   : > { %v2320_v27 = vmul.f32 %v2292_v57, %v6928_v0  ;;  %v2260_v51 = vpop.f32.mrf.mxu0 }
 0x940   : > { %v2261_v22 = vadd.f32 %v2260_v51, %v2225_v53 }
 0x941   : > { %v6332_v39 = vpop.eup %6331  ;;  %v7889_v40 = vsub.f32 %v7823_v55, %v2320_v27 }
 0x942   : > { %v2414_v17 = vmul.f32 %v6332_v39, %v2401_v50  ;;  %v7892_v63 = vadd.f32 %v2261_v22, %v6962_v28  ;;  %vm2420_vm14 = vweird.f32 %v6332_v39 }
 0x943   : > { %v2344_v25 = vmul.f32 %v7889_v40, %v7889_v40  ;;  %vm2421_vm0 = vmor %vm2419_vm15, %vm2420_vm14 }
 0x944   : > { %v2415_v49 = vmul.f32 %v6332_v39, %v2414_v17  ;;  %v2308_v56 = vsel %vm769_vm5, %v7892_v63, 0.0 }
 0x945   : > { %2309 = vadd.xlane.f32.xlu1 %v2308_v56  ;;  %v2228_v43 = vpop.f32.mrf.mxu3  ;;  %2366 = vadd.xlane.f32.xlu2 %v2365_v6  ;;  %v2362_v21 = vsel %vm769_vm5, %v2344_v25, 0.0 }
 0x946   : > { %v2416_v58 = vmul.f32 0.5, %v2415_v49  ;;  %2363 = vadd.xlane.f32.xlu0 %v2362_v21 }
 0x947   : > { %v2263_v9 = vpop.f32.mrf.mxu0 }
 0x948   : > { %v2417_v26 = vsub.f32 1.5, %v2416_v58  ;;  %v2264_v28 = vadd.f32 %v2263_v9, %v2228_v43 }
 0x94a   : > { %v2418_v46 = vmul.f32 %v6332_v39, %v2417_v26  ;;  %v7901_v38 = vadd.f32 %v2264_v28, %v7022_v36 }
 0x94b   : > { %v2358_v44 = vpop.xlane.xlu2 %2357 }
 0x94c   : > { %v2422_v3 = vsel %vm2421_vm0, %v6332_v39, %v2418_v46  ;;  %v2390_v11 = vmul.f32 %v2358_v44, %v6928_v0  ;;  %v2311_v35 = vsel %vm769_vm5, %v7901_v38, 0.0 }
 0x94d   : > { %v2533_v7 = vmul.f32 %v2422_v3, %v7811_v29  ;;  %v2231_v42 = vpop.f32.mrf.mxu3 }
 0x94e   : > { %v2402_v36 = vadd.f32 1e-05, %v2390_v11  ;;  %2312 = vadd.xlane.f32.xlu0 %v2311_v35 }
 0x94f   : > { %v2546_v23 = vmul.f32 %v7906_v12, %v2533_v7  ;;  %v2266_v59 = vpop.f32.mrf.mxu0 }
 0x950   : > { %6333 = vrsqrt.f32 %v2402_v36  ;;  %v2267_v30 = vadd.f32 %v2266_v59, %v2231_v42  ;;  %vm2429_vm2 = vweird.f32 %v2402_v36 }
 0x951   : > { %v2559_v62 = vadd.f32 %v7912_v10, %v2546_v23 }
 0x952   : > { %v7917_v16 = vadd.f32 %v2267_v30, %v7009_v20 }
 0x953   : > { %5975 = vmatmul.msk.f32.vlgmr.msrb.gmra.mxu1 %vm769_vm5, %v2559_v62  ;;  %v2298_v13 = vpop.xlane.xlu2 %2297  ;;  %v2361_v45 = vpop.xlane.xlu1 %2360 }
 0x954   : > { %v2322_v29 = vmul.f32 %v2298_v13, %v6928_v0  ;;  %v2391_v60 = vmul.f32 %v2361_v45, %v6928_v0  ;;  %v2314_v48 = vsel %vm769_vm5, %v7917_v16, 0.0 }
 0x955   : > { %2315 = vadd.xlane.f32.xlu2 %v2314_v48 }
 0x956   : > { %v6334_v19 = vpop.eup %6333  ;;  %v7925_v14 = vsub.f32 %v7843_v24, %v2322_v29  ;;  %v2403_v1 = vadd.f32 1e-05, %v2391_v60 }
 0x957   : > { %v2424_v50 = vmul.f32 %v6334_v19, %v2402_v36  ;;  %vm2430_vm1 = vweird.f32 %v6334_v19 }
 0x958   : > { %6335 = vrsqrt.f32 %v2403_v1  ;;  %v2346_v20 = vmul.f32 %v7925_v14, %v7925_v14  ;;  %vm2431_vm3 = vmor %vm2429_vm2, %vm2430_vm1  ;;  %vm2439_vm7 = vweird.f32 %v2403_v1 }
 0x959   : > { %v2425_v4 = vmul.f32 %v6334_v19, %v2424_v50 }
 0x95a   : > { %v2368_v53 = vsel %vm769_vm5, %v2346_v20, 0.0 }
 0x95b   : > { %v2426_v57 = vmul.f32 0.5, %v2425_v4  ;;  %2369 = vadd.xlane.f32.xlu1 %v2368_v53 }
 0x95d   : > { %v2427_v27 = vsub.f32 1.5, %v2426_v57 }
 0x95e   : > { %v6336_v51 = vpop.eup %6335 }
 0x95f   : > { %v2428_v22 = vmul.f32 %v6334_v19, %v2427_v27  ;;  %v2434_v54 = vmul.f32 %v6336_v51, %v2403_v1  ;;  %vm2440_vm4 = vweird.f32 %v6336_v51 }
 0x960   : > { %vm2441_vm8 = vmor %vm2439_vm7, %vm2440_vm4 }
 0x961   : > { %v2432_v39 = vsel %vm2431_vm3, %v6334_v19, %v2428_v22  ;;  %v2435_v17 = vmul.f32 %v6336_v51, %v2434_v54 }
 0x962   : > { %v2534_v25 = vmul.f32 %v2432_v39, %v7835_v8 }
 0x963   : > { %v2436_v49 = vmul.f32 0.5, %v2435_v17 }
 0x964   : > { %v2547_v56 = vmul.f32 %v7906_v12, %v2534_v25 }
 0x965   : > { %v2437_v6 = vsub.f32 1.5, %v2436_v49 }
 0x966   : > { %v2560_v43 = vadd.f32 %v7912_v10, %v2547_v56 }
 0x967   : > { %v2438_v21 = vmul.f32 %v6336_v51, %v2437_v6 }
 0x968   : > { %5976 = vmatmul.msk.f32.gmra.mxu1 %vm769_vm5, %v2560_v43 }
 0x969   : > { %v2442_v58 = vsel %vm2441_vm8, %v6336_v51, %v2438_v21 }
 0x96a   : > { %v2535_v9 = vmul.f32 %v2442_v58, %v7846_v31 }
 0x96c   : > { %v2548_v26 = vmul.f32 %v7906_v12, %v2535_v9 }
 0x96e   : > { %v2561_v28 = vadd.f32 %v7912_v10, %v2548_v26 }
 0x970   : > { %5977 = vmatmul.msk.f32.gmra.mxu1 %vm769_vm5, %v2561_v28  ;;  %v3163_v28 = vld [vmem:[%s9594_s11 + $0x78] sm:$0xff] }
 0x971   : > { %3168 = vmatpush.msrb.mxu2 %v3163_v28  ;;  %v3152_v28 = vld [vmem:[%s9594_s11 + $0x20] sm:$0xff] }
 0x975   : > { %v2301_v8 = vpop.xlane.xlu0 %2300 }
 0x976   : > { %v2323_v46 = vmul.f32 %v2301_v8, %v6928_v0 }
 0x978   : > { %v7940_v34 = vsub.f32 %v7854_v15, %v2323_v46 }
 0x97a   : > { %v2347_v44 = vmul.f32 %v7940_v34, %v7940_v34 }
 0x97c   : > { %v2371_v3 = vsel %vm769_vm5, %v2347_v44, 0.0  ;;  %v3162_v44 = vld [vmem:[%s9594_s11 + $0x70] sm:$0xff] }
 0x97d   : > { %2372 = vadd.xlane.f32.xlu0 %v2371_v3  ;;  %v2304_v11 = vpop.xlane.xlu1 %2303  ;;  %3169 = vmatpush.msrb.mxu2 %v3162_v44 }
 0x97e   : > { %v2324_v31 = vmul.f32 %v2304_v11, %v6928_v0 }
 0x980   : > { %v7947_v35 = vsub.f32 %v7859_v61, %v2324_v31  ;;  %v7988_v31 = vld [vmem:[%s9593_s10] ss:$0 sm:$0xff] }
 0x982   : > { %v2348_v7 = vmul.f32 %v7947_v35, %v7947_v35 }
 0x984   : > { %v2374_v36 = vsel %vm769_vm5, %v2348_v7, 0.0 }
 0x985   : > { %2375 = vadd.xlane.f32.xlu1 %v2374_v36 }
 0x9b0   : > { %v2307_v23 = vpop.xlane.xlu2 %2306 }
 0x9b1   : > { %v2325_v42 = vmul.f32 %v2307_v23, %v6928_v0  ;;  %v3161_v23 = vld [vmem:[%s9594_s11 + $0x68] sm:$0xff] }
 0x9b2   : > { %3170 = vmatpush.msrb.mxu2 %v3161_v23  ;;  %v3150_v23 = vld [vmem:[%s9594_s11 + $0x10] sm:$0xff] }
 0x9b3   : > { %v7954_v59 = vsub.f32 %v7878_v2, %v2325_v42 }
 0x9b5   : > { %v2349_v30 = vmul.f32 %v7954_v59, %v7954_v59 }
 0x9b7   : > { %v2377_v62 = vsel %vm769_vm5, %v2349_v30, 0.0 }
 0x9b8   : > { %2378 = vadd.xlane.f32.xlu2 %v2377_v62  ;;  %v2367_v13 = vpop.xlane.xlu2 %2366  ;;  %v2310_v45 = vpop.xlane.xlu1 %2309 }
 0x9b9   : > { %v2364_v29 = vpop.xlane.xlu0 %2363  ;;  %v2393_v60 = vmul.f32 %v2367_v13, %v6928_v0  ;;  %v2326_v48 = vmul.f32 %v2310_v45, %v6928_v0 }
 0x9ba   : > { %v2392_v19 = vmul.f32 %v2364_v29, %v6928_v0  ;;  %v3160_v29 = vld [vmem:[%s9594_s11 + $0x60] sm:$0xff] }
 0x9bb   : > { %v2405_v1 = vadd.f32 1e-05, %v2393_v60  ;;  %v7963_v50 = vsub.f32 %v7892_v63, %v2326_v48  ;;  %3171 = vmatpush.msrb.mxu2 %v3160_v29 }
 0x9bc   : > { %v2404_v20 = vadd.f32 1e-05, %v2392_v19 }
 0x9bd   : > { %6337 = vrsqrt.f32 %v2405_v1  ;;  %v2350_v4 = vmul.f32 %v7963_v50, %v7963_v50  ;;  %vm2459_vm15 = vweird.f32 %v2405_v1 }
 0x9be   : > { %6339 = vrsqrt.f32 %v2404_v20  ;;  %vm2449_vm10 = vweird.f32 %v2404_v20 }
 0x9bf   : > { %v2380_v53 = vsel %vm769_vm5, %v2350_v4, 0.0 }
 0x9c0   : > { %2381 = vadd.xlane.f32.xlu0 %v2380_v53 }
 0x9c1   : > { %v2313_v57 = vpop.xlane.xlu0 %2312 }
 0x9c2   : > { %v2327_v27 = vmul.f32 %v2313_v57, %v6928_v0  ;;  %v3158_v57 = vld [vmem:[%s9594_s11 + $0x50] sm:$0xff] }
 0x9c3   : > { %v6338_v51 = vpop.eup %6337 }
 0x9c4   : > { %v6340_v22 = vpop.eup %6339  ;;  %v2454_v54 = vmul.f32 %v6338_v51, %v2405_v1  ;;  %v7970_v39 = vsub.f32 %v7901_v38, %v2327_v27  ;;  %vm2460_vm13 = vweird.f32 %v6338_v51 }
 0x9c5   : > { %v2444_v17 = vmul.f32 %v6340_v22, %v2404_v20  ;;  %vm2450_vm9 = vweird.f32 %v6340_v22  ;;  %vm2461_vm0 = vmor %vm2459_vm15, %vm2460_vm13  ;;  %v3159_v20 = vld [vmem:[%s9594_s11 + $0x58] sm:$0xff] }
 0x9c6   : > { %v2455_v25 = vmul.f32 %v6338_v51, %v2454_v54  ;;  %v2351_v49 = vmul.f32 %v7970_v39, %v7970_v39  ;;  %vm2451_vm14 = vmor %vm2449_vm10, %vm2450_vm9  ;;  %3172 = vmatpush.msrb.mxu2 %v3159_v20 }
 0x9c7   : > { %v2445_v56 = vmul.f32 %v6340_v22, %v2444_v17 }
 0x9c8   : > { %v2456_v6 = vmul.f32 0.5, %v2455_v25  ;;  %v2316_v43 = vpop.xlane.xlu2 %2315  ;;  %v2383_v21 = vsel %vm769_vm5, %v2351_v49, 0.0  ;;  %3173 = vmatpush.msrb.mxu2 %v3158_v57 }
 0x9c9   : > { %v2446_v58 = vmul.f32 0.5, %v2445_v56  ;;  %v2328_v9 = vmul.f32 %v2316_v43, %v6928_v0  ;;  %2384 = vadd.xlane.f32.xlu1 %v2383_v21  ;;  %v3155_v56 = vld [vmem:[%s9594_s11 + $0x38] sm:$0xff]  ;;  %v3154_v21 = vld [vmem:[%s9594_s11 + $0x30] sm:$0xff] }
 0x9ca   : > { %v2457_v26 = vsub.f32 1.5, %v2456_v6 }
 0x9cb   : > { %v2447_v8 = vsub.f32 1.5, %v2446_v58  ;;  %v7980_v46 = vsub.f32 %v7917_v16, %v2328_v9  ;;  %v3153_v9 = vld [vmem:[%s9594_s11 + $0x28] sm:$0xff] }
 0x9cc   : > { %v2458_v11 = vmul.f32 %v6338_v51, %v2457_v26 }
 0x9cd   : > { %v2448_v3 = vmul.f32 %v6340_v22, %v2447_v8  ;;  %v2352_v7 = vmul.f32 %v7980_v46, %v7980_v46 }
 0x9ce   : > { %v2370_v36 = vpop.xlane.xlu1 %2369  ;;  %v2462_v60 = vsel %vm2461_vm0, %v6338_v51, %v2458_v11  ;;  %v3157_v51 = vld [vmem:[%s9594_s11 + $0x48] sm:$0xff]  ;;  %v3151_v11 = vld [vmem:[%s9594_s11 + $0x18] sm:$0xff] }
 0x9cf   : > { %v2452_v42 = vsel %vm2451_vm14, %v6340_v22, %v2448_v3  ;;  %v2394_v30 = vmul.f32 %v2370_v36, %v6928_v0  ;;  %v2386_v62 = vsel %vm769_vm5, %v2352_v7, 0.0  ;;  %v2537_v53 = vmul.f32 %v2462_v60, %v7881_v32  ;;  %3174 = vmatpush.msrb.mxu2 %v3157_v51  ;;  %v3156_v32 = vld [vmem:[%s9594_s11 + $0x40] sm:$0xff]  ;;  %v3149_v60 = vld [vmem:[%s9594_s11 + $0x8] sm:$0xff] }
 0x9d0   : > { %v2632_v13 = vpop.f32.mrf.mxu1  ;;  %2387 = vadd.xlane.f32.xlu2 %v2386_v62  ;;  %v2536_v45 = vmul.f32 %v2452_v42, %v7889_v40 }
 0x9d1   : > { %v2406_v48 = vadd.f32 1e-05, %v2394_v30  ;;  %v8002_v19 = vadd.f32 %v7988_v31, %v2632_v13  ;;  %v2550_v54 = vmul.f32 %v7906_v12, %v2537_v53  ;;  %3175 = vmatpush.msrb.mxu2 %v3156_v32 }
 0x9d2   : > { %v2549_v1 = vmul.f32 %v7906_v12, %v2536_v45 }
 0x9d3   : > { %6341 = vrsqrt.f32 %v2406_v48  ;;  %v8009_v4 = vmul.f32 0.70710677, %v8002_v19  ;;  %3176 = vmatpush.msrb.mxu2 %v3155_v56  ;;  %v2563_v43 = vadd.f32 %v7912_v10, %v2550_v54  ;;  %vm2469_vm2 = vweird.f32 %v2406_v48 }
 0x9d4   : > { %v2562_v40 = vadd.f32 %v7912_v10, %v2549_v1 }
 0x9d5   : > { %v8017_v27 = vand.u32 2147483647, %v8009_v4  ;;  %3177 = vmatpush.msrb.mxu2 %v3154_v21  ;;  %vm3088_vm0 = vcmp.ge.f32.partialorder %v8009_v4, 0.0 }
 0x9d6   : > { %5978 = vmatmul.msk.f32.gmra.mxu1 %vm769_vm5, %v2562_v40 }
 0x9d7   : > { %v2704_v22 = vmul.f32 0.3275911, %v8017_v27  ;;  %3178 = vmatpush.msrb.mxu2 %v3153_v9  ;;  %v3016_v54 = vsub.f32 0.0, %v8017_v27 }
 0x9d9   : > { %v6342_v17 = vpop.eup %6341  ;;  %v2716_v25 = vadd.f32 1.0, %v2704_v22  ;;  %3179 = vmatpush.msrb.mxu2 %v3152_v28 }
 0x9da   : > { %v2464_v49 = vmul.f32 %v6342_v17, %v2406_v48  ;;  %vm2470_vm1 = vweird.f32 %v6342_v17 }
 0x9db   : > { %6343 = vrcp.f32 %v2716_v25  ;;  %vm2471_vm3 = vmor %vm2469_vm2, %vm2470_vm1  ;;  %3180 = vmatpush.msrb.mxu2 %v3151_v11  ;;  %v2739_v42 = vand.u32 2147483648, %v2716_v25  ;;  %v2737_v45 = vand.u32 2147483647, %v2716_v25  ;;  %vm2733_vm7 = vweird.f32 %v2716_v25 }
 0x9dc   : > { %v2465_v6 = vmul.f32 %v6342_v17, %v2464_v49 }
 0x9dd   : > { %3181 = vmatpush.msrb.mxu2 %v3150_v23  ;;  %v2740_v40 = vor.u32 1.1754944e-38, %v2739_v42  ;;  %vm2738_vm9 = vcmp.eq.f32.partialorder %v2737_v45, 8.507059e+37 }
 0x9de   : > { %v2466_v58 = vmul.f32 0.5, %v2465_v6  ;;  %5979 = vmatmul.msk.f32.gmra.mxu1 %vm769_vm5, %v2563_v43  ;;  %v3028_v43 = vmul.f32 %v3016_v54, %v8017_v27 }
 0x9df   : > { %3182 = vmatpush.msrb.mxu2 %v3149_v60 }
 0x9e0   : > { %v2467_v26 = vsub.f32 1.5, %v2466_v58 }
 0x9e1   : > { %v6344_v8 = vpop.eup %6343 }
 0x9e2   : > { %v2468_v44 = vmul.f32 %v6342_v17, %v2467_v26  ;;  %v2729_v3 = vmul.f32 %v6344_v8, %v2716_v25  ;;  %vm2734_vm4 = vweird.f32 %v6344_v8 }
 0x9e3   : > { %vm2735_vm8 = vmor %vm2733_vm7, %vm2734_vm4 }
 0x9e4   : > { %v2472_v7 = vsel %vm2471_vm3, %v6342_v17, %v2468_v44  ;;  %v2730_v36 = vsub.f32 1.0, %v2729_v3 }
 0x9e5   : > { %v2635_v30 = vpop.f32.mrf.mxu1  ;;  %v2538_v62 = vmul.f32 %v2472_v7, %v7925_v14  ;;  %v3148_v14 = vld [vmem:[%s9594_s11] sm:$0xff] }
 0x9e6   : > { %v2731_v13 = vmul.f32 %v6344_v8, %v2730_v36  ;;  %v8050_v29 = vadd.f32 %v7988_v31, %v2635_v30  ;;  %3183 = vmatpush.msrb.mxu2 %v3148_v14 }
 0x9e7   : > { %v2551_v48 = vmul.f32 %v7906_v12, %v2538_v62 }
 0x9e8   : > { %v2732_v1 = vadd.f32 %v6344_v8, %v2731_v13  ;;  %v8057_v20 = vmul.f32 0.70710677, %v8050_v29 }
 0x9e9   : > { %v2564_v53 = vadd.f32 %v7912_v10, %v2551_v48 }
 0x9ea   : > { %v2736_v57 = vsel %vm2735_vm8, %v6344_v8, %v2732_v1  ;;  %v2693_v51 = vand.u32 2147483647, %v8057_v20  ;;  %v3040_v8 = vmul.f32 1.442695, %v3028_v43 }
 0x9eb   : > { %v2741_v22 = vsel %vm2738_vm9, %v2740_v40, %v2736_v57  ;;  %5980 = vmatmul.msk.f32.gmra.mxu1 %vm769_vm5, %v2564_v53 }
 0x9ec   : > { %v2908_v32 = vmul.f32 1.0614054, %v2741_v22  ;;  %v2705_v17 = vmul.f32 0.3275911, %v2693_v51 }
 0x9ed   : > { %v2638_v25 = vpop.f32.mrf.mxu1 }
 0x9ee   : > { %v2920_v49 = vadd.f32 -1.4531521, %v2908_v32  ;;  %v2717_v56 = vadd.f32 1.0, %v2705_v17  ;;  %v8067_v6 = vadd.f32 %v7988_v31, %v2638_v25  ;;  %v3017_v32 = vsub.f32 0.0, %v2693_v51 }
 0x9f0   : > { %v2932_v21 = vmul.f32 %v2920_v49, %v2741_v22  ;;  %6345 = vrcp.f32 %v2717_v56  ;;  %v2373_v58 = vpop.xlane.xlu0 %2372  ;;  %v8071_v9 = vmul.f32 0.70710677, %v8067_v6  ;;  %v2754_v48 = vand.u32 2147483648, %v2717_v56 }
 0x9f1   : > { %v2395_v26 = vmul.f32 %v2373_v58, %v6928_v0  ;;  %v2752_v40 = vand.u32 2147483647, %v2717_v56  ;;  %vm2748_vm13 = vweird.f32 %v2717_v56 }
 0x9f2   : > { %v2944_v28 = vadd.f32 1.4214138, %v2932_v21  ;;  %v8075_v44 = vand.u32 2147483647, %v8071_v9  ;;  %v2755_v21 = vor.u32 1.1754944e-38, %v2754_v48 }
 0x9f3   : > { %v2407_v3 = vadd.f32 1e-05, %v2395_v26  ;;  %vm2753_vm15 = vcmp.eq.f32.partialorder %v2752_v40, 8.507059e+37  ;;  %v2668_v40 = vmul.f32 0.5, %v8002_v19 }
 0x9f4   : > { %v2956_v11 = vmul.f32 %v2944_v28, %v2741_v22  ;;  %v2706_v7 = vmul.f32 0.3275911, %v8075_v44  ;;  %v3018_v19 = vsub.f32 0.0, %v8075_v44 }
 0x9f5   : > { %6347 = vrsqrt.f32 %v2407_v3  ;;  %vm2479_vm2 = vweird.f32 %v2407_v3 }
 0x9f6   : > { %v6346_v36 = vpop.eup %6345  ;;  %v2968_v27 = vadd.f32 -0.28449672, %v2956_v11  ;;  %6349 = vpow2.f32 %v3040_v8  ;;  %v8078_v42 = vadd.f32 1.0, %v2706_v7  ;;  %v3029_v7 = vmul.f32 %v3017_v32, %v2693_v51 }
 0x9f7   : > { %v2744_v23 = vmul.f32 %v6346_v36, %v2717_v56  ;;  %vm2749_vm10 = vweird.f32 %v6346_v36 }
 0x9f8   : > { %v2980_v30 = vmul.f32 %v2968_v27, %v2741_v22  ;;  %v2376_v62 = vpop.xlane.xlu1 %2375  ;;  %6351 = vrcp.f32 %v8078_v42  ;;  %vm2750_vm14 = vmor %vm2748_vm13, %vm2749_vm10  ;;  %vm2763_vm7 = vweird.f32 %v8078_v42 }
 0x9f9   : > { %v2745_v13 = vsub.f32 1.0, %v2744_v23  ;;  %v2396_v60 = vmul.f32 %v2376_v62, %v6928_v0  ;;  %v2769_v62 = vand.u32 2147483648, %v8078_v42 }
 0x9fa   : > { %v2992_v45 = vadd.f32 0.2548296, %v2980_v30 }
 0x9fb   : > { %v6348_v1 = vpop.eup %6347  ;;  %v2746_v14 = vmul.f32 %v6346_v36, %v2745_v13  ;;  %v8082_v17 = vadd.f32 1e-05, %v2396_v60  ;;  %v2770_v32 = vor.u32 1.1754944e-38, %v2769_v62 }
 0x9fc   : > { %v3004_v53 = vmul.f32 %v2992_v45, %v2741_v22  ;;  %v2474_v57 = vmul.f32 %v6348_v1, %v2407_v3  ;;  %v6350_v54 = vpop.eup %6349  ;;  %vm2480_vm1 = vweird.f32 %v6348_v1 }
 0x9fd   : > { %v2747_v25 = vadd.f32 %v6346_v36, %v2746_v14  ;;  %6353 = vrsqrt.f32 %v8082_v17  ;;  %vm2481_vm4 = vmor %vm2479_vm2, %vm2480_vm1  ;;  %vm2489_vm13 = vweird.f32 %v8082_v17 }
 0x9fe   : > { %v3064_v49 = vmul.f32 %v6350_v54, %v3004_v53  ;;  %v2475_v43 = vmul.f32 %v6348_v1, %v2474_v57  ;;  %v6352_v58 = vpop.eup %6351 }
 0x9ff   : > { %v2751_v26 = vsel %vm2750_vm14, %v6346_v36, %v2747_v25  ;;  %v2759_v8 = vmul.f32 %v6352_v58, %v8078_v42  ;;  %v2767_v36 = vand.u32 2147483647, %v8078_v42  ;;  %vm2764_vm3 = vweird.f32 %v6352_v58 }
 0xa00   : > { %v3076_v28 = vsub.f32 1.0, %v3064_v49  ;;  %v2476_v22 = vmul.f32 0.5, %v2475_v43  ;;  %v2756_v11 = vsel %vm2753_vm15, %v2755_v21, %v2751_v26  ;;  %vm2765_vm8 = vmor %vm2763_vm7, %vm2764_vm3  ;;  %v3042_v43 = vmul.f32 1.442695, %v3029_v7 }
 0xa01   : > { %v2909_v27 = vmul.f32 1.0614054, %v2756_v11  ;;  %v2760_v56 = vsub.f32 1.0, %v2759_v8  ;;  %vm2768_vm9 = vcmp.eq.f32.partialorder %v2767_v36, 8.507059e+37  ;;  %v3030_v7 = vmul.f32 %v3018_v19, %v8075_v44 }
 0xa02   : > { %v3100_v23 = vsub.f32 0.0, %v3076_v28  ;;  %v2477_v30 = vsub.f32 1.5, %v2476_v22  ;;  %6355 = vpow2.f32 %v3042_v43  ;;  %vm3089_vm15 = vcmp.ge.f32.partialorder %v8057_v20, 0.0 }
 0xa03   : > { %v2921_v13 = vadd.f32 -1.4531521, %v2909_v27  ;;  %v2761_v60 = vmul.f32 %v6352_v58, %v2760_v56  ;;  %v6354_v14 = vpop.eup %6353 }
 0xa04   : > { %v3112_v45 = vsel %vm3088_vm0, %v3076_v28, %v3100_v23  ;;  %v2478_v48 = vmul.f32 %v6348_v1, %v2477_v30  ;;  %v2484_v57 = vmul.f32 %v6354_v14, %v8082_v17  ;;  %vm2490_vm10 = vweird.f32 %v6354_v14 }
 0xa05   : > { %v3124_v4 = vadd.f32 1.0, %v3112_v45  ;;  %v2933_v51 = vmul.f32 %v2921_v13, %v2756_v11  ;;  %v2762_v54 = vadd.f32 %v6352_v58, %v2761_v60  ;;  %vm2491_vm14 = vmor %vm2489_vm13, %vm2490_vm10  ;;  %v3044_v60 = vmul.f32 1.442695, %v3030_v7 }
 0xa06   : > { %v2482_v53 = vsel %vm2481_vm4, %v6348_v1, %v2478_v48  ;;  %v2485_v21 = vmul.f32 %v6354_v14, %v2484_v57  ;;  %vm3090_vm0 = vcmp.ge.f32.partialorder %v8071_v9, 0.0 }
 0xa07   : > { %v3136_v3 = vmul.f32 %v3124_v4, %v2668_v40  ;;  %v2539_v25 = vmul.f32 %v2482_v53, %v7940_v34  ;;  %v2945_v49 = vadd.f32 1.4214138, %v2933_v51  ;;  %v2766_v26 = vsel %vm2765_vm8, %v6352_v58, %v2762_v54 }
 0xa08   : > { %v2771_v1 = vsel %vm2768_vm9, %v2770_v32, %v2766_v26  ;;  %v2486_v8 = vmul.f32 0.5, %v2485_v21  ;;  %v6356_v4 = vpop.eup %6355  ;;  %6357 = vpow2.f32 %v3044_v60 }
 0xa09   : > { %3184 = vmatmul.f32.vlgmr.msrb.gmra.mxu2 %v3136_v3  ;;  %v2552_v28 = vmul.f32 %v7906_v12, %v2539_v25  ;;  %v2957_v42 = vmul.f32 %v2945_v49, %v2756_v11  ;;  %v2910_v22 = vmul.f32 1.0614054, %v2771_v1 }
 0xa0a   : > { %v2487_v34 = vsub.f32 1.5, %v2486_v8  ;;  %v2670_v8 = vmul.f32 0.5, %v8067_v6 }
 0xa0b   : > { %v2565_v27 = vadd.f32 %v7912_v10, %v2552_v28  ;;  %v2969_v23 = vadd.f32 -0.28449672, %v2957_v42  ;;  %v2922_v56 = vadd.f32 -1.4531521, %v2910_v22 }
 0xa0c   : > { %v2488_v30 = vmul.f32 %v6354_v14, %v2487_v34 }
 0xa0d   : > { %5981 = vmatmul.msk.f32.gmra.mxu1 %vm769_vm5, %v2565_v27  ;;  %v2981_v58 = vmul.f32 %v2969_v23, %v2756_v11  ;;  %v2934_v62 = vmul.f32 %v2922_v56, %v2771_v1 }
 0xa0e   : > { %v2492_v36 = vsel %vm2491_vm14, %v6354_v14, %v2488_v30  ;;  %v6358_v43 = vpop.eup %6357 }
 0xa0f   : > { %v2993_v13 = vadd.f32 0.2548296, %v2981_v58  ;;  %v2946_v45 = vadd.f32 1.4214138, %v2934_v62  ;;  %v2540_v48 = vmul.f32 %v2492_v36, %v7947_v35  ;;  %v2669_v35 = vmul.f32 0.5, %v8050_v29 }
 0xa11   : > { %v3005_v40 = vmul.f32 %v2993_v13, %v2756_v11  ;;  %v2958_v51 = vmul.f32 %v2946_v45, %v2771_v1  ;;  %v2553_v53 = vmul.f32 %v7906_v12, %v2540_v48 }
 0xa13   : > { %v3065_v44 = vmul.f32 %v6356_v4, %v3005_v40  ;;  %v2970_v57 = vadd.f32 -0.28449672, %v2958_v51  ;;  %v2566_v54 = vadd.f32 %v7912_v10, %v2553_v53 }
 0xa15   : > { %v3077_v3 = vsub.f32 1.0, %v3065_v44  ;;  %v2982_v17 = vmul.f32 %v2970_v57, %v2771_v1  ;;  %5982 = vmatmul.msk.f32.gmra.mxu1 %vm769_vm5, %v2566_v54 }
 0xa17   : > { %v3101_v32 = vsub.f32 0.0, %v3077_v3  ;;  %v2994_v14 = vadd.f32 0.2548296, %v2982_v17 }
 0xa19   : > { %v3113_v25 = vsel %vm3089_vm15, %v3077_v3, %v3101_v32  ;;  %v3006_v49 = vmul.f32 %v2994_v14, %v2771_v1 }
 0xa1a   : > { %v3125_v11 = vadd.f32 1.0, %v3113_v25 }
 0xa1b   : > { %v3066_v26 = vmul.f32 %v6358_v43, %v3006_v49 }
 0xa1c   : > { %v3137_v21 = vmul.f32 %v3125_v11, %v2669_v35 }
 0xa1d   : > { %v3078_v19 = vsub.f32 1.0, %v3066_v26 }
 0xa1e   : > { %3187 = vmatmul.f32.gmra.mxu2 %v3137_v21 }
 0xa1f   : > { %v3102_v28 = vsub.f32 0.0, %v3078_v19 }
 0xa21   : > { %v3114_v42 = vsel %vm3090_vm0, %v3078_v19, %v3102_v28 }
 0xa22   : > { %v3126_v22 = vadd.f32 1.0, %v3114_v42 }
 0xa24   : > { %v3138_v27 = vmul.f32 %v3126_v22, %v2670_v8 }
 0xa26   : > { %3190 = vmatmul.f32.gmra.mxu2 %v3138_v27 }
 0xa2b   : > { %v2379_v20 = vpop.xlane.xlu2 %2378 }
 0xa2c   : > { %v2397_v23 = vmul.f32 %v2379_v20, %v6928_v0 }
 0xa2e   : > { %v2409_v29 = vadd.f32 1e-05, %v2397_v23 }
 0xa30   : > { %6359 = vrsqrt.f32 %v2409_v29  ;;  %vm2499_vm2 = vweird.f32 %v2409_v29 }
 0xa33   : > { %v2382_v1 = vpop.xlane.xlu0 %2381 }
 0xa34   : > { %v2398_v34 = vmul.f32 %v2382_v1, %v6928_v0 }
 0xa36   : > { %v6360_v56 = vpop.eup %6359  ;;  %v2410_v7 = vadd.f32 1e-05, %v2398_v34 }
 0xa37   : > { %v2494_v58 = vmul.f32 %v6360_v56, %v2409_v29  ;;  %vm2500_vm1 = vweird.f32 %v6360_v56 }
 0xa38   : > { %6361 = vrsqrt.f32 %v2410_v7  ;;  %vm2501_vm3 = vmor %vm2499_vm2, %vm2500_vm1  ;;  %vm2509_vm7 = vweird.f32 %v2410_v7 }
 0xa39   : > { %v2495_v30 = vmul.f32 %v6360_v56, %v2494_v58 }
 0xa3b   : > { %v2496_v9 = vmul.f32 0.5, %v2495_v30 }
 0xa3c   : > { %v2385_v62 = vpop.xlane.xlu1 %2384 }
 0xa3d   : > { %v2497_v13 = vsub.f32 1.5, %v2496_v9  ;;  %v2399_v6 = vmul.f32 %v2385_v62, %v6928_v0 }
 0xa3e   : > { %v6362_v36 = vpop.eup %6361 }
 0xa3f   : > { %v2498_v45 = vmul.f32 %v6360_v56, %v2497_v13  ;;  %v2504_v60 = vmul.f32 %v6362_v36, %v2410_v7  ;;  %v2411_v48 = vadd.f32 1e-05, %v2399_v6  ;;  %vm2510_vm4 = vweird.f32 %v6362_v36 }
 0xa40   : > { %vm2511_vm8 = vmor %vm2509_vm7, %vm2510_vm4 }
 0xa41   : > { %v2502_v40 = vsel %vm2501_vm3, %v6360_v56, %v2498_v45  ;;  %v2505_v4 = vmul.f32 %v6362_v36, %v2504_v60  ;;  %6363 = vrsqrt.f32 %v2411_v48  ;;  %vm2519_vm10 = vweird.f32 %v2411_v48 }
 0xa42   : > { %v2541_v51 = vmul.f32 %v2502_v40, %v7954_v59 }
 0xa43   : > { %v2506_v53 = vmul.f32 0.5, %v2505_v4  ;;  %v2388_v44 = vpop.xlane.xlu2 %2387 }
 0xa44   : > { %v2400_v57 = vmul.f32 %v2388_v44, %v6928_v0  ;;  %v2554_v54 = vmul.f32 %v7906_v12, %v2541_v51 }
 0xa45   : > { %v2507_v3 = vsub.f32 1.5, %v2506_v53 }
 0xa46   : > { %v2412_v17 = vadd.f32 1e-05, %v2400_v57  ;;  %v2567_v32 = vadd.f32 %v7912_v10, %v2554_v54 }
 0xa47   : > { %v6364_v14 = vpop.eup %6363  ;;  %v2508_v25 = vmul.f32 %v6362_v36, %v2507_v3 }
 0xa48   : > { %v2514_v35 = vmul.f32 %v6364_v14, %v2411_v48  ;;  %6365 = vrsqrt.f32 %v2412_v17  ;;  %5983 = vmatmul.msk.f32.gmra.mxu1 %vm769_vm5, %v2567_v32  ;;  %vm2520_vm9 = vweird.f32 %v6364_v14  ;;  %vm2529_vm15 = vweird.f32 %v2412_v17 }
 0xa49   : > { %v2512_v59 = vsel %vm2511_vm8, %v6362_v36, %v2508_v25  ;;  %vm2521_vm13 = vmor %vm2519_vm10, %vm2520_vm9 }
 0xa4a   : > { %v2515_v11 = vmul.f32 %v6364_v14, %v2514_v35  ;;  %v2542_v49 = vmul.f32 %v2512_v59, %v7963_v50 }
 0xa4c   : > { %v2516_v43 = vmul.f32 0.5, %v2515_v11  ;;  %v2555_v21 = vmul.f32 %v7906_v12, %v2542_v49 }
 0xa4e   : > { %v6366_v26 = vpop.eup %6365  ;;  %v2517_v19 = vsub.f32 1.5, %v2516_v43  ;;  %v2568_v28 = vadd.f32 %v7912_v10, %v2555_v21 }
 0xa4f   : > { %v2524_v42 = vmul.f32 %v6366_v26, %v2412_v17  ;;  %vm2530_vm14 = vweird.f32 %v6366_v26 }
 0xa50   : > { %v2518_v8 = vmul.f32 %v6364_v14, %v2517_v19  ;;  %5984 = vmatmul.msk.f32.gmra.mxu1 %vm769_vm5, %v2568_v28  ;;  %vm2531_vm0 = vmor %vm2529_vm15, %vm2530_vm14 }
 0xa51   : > { %v2525_v22 = vmul.f32 %v6366_v26, %v2524_v42 }
 0xa52   : > { %v2522_v27 = vsel %vm2521_vm13, %v6364_v14, %v2518_v8 }
 0xa53   : > { %v2543_v20 = vmul.f32 %v2522_v27, %v7970_v39  ;;  %v2526_v23 = vmul.f32 0.5, %v2525_v22  ;;  %v2641_v50 = vpop.f32.mrf.mxu1 }
 0xa54   : > { %v8121_v29 = vadd.f32 %v7988_v31, %v2641_v50 }
 0xa55   : > { %v2527_v1 = vsub.f32 1.5, %v2526_v23  ;;  %v2556_v34 = vmul.f32 %v7906_v12, %v2543_v20 }
 0xa56   : > { %v8125_v56 = vmul.f32 0.70710677, %v8121_v29 }
 0xa57   : > { %v2528_v7 = vmul.f32 %v6366_v26, %v2527_v1  ;;  %v2569_v58 = vadd.f32 %v7912_v10, %v2556_v34 }
 0xa58   : > { %v2695_v30 = vand.u32 2147483647, %v8125_v56 }
 0xa59   : > { %v2532_v39 = vsel %vm2531_vm0, %v6366_v26, %v2528_v7  ;;  %5985 = vmatmul.msk.f32.gmra.mxu1 %vm769_vm5, %v2569_v58 }
 0xa5a   : > { %v2544_v9 = vmul.f32 %v2532_v39, %v7980_v46  ;;  %v2707_v62 = vmul.f32 0.3275911, %v2695_v30  ;;  %v3019_v43 = vsub.f32 0.0, %v2695_v30 }
 0xa5b   : > { %v2644_v13 = vpop.f32.mrf.mxu1 }
 0xa5c   : > { %v2719_v6 = vadd.f32 1.0, %v2707_v62  ;;  %v8132_v36 = vadd.f32 %v7988_v31, %v2644_v13  ;;  %v2557_v45 = vmul.f32 %v7906_v12, %v2544_v9  ;;  %v3031_v20 = vmul.f32 %v3019_v43, %v2695_v30 }
 0xa5e   : > { %6367 = vrcp.f32 %v2719_v6  ;;  %v8136_v60 = vmul.f32 0.70710677, %v8132_v36  ;;  %v2570_v48 = vadd.f32 %v7912_v10, %v2557_v45  ;;  %v2784_v57 = vand.u32 2147483648, %v2719_v6 }
 0xa5f   : > { %v2782_v17 = vand.u32 2147483647, %v2719_v6  ;;  %vm2778_vm2 = vweird.f32 %v2719_v6  ;;  %v3046_v58 = vmul.f32 1.442695, %v3031_v20 }
 0xa60   : > { %v2696_v40 = vand.u32 2147483647, %v8136_v60  ;;  %v2785_v14 = vor.u32 1.1754944e-38, %v2784_v57 }
 0xa61   : > { %5986 = vmatmul.msk.f32.gmra.mxu1 %vm769_vm5, %v2570_v48  ;;  %vm2783_vm4 = vcmp.eq.f32.partialorder %v2782_v17, 8.507059e+37 }
 0xa62   : > { %v2708_v4 = vmul.f32 0.3275911, %v2696_v40  ;;  %v3020_v39 = vsub.f32 0.0, %v2696_v40 }
 0xa64   : > { %v6368_v46 = vpop.eup %6367  ;;  %v2720_v53 = vadd.f32 1.0, %v2708_v4  ;;  %v3032_v30 = vmul.f32 %v3020_v39, %v2696_v40  ;;  %v8158_v39 = vld [vmem:[%s9595_s12] ss:$0 sm:$0xff] }
 0xa65   : > { %v2774_v51 = vmul.f32 %v6368_v46, %v2719_v6  ;;  %vm2779_vm1 = vweird.f32 %v6368_v46 }
 0xa66   : > { %6369 = vrcp.f32 %v2720_v53  ;;  %vm2780_vm3 = vmor %vm2778_vm2, %vm2779_vm1  ;;  %v2799_v28 = vand.u32 2147483648, %v2720_v53  ;;  %v2797_v27 = vand.u32 2147483647, %v2720_v53  ;;  %vm2793_vm8 = vweird.f32 %v2720_v53 }
 0xa67   : > { %v2775_v44 = vsub.f32 1.0, %v2774_v51  ;;  %vm3091_vm1 = vcmp.ge.f32.partialorder %v8125_v56, 0.0  ;;  %vm3092_vm2 = vcmp.ge.f32.partialorder %v8136_v60, 0.0 }
 0xa68   : > { %v2647_v54 = vpop.f32.mrf.mxu1  ;;  %v2800_v1 = vor.u32 1.1754944e-38, %v2799_v28  ;;  %vm2798_vm10 = vcmp.eq.f32.partialorder %v2797_v27, 8.507059e+37 }
 0xa69   : > { %v2776_v3 = vmul.f32 %v6368_v46, %v2775_v44  ;;  %v8142_v12 = vadd.f32 %v7988_v31, %v2647_v54 }
 0xa6b   : > { %v8145_v10 = vmul.f32 0.70710677, %v8142_v12  ;;  %v2777_v32 = vadd.f32 %v6368_v46, %v2776_v3 }
 0xa6c   : > { %v6370_v25 = vpop.eup %6369 }
 0xa6d   : > { %v8148_v35 = vand.u32 2147483647, %v8145_v10  ;;  %v2781_v59 = vsel %vm2780_vm3, %v6368_v46, %v2777_v32  ;;  %v2789_v11 = vmul.f32 %v6370_v25, %v2720_v53  ;;  %vm2794_vm7 = vweird.f32 %v6370_v25 }
 0xa6e   : > { %v2786_v49 = vsel %vm2783_vm4, %v2785_v14, %v2781_v59  ;;  %vm2795_vm9 = vmor %vm2793_vm8, %vm2794_vm7  ;;  %v3048_v32 = vmul.f32 1.442695, %v3032_v30  ;;  %vm3093_vm3 = vcmp.ge.f32.partialorder %v8145_v10, 0.0 }
 0xa6f   : > { %v2709_v21 = vmul.f32 0.3275911, %v8148_v35  ;;  %v2911_v26 = vmul.f32 1.0614054, %v2786_v49  ;;  %v2790_v19 = vsub.f32 1.0, %v2789_v11 }
 0xa71   : > { %v2721_v42 = vadd.f32 1.0, %v2709_v21  ;;  %v2923_v8 = vadd.f32 -1.4531521, %v2911_v26  ;;  %v2791_v22 = vmul.f32 %v6370_v25, %v2790_v19  ;;  %v3021_v19 = vsub.f32 0.0, %v8148_v35 }
 0xa73   : > { %6371 = vrcp.f32 %v2721_v42  ;;  %v2935_v23 = vmul.f32 %v2923_v8, %v2786_v49  ;;  %v2792_v50 = vadd.f32 %v6370_v25, %v2791_v22  ;;  %v2814_v44 = vand.u32 2147483648, %v2721_v42 }
 0xa74   : > { %6373 = vpow2.f32 %v3046_v58  ;;  %v2812_v57 = vand.u32 2147483647, %v2721_v42  ;;  %vm2808_vm14 = vweird.f32 %v2721_v42  ;;  %v2671_v58 = vmul.f32 0.5, %v8121_v29 }
 0xa75   : > { %v2947_v34 = vadd.f32 1.4214138, %v2935_v23  ;;  %v2796_v7 = vsel %vm2795_vm9, %v6370_v25, %v2792_v50  ;;  %v2815_v43 = vor.u32 1.1754944e-38, %v2814_v44  ;;  %6375 = vpow2.f32 %v3048_v32 }
 0xa76   : > { %v2801_v9 = vsel %vm2798_vm10, %v2800_v1, %v2796_v7  ;;  %vm2813_vm0 = vcmp.eq.f32.partialorder %v2812_v57, 8.507059e+37 }
 0xa77   : > { %v2959_v62 = vmul.f32 %v2947_v34, %v2786_v49  ;;  %v2912_v13 = vmul.f32 1.0614054, %v2801_v9 }
 0xa79   : > { %v6372_v6 = vpop.eup %6371  ;;  %v2971_v48 = vadd.f32 -0.28449672, %v2959_v62  ;;  %v2924_v4 = vadd.f32 -1.4531521, %v2912_v13 }
 0xa7a   : > { %v2804_v45 = vmul.f32 %v6372_v6, %v2721_v42  ;;  %vm2809_vm13 = vweird.f32 %v6372_v6  ;;  %v6374_v11 = vpop.eup %6373 }
 0xa7b   : > { %v2983_v51 = vmul.f32 %v2971_v48, %v2786_v49  ;;  %v2936_v53 = vmul.f32 %v2924_v4, %v2801_v9  ;;  %vm2810_vm15 = vmor %vm2808_vm14, %vm2809_vm13  ;;  %v6376_v7 = vpop.eup %6375 }
 0xa7c   : > { %v2805_v46 = vsub.f32 1.0, %v2804_v45 }
 0xa7d   : > { %v2995_v3 = vadd.f32 0.2548296, %v2983_v51  ;;  %v2948_v17 = vadd.f32 1.4214138, %v2936_v53 }
 0xa7e   : > { %v2806_v54 = vmul.f32 %v6372_v6, %v2805_v46 }
 0xa7f   : > { %v3007_v14 = vmul.f32 %v2995_v3, %v2786_v49  ;;  %v2960_v25 = vmul.f32 %v2948_v17, %v2801_v9  ;;  %v3033_v49 = vmul.f32 %v3021_v19, %v8148_v35  ;;  %v2672_v17 = vmul.f32 0.5, %v8132_v36 }
 0xa80   : > { %v2807_v59 = vadd.f32 %v6372_v6, %v2806_v54 }
 0xa81   : > { %v3067_v21 = vmul.f32 %v6374_v11, %v3007_v14  ;;  %v2972_v26 = vadd.f32 -0.28449672, %v2960_v25  ;;  %v3050_v48 = vmul.f32 1.442695, %v3033_v49 }
 0xa82   : > { %v2811_v40 = vsel %vm2810_vm15, %v6372_v6, %v2807_v59 }
 0xa83   : > { %v2816_v28 = vsel %vm2813_vm0, %v2815_v43, %v2811_v40  ;;  %v3079_v8 = vsub.f32 1.0, %v3067_v21  ;;  %v2984_v22 = vmul.f32 %v2972_v26, %v2801_v9  ;;  %6377 = vpow2.f32 %v3050_v48 }
 0xa84   : > { %v2913_v27 = vmul.f32 1.0614054, %v2816_v28 }
 0xa85   : > { %v3103_v20 = vsub.f32 0.0, %v3079_v8  ;;  %v2996_v23 = vadd.f32 0.2548296, %v2984_v22 }
 0xa86   : > { %v2925_v42 = vadd.f32 -1.4531521, %v2913_v27 }
 0xa87   : > { %v3115_v50 = vsel %vm3091_vm1, %v3079_v8, %v3103_v20  ;;  %v3008_v1 = vmul.f32 %v2996_v23, %v2801_v9 }
 0xa88   : > { %v2937_v34 = vmul.f32 %v2925_v42, %v2816_v28  ;;  %v3127_v62 = vadd.f32 1.0, %v3115_v50  ;;  %v2673_v42 = vmul.f32 0.5, %v8142_v12 }
 0xa89   : > { %v3068_v6 = vmul.f32 %v6376_v7, %v3008_v1  ;;  %v6378_v26 = vpop.eup %6377 }
 0xa8a   : > { %v2650_v13 = vpop.f32.mrf.mxu1  ;;  %v2949_v45 = vadd.f32 1.4214138, %v2937_v34  ;;  %v3139_v35 = vmul.f32 %v3127_v62, %v2671_v58 }
 0xa8b   : > { %v8161_v56 = vadd.f32 %v7988_v31, %v2650_v13  ;;  %v3080_v9 = vsub.f32 1.0, %v3068_v6 }
 0xa8c   : > { %v3185_v4 = vpop.f32.mrf.mxu2  ;;  %v2961_v30 = vmul.f32 %v2949_v45, %v2816_v28  ;;  %3193 = vmatmul.f32.gmra.mxu2 %v3139_v35 }
 0xa8d   : > { %v8164_v46 = vmul.f32 0.70710677, %v8161_v56  ;;  %v3186_v29 = vadd.f32 %v8158_v39, %v3185_v4  ;;  %v3104_v51 = vsub.f32 0.0, %v3080_v9 }
 0xa8e   : > { %v2973_v53 = vadd.f32 -0.28449672, %v2961_v30 }
 0xa8f   : > { %v2698_v44 = vand.u32 2147483647, %v8164_v46  ;;  %v8170_v57 = vadd.f32 %v3186_v29, %v7748_v33  ;;  %v3116_v54 = vsel %vm3092_vm2, %v3080_v9, %v3104_v51  ;;  %vm3094_vm0 = vcmp.ge.f32.partialorder %v8164_v46, 0.0 }
 0xa90   : > { %v2985_v3 = vmul.f32 %v2973_v53, %v2816_v28  ;;  %v3128_v25 = vadd.f32 1.0, %v3116_v54 }
 0xa91   : > { %v2710_v32 = vmul.f32 0.3275911, %v2698_v44  ;;  %v3235_v14 = vsel %vm769_vm5, %v8170_v57, 0.0  ;;  %v3022_v48 = vsub.f32 0.0, %v2698_v44 }
 0xa92   : > { %3236 = vadd.xlane.f32.xlu0 %v3235_v14  ;;  %v2997_v59 = vadd.f32 0.2548296, %v2985_v3  ;;  %v3140_v43 = vmul.f32 %v3128_v25, %v2672_v17  ;;  %v2653_v60 = vpop.f32.mrf.mxu1 }
 0xa93   : > { %v2722_v11 = vadd.f32 1.0, %v2710_v32  ;;  %v8176_v33 = vadd.f32 %v7988_v31, %v2653_v60  ;;  %v3034_v53 = vmul.f32 %v3022_v48, %v2698_v44  ;;  %v2674_v48 = vmul.f32 0.5, %v8161_v56 }
 0xa94   : > { %v3009_v21 = vmul.f32 %v2997_v59, %v2816_v28  ;;  %3196 = vmatmul.f32.gmra.mxu2 %v3140_v43 }
 0xa95   : > { %6379 = vrcp.f32 %v2722_v11  ;;  %v8179_v36 = vmul.f32 0.70710677, %v8176_v33  ;;  %v2829_v1 = vand.u32 2147483648, %v2722_v11  ;;  %v2827_v58 = vand.u32 2147483647, %v2722_v11 }
 0xa96   : > { %v3069_v40 = vmul.f32 %v6378_v26, %v3009_v21  ;;  %vm2823_vm7 = vweird.f32 %v2722_v11 }
 0xa97   : > { %v8182_v8 = vand.u32 2147483647, %v8179_v36  ;;  %v2830_v6 = vor.u32 1.1754944e-38, %v2829_v1  ;;  %vm2828_vm9 = vcmp.eq.f32.partialorder %v2827_v58, 8.507059e+37  ;;  %vm3095_vm1 = vcmp.ge.f32.partialorder %v8179_v36, 0.0 }
 0xa98   : > { %v3081_v19 = vsub.f32 1.0, %v3069_v40 }
 0xa99   : > { %v2711_v28 = vmul.f32 0.3275911, %v8182_v8 }
 0xa9a   : > { %v3105_v22 = vsub.f32 0.0, %v3081_v19 }
 0xa9b   : > { %v6380_v27 = vpop.eup %6379  ;;  %v2723_v50 = vadd.f32 1.0, %v2711_v28 }
 0xa9c   : > { %v2819_v20 = vmul.f32 %v6380_v27, %v2722_v11  ;;  %v3117_v23 = vsel %vm3093_vm3, %v3081_v19, %v3105_v22  ;;  %vm2824_vm4 = vweird.f32 %v6380_v27  ;;  %v3052_v11 = vmul.f32 1.442695, %v3034_v53 }
 0xa9d   : > { %v3129_v31 = vadd.f32 1.0, %v3117_v23  ;;  %6381 = vrcp.f32 %v2723_v50  ;;  %vm2825_vm8 = vmor %vm2823_vm7, %vm2824_vm4  ;;  %v2844_v3 = vand.u32 2147483648, %v2723_v50  ;;  %v2842_v25 = vand.u32 2147483647, %v2723_v50 }
 0xa9e   : > { %v2820_v49 = vsub.f32 1.0, %v2819_v20  ;;  %vm2838_vm13 = vweird.f32 %v2723_v50  ;;  %v3023_v19 = vsub.f32 0.0, %v8182_v8  ;;  %6383 = vpow2.f32 %v3052_v11 }
 0xa9f   : > { %v3141_v34 = vmul.f32 %v3129_v31, %v2673_v42  ;;  %v2845_v21 = vor.u32 1.1754944e-38, %v2844_v3  ;;  %vm2843_vm15 = vcmp.eq.f32.partialorder %v2842_v25, 8.507059e+37 }
 0xaa0   : > { %v2821_v7 = vmul.f32 %v6380_v27, %v2820_v49 }
 0xaa1   : > { %v3188_v62 = vpop.f32.mrf.mxu2  ;;  %3199 = vmatmul.f32.gmra.mxu2 %v3141_v34 }
 0xaa2   : > { %v3189_v10 = vadd.f32 %v8158_v39, %v3188_v62  ;;  %v2822_v13 = vadd.f32 %v6380_v27, %v2821_v7 }
 0xaa3   : > { %v6382_v4 = vpop.eup %6381 }
 0xaa4   : > { %v8189_v45 = vadd.f32 %v3189_v10, %v7767_v52  ;;  %v2826_v12 = vsel %vm2825_vm8, %v6380_v27, %v2822_v13  ;;  %v2834_v29 = vmul.f32 %v6382_v4, %v2723_v50  ;;  %vm2839_vm10 = vweird.f32 %v6382_v4  ;;  %v6384_v50 = vpop.eup %6383 }
 0xaa5   : > { %v2831_v35 = vsel %vm2828_vm9, %v2830_v6, %v2826_v12  ;;  %vm2840_vm14 = vmor %vm2838_vm13, %vm2839_vm10 }
 0xaa6   : > { %v3238_v9 = vsel %vm769_vm5, %v8189_v45, 0.0  ;;  %v2914_v30 = vmul.f32 1.0614054, %v2831_v35  ;;  %v2835_v54 = vsub.f32 1.0, %v2834_v29 }
 0xaa7   : > { %3239 = vadd.xlane.f32.xlu1 %v3238_v9 }
 0xaa8   : > { %v2926_v51 = vadd.f32 -1.4531521, %v2914_v30  ;;  %v2836_v14 = vmul.f32 %v6382_v4, %v2835_v54  ;;  %v6600_v54 = vld [vmem:[%s9593_s10] ss:$0 sm:$0xff] }
 0xaa9   : > { %v3191_v17 = vpop.f32.mrf.mxu2 }
 0xaaa   : > { %v2938_v32 = vmul.f32 %v2926_v51, %v2831_v35  ;;  %v3192_v52 = vadd.f32 %v8158_v39, %v3191_v17  ;;  %v2837_v60 = vadd.f32 %v6382_v4, %v2836_v14 }
 0xaac   : > { %v2950_v59 = vadd.f32 1.4214138, %v2938_v32  ;;  %v8195_v43 = vadd.f32 %v3192_v52, %v7774_v37  ;;  %v2841_v40 = vsel %vm2840_vm14, %v6382_v4, %v2837_v60  ;;  %v3035_v37 = vmul.f32 %v3023_v19, %v8182_v8 }
 0xaad   : > { %v2846_v27 = vsel %vm2843_vm15, %v2845_v21, %v2841_v40  ;;  %v2675_v32 = vmul.f32 0.5, %v8176_v33 }
 0xaae   : > { %v2962_v26 = vmul.f32 %v2950_v59, %v2831_v35  ;;  %v3241_v44 = vsel %vm769_vm5, %v8195_v43, 0.0  ;;  %v2915_v20 = vmul.f32 1.0614054, %v2846_v27  ;;  %v3054_v34 = vmul.f32 1.442695, %v3035_v37 }
 0xaaf   : > { %3242 = vadd.xlane.f32.xlu2 %v3241_v44 }
 0xab0   : > { %v2974_v22 = vadd.f32 -0.28449672, %v2962_v26  ;;  %v2927_v23 = vadd.f32 -1.4531521, %v2915_v20  ;;  %6385 = vpow2.f32 %v3054_v34 }
 0xab2   : > { %v2986_v28 = vmul.f32 %v2974_v22, %v2831_v35  ;;  %v2939_v31 = vmul.f32 %v2927_v23, %v2846_v27 }
 0xab4   : > { %v2998_v42 = vadd.f32 0.2548296, %v2986_v28  ;;  %v2951_v1 = vadd.f32 1.4214138, %v2939_v31 }
 0xab6   : > { %v3010_v49 = vmul.f32 %v2998_v42, %v2831_v35  ;;  %v2963_v58 = vmul.f32 %v2951_v1, %v2846_v27  ;;  %v6386_v35 = vpop.eup %6385 }
 0xab8   : > { %v3070_v7 = vmul.f32 %v6384_v50, %v3010_v49  ;;  %v2975_v10 = vadd.f32 -0.28449672, %v2963_v58 }
 0xaba   : > { %v3082_v62 = vsub.f32 1.0, %v3070_v7  ;;  %v2987_v6 = vmul.f32 %v2975_v10, %v2846_v27 }
 0xabc   : > { %v3106_v13 = vsub.f32 0.0, %v3082_v62  ;;  %v2999_v8 = vadd.f32 0.2548296, %v2987_v6 }
 0xabe   : > { %v3118_v12 = vsel %vm3094_vm0, %v3082_v62, %v3106_v13  ;;  %v3011_v30 = vmul.f32 %v2999_v8, %v2846_v27 }
 0xabf   : > { %v3130_v4 = vadd.f32 1.0, %v3118_v12 }
 0xac0   : > { %v3071_v29 = vmul.f32 %v6386_v35, %v3011_v30 }
 0xac1   : > { %v3142_v9 = vmul.f32 %v3130_v4, %v2674_v48 }
 0xac2   : > { %v3083_v53 = vsub.f32 1.0, %v3071_v29 }
 0xac3   : > { %3202 = vmatmul.f32.gmra.mxu2 %v3142_v9 }
 0xac4   : > { %v3107_v46 = vsub.f32 0.0, %v3083_v53 }
 0xac5   : > { %v2656_v51 = vpop.f32.mrf.mxu1 }
 0xac6   : > { %v8206_v3 = vadd.f32 %v6600_v54, %v2656_v51  ;;  %v3119_v17 = vsel %vm3095_vm1, %v3083_v53, %v3107_v46 }
 0xac7   : > { %v3131_v52 = vadd.f32 1.0, %v3119_v17 }
 0xac8   : > { %v8210_v56 = vmul.f32 0.70710677, %v8206_v3 }
 0xac9   : > { %v3143_v59 = vmul.f32 %v3131_v52, %v2675_v32 }
 0xaca   : > { %v2700_v14 = vand.u32 2147483647, %v8210_v56 }
 0xacb   : > { %3205 = vmatmul.f32.gmra.mxu2 %v3143_v59 }
 0xacc   : > { %v2712_v25 = vmul.f32 0.3275911, %v2700_v14  ;;  %v3024_v4 = vsub.f32 0.0, %v2700_v14 }
 0xacd   : > { %v2659_v11 = vpop.f32.mrf.mxu1 }
 0xace   : > { %v2724_v60 = vadd.f32 1.0, %v2712_v25  ;;  %v8214_v21 = vadd.f32 %v6600_v54, %v2659_v11  ;;  %v3036_v32 = vmul.f32 %v3024_v4, %v2700_v14 }
 0xad0   : > { %6387 = vrcp.f32 %v2724_v60  ;;  %v8217_v26 = vmul.f32 0.70710677, %v8214_v21  ;;  %v2859_v37 = vand.u32 2147483648, %v2724_v60  ;;  %v2857_v31 = vand.u32 2147483647, %v2724_v60 }
 0xad1   : > { %vm2853_vm3 = vweird.f32 %v2724_v60 }
 0xad2   : > { %v8220_v36 = vand.u32 2147483647, %v8217_v26  ;;  %v2860_v7 = vor.u32 1.1754944e-38, %v2859_v37  ;;  %vm2858_vm7 = vcmp.eq.f32.partialorder %v2857_v31, 8.507059e+37 }
 0xad4   : > { %v2713_v44 = vmul.f32 0.3275911, %v8220_v36 }
 0xad6   : > { %v6388_v33 = vpop.eup %6387  ;;  %v2662_v40 = vpop.f32.mrf.mxu1  ;;  %v2725_v22 = vadd.f32 1.0, %v2713_v44 }
 0xad7   : > { %v2849_v19 = vmul.f32 %v6388_v33, %v2724_v60  ;;  %v8223_v27 = vadd.f32 %v6600_v54, %v2662_v40  ;;  %vm2854_vm2 = vweird.f32 %v6388_v33  ;;  %v3025_v60 = vsub.f32 0.0, %v8220_v36 }
 0xad8   : > { %6389 = vrcp.f32 %v2725_v22  ;;  %vm2855_vm4 = vmor %vm2853_vm3, %vm2854_vm2  ;;  %v2874_v30 = vand.u32 2147483648, %v2725_v22  ;;  %v2872_v29 = vand.u32 2147483647, %v2725_v22  ;;  %vm2868_vm9 = vweird.f32 %v2725_v22 }
 0xad9   : > { %v2850_v20 = vsub.f32 1.0, %v2849_v19  ;;  %v8226_v28 = vmul.f32 0.70710677, %v8223_v27  ;;  %v3037_v14 = vmul.f32 %v3025_v60, %v8220_v36 }
 0xada   : > { %v2875_v52 = vor.u32 1.1754944e-38, %v2874_v30  ;;  %vm2873_vm13 = vcmp.eq.f32.partialorder %v2872_v29, 8.507059e+37 }
 0xadb   : > { %v2851_v23 = vmul.f32 %v6388_v33, %v2850_v20  ;;  %v8229_v42 = vand.u32 2147483647, %v8226_v28  ;;  %v3056_v20 = vmul.f32 1.442695, %v3036_v32  ;;  %v3058_v30 = vmul.f32 1.442695, %v3037_v14 }
 0xadd   : > { %v2852_v49 = vadd.f32 %v6388_v33, %v2851_v23  ;;  %v2714_v50 = vmul.f32 0.3275911, %v8229_v42 }
 0xade   : > { %v2665_v1 = vpop.f32.mrf.mxu1  ;;  %v6390_v34 = vpop.eup %6389 }
 0xadf   : > { %v8232_v58 = vadd.f32 %v6600_v54, %v2665_v1  ;;  %v2856_v62 = vsel %vm2855_vm4, %v6388_v33, %v2852_v49  ;;  %v2864_v10 = vmul.f32 %v6390_v34, %v2725_v22  ;;  %v2726_v13 = vadd.f32 1.0, %v2714_v50 }
 0xae0   : > { %v2861_v12 = vsel %vm2858_vm7, %v2860_v7, %v2856_v62  ;;  %vm2869_vm8 = vweird.f32 %v6390_v34 }
 0xae1   : > { %v8235_v6 = vmul.f32 0.70710677, %v8232_v58  ;;  %v2865_v48 = vsub.f32 1.0, %v2864_v10  ;;  %6391 = vrcp.f32 %v2726_v13  ;;  %v2916_v35 = vmul.f32 1.0614054, %v2861_v12  ;;  %vm2870_vm10 = vmor %vm2868_vm9, %vm2869_vm8 }
 0xae2   : > { %v2887_v22 = vand.u32 2147483647, %v2726_v13  ;;  %v2889_v23 = vand.u32 2147483648, %v2726_v13  ;;  %vm2883_vm15 = vweird.f32 %v2726_v13  ;;  %vm3096_vm8 = vcmp.ge.f32.partialorder %v8210_v56, 0.0 }
 0xae3   : > { %v8238_v8 = vand.u32 2147483647, %v8235_v6  ;;  %v2866_v9 = vmul.f32 %v6390_v34, %v2865_v48  ;;  %v2928_v53 = vadd.f32 -1.4531521, %v2916_v35  ;;  %v3026_v35 = vsub.f32 0.0, %v8229_v42 }
 0xae4   : > { %v2890_v62 = vor.u32 1.1754944e-38, %v2889_v23  ;;  %vm2888_vm1 = vcmp.eq.f32.partialorder %v2887_v22, 8.507059e+37  ;;  %vm3097_vm9 = vcmp.ge.f32.partialorder %v8217_v26, 0.0 }
 0xae5   : > { %v2715_v51 = vmul.f32 0.3275911, %v8238_v8  ;;  %v2867_v54 = vadd.f32 %v6390_v34, %v2866_v9  ;;  %v2940_v25 = vmul.f32 %v2928_v53, %v2861_v12  ;;  %v3027_v23 = vsub.f32 0.0, %v8238_v8 }
 0xae7   : > { %v2727_v46 = vadd.f32 1.0, %v2715_v51  ;;  %v6392_v17 = vpop.eup %6391  ;;  %v2871_v59 = vsel %vm2870_vm10, %v6390_v34, %v2867_v54  ;;  %v2952_v40 = vadd.f32 1.4214138, %v2940_v25  ;;  %vm3098_vm10 = vcmp.ge.f32.partialorder %v8226_v28, 0.0 }
 0xae8   : > { %v2879_v11 = vmul.f32 %v6392_v17, %v2726_v13  ;;  %v2876_v44 = vsel %vm2873_vm13, %v2875_v52, %v2871_v59  ;;  %vm2884_vm14 = vweird.f32 %v6392_v17  ;;  %vm3099_vm13 = vcmp.ge.f32.partialorder %v8235_v6, 0.0 }
 0xae9   : > { %6393 = vrcp.f32 %v2727_v46  ;;  %v2917_v19 = vmul.f32 1.0614054, %v2876_v44  ;;  %v2964_v31 = vmul.f32 %v2952_v40, %v2861_v12  ;;  %vm2885_vm0 = vmor %vm2883_vm15, %vm2884_vm14  ;;  %v2904_v53 = vand.u32 2147483648, %v2727_v46 }
 0xaea   : > { %v2880_v33 = vsub.f32 1.0, %v2879_v11  ;;  %6395 = vpow2.f32 %v3056_v20  ;;  %v2902_v52 = vand.u32 2147483647, %v2727_v46  ;;  %vm2898_vm3 = vweird.f32 %v2727_v46 }
 0xaeb   : > { %v2929_v49 = vadd.f32 -1.4531521, %v2917_v19  ;;  %v2976_v1 = vadd.f32 -0.28449672, %v2964_v31  ;;  %6397 = vpow2.f32 %v3058_v30  ;;  %v2905_v40 = vor.u32 1.1754944e-38, %v2904_v53 }
 0xaec   : > { %v2881_v37 = vmul.f32 %v6392_v17, %v2880_v33  ;;  %vm2903_vm7 = vcmp.eq.f32.partialorder %v2902_v52, 8.507059e+37 }
 0xaed   : > { %v2941_v34 = vmul.f32 %v2929_v49, %v2876_v44  ;;  %v2988_v48 = vmul.f32 %v2976_v1, %v2861_v12 }
 0xaee   : > { %v2882_v7 = vadd.f32 %v6392_v17, %v2881_v37 }
 0xaef   : > { %v6394_v50 = vpop.eup %6393  ;;  %v2953_v4 = vadd.f32 1.4214138, %v2941_v34  ;;  %v3000_v36 = vadd.f32 0.2548296, %v2988_v48  ;;  %v3039_v48 = vmul.f32 %v3027_v23, %v8238_v8 }
 0xaf0   : > { %v2894_v10 = vmul.f32 %v6394_v50, %v2727_v46  ;;  %v2886_v9 = vsel %vm2885_vm0, %v6392_v17, %v2882_v7  ;;  %vm2899_vm2 = vweird.f32 %v6394_v50  ;;  %v6396_v60 = vpop.eup %6395  ;;  %v3038_v17 = vmul.f32 %v3026_v35, %v8229_v42 }
 0xaf1   : > { %v2891_v51 = vsel %vm2888_vm1, %v2890_v62, %v2886_v9  ;;  %v2965_v54 = vmul.f32 %v2953_v4, %v2876_v44  ;;  %v3012_v25 = vmul.f32 %v3000_v36, %v2861_v12  ;;  %vm2900_vm4 = vmor %vm2898_vm3, %vm2899_vm2  ;;  %v6398_v46 = vpop.eup %6397 }
 0xaf2   : > { %v2895_v29 = vsub.f32 1.0, %v2894_v10  ;;  %v2918_v13 = vmul.f32 1.0614054, %v2891_v51  ;;  %v3060_v1 = vmul.f32 1.442695, %v3038_v17 }
 0xaf3   : > { %v2977_v59 = vadd.f32 -0.28449672, %v2965_v54  ;;  %v3072_v19 = vmul.f32 %v6396_v60, %v3012_v25 }
 0xaf4   : > { %v2896_v32 = vmul.f32 %v6394_v50, %v2895_v29  ;;  %v2930_v11 = vadd.f32 -1.4531521, %v2918_v13  ;;  %6399 = vpow2.f32 %v3060_v1 }
 0xaf5   : > { %v2989_v20 = vmul.f32 %v2977_v59, %v2876_v44  ;;  %v3084_v31 = vsub.f32 1.0, %v3072_v19 }
 0xaf6   : > { %v2897_v33 = vadd.f32 %v6394_v50, %v2896_v32  ;;  %v2942_v22 = vmul.f32 %v2930_v11, %v2891_v51  ;;  %v2677_v11 = vmul.f32 0.5, %v8214_v21 }
 0xaf7   : > { %v3001_v49 = vadd.f32 0.2548296, %v2989_v20  ;;  %v3108_v7 = vsub.f32 0.0, %v3084_v31 }
 0xaf8   : > { %v2901_v37 = vsel %vm2900_vm4, %v6394_v50, %v2897_v33  ;;  %v2954_v12 = vadd.f32 1.4214138, %v2942_v22  ;;  %v2676_v50 = vmul.f32 0.5, %v8206_v3 }
 0xaf9   : > { %v2906_v14 = vsel %vm2903_vm7, %v2905_v40, %v2901_v37  ;;  %v3013_v62 = vmul.f32 %v3001_v49, %v2876_v44  ;;  %v3120_v4 = vsel %vm3096_vm8, %v3084_v31, %v3108_v7  ;;  %v3062_v44 = vmul.f32 1.442695, %v3039_v48 }
 0xafa   : > { %v2919_v34 = vmul.f32 1.0614054, %v2906_v14  ;;  %v2966_v42 = vmul.f32 %v2954_v12, %v2891_v51  ;;  %v3132_v35 = vadd.f32 1.0, %v3120_v4  ;;  %v6400_v59 = vpop.eup %6399  ;;  %v2678_v12 = vmul.f32 0.5, %v8223_v27 }
 0xafb   : > { %v3073_v9 = vmul.f32 %v6398_v46, %v3013_v62  ;;  %6401 = vpow2.f32 %v3062_v44  ;;  %v2679_v27 = vmul.f32 0.5, %v8232_v58 }
 0xafc   : > { %v2931_v10 = vadd.f32 -1.4531521, %v2919_v34  ;;  %v2978_v30 = vadd.f32 -0.28449672, %v2966_v42  ;;  %v3144_v54 = vmul.f32 %v3132_v35, %v2676_v50 }
 0xafd   : > { %v3085_v53 = vsub.f32 1.0, %v3073_v9 }
 0xafe   : > { %v2943_v29 = vmul.f32 %v2931_v10, %v2906_v14  ;;  %v2990_v36 = vmul.f32 %v2978_v30, %v2891_v51  ;;  %3208 = vmatmul.f32.gmra.mxu2 %v3144_v54 }
 0xaff   : > { %v3109_v32 = vsub.f32 0.0, %v3085_v53 }
 0xb00   : > { %v2955_v13 = vadd.f32 1.4214138, %v2943_v29  ;;  %v3002_v52 = vadd.f32 0.2548296, %v2990_v36 }
 0xb01   : > { %v3121_v8 = vsel %vm3097_vm9, %v3085_v53, %v3109_v32  ;;  %v6402_v31 = vpop.eup %6401 }
 0xb02   : > { %v2967_v56 = vmul.f32 %v2955_v13, %v2906_v14  ;;  %v3014_v25 = vmul.f32 %v3002_v52, %v2891_v51  ;;  %v3133_v3 = vadd.f32 1.0, %v3121_v8 }
 0xb04   : > { %v2979_v60 = vadd.f32 -0.28449672, %v2967_v56  ;;  %v3074_v33 = vmul.f32 %v6400_v59, %v3014_v25  ;;  %v3145_v19 = vmul.f32 %v3133_v3, %v2677_v11 }
 0xb05   : > { %v3237_v17 = vpop.xlane.xlu0 %3236 }
 0xb06   : > { %v3271_v40 = vmul.f32 %v3237_v17, %v6928_v0  ;;  %v2991_v20 = vmul.f32 %v2979_v60, %v2906_v14  ;;  %v3086_v22 = vsub.f32 1.0, %v3074_v33  ;;  %3211 = vmatmul.f32.gmra.mxu2 %v3145_v19 }
 0xb08   : > { %v8253_v23 = vsub.f32 %v8170_v57, %v3271_v40  ;;  %v3003_v26 = vadd.f32 0.2548296, %v2991_v20  ;;  %v3110_v37 = vsub.f32 0.0, %v3086_v22  ;;  %v5991_v20 = vld [vmem:[%s9590_s7 + $0x38] sm:$0xff] }
 0xb09   : > { %3583 = vmatpush.msrb.mxu0 %v5991_v20  ;;  %6145 = vmatpush.msra.mxu3 %v5991_v20 }
 0xb0a   : > { %v3295_v21 = vmul.f32 %v8253_v23, %v8253_v23  ;;  %v3015_v51 = vmul.f32 %v3003_v26, %v2906_v14  ;;  %v3122_v49 = vsel %vm3098_vm10, %v3086_v22, %v3110_v37  ;;  %v5988_v22 = vld [vmem:[%s9590_s7 + $0x20] sm:$0xff] }
 0xb0b   : > { %v3134_v34 = vadd.f32 1.0, %v3122_v49 }
 0xb0c   : > { %v3307_v1 = vsel %vm769_vm5, %v3295_v21, 0.0  ;;  %v3075_v7 = vmul.f32 %v6402_v31, %v3015_v51 }
 0xb0d   : > { %3308 = vadd.xlane.f32.xlu0 %v3307_v1  ;;  %v3146_v62 = vmul.f32 %v3134_v34, %v2678_v12 }
 0xb0e   : > { %v3087_v42 = vsub.f32 1.0, %v3075_v7 }
 0xb0f   : > { %v3194_v46 = vpop.f32.mrf.mxu2  ;;  %3214 = vmatmul.f32.gmra.mxu2 %v3146_v62 }
 0xb10   : > { %v3111_v10 = vsub.f32 0.0, %v3087_v42  ;;  %v3195_v28 = vadd.f32 %v8158_v39, %v3194_v46 }
 0xb12   : > { %v3123_v48 = vsel %vm3099_vm13, %v3087_v42, %v3111_v10  ;;  %v8263_v14 = vadd.f32 %v3195_v28, %v7823_v55 }
 0xb13   : > { %v3135_v4 = vadd.f32 1.0, %v3123_v48 }
 0xb14   : > { %v3244_v9 = vsel %vm769_vm5, %v8263_v14, 0.0 }
 0xb15   : > { %3245 = vadd.xlane.f32.xlu2 %v3244_v9  ;;  %v3147_v30 = vmul.f32 %v3135_v4, %v2679_v27  ;;  %v5987_v9 = vld [vmem:[%s9589_s6 + $0x4] sm:$0xf] }
 0xb17   : > { %3217 = vmatmul.f32.gmra.mxu2 %v3147_v30  ;;  %v3197_v6 = vpop.f32.mrf.mxu2 }
 0xb18   : > { %v3198_v53 = vadd.f32 %v8158_v39, %v3197_v6  ;;  %v8341_v6 = vperm.slane %v5987_v9, 0 }
 0xb1a   : > { %v3240_v50 = vpop.xlane.xlu1 %3239  ;;  %v8278_v44 = vadd.f32 %v3198_v53, %v7718_v5 }
 0xb1b   : > { %v3272_v35 = vmul.f32 %v3240_v50, %v6928_v0 }
 0xb1c   : > { %v3247_v59 = vsel %vm769_vm5, %v8278_v44, 0.0 }
 0xb1d   : > { %v8270_v29 = vsub.f32 %v8189_v45, %v3272_v35 }
 0xb1f   : > { %v3296_v55 = vmul.f32 %v8270_v29, %v8270_v29 }
 0xb21   : > { %v3310_v58 = vsel %vm769_vm5, %v3296_v55, 0.0 }
 0xb22   : > { %3311 = vadd.xlane.f32.xlu1 %v3310_v58  ;;  %v3243_v36 = vpop.xlane.xlu2 %3242 }
 0xb23   : > { %v3273_v54 = vmul.f32 %v3243_v36, %v6928_v0 }
 0xb24   : > { %v3200_v13 = vpop.f32.mrf.mxu2 }
 0xb25   : > { %v3201_v32 = vadd.f32 %v8158_v39, %v3200_v13  ;;  %v8282_v52 = vsub.f32 %v8195_v43, %v3273_v54  ;;  %v8346_v13 = vperm.slane %v5987_v9, 1 }
 0xb27   : > { %v8285_v56 = vadd.f32 %v3201_v32, %v7843_v24  ;;  %v3297_v8 = vmul.f32 %v8282_v52, %v8282_v52 }
 0xb29   : > { %v3250_v25 = vsel %vm769_vm5, %v8285_v56, 0.0  ;;  %v3313_v5 = vsel %vm769_vm5, %v3297_v8, 0.0 }
 0xb2a   : > { %3251 = vadd.xlane.f32.xlu2 %v3250_v25  ;;  %3248 = vadd.xlane.f32.xlu1 %v3247_v59 }
 0xb2b   : > { %3314 = vadd.xlane.f32.xlu0 %v3313_v5 }
 0xb46   : > { %v3203_v11 = vpop.f32.mrf.mxu2 }
 0xb47   : > { %v3204_v3 = vadd.f32 %v8158_v39, %v3203_v11 }
 0xb49   : > { %v8296_v24 = vadd.f32 %v3204_v3, %v7854_v15  ;;  %v5990_v15 = vld [vmem:[%s9590_s7 + $0x30] sm:$0xff] }
 0xb4a   : > { %3584 = vmatpush.msrb.mxu0 %v5990_v15  ;;  %6146 = vmatpush.msra.mxu3 %v5990_v15 }
 0xb4b   : > { %v3253_v60 = vsel %vm769_vm5, %v8296_v24, 0.0 }
 0xb4c   : > { %3254 = vadd.xlane.f32.xlu0 %v3253_v60 }
 0xb4e   : > { %v3206_v17 = vpop.f32.mrf.mxu2 }
 0xb4f   : > { %v3207_v33 = vadd.f32 %v8158_v39, %v3206_v17 }
 0xb51   : > { %v8302_v40 = vadd.f32 %v3207_v33, %v7859_v61  ;;  %v5989_v61 = vld [vmem:[%s9590_s7 + $0x28] sm:$0xff] }
 0xb52   : > { %3585 = vmatpush.msrb.mxu0 %v5989_v61  ;;  %6147 = vmatpush.msra.mxu3 %v5989_v61 }
 0xb53   : > { %v3256_v19 = vsel %vm769_vm5, %v8302_v40, 0.0 }
 0xb54   : > { %3257 = vadd.xlane.f32.xlu1 %v3256_v19  ;;  %3586 = vmatpush.msrb.mxu0 %v5988_v22 }
 0xb55   : > { %6148 = vmatpush.msra.mxu3 %v5988_v22 }
 0xb80   : > { %v3309_v26 = vpop.xlane.xlu0 %3308 }
 0xb81   : > { %v3343_v37 = vmul.f32 %v3309_v26, %v6928_v0  ;;  %v3209_v51 = vpop.f32.mrf.mxu2 }
 0xb82   : > { %v3210_v31 = vadd.f32 %v8158_v39, %v3209_v51 }
 0xb83   : > { %v3355_v21 = vadd.f32 1e-05, %v3343_v37 }
 0xb84   : > { %v8321_v49 = vadd.f32 %v3210_v31, %v7878_v2 }
 0xb85   : > { %6403 = vrsqrt.f32 %v3355_v21  ;;  %vm3373_vm15 = vweird.f32 %v3355_v21 }
 0xb86   : > { %v3259_v34 = vsel %vm769_vm5, %v8321_v49, 0.0 }
 0xb87   : > { %3260 = vadd.xlane.f32.xlu2 %v3259_v34 }
 0xb88   : > { %v3246_v12 = vpop.xlane.xlu2 %3245 }
 0xb89   : > { %v3274_v1 = vmul.f32 %v3246_v12, %v6928_v0  ;;  %v3212_v46 = vpop.f32.mrf.mxu2 }
 0xb8a   : > { %v3213_v28 = vadd.f32 %v8158_v39, %v3212_v46 }
 0xb8b   : > { %v6404_v7 = vpop.eup %6403  ;;  %v8327_v42 = vsub.f32 %v8263_v14, %v3274_v1 }
 0xb8c   : > { %v3368_v62 = vmul.f32 %v6404_v7, %v3355_v21  ;;  %v8333_v4 = vadd.f32 %v3213_v28, %v7892_v63  ;;  %vm3374_vm14 = vweird.f32 %v6404_v7 }
 0xb8d   : > { %v3298_v2 = vmul.f32 %v8327_v42, %v8327_v42  ;;  %vm3375_vm0 = vmor %vm3373_vm15, %vm3374_vm14 }
 0xb8e   : > { %v3369_v10 = vmul.f32 %v6404_v7, %v3368_v62  ;;  %v3262_v50 = vsel %vm769_vm5, %v8333_v4, 0.0 }
 0xb8f   : > { %v3316_v27 = vsel %vm769_vm5, %v3298_v2, 0.0  ;;  %3263 = vadd.xlane.f32.xlu0 %v3262_v50 }
 0xb90   : > { %v3370_v48 = vmul.f32 0.5, %v3369_v10  ;;  %3317 = vadd.xlane.f32.xlu1 %v3316_v27 }
 0xb92   : > { %v3371_v30 = vsub.f32 1.5, %v3370_v48  ;;  %v3215_v63 = vpop.f32.mrf.mxu2 }
 0xb93   : > { %v3216_v58 = vadd.f32 %v8158_v39, %v3215_v63 }
 0xb94   : > { %v3372_v35 = vmul.f32 %v6404_v7, %v3371_v30 }
 0xb95   : > { %v3312_v55 = vpop.xlane.xlu1 %3311  ;;  %v8349_v32 = vadd.f32 %v3216_v58, %v7901_v38 }
 0xb96   : > { %v3376_v53 = vsel %vm3375_vm0, %v6404_v7, %v3372_v35  ;;  %v3344_v36 = vmul.f32 %v3312_v55, %v6928_v0 }
 0xb97   : > { %v3487_v54 = vmul.f32 %v3376_v53, %v8253_v23  ;;  %v3265_v59 = vsel %vm769_vm5, %v8349_v32, 0.0 }
 0xb98   : > { %v3356_v8 = vadd.f32 1e-05, %v3344_v36  ;;  %3266 = vadd.xlane.f32.xlu2 %v3265_v59 }
 0xb99   : > { %v3500_v25 = vmul.f32 %v8341_v6, %v3487_v54 }
 0xb9a   : > { %6405 = vrsqrt.f32 %v3356_v8  ;;  %v3218_v11 = vpop.f32.mrf.mxu2  ;;  %vm3383_vm2 = vweird.f32 %v3356_v8 }
 0xb9b   : > { %v3513_v5 = vadd.f32 %v8346_v13, %v3500_v25  ;;  %v3219_v23 = vadd.f32 %v8158_v39, %v3218_v11 }
 0xb9d   : > { %5993 = vmatmul.msk.f32.vlgmr.msrb.gmra.mxu0 %vm769_vm5, %v3513_v5  ;;  %v3252_v3 = vpop.xlane.xlu2 %3251  ;;  %v3249_v17 = vpop.xlane.xlu1 %3248  ;;  %v8361_v15 = vadd.f32 %v3219_v23, %v7917_v16 }
 0xb9e   : > { %v3315_v60 = vpop.xlane.xlu0 %3314  ;;  %v3276_v38 = vmul.f32 %v3252_v3, %v6928_v0  ;;  %v3275_v19 = vmul.f32 %v3249_v17, %v6928_v0 }
 0xb9f   : > { %v3345_v33 = vmul.f32 %v3315_v60, %v6928_v0  ;;  %v3268_v39 = vsel %vm769_vm5, %v8361_v15, 0.0 }
 0xba0   : > { %v6406_v20 = vpop.eup %6405  ;;  %v8364_v61 = vsub.f32 %v8285_v56, %v3276_v38  ;;  %v8367_v37 = vsub.f32 %v8278_v44, %v3275_v19  ;;  %3269 = vadd.xlane.f32.xlu1 %v3268_v39 }
 0xba1   : > { %v3378_v22 = vmul.f32 %v6406_v20, %v3356_v8  ;;  %v3357_v26 = vadd.f32 1e-05, %v3345_v33  ;;  %vm3384_vm1 = vweird.f32 %v6406_v20 }
 0xba2   : > { %v3300_v21 = vmul.f32 %v8364_v61, %v8364_v61  ;;  %v3299_v16 = vmul.f32 %v8367_v37, %v8367_v37  ;;  %vm3385_vm3 = vmor %vm3383_vm2, %vm3384_vm1 }
 0xba3   : > { %v3379_v51 = vmul.f32 %v6406_v20, %v3378_v22  ;;  %6407 = vrsqrt.f32 %v3357_v26  ;;  %vm3393_vm7 = vweird.f32 %v3357_v26 }
 0xba4   : > { %v3322_v31 = vsel %vm769_vm5, %v3300_v21, 0.0  ;;  %v3319_v1 = vsel %vm769_vm5, %v3299_v16, 0.0 }
 0xba5   : > { %v3380_v12 = vmul.f32 0.5, %v3379_v51  ;;  %3323 = vadd.xlane.f32.xlu2 %v3322_v31  ;;  %3320 = vadd.xlane.f32.xlu0 %v3319_v1 }
 0xba7   : > { %v3381_v34 = vsub.f32 1.5, %v3380_v12 }
 0xba9   : > { %v6408_v7 = vpop.eup %6407  ;;  %v3382_v62 = vmul.f32 %v6406_v20, %v3381_v34 }
 0xbaa   : > { %v3388_v46 = vmul.f32 %v6408_v7, %v3357_v26  ;;  %vm3394_vm4 = vweird.f32 %v6408_v7 }
 0xbab   : > { %v3386_v10 = vsel %vm3385_vm3, %v6406_v20, %v3382_v62  ;;  %vm3395_vm8 = vmor %vm3393_vm7, %vm3394_vm4 }
 0xbac   : > { %v3389_v28 = vmul.f32 %v6408_v7, %v3388_v46  ;;  %v3488_v2 = vmul.f32 %v3386_v10, %v8270_v29 }
 0xbae   : > { %v3390_v48 = vmul.f32 0.5, %v3389_v28  ;;  %v3501_v27 = vmul.f32 %v8341_v6, %v3488_v2 }
 0xbb0   : > { %v3391_v9 = vsub.f32 1.5, %v3390_v48  ;;  %v3514_v30 = vadd.f32 %v8346_v13, %v3501_v27 }
 0xbb2   : > { %v3392_v50 = vmul.f32 %v6408_v7, %v3391_v9  ;;  %5994 = vmatmul.msk.f32.gmra.mxu0 %vm769_vm5, %v3514_v30 }
 0xbb4   : > { %v3396_v35 = vsel %vm3395_vm8, %v6408_v7, %v3392_v50 }
 0xbb5   : > { %v3489_v63 = vmul.f32 %v3396_v35, %v8282_v52 }
 0xbb7   : > { %v3502_v55 = vmul.f32 %v8341_v6, %v3489_v63 }
 0xbb9   : > { %v3515_v53 = vadd.f32 %v8346_v13, %v3502_v55 }
 0xbbb   : > { %5995 = vmatmul.msk.f32.gmra.mxu0 %vm769_vm5, %v3515_v53 }
 0xbbf   : > { %v3255_v29 = vpop.xlane.xlu0 %3254 }
 0xbc0   : > { %v3277_v58 = vmul.f32 %v3255_v29, %v6928_v0 }
 0xbc2   : > { %v8387_v36 = vsub.f32 %v8296_v24, %v3277_v58 }
 0xbc4   : > { %v3301_v54 = vmul.f32 %v8387_v36, %v8387_v36 }
 0xbc6   : > { %v3325_v8 = vsel %vm769_vm5, %v3301_v54, 0.0 }
 0xbc7   : > { %3326 = vadd.xlane.f32.xlu0 %v3325_v8  ;;  %v3258_v25 = vpop.xlane.xlu1 %3257 }
 0xbc8   : > { %v3278_v52 = vmul.f32 %v3258_v25, %v6928_v0 }
 0xbca   : > { %v8394_v59 = vsub.f32 %v8302_v40, %v3278_v52 }
 0xbcc   : > { %v3302_v5 = vmul.f32 %v8394_v59, %v8394_v59 }
 0xbce   : > { %v3328_v11 = vsel %vm769_vm5, %v3302_v5, 0.0 }
 0xbcf   : > { %3329 = vadd.xlane.f32.xlu1 %v3328_v11 }
 0xbfa   : > { %v3261_v3 = vpop.xlane.xlu2 %3260 }
 0xbfb   : > { %v3279_v23 = vmul.f32 %v3261_v3, %v6928_v0 }
 0xbfd   : > { %v8401_v60 = vsub.f32 %v8321_v49, %v3279_v23 }
 0xbff   : > { %v3303_v38 = vmul.f32 %v8401_v60, %v8401_v60 }
 0xc01   : > { %v3331_v33 = vsel %vm769_vm5, %v3303_v38, 0.0 }
 0xc02   : > { %v3264_v20 = vpop.xlane.xlu0 %3263  ;;  %3332 = vadd.xlane.f32.xlu2 %v3331_v33 }
 0xc03   : > { %v3318_v17 = vpop.xlane.xlu1 %3317  ;;  %v3280_v22 = vmul.f32 %v3264_v20, %v6928_v0 }
 0xc04   : > { %v3346_v19 = vmul.f32 %v3318_v17, %v6928_v0 }
 0xc05   : > { %v8409_v39 = vsub.f32 %v8333_v4, %v3280_v22 }
 0xc06   : > { %v3358_v26 = vadd.f32 1e-05, %v3346_v19 }
 0xc07   : > { %v3304_v21 = vmul.f32 %v8409_v39, %v8409_v39 }
 0xc08   : > { %6409 = vrsqrt.f32 %v3358_v26  ;;  %vm3403_vm10 = vweird.f32 %v3358_v26 }
 0xc09   : > { %v3334_v51 = vsel %vm769_vm5, %v3304_v21, 0.0 }
 0xc0a   : > { %3335 = vadd.xlane.f32.xlu0 %v3334_v51  ;;  %v8437_v51 = vld [vmem:[%s9591_s8 + $0x1] ss:$0 sm:$0xff] }
 0xc0b   : > { %v3267_v16 = vpop.xlane.xlu2 %3266 }
 0xc0c   : > { %v3281_v12 = vmul.f32 %v3267_v16, %v6928_v0 }
 0xc0e   : > { %v6410_v31 = vpop.eup %6409  ;;  %v8416_v34 = vsub.f32 %v8349_v32, %v3281_v12 }
 0xc0f   : > { %v3398_v1 = vmul.f32 %v6410_v31, %v3358_v26  ;;  %vm3404_vm9 = vweird.f32 %v6410_v31 }
 0xc10   : > { %v3305_v62 = vmul.f32 %v8416_v34, %v8416_v34  ;;  %vm3405_vm13 = vmor %vm3403_vm10, %vm3404_vm9 }
 0xc11   : > { %v3399_v7 = vmul.f32 %v6410_v31, %v3398_v1 }
 0xc12   : > { %v3337_v10 = vsel %vm769_vm5, %v3305_v62, 0.0 }
 0xc13   : > { %v3400_v46 = vmul.f32 0.5, %v3399_v7  ;;  %3338 = vadd.xlane.f32.xlu1 %v3337_v10  ;;  %v3270_v2 = vpop.xlane.xlu1 %3269 }
 0xc14   : > { %v3282_v48 = vmul.f32 %v3270_v2, %v6928_v0 }
 0xc15   : > { %v3401_v28 = vsub.f32 1.5, %v3400_v46 }
 0xc16   : > { %v8423_v30 = vsub.f32 %v8361_v15, %v3282_v48 }
 0xc17   : > { %v3402_v27 = vmul.f32 %v6410_v31, %v3401_v28 }
 0xc18   : > { %v3324_v9 = vpop.xlane.xlu2 %3323  ;;  %v3321_v35 = vpop.xlane.xlu0 %3320  ;;  %v3306_v29 = vmul.f32 %v8423_v30, %v8423_v30 }
 0xc19   : > { %v3348_v50 = vmul.f32 %v3324_v9, %v6928_v0  ;;  %v3406_v63 = vsel %vm3405_vm13, %v6410_v31, %v3402_v27  ;;  %v3347_v55 = vmul.f32 %v3321_v35, %v6928_v0 }
 0xc1a   : > { %v3490_v58 = vmul.f32 %v3406_v63, %v8327_v42  ;;  %v3340_v8 = vsel %vm769_vm5, %v3306_v29, 0.0  ;;  %v3588_v33 = vpop.f32.mrf.mxu0 }
 0xc1b   : > { %v3360_v53 = vadd.f32 1e-05, %v3348_v50  ;;  %v3359_v54 = vadd.f32 1e-05, %v3347_v55  ;;  %3341 = vadd.xlane.f32.xlu2 %v3340_v8  ;;  %v8447_v46 = vadd.f32 %v8437_v51, %v3588_v33 }
 0xc1c   : > { %v3503_v25 = vmul.f32 %v8341_v6, %v3490_v58 }
 0xc1d   : > { %6411 = vrsqrt.f32 %v3360_v53  ;;  %vm3413_vm0 = vweird.f32 %v3359_v54  ;;  %vm3423_vm2 = vweird.f32 %v3360_v53 }
 0xc1e   : > { %6413 = vrsqrt.f32 %v3359_v54  ;;  %v3516_v52 = vadd.f32 %v8346_v13, %v3503_v25 }
 0xc20   : > { %5996 = vmatmul.msk.f32.gmra.mxu0 %vm769_vm5, %v3516_v52 }
 0xc23   : > { %v6412_v5 = vpop.eup %6411 }
 0xc24   : > { %v6414_v11 = vpop.eup %6413  ;;  %v3418_v3 = vmul.f32 %v6412_v5, %v3360_v53  ;;  %vm3424_vm15 = vweird.f32 %v6412_v5 }
 0xc25   : > { %v3408_v23 = vmul.f32 %v6414_v11, %v3359_v54  ;;  %vm3414_vm14 = vweird.f32 %v6414_v11  ;;  %vm3425_vm3 = vmor %vm3423_vm2, %vm3424_vm15 }
 0xc26   : > { %v3419_v38 = vmul.f32 %v6412_v5, %v3418_v3  ;;  %vm3415_vm1 = vmor %vm3413_vm0, %vm3414_vm14 }
 0xc27   : > { %v3409_v17 = vmul.f32 %v6414_v11, %v3408_v23 }
 0xc28   : > { %v3420_v42 = vmul.f32 0.5, %v3419_v38 }
 0xc29   : > { %v3410_v19 = vmul.f32 0.5, %v3409_v17 }
 0xc2a   : > { %v3421_v20 = vsub.f32 1.5, %v3420_v42 }
 0xc2b   : > { %v3411_v22 = vsub.f32 1.5, %v3410_v19 }
 0xc2c   : > { %v3422_v26 = vmul.f32 %v6412_v5, %v3421_v20 }
 0xc2d   : > { %v3412_v21 = vmul.f32 %v6414_v11, %v3411_v22 }
 0xc2e   : > { %v3426_v7 = vsel %vm3425_vm3, %v6412_v5, %v3422_v26 }
 0xc2f   : > { %v3416_v16 = vsel %vm3415_vm1, %v6414_v11, %v3412_v21  ;;  %v3591_v31 = vpop.f32.mrf.mxu0  ;;  %v3492_v28 = vmul.f32 %v3426_v7, %v8364_v61 }
 0xc30   : > { %v8440_v12 = vadd.f32 %v8437_v51, %v3591_v31  ;;  %v3491_v1 = vmul.f32 %v3416_v16, %v8367_v37 }
 0xc31   : > { %v3505_v37 = vmul.f32 %v8341_v6, %v3492_v28 }
 0xc32   : > { %3632 = vrot.lane.b32.xlu1 %v8440_v12, %s6669_s23  ;;  %v3504_v62 = vmul.f32 %v8341_v6, %v3491_v1 }
 0xc33   : > { %3630 = vrot.lane.b32.xlu2 %v8447_v46, %s6669_s23  ;;  %v3518_v50 = vadd.f32 %v8346_v13, %v3505_v37 }
 0xc34   : > { %v3517_v10 = vadd.f32 %v8346_v13, %v3504_v62 }
 0xc36   : > { %5997 = vmatmul.msk.f32.gmra.mxu0 %vm769_vm5, %v3517_v10 }
 0xc38   : > { %v3594_v2 = vpop.f32.mrf.mxu0 }
 0xc39   : > { %v8456_v48 = vadd.f32 %v8437_v51, %v3594_v2 }
 0xc3a   : > { %v3327_v27 = vpop.xlane.xlu0 %3326 }
 0xc3b   : > { %3634 = vrot.lane.b32.xlu0 %v8456_v48, %s6669_s23  ;;  %v3349_v9 = vmul.f32 %v3327_v27, %v6928_v0 }
 0xc3d   : > { %v3361_v61 = vadd.f32 1e-05, %v3349_v9 }
 0xc3e   : > { %5998 = vmatmul.msk.f32.gmra.mxu0 %vm769_vm5, %v3518_v50 }
 0xc3f   : > { %6415 = vrsqrt.f32 %v3361_v61  ;;  %vm3433_vm7 = vweird.f32 %v3361_v61 }
 0xc42   : > { %v3330_v63 = vpop.xlane.xlu1 %3329 }
 0xc43   : > { %v3350_v53 = vmul.f32 %v3330_v63, %v6928_v0 }
 0xc45   : > { %v6416_v35 = vpop.eup %6415  ;;  %v3362_v58 = vadd.f32 1e-05, %v3350_v53 }
 0xc46   : > { %v3428_v55 = vmul.f32 %v6416_v35, %v3361_v61  ;;  %vm3434_vm4 = vweird.f32 %v6416_v35 }
 0xc47   : > { %6417 = vrsqrt.f32 %v3362_v58  ;;  %vm3435_vm8 = vmor %vm3433_vm7, %vm3434_vm4  ;;  %vm3443_vm10 = vweird.f32 %v3362_v58 }
 0xc48   : > { %v3429_v29 = vmul.f32 %v6416_v35, %v3428_v55 }
 0xc4a   : > { %v3430_v54 = vmul.f32 0.5, %v3429_v29 }
 0xc4c   : > { %v3431_v8 = vsub.f32 1.5, %v3430_v54 }
 0xc4d   : > { %v6418_v52 = vpop.eup %6417 }
 0xc4e   : > { %v3432_v25 = vmul.f32 %v6416_v35, %v3431_v8  ;;  %v3438_v3 = vmul.f32 %v6418_v52, %v3362_v58  ;;  %vm3444_vm9 = vweird.f32 %v6418_v52 }
 0xc4f   : > { %vm3445_vm13 = vmor %vm3443_vm10, %vm3444_vm9 }
 0xc50   : > { %v3436_v5 = vsel %vm3435_vm8, %v6416_v35, %v3432_v25  ;;  %v3439_v38 = vmul.f32 %v6418_v52, %v3438_v3 }
 0xc51   : > { %v3493_v11 = vmul.f32 %v3436_v5, %v8387_v36 }
 0xc52   : > { %v3440_v17 = vmul.f32 0.5, %v3439_v38 }
 0xc53   : > { %v3506_v23 = vmul.f32 %v8341_v6, %v3493_v11 }
 0xc54   : > { %v3441_v42 = vsub.f32 1.5, %v3440_v17 }
 0xc55   : > { %v3519_v33 = vadd.f32 %v8346_v13, %v3506_v23 }
 0xc56   : > { %v3442_v19 = vmul.f32 %v6418_v52, %v3441_v42 }
 0xc57   : > { %5999 = vmatmul.msk.f32.vlgmr.msra.gmra.mxu3 %vm769_vm5, %v3519_v33 }
 0xc58   : > { %v3446_v20 = vsel %vm3445_vm13, %v6418_v52, %v3442_v19 }
 0xc59   : > { %v3494_v22 = vmul.f32 %v3446_v20, %v8394_v59 }
 0xc5b   : > { %v3507_v26 = vmul.f32 %v8341_v6, %v3494_v22 }
 0xc5d   : > { %v3520_v36 = vadd.f32 %v8346_v13, %v3507_v26 }
 0xc5f   : > { %6000 = vmatmul.msk.f32.gmra.mxu3 %vm769_vm5, %v3520_v36 }
 0xc75   : > { %v3333_v21 = vpop.xlane.xlu2 %3332 }
 0xc76   : > { %v3351_v16 = vmul.f32 %v3333_v21, %v6928_v0 }
 0xc78   : > { %v3363_v31 = vadd.f32 1e-05, %v3351_v16 }
 0xc7a   : > { %6419 = vrsqrt.f32 %v3363_v31  ;;  %vm3453_vm15 = vweird.f32 %v3363_v31 }
 0xc7d   : > { %v3336_v1 = vpop.xlane.xlu0 %3335 }
 0xc7e   : > { %v3352_v7 = vmul.f32 %v3336_v1, %v6928_v0 }
 0xc80   : > { %v6420_v62 = vpop.eup %6419  ;;  %v3364_v10 = vadd.f32 1e-05, %v3352_v7 }
 0xc81   : > { %v3448_v28 = vmul.f32 %v6420_v62, %v3363_v31  ;;  %vm3454_vm14 = vweird.f32 %v6420_v62 }
 0xc82   : > { %6421 = vrsqrt.f32 %v3364_v10  ;;  %vm3455_vm0 = vmor %vm3453_vm15, %vm3454_vm14  ;;  %vm3463_vm2 = vweird.f32 %v3364_v10 }
 0xc83   : > { %v3449_v2 = vmul.f32 %v6420_v62, %v3448_v28 }
 0xc85   : > { %v3450_v59 = vmul.f32 0.5, %v3449_v2 }
 0xc86   : > { %v3339_v37 = vpop.xlane.xlu1 %3338 }
 0xc87   : > { %v3353_v27 = vmul.f32 %v3339_v37, %v6928_v0  ;;  %v3451_v9 = vsub.f32 1.5, %v3450_v59 }
 0xc88   : > { %v6422_v50 = vpop.eup %6421 }
 0xc89   : > { %v3365_v61 = vadd.f32 1e-05, %v3353_v27  ;;  %v3452_v35 = vmul.f32 %v6420_v62, %v3451_v9  ;;  %v3458_v63 = vmul.f32 %v6422_v50, %v3364_v10  ;;  %vm3464_vm1 = vweird.f32 %v6422_v50 }
 0xc8a   : > { %vm3465_vm3 = vmor %vm3463_vm2, %vm3464_vm1 }
 0xc8b   : > { %6423 = vrsqrt.f32 %v3365_v61  ;;  %v3456_v55 = vsel %vm3455_vm0, %v6420_v62, %v3452_v35  ;;  %v3459_v53 = vmul.f32 %v6422_v50, %v3458_v63  ;;  %vm3473_vm7 = vweird.f32 %v3365_v61 }
 0xc8c   : > { %v3495_v29 = vmul.f32 %v3456_v55, %v8401_v60 }
 0xc8d   : > { %v3460_v58 = vmul.f32 0.5, %v3459_v53  ;;  %v3624_v53 = vsel %vm761_vm11, %v8447_v46, 0.0 }
 0xc8e   : > { %v3342_v54 = vpop.xlane.xlu2 %3341  ;;  %v3508_v25 = vmul.f32 %v8341_v6, %v3495_v29  ;;  %v3626_v29 = vsel %vm761_vm11, %v8456_v48, 0.0 }
 0xc8f   : > { %v3354_v8 = vmul.f32 %v3342_v54, %v6928_v0  ;;  %v3461_v52 = vsub.f32 1.5, %v3460_v58 }
 0xc90   : > { %v3521_v3 = vadd.f32 %v8346_v13, %v3508_v25 }
 0xc91   : > { %v6424_v5 = vpop.eup %6423  ;;  %v3366_v11 = vadd.f32 1e-05, %v3354_v8  ;;  %v3462_v23 = vmul.f32 %v6422_v50, %v3461_v52  ;;  %v3625_v52 = vsel %vm761_vm11, %v8440_v12, 0.0 }
 0xc92   : > { %v3468_v38 = vmul.f32 %v6424_v5, %v3365_v61  ;;  %6001 = vmatmul.msk.f32.gmra.mxu3 %vm769_vm5, %v3521_v3  ;;  %vm3474_vm4 = vweird.f32 %v6424_v5  ;;  %v3738_v3 = vsel %vm7142_vm12, %v8440_v12, 0.0 }
 0xc93   : > { %6425 = vrsqrt.f32 %v3366_v11  ;;  %v3466_v60 = vsel %vm3465_vm3, %v6422_v50, %v3462_v23  ;;  %vm3475_vm8 = vmor %vm3473_vm7, %vm3474_vm4  ;;  %vm3483_vm10 = vweird.f32 %v3366_v11  ;;  %v3739_v23 = vsel %vm7142_vm12, %v8456_v48, 0.0 }
 0xc94   : > { %v3469_v17 = vmul.f32 %v6424_v5, %v3468_v38  ;;  %v3496_v33 = vmul.f32 %v3466_v60, %v8409_v39 }
 0xc96   : > { %v3470_v42 = vmul.f32 0.5, %v3469_v17  ;;  %v3509_v19 = vmul.f32 %v8341_v6, %v3496_v33  ;;  %v3631_v55 = vpop.permute.xlu2 %3630 }
 0xc97   : > { %v3740_v25 = vsel %vm7142_vm12, %v3631_v55, 0.0 }
 0xc98   : > { %v3471_v20 = vsub.f32 1.5, %v3470_v42  ;;  %v3522_v26 = vadd.f32 %v8346_v13, %v3509_v19 }
 0xc99   : > { %v6426_v22 = vpop.eup %6425 }
 0xc9a   : > { %v3472_v36 = vmul.f32 %v6424_v5, %v3471_v20  ;;  %v3478_v21 = vmul.f32 %v6426_v22, %v3366_v11  ;;  %6002 = vmatmul.msk.f32.gmra.mxu3 %vm769_vm5, %v3522_v26  ;;  %vm3484_vm9 = vweird.f32 %v6426_v22  ;;  %v3737_v11 = vsel %vm7142_vm12, %v8447_v46, 0.0 }
 0xc9b   : > { %vm3485_vm13 = vmor %vm3483_vm10, %vm3484_vm9 }
 0xc9c   : > { %v3476_v31 = vsel %vm3475_vm8, %v6424_v5, %v3472_v36  ;;  %v3479_v1 = vmul.f32 %v6426_v22, %v3478_v21 }
 0xc9d   : > { %v3597_v16 = vpop.f32.mrf.mxu0  ;;  %v3497_v39 = vmul.f32 %v3476_v31, %v8416_v34 }
 0xc9e   : > { %v8485_v7 = vadd.f32 %v8437_v51, %v3597_v16  ;;  %v3480_v62 = vmul.f32 0.5, %v3479_v1 }
 0xc9f   : > { %v3510_v10 = vmul.f32 %v8341_v6, %v3497_v39 }
 0xca0   : > { %3905 = vrot.lane.b32.xlu1 %v8485_v7, %s6669_s23  ;;  %v3481_v28 = vsub.f32 1.5, %v3480_v62  ;;  %v3899_v16 = vsel %vm761_vm11, %v8485_v7, 0.0  ;;  %v4012_v31 = vsel %vm7142_vm12, %v8485_v7, 0.0 }
 0xca1   : > { %v3523_v2 = vadd.f32 %v8346_v13, %v3510_v10 }
 0xca2   : > { %v3482_v59 = vmul.f32 %v6426_v22, %v3481_v28 }
 0xca3   : > { %6003 = vmatmul.msk.f32.gmra.mxu3 %vm769_vm5, %v3523_v2 }
 0xca4   : > { %v3486_v37 = vsel %vm3485_vm13, %v6426_v22, %v3482_v59  ;;  %v3633_v35 = vpop.permute.xlu1 %3632 }
 0xca5   : > { %v3498_v27 = vmul.f32 %v3486_v37, %v8423_v30  ;;  %v3640_v63 = vsel %vm761_vm11, %v3633_v35, 0.0  ;;  %v3741_v58 = vsel %vm7142_vm12, %v3633_v35, 0.0 }
 0xca7   : > { %v3511_v34 = vmul.f32 %v8341_v6, %v3498_v27  ;;  %v3639_v6 = vsel %vm761_vm11, %v3631_v55, 0.0 }
 0xca9   : > { %v3524_v9 = vadd.f32 %v8346_v13, %v3511_v34 }
 0xcab   : > { %6004 = vmatmul.msk.f32.gmra.mxu3 %vm769_vm5, %v3524_v9 }
 0xcad   : > { %v3635_v50 = vpop.permute.xlu0 %3634 }
 0xcae   : > { %v3641_v61 = vsel %vm761_vm11, %v3635_v50, 0.0  ;;  %v3742_v13 = vsel %vm7142_vm12, %v3635_v50, 0.0 }
 0xcaf   : > { %6005 = vmatpush.xpose.msk.msra.mxu0 %vm769_vm5, %v3641_v61  ;;  %6149 = vmatpush.xpose.msk.msra.mxu2 %vm769_vm5, %v3641_v61 }
 0xcb3   : > { %v3600_v30 = vpop.f32.mrf.mxu0  ;;  %6006 = vmatpush.xpose.msk.msra.mxu0 %vm769_vm5, %v3640_v63  ;;  %6150 = vmatpush.xpose.msk.msra.mxu2 %vm769_vm5, %v3640_v63 }
 0xcb4   : > { %v8536_v5 = vadd.f32 %v8437_v51, %v3600_v30 }
 0xcb6   : > { %v3900_v10 = vsel %vm761_vm11, %v8536_v5, 0.0  ;;  %v4013_v28 = vsel %vm7142_vm12, %v8536_v5, 0.0 }
 0xcb7   : > { %6007 = vmatpush.xpose.msk.msra.mxu0 %vm769_vm5, %v3639_v6  ;;  %6151 = vmatpush.xpose.msk.msra.mxu2 %vm769_vm5, %v3639_v6 }
 0xcba   : > { %6008 = vmatmul.msk.f32.vlgmr.msra.gmra.mxu0 %vm769_vm5, %v3624_v53  ;;  %6010 = vmatmul.msk.f32.vlgmr.msra.gmra.mxu2 %vm769_vm5, %v3626_v29 }
 0xcbb   : > { %6011 = vmatpush.xpose.msk.msrb.mxu0 %vm769_vm5, %v3742_v13  ;;  %v3603_v54 = vpop.f32.mrf.mxu0 }
 0xcbc   : > { %v8523_v8 = vadd.f32 %v8437_v51, %v3603_v54 }
 0xcbe   : > { %3909 = vrot.lane.b32.xlu0 %v8523_v8, %s6669_s23  ;;  %v3901_v50 = vsel %vm761_vm11, %v8523_v8, 0.0  ;;  %v4014_v61 = vsel %vm7142_vm12, %v8523_v8, 0.0 }
 0xcbf   : > { %6012 = vmatpush.xpose.msk.msrb.mxu0 %vm769_vm5, %v3741_v58 }
 0xcc2   : > { %6009 = vmatmul.msk.f32.gmra.mxu0 %vm769_vm5, %v3625_v52 }
 0xcc3   : > { %6013 = vmatpush.xpose.msk.msrb.mxu0 %vm769_vm5, %v3740_v25 }
 0xcc6   : > { %3907 = vrot.lane.b32.xlu0 %v8536_v5, %s6669_s23 }
 0xcca   : > { %6014 = vmatmul.msk.f32.vlgmr.msrb.gmra.mxu0 %vm769_vm5, %v3737_v11 }
 0xcd2   : > { %6015 = vmatmul.msk.f32.gmra.mxu0 %vm769_vm5, %v3738_v3 }
 0xcda   : > { %6016 = vmatmul.msk.f32.gmra.mxu0 %vm769_vm5, %v3739_v23  ;;  %v3606_v39 = vpop.f32.mrf.mxu3 }
 0xce2   : > { %v3609_v63 = vpop.f32.mrf.mxu3 }
 0xce3   : > { %v8620_v23 = vadd.f32 %v8437_v51, %v3609_v63 }
 0xd12   : > { %v3906_v22 = vpop.permute.xlu1 %3905 }
 0xd13   : > { %v3914_v26 = vsel %vm761_vm11, %v3906_v22, 0.0  ;;  %v4015_v36 = vsel %vm7142_vm12, %v3906_v22, 0.0 }
 0xd15   : > { %v3612_v54 = vpop.f32.mrf.mxu3 }
 0xd1d   : > { %v3615_v3 = vpop.f32.mrf.mxu3 }
 0xd30   : > { %v3910_v38 = vpop.permute.xlu0 %3909 }
 0xd31   : > { %v3916_v60 = vsel %vm761_vm11, %v3910_v38, 0.0  ;;  %v4017_v17 = vsel %vm7142_vm12, %v3910_v38, 0.0  ;;  %v3618_v38 = vpop.f32.mrf.mxu3 }
 0xd32   : > { %6029 = vmatpush.xpose.msk.msra.mxu1 %vm769_vm5, %v3916_v60  ;;  %6035 = vmatpush.xpose.msk.msrb.mxu3 %vm769_vm5, %v4017_v17  ;;  %v8625_v60 = vadd.f32 %v8437_v51, %v3612_v54  ;;  %v8628_v17 = vadd.f32 %v8437_v51, %v3606_v39 }
 0xd37   : > { %v3689_v33 = vpop.f32.mrf.mxu0 }
 0xd38   : > { %v3908_v42 = vpop.permute.xlu0 %3907  ;;  %v3698_v59 = vmul.f32 0.25, %v3689_v33 }
 0xd39   : > { %v3915_v19 = vsel %vm761_vm11, %v3908_v42, 0.0  ;;  %v4016_v20 = vsel %vm7142_vm12, %v3908_v42, 0.0  ;;  %v3621_v33 = vpop.f32.mrf.mxu3 }
 0xd3a   : > { %6030 = vmatpush.xpose.msk.msra.mxu1 %vm769_vm5, %v3915_v19  ;;  %6036 = vmatpush.xpose.msk.msrb.mxu3 %vm769_vm5, %v4016_v20  ;;  %v8592_v34 = vadd.f32 %v3698_v59, %v7232_v18  ;;  %v8635_v42 = vadd.f32 %v8437_v51, %v3621_v33 }
 0xd3c   : > { %v3704_v6 = vsel %vm1246_vm6, %v8592_v34, -inf }
 0xd3d   : > { %v3695_v35 = vpop.f32.mrf.mxu2 }
 0xd3e   : > { %6031 = vmatpush.xpose.msk.msra.mxu1 %vm769_vm5, %v3914_v26  ;;  %6037 = vmatpush.xpose.msk.msrb.mxu3 %vm769_vm5, %v4015_v36  ;;  %v3700_v30 = vmul.f32 0.25, %v3695_v35  ;;  %v8645_v26 = vadd.f32 %v8437_v51, %v3618_v38  ;;  %v4288_v38 = vsel %vm7142_vm12, %v8620_v23, 0.0 }
 0xd3f   : > { %v3692_v21 = vpop.f32.mrf.mxu0 }
 0xd40   : > { %v8610_v29 = vadd.f32 %v3700_v30, %v7232_v18  ;;  %v3699_v19 = vmul.f32 0.25, %v3692_v21 }
 0xd41   : > { %6032 = vmatmul.msk.f32.vlgmr.msra.gmra.mxu1 %vm769_vm5, %v3899_v16  ;;  %6038 = vmatmul.msk.f32.vlgmr.msrb.gmra.mxu3 %vm769_vm5, %v4012_v31 }
 0xd42   : > { %v3710_v52 = vsel %vm1246_vm6, %v8610_v29, -inf  ;;  %v8640_v20 = vadd.f32 %v3699_v19, %v7232_v18 }
 0xd44   : > { %v3707_v22 = vsel %vm1246_vm6, %v8640_v20, -inf }
 0xd47   : > { %v3781_v1 = vpop.f32.mrf.mxu0 }
 0xd48   : > { %v3790_v62 = vmul.f32 0.25, %v3781_v1 }
 0xd49   : > { %6033 = vmatmul.msk.f32.gmra.mxu1 %vm769_vm5, %v3900_v10  ;;  %6039 = vmatmul.msk.f32.gmra.mxu3 %vm769_vm5, %v4013_v28 }
 0xd4a   : > { %v8587_v2 = vadd.f32 %v3790_v62, %v7232_v18 }
 0xd4c   : > { %v3796_v37 = vsel %vm1246_vm6, %v8587_v2, -inf }
 0xd4d   : > { %3797 = vmax.xlane.f32.xlu2 %v3796_v37 }
 0xd4f   : > { %v3784_v27 = vpop.f32.mrf.mxu0 }
 0xd50   : > { %v3791_v9 = vmul.f32 0.25, %v3784_v27 }
 0xd51   : > { %6034 = vmatmul.msk.f32.gmra.mxu1 %vm769_vm5, %v3901_v50  ;;  %6040 = vmatmul.msk.f32.gmra.mxu3 %vm769_vm5, %v4014_v61  ;;  %v8668_v61 = vadd.f32 %v8437_v51, %v3615_v3  ;;  %v4175_v3 = vsel %vm761_vm11, %v8620_v23, 0.0 }
 0xd52   : > { %v8603_v55 = vadd.f32 %v3791_v9, %v7232_v18 }
 0xd54   : > { %v3799_v13 = vsel %vm1246_vm6, %v8603_v55, -inf }
 0xd55   : > { %3705 = vmax.xlane.f32.xlu2 %v3704_v6  ;;  %3800 = vmax.xlane.f32.xlu0 %v3799_v13 }
 0xd57   : > { %v3787_v53 = vpop.f32.mrf.mxu0 }
 0xd58   : > { %v3792_v58 = vmul.f32 0.25, %v3787_v53 }
 0xd5a   : > { %v8613_v25 = vadd.f32 %v3792_v58, %v7232_v18 }
 0xd5c   : > { %v3802_v11 = vsel %vm1246_vm6, %v8613_v25, -inf }
 0xd5d   : > { %3711 = vmax.xlane.f32.xlu2 %v3710_v52  ;;  %3803 = vmax.xlane.f32.xlu1 %v3802_v11  ;;  %v4287_v11 = vsel %vm7142_vm12, %v8628_v17, 0.0 }
 0xd69   : > { %4182 = vrot.lane.b32.xlu0 %v8620_v23, %s6669_s23 }
 0xd75   : > { %4184 = vrot.lane.b32.xlu2 %v8625_v60, %s6669_s23 }
 0xd76   : > { %4180 = vrot.lane.b32.xlu1 %v8628_v17, %s6669_s23 }
 0xd7d   : > { %4459 = vrot.lane.b32.xlu2 %v8635_v42, %s6669_s23 }
 0xd93   : > { %3708 = vmax.xlane.f32.xlu0 %v3707_v22 }
 0xda7   : > { %4457 = vrot.lane.b32.xlu0 %v8645_v26, %s6669_s23 }
 0xdaf   : > { %3644 = vrot.lane.b32.xlu0 %v8440_v12, %s6670_s28 }
 0xdbe   : > { %v3964_v36 = vpop.f32.mrf.mxu1 }
 0xdbf   : > { %v3973_v16 = vmul.f32 0.25, %v3964_v36  ;;  %v4176_v36 = vsel %vm761_vm11, %v8625_v60, 0.0 }
 0xdc0   : > { %v3798_v31 = vpop.xlane.xlu2 %3797 }
 0xdc1   : > { %v8652_v21 = vadd.f32 %v3973_v16, %v7232_v18  ;;  %v3805_v33 = vsub.f32 %v8587_v2, %v3798_v31  ;;  %v4289_v16 = vsel %vm7142_vm12, %v8625_v60, 0.0 }
 0xdc3   : > { %v3979_v1 = vsel %vm1246_vm6, %v8652_v21, -inf  ;;  %v3808_v19 = vmul.f32 1.442695, %v3805_v33 }
 0xdc4   : > { %3980 = vmax.xlane.f32.xlu1 %v3979_v1 }
 0xdc5   : > { %6427 = vpow2.f32 %v3808_v19 }
 0xdc6   : > { %v3967_v39 = vpop.f32.mrf.mxu1 }
 0xdc7   : > { %v3974_v62 = vmul.f32 0.25, %v3967_v39 }
 0xdc8   : > { %v3706_v10 = vpop.xlane.xlu2 %3705  ;;  %v3801_v37 = vpop.xlane.xlu0 %3800 }
 0xdc9   : > { %v8657_v28 = vadd.f32 %v3974_v62, %v7232_v18  ;;  %v3713_v22 = vsub.f32 %v8592_v34, %v3706_v10  ;;  %v3806_v34 = vsub.f32 %v8603_v55, %v3801_v37 }
 0xdcb   : > { %v3982_v59 = vsel %vm1246_vm6, %v8657_v28, -inf  ;;  %v3716_v2 = vmul.f32 1.442695, %v3713_v22  ;;  %v8720_v31 = vpop.eup %6427 }
 0xdcc   : > { %3983 = vmax.xlane.f32.xlu2 %v3982_v59  ;;  %v3814_v10 = vsel %vm1246_vm6, %v8720_v31, 0.0 }
 0xdcd   : > { %6429 = vpow2.f32 %v3716_v2  ;;  %v4449_v2 = vsel %vm761_vm11, %v8668_v61, 0.0 }
 0xdce   : > { %v3970_v1 = vpop.f32.mrf.mxu1 }
 0xdcf   : > { %v3975_v39 = vmul.f32 0.25, %v3970_v1  ;;  %v4562_v1 = vsel %vm7142_vm12, %v8668_v61, 0.0 }
 0xdd0   : > { %v3712_v12 = vpop.xlane.xlu2 %3711  ;;  %v8678_v6 = vpop.xlane.xlu1 %3803 }
 0xdd1   : > { %v3807_v19 = vsub.f32 %v8613_v25, %v8678_v6 }
 0xdd8   : > { %v4185_v27 = vpop.permute.xlu2 %4184 }
 0xdd9   : > { %v4191_v9 = vsel %vm761_vm11, %v4185_v27, 0.0  ;;  %v4292_v50 = vsel %vm7142_vm12, %v4185_v27, 0.0  ;;  %v8726_v27 = vpop.eup %6429 }
 0xdda   : > { %6053 = vmatpush.xpose.msk.msrb.mxu1 %vm769_vm5, %v4191_v9  ;;  %6059 = vmatpush.xpose.msk.msra.mxu3 %vm769_vm5, %v4292_v50  ;;  %v3810_v9 = vmul.f32 1.442695, %v3806_v34  ;;  %v3715_v50 = vsub.f32 %v8610_v29, %v3712_v12  ;;  %v3722_v55 = vsel %vm1246_vm6, %v8726_v27, 0.0 }
 0xddb   : > { %v4183_v35 = vpop.permute.xlu0 %4182 }
 0xddc   : > { %v4190_v63 = vsel %vm761_vm11, %v4183_v35, 0.0  ;;  %v4291_v30 = vsel %vm7142_vm12, %v4183_v35, 0.0  ;;  %v3720_v37 = vmul.f32 1.442695, %v3715_v50 }
 0xddd   : > { %4455 = vrot.lane.b32.xlu1 %v8668_v61, %s6669_s23  ;;  %s512_s23 = sand.u32 1, %s6657_s22  }
 0xdde   : > { %6054 = vmatpush.xpose.msk.msrb.mxu1 %vm769_vm5, %v4190_v63  ;;  %6060 = vmatpush.xpose.msk.msra.mxu3 %vm769_vm5, %v4291_v30  ;;  %v8730_v63 = vadd.f32 %v3975_v39, %v7232_v18  ;;  %s5775_s25 = scalar_lea.sflag [#allocation3], %s512_s23 }
 0xde0   : > { %v4460_v51 = vpop.permute.xlu2 %4459 }
 0xde1   : > { %v4466_v54 = vsel %vm761_vm11, %v4460_v51, 0.0  ;;  %v4567_v52 = vsel %vm7142_vm12, %v4460_v51, 0.0 }
 0xde4   : > { %3646 = vrot.lane.b32.xlu2 %v8456_v48, %s6670_s28  ;;  %v4174_v48 = vsel %vm761_vm11, %v8628_v17, 0.0 }
 0xde8   : > { %v4181_v13 = vpop.permute.xlu1 %4180 }
 0xde9   : > { %v4189_v53 = vsel %vm761_vm11, %v4181_v13, 0.0  ;;  %v4290_v58 = vsel %vm7142_vm12, %v4181_v13, 0.0 }
 0xdea   : > { %6055 = vmatpush.xpose.msk.msrb.mxu1 %vm769_vm5, %v4189_v53  ;;  %6061 = vmatpush.xpose.msk.msra.mxu3 %vm769_vm5, %v4290_v58 }
 0xded   : > { %6056 = vmatmul.msk.f32.vlgmr.msrb.gmra.mxu1 %vm769_vm5, %v4174_v48  ;;  %6062 = vmatmul.msk.f32.vlgmr.msra.gmra.mxu3 %vm769_vm5, %v4287_v11 }
 0xdee   : > { %6077 = vmatpush.xpose.msk.msra.mxu1 %vm769_vm5, %v4466_v54  ;;  %6083 = vmatpush.xpose.msk.msrb.mxu3 %vm769_vm5, %v4567_v52 }
 0xdf5   : > { %6057 = vmatmul.msk.f32.gmra.mxu1 %vm769_vm5, %v4175_v3  ;;  %6063 = vmatmul.msk.f32.gmra.mxu3 %vm769_vm5, %v4288_v38 }
 0xdfd   : > { %6058 = vmatmul.msk.f32.gmra.mxu1 %vm769_vm5, %v4176_v36  ;;  %6064 = vmatmul.msk.f32.gmra.mxu3 %vm769_vm5, %v4289_v16  ;;  %v4056_v16 = vpop.f32.mrf.mxu3 }
 0xdfe   : > { %v4065_v39 = vmul.f32 0.25, %v4056_v16 }
 0xe05   : > { %v4059_v50 = vpop.f32.mrf.mxu3 }
 0xe06   : > { %v3709_v62 = vpop.xlane.xlu0 %3708 }
 0xe07   : > { %v3714_v59 = vsub.f32 %v8640_v20, %v3709_v62  ;;  %3815 = vadd.xlane.f32.xlu1 %v3814_v10  ;;  %v3985_v20 = vsel %vm1246_vm6, %v8730_v63, -inf  ;;  %v4450_v10 = vsel %vm761_vm11, %v8645_v26, 0.0 }
 0xe09   : > { %v3718_v35 = vmul.f32 1.442695, %v3714_v59  ;;  %v4563_v59 = vsel %vm7142_vm12, %v8645_v26, 0.0 }
 0xe0b   : > { %6431 = vpow2.f32 %v3718_v35 }
 0xe0c   : > { %6433 = vpow2.f32 %v3810_v9  ;;  %v8803_v9 = vadd.f32 %v4065_v39, %v7232_v18 }
 0xe0d   : > { %3723 = vadd.xlane.f32.xlu2 %v3722_v55  ;;  %6435 = vpow2.f32 %v3720_v37  ;;  %v4066_v55 = vmul.f32 0.25, %v4059_v50 }
 0xe0e   : > { %v4071_v37 = vsel %vm1246_vm6, %v8803_v9, -inf }
 0xe0f   : > { %3986 = vmax.xlane.f32.xlu1 %v3985_v20 }
 0xe11   : > { %v8736_v30 = vpop.eup %6431 }
 0xe12   : > { %v3725_v29 = vsel %vm1246_vm6, %v8736_v30, 0.0  ;;  %v8740_v12 = vpop.eup %6433 }
 0xe13   : > { %3726 = vadd.xlane.f32.xlu0 %v3725_v29  ;;  %v3817_v51 = vsel %vm1246_vm6, %v8740_v12, 0.0  ;;  %v8744_v13 = vpop.eup %6435  ;;  %v4451_v29 = vsel %vm761_vm11, %v8635_v42, 0.0 }
 0xe14   : > { %v3728_v52 = vsel %vm1246_vm6, %v8744_v13, 0.0 }
 0xe17   : > { %3818 = vadd.xlane.f32.xlu1 %v3817_v51  ;;  %v8817_v51 = vadd.f32 %v4066_v55, %v7232_v18 }
 0xe19   : > { %v4458_v53 = vpop.permute.xlu0 %4457 }
 0xe1a   : > { %v4465_v58 = vsel %vm761_vm11, %v4458_v53, 0.0  ;;  %v4566_v54 = vsel %vm7142_vm12, %v4458_v53, 0.0  ;;  %v4564_v53 = vsel %vm7142_vm12, %v8635_v42, 0.0 }
 0xe1b   : > { %3729 = vadd.xlane.f32.xlu0 %v3728_v52  ;;  %6078 = vmatpush.xpose.msk.msra.mxu1 %vm769_vm5, %v4465_v58  ;;  %v4062_v58 = vpop.f32.mrf.mxu3 }
 0xe1c   : > { %6084 = vmatpush.xpose.msk.msrb.mxu3 %vm769_vm5, %v4566_v54  ;;  %v4074_v54 = vsel %vm1246_vm6, %v8817_v51, -inf  ;;  %v4067_v16 = vmul.f32 0.25, %v4062_v58 }
 0xe2f   : > { %3919 = vrot.lane.b32.xlu0 %v8536_v5, %s6670_s28  ;;  %v8768_v5 = vpop.permute.xlu0 %3644 }
 0xe30   : > { %3642 = vrot.lane.b32.xlu1 %v8447_v46, %s6670_s28 }
 0xe37   : > { %4192 = vrot.lane.b32.xlu0 %v8628_v17, %s6670_s28  ;;  %v3981_v38 = vpop.xlane.xlu1 %3980 }
 0xe38   : > { %v3988_v25 = vsub.f32 %v8652_v21, %v3981_v38 }
 0xe3a   : > { %v3991_v21 = vmul.f32 1.442695, %v3988_v25 }
 0xe3f   : > { %v3984_v48 = vpop.xlane.xlu2 %3983 }
 0xe40   : > { %v3989_v11 = vsub.f32 %v8657_v28, %v3984_v48  ;;  %v3812_v28 = vmul.f32 1.442695, %v3807_v19 }
 0xe42   : > { %v3993_v3 = vmul.f32 1.442695, %v3989_v11 }
 0xe44   : > { %6437 = vpow2.f32 %v3993_v3 }
 0xe45   : > { %6439 = vpow2.f32 %v3812_v28 }
 0xe46   : > { %6441 = vpow2.f32 %v3991_v21 }
 0xe47   : > { %v8761_v33 = vpop.permute.xlu2 %3646 }
 0xe48   : > { %6017 = vmatpush.msk.msra.mxu0 %vm7142_vm12, %v8761_v33 }
 0xe4a   : > { %v8770_v46 = vpop.eup %6437  ;;  %6018 = vmatpush.msk.msra.mxu0 %vm7142_vm12, %v8768_v5 }
 0xe4b   : > { %v4000_v17 = vsel %vm1246_vm6, %v8770_v46, 0.0  ;;  %v8792_v34 = vpop.eup %6439 }
 0xe4c   : > { %4001 = vadd.xlane.f32.xlu2 %v4000_v17  ;;  %v3820_v62 = vsel %vm1246_vm6, %v8792_v34, 0.0  ;;  %v8807_v35 = vpop.eup %6441 }
 0xe4d   : > { %v3997_v20 = vsel %vm1246_vm6, %v8807_v35, 0.0 }
 0xe4f   : > { %v4456_v22 = vpop.permute.xlu1 %4455 }
 0xe50   : > { %v4464_v6 = vsel %vm761_vm11, %v4456_v22, 0.0  ;;  %v4565_v36 = vsel %vm7142_vm12, %v4456_v22, 0.0 }
 0xe51   : > { %6079 = vmatpush.xpose.msk.msra.mxu1 %vm769_vm5, %v4464_v6  ;;  %6085 = vmatpush.xpose.msk.msrb.mxu3 %vm769_vm5, %v4565_v36 }
 0xe54   : > { %6080 = vmatmul.msk.f32.vlgmr.msra.gmra.mxu1 %vm769_vm5, %v4449_v2  ;;  %6086 = vmatmul.msk.f32.vlgmr.msrb.gmra.mxu3 %vm769_vm5, %v4562_v1  ;;  %v8850_v2 = vadd.f32 %v4067_v16, %v7232_v18 }
 0xe56   : > { %v4077_v39 = vsel %vm1246_vm6, %v8850_v2, -inf }
 0xe5a   : > { %3821 = vadd.xlane.f32.xlu1 %v3820_v62 }
 0xe5c   : > { %6081 = vmatmul.msk.f32.gmra.mxu1 %vm769_vm5, %v4450_v10  ;;  %6087 = vmatmul.msk.f32.gmra.mxu3 %vm769_vm5, %v4563_v59 }
 0xe61   : > { %4072 = vmax.xlane.f32.xlu0 %v4071_v37 }
 0xe62   : > { %3998 = vadd.xlane.f32.xlu1 %v3997_v20 }
 0xe64   : > { %3917 = vrot.lane.b32.xlu2 %v8485_v7, %s6670_s28  ;;  %6082 = vmatmul.msk.f32.gmra.mxu1 %vm769_vm5, %v4451_v29 }
 0xe65   : > { %6088 = vmatmul.msk.f32.gmra.mxu3 %vm769_vm5, %v4564_v53 }
 0xe69   : > { %4075 = vmax.xlane.f32.xlu0 %v4074_v54 }
 0xe6a   : > { %v4239_v52 = vpop.f32.mrf.mxu1 }
 0xe6b   : > { %v4248_v48 = vmul.f32 0.25, %v4239_v52 }
 0xe6c   : > { %4194 = vrot.lane.b32.xlu2 %v8620_v23, %s6670_s28 }
 0xe6d   : > { %v8831_v7 = vadd.f32 %v4248_v48, %v7232_v18 }
 0xe6f   : > { %v4254_v11 = vsel %vm1246_vm6, %v8831_v7, -inf }
 0xe70   : > { %v8835_v3 = vpop.f32.mrf.mxu3 }
 0xe71   : > { %4255 = vmax.xlane.f32.xlu0 %v4254_v11 }
 0xe72   : > { %v4242_v38 = vpop.f32.mrf.mxu1 }
 0xe73   : > { %v4249_v19 = vmul.f32 0.25, %v4242_v38 }
 0xe75   : > { %v8838_v17 = vadd.f32 %v4249_v19, %v7232_v18 }
 0xe77   : > { %v4257_v28 = vsel %vm1246_vm6, %v8838_v17, -inf }
 0xe78   : > { %v4334_v22 = vpop.f32.mrf.mxu3 }
 0xe79   : > { %v4341_v25 = vmul.f32 0.25, %v4334_v22  ;;  %4258 = vmax.xlane.f32.xlu0 %v4257_v28 }
 0xe7a   : > { %v3816_v36 = vpop.xlane.xlu1 %3815 }
 0xe7b   : > { %3921 = vrot.lane.b32.xlu1 %v8523_v8, %s6670_s28  ;;  %v8845_v23 = vadd.f32 %v4341_v25, %v7232_v18  ;;  %6443 = vrcp.f32 %v3816_v36 }
 0xe7d   : > { %v4349_v6 = vsel %vm1246_vm6, %v8845_v23, -inf }
 0xe80   : > { %v3724_v52 = vpop.xlane.xlu2 %3723 }
 0xe81   : > { %4350 = vmax.xlane.f32.xlu0 %v4349_v6  ;;  %v6444_v10 = vpop.eup %6443 }
 0xe82   : > { %v3987_v1 = vpop.xlane.xlu1 %3986  ;;  %v3826_v50 = vmul.f32 %v6444_v10, %v8720_v31 }
 0xe83   : > { %v3990_v21 = vsub.f32 %v8730_v63, %v3987_v1 }
 0xe85   : > { %v3995_v8 = vmul.f32 1.442695, %v3990_v21 }
 0xe86   : > { %v3727_v20 = vpop.xlane.xlu0 %3726 }
 0xe87   : > { %6445 = vpow2.f32 %v3995_v8 }
 0xe8a   : > { %v3819_v62 = vpop.xlane.xlu1 %3818 }
 0xe8b   : > { %6447 = vrcp.f32 %v3819_v62 }
 0xe8d   : > { %v8855_v59 = vpop.eup %6445 }
 0xe8e   : > { %v4003_v63 = vsel %vm1246_vm6, %v8855_v59, 0.0  ;;  %v3730_v29 = vpop.xlane.xlu0 %3729 }
 0xe91   : > { %v6448_v37 = vpop.eup %6447 }
 0xe92   : > { %v3827_v31 = vmul.f32 %v6448_v37, %v8740_v12 }
 0xe95   : > { %4078 = vmax.xlane.f32.xlu2 %v4077_v39 }
 0xea1   : > { %v8875_v53 = vpop.permute.xlu0 %3919 }
 0xea2   : > { %v3643_v55 = vpop.permute.xlu1 %3642 }
 0xea3   : > { %6019 = vmatpush.msk.msra.mxu0 %vm7142_vm12, %v3643_v55 }
 0xea4   : > { %6020 = vmatmul.msk.f32.vlgmr.msra.gmra.mxu0 %vm1246_vm6, %v3826_v50 }
 0xea5   : > { %6023 = vmatpush.msk.msrb.mxu0 %vm761_vm11, %v8761_v33  ;;  %4004 = vadd.xlane.f32.xlu1 %v4003_v63  ;;  %v8877_v33 = vpop.f32.mrf.mxu1 }
 0xea7   : > { %6024 = vmatpush.msk.msrb.mxu0 %vm761_vm11, %v8768_v5  ;;  %v8881_v5 = vpop.f32.mrf.mxu3 }
 0xea9   : > { %6025 = vmatpush.msk.msrb.mxu0 %vm761_vm11, %v3643_v55  ;;  %v8879_v58 = vpop.permute.xlu0 %4192 }
 0xeac   : > { %6021 = vmatmul.msk.f32.gmra.mxu0 %vm1246_vm6, %v3827_v31 }
 0xebe   : > { %4196 = vrot.lane.b32.xlu1 %v8625_v60, %s6670_s28 }
 0xecd   : > { %v3822_v54 = vpop.xlane.xlu1 %3821 }
 0xece   : > { %6449 = vrcp.f32 %v3822_v54 }
 0xecf   : > { %6451 = vrcp.f32 %v3724_v52  ;;  %v4002_v52 = vpop.xlane.xlu2 %4001 }
 0xed1   : > { %v8883_v48 = vpop.f32.mrf.mxu1 }
 0xed4   : > { %v6450_v12 = vpop.eup %6449  ;;  %v4073_v11 = vpop.xlane.xlu0 %4072 }
 0xed5   : > { %v4080_v38 = vsub.f32 %v8803_v9, %v4073_v11  ;;  %v3828_v60 = vmul.f32 %v6450_v12, %v8792_v34  ;;  %v6452_v25 = vpop.eup %6451  ;;  %v3999_v63 = vpop.xlane.xlu1 %3998 }
 0xed6   : > { %v3734_v1 = vmul.f32 %v6452_v25, %v8726_v27 }
 0xed7   : > { %v4083_v19 = vmul.f32 1.442695, %v4080_v38  ;;  %6022 = vmatmul.msk.f32.gmra.mxu0 %vm1246_vm6, %v3828_v60  ;;  %v8888_v28 = vpop.f32.mrf.mxu3 }
 0xed9   : > { %6453 = vpow2.f32 %v4083_v19  ;;  %v4517_v22 = vpop.f32.mrf.mxu1 }
 0xeda   : > { %v4524_v6 = vmul.f32 0.25, %v4517_v22  ;;  %6455 = vrcp.f32 %v3727_v20 }
 0xedc   : > { %v8891_v36 = vadd.f32 %v4524_v6, %v7232_v18  ;;  %v4076_v16 = vpop.xlane.xlu0 %4075 }
 0xedd   : > { %v4081_v9 = vsub.f32 %v8817_v51, %v4076_v16  ;;  %v4250_v16 = vmul.f32 0.25, %v8877_v33 }
 0xede   : > { %v4532_v34 = vsel %vm1246_vm6, %v8891_v36, -inf }
 0xedf   : > { %v8897_v21 = vpop.eup %6453  ;;  %v4085_v39 = vmul.f32 1.442695, %v4081_v9  ;;  %v8899_v8 = vpop.f32.mrf.mxu3  ;;  %4533 = vmax.xlane.f32.xlu0 %v4532_v34  ;;  %6026 = vmatmul.msk.f32.vlgmr.msrb.gmra.mxu0 %vm1246_vm6, %v3734_v1  ;;  %v8949_v34 = vadd.f32 %v4250_v16, %v7232_v18 }
 0xee0   : > { %v4089_v62 = vsel %vm1246_vm6, %v8897_v21, 0.0  ;;  %v6456_v27 = vpop.eup %6455  ;;  %v3918_v1 = vpop.permute.xlu2 %3917 }
 0xee1   : > { %6457 = vpow2.f32 %v4085_v39  ;;  %4090 = vadd.xlane.f32.xlu2 %v4089_v62  ;;  %v4520_v10 = vpop.f32.mrf.mxu1  ;;  %v3735_v31 = vmul.f32 %v6456_v27, %v8736_v30  ;;  %v4260_v62 = vsel %vm1246_vm6, %v8949_v34, -inf }
 0xee2   : > { %v4525_v50 = vmul.f32 0.25, %v4520_v10  ;;  %6459 = vrcp.f32 %v3730_v29  ;;  %v4340_v29 = vmul.f32 0.25, %v8835_v3 }
 0xee3   : > { %6461 = vrcp.f32 %v3999_v63 }
 0xee4   : > { %v8905_v51 = vadd.f32 %v4525_v50, %v7232_v18  ;;  %v4256_v55 = vpop.xlane.xlu0 %4255  ;;  %v8921_v19 = vadd.f32 %v4340_v29, %v7232_v18 }
 0xee5   : > { %v4263_v37 = vsub.f32 %v8831_v7, %v4256_v55  ;;  %v4615_v55 = vmul.f32 0.25, %v8888_v28  ;;  %v4342_v28 = vmul.f32 0.25, %v8881_v5 }
 0xee6   : > { %v4535_v20 = vsel %vm1246_vm6, %v8905_v51, -inf }
 0xee7   : > { %v8911_v54 = vpop.eup %6457  ;;  %4536 = vmax.xlane.f32.xlu0 %v4535_v20  ;;  %6027 = vmatmul.msk.f32.gmra.mxu0 %vm1246_vm6, %v3735_v31  ;;  %v4266_v38 = vmul.f32 1.442695, %v4263_v37 }
 0xee8   : > { %v4612_v12 = vpop.f32.mrf.mxu3  ;;  %v4092_v11 = vsel %vm1246_vm6, %v8911_v54, 0.0  ;;  %v6460_v30 = vpop.eup %6459 }
 0xee9   : > { %v4617_v7 = vmul.f32 0.25, %v4612_v12  ;;  %4093 = vadd.xlane.f32.xlu2 %v4092_v11  ;;  %6463 = vpow2.f32 %v4266_v38  ;;  %v3736_v25 = vmul.f32 %v6460_v30, %v8744_v13  ;;  %v6462_v3 = vpop.eup %6461  ;;  %v4346_v13 = vsel %vm1246_vm6, %v8921_v19, -inf  ;;  %v4195_v50 = vpop.permute.xlu2 %4194 }
 0xeea   : > { %6465 = vrcp.f32 %v4002_v52  ;;  %v4009_v9 = vmul.f32 %v6462_v3, %v8807_v35  ;;  %v4523_v35 = vmul.f32 0.25, %v8883_v48  ;;  %v8965_v48 = vadd.f32 %v4615_v55, %v7232_v18 }
 0xeeb   : > { %v8918_v60 = vadd.f32 %v4617_v7, %v7232_v18  ;;  %v8976_v11 = vadd.f32 %v4342_v28, %v7232_v18  ;;  %v4616_v30 = vmul.f32 0.25, %v8899_v8 }
 0xeec   : > { %v8959_v27 = vadd.f32 %v4523_v35, %v7232_v18  ;;  %v4621_v31 = vsel %vm1246_vm6, %v8965_v48, -inf  ;;  %v4259_v52 = vpop.xlane.xlu0 %4258 }
 0xeed   : > { %v3922_v22 = vpop.permute.xlu1 %3921  ;;  %v4627_v6 = vsel %vm1246_vm6, %v8918_v60, -inf  ;;  %v8983_v3 = vadd.f32 %v4616_v30, %v7232_v18  ;;  %v4264_v55 = vsub.f32 %v8838_v17, %v4259_v52 }
 0xeee   : > { %6041 = vmatpush.msk.msra.mxu0 %vm7142_vm12, %v3922_v22  ;;  %6047 = vmatpush.msk.msrb.mxu2 %vm761_vm11, %v3922_v22  ;;  %v4529_v63 = vsel %vm1246_vm6, %v8959_v27, -inf  ;;  %v4352_v22 = vsel %vm1246_vm6, %v8976_v11, -inf }
 0xeef   : > { %4628 = vmax.xlane.f32.xlu0 %v4627_v6  ;;  %6028 = vmatmul.msk.f32.gmra.mxu0 %vm1246_vm6, %v3736_v25  ;;  %v8945_v33 = vpop.eup %6463  ;;  %v4624_v16 = vsel %vm1246_vm6, %v8983_v3, -inf }
 0xef0   : > { %6042 = vmatpush.msk.msra.mxu0 %vm7142_vm12, %v8875_v53  ;;  %6048 = vmatpush.msk.msrb.mxu2 %vm761_vm11, %v8875_v53  ;;  %v6466_v53 = vpop.eup %6465  ;;  %v4272_v39 = vsel %vm1246_vm6, %v8945_v33, 0.0 }
 0xef1   : > { %4347 = vmax.xlane.f32.xlu2 %v4346_v13  ;;  %v4010_v10 = vmul.f32 %v6466_v53, %v8770_v46 }
 0xef2   : > { %6043 = vmatpush.msk.msra.mxu0 %vm7142_vm12, %v3918_v1  ;;  %6049 = vmatpush.msk.msrb.mxu2 %vm761_vm11, %v3918_v1 }
 0xef3   : > { %6050 = vmatmul.msk.f32.vlgmr.msrb.gmra.mxu2 %vm1246_vm6, %v4009_v9 }
 0xef4   : > { %v4351_v38 = vpop.xlane.xlu0 %4350 }
 0xef7   : > { %4273 = vadd.xlane.f32.xlu0 %v4272_v39 }
 0xef9   : > { %4261 = vmax.xlane.f32.xlu2 %v4260_v62 }
 0xefb   : > { %6051 = vmatmul.msk.f32.gmra.mxu2 %vm1246_vm6, %v4010_v10 }
 0xf01   : > { %4530 = vmax.xlane.f32.xlu2 %v4529_v63 }
 0xf08   : > { %v4079_v37 = vpop.xlane.xlu2 %4078 }
 0xf09   : > { %v4082_v46 = vsub.f32 %v8850_v2, %v4079_v37  ;;  %4622 = vmax.xlane.f32.xlu2 %v4621_v31  ;;  %v4356_v2 = vsub.f32 %v8845_v23, %v4351_v38 }
 0xf0b   : > { %v4087_v20 = vmul.f32 1.442695, %v4082_v46  ;;  %v4360_v5 = vmul.f32 1.442695, %v4356_v2 }
 0xf0d   : > { %6467 = vpow2.f32 %v4087_v20 }
 0xf13   : > { %v8970_v29 = vpop.eup %6467 }
 0xf14   : > { %v4095_v12 = vsel %vm1246_vm6, %v8970_v29, 0.0 }
 0xf15   : > { %4096 = vadd.xlane.f32.xlu1 %v4095_v12 }
 0xf18   : > { %v4005_v7 = vpop.xlane.xlu1 %4004 }
 0xf19   : > { %6469 = vrcp.f32 %v4005_v7 }
 0xf1a   : > { %6471 = vpow2.f32 %v4360_v5 }
 0xf1d   : > { %4353 = vmax.xlane.f32.xlu1 %v4352_v22 }
 0xf1f   : > { %v6470_v25 = vpop.eup %6469 }
 0xf20   : > { %v4011_v6 = vmul.f32 %v6470_v25, %v8855_v59  ;;  %v8989_v23 = vpop.eup %6471 }
 0xf21   : > { %v4367_v8 = vsel %vm1246_vm6, %v8989_v23, 0.0 }
 0xf22   : > { %6052 = vmatmul.msk.f32.gmra.mxu2 %vm1246_vm6, %v4011_v6 }
 0xf25   : > { %4625 = vmax.xlane.f32.xlu1 %v4624_v16 }
 0xf2d   : > { %4368 = vadd.xlane.f32.xlu1 %v4367_v8 }
 0xf30   : > { %v4197_v13 = vpop.permute.xlu1 %4196 }
 0xf31   : > { %6065 = vmatpush.msk.msrb.mxu0 %vm7142_vm12, %v4197_v13  ;;  %6071 = vmatpush.msk.msra.mxu2 %vm761_vm11, %v4197_v13 }
 0xf33   : > { %6066 = vmatpush.msk.msrb.mxu0 %vm7142_vm12, %v4195_v50  ;;  %6072 = vmatpush.msk.msra.mxu2 %vm761_vm11, %v4195_v50 }
 0xf35   : > { %6067 = vmatpush.msk.msrb.mxu0 %vm7142_vm12, %v8879_v58  ;;  %6073 = vmatpush.msk.msra.mxu2 %vm761_vm11, %v8879_v58 }
 0xf52   : > { %v4534_v18 = vpop.xlane.xlu0 %4533 }
 0xf53   : > { %v4539_v5 = vsub.f32 %v8891_v36, %v4534_v18 }
 0xf54   : > { %v4091_v59 = vpop.xlane.xlu2 %4090 }
 0xf55   : > { %6473 = vrcp.f32 %v4091_v59  ;;  %v4543_v16 = vmul.f32 1.442695, %v4539_v5 }
 0xf5a   : > { %v9007_v1 = vpop.xlane.xlu0 %4536 }
 0xf5b   : > { %v6474_v9 = vpop.eup %6473 }
 0xf5c   : > { %v4101_v53 = vmul.f32 %v6474_v9, %v8897_v21  ;;  %v4094_v39 = vpop.xlane.xlu2 %4093  ;;  %v4268_v21 = vmul.f32 1.442695, %v4264_v55 }
 0xf5d   : > { %6475 = vrcp.f32 %v4094_v39 }
 0xf5e   : > { %6044 = vmatmul.msk.f32.vlgmr.msra.gmra.mxu0 %vm1246_vm6, %v4101_v53 }
 0xf62   : > { %v9011_v35 = vpop.xlane.xlu0 %4628 }
 0xf63   : > { %v6476_v62 = vpop.eup %6475 }
 0xf64   : > { %v4348_v10 = vpop.xlane.xlu2 %4347  ;;  %v4102_v50 = vmul.f32 %v6476_v62, %v8911_v54 }
 0xf65   : > { %v4355_v58 = vsub.f32 %v8921_v19, %v4348_v10  ;;  %v3855_v10 = vpop.f32.mrf.mxu0 }
 0xf66   : > { %6045 = vmatmul.msk.f32.gmra.mxu0 %vm1246_vm6, %v4102_v50 }
 0xf67   : > { %v4358_v63 = vmul.f32 1.442695, %v4355_v58 }
 0xf69   : > { %6477 = vpow2.f32 %v4358_v63 }
 0xf6a   : > { %v4274_v37 = vpop.xlane.xlu0 %4273 }
 0xf6b   : > { %6479 = vrcp.f32 %v4274_v37 }
 0xf6c   : > { %v4262_v31 = vpop.xlane.xlu2 %4261  ;;  %6481 = vpow2.f32 %v4268_v21 }
 0xf6d   : > { %v4265_v46 = vsub.f32 %v8949_v34, %v4262_v31  ;;  %v3858_v55 = vpop.f32.mrf.mxu0 }
 0xf6f   : > { %v9018_v20 = vpop.eup %6477  ;;  %v4270_v28 = vmul.f32 1.442695, %v4265_v46 }
 0xf70   : > { %v4364_v54 = vsel %vm1246_vm6, %v9018_v20, 0.0 }
 0xf71   : > { %v6480_v19 = vpop.eup %6479  ;;  %6483 = vpow2.f32 %v4270_v28  ;;  %4365 = vadd.xlane.f32.xlu0 %v4364_v54 }
 0xf72   : > { %v4284_v17 = vmul.f32 %v6480_v19, %v8945_v33  ;;  %v9024_v12 = vpop.eup %6481  ;;  %v4632_v19 = vsub.f32 %v8918_v60, %v9011_v35 }
 0xf73   : > { %v4275_v30 = vsel %vm1246_vm6, %v9024_v12, 0.0 }
 0xf74   : > { %v4531_v52 = vpop.xlane.xlu2 %4530  ;;  %6074 = vmatmul.msk.f32.vlgmr.msra.gmra.mxu2 %vm1246_vm6, %v4284_v17  ;;  %v4637_v17 = vmul.f32 1.442695, %v4632_v19 }
 0xf75   : > { %v4538_v38 = vsub.f32 %v8959_v27, %v4531_v52  ;;  %v4540_v52 = vsub.f32 %v8905_v51, %v9007_v1 }
 0xf76   : > { %v4165_v35 = vpop.f32.mrf.mxu2 }
 0xf77   : > { %v9027_v34 = vpop.eup %6483  ;;  %v4541_v7 = vmul.f32 1.442695, %v4538_v38  ;;  %v4545_v38 = vmul.f32 1.442695, %v4540_v52 }
 0xf78   : > { %v4278_v2 = vsel %vm1246_vm6, %v9027_v34, 0.0 }
 0xf79   : > { %6485 = vpow2.f32 %v4541_v7  ;;  %4279 = vadd.xlane.f32.xlu2 %v4278_v2  ;;  %4276 = vadd.xlane.f32.xlu0 %v4275_v30 }
 0xf7c   : > { %v4623_v33 = vpop.xlane.xlu2 %4622 }
 0xf7d   : > { %v4630_v22 = vsub.f32 %v8965_v48, %v4623_v33 }
 0xf7f   : > { %v9034_v25 = vpop.eup %6485  ;;  %v4633_v27 = vmul.f32 1.442695, %v4630_v22 }
 0xf80   : > { %v4547_v6 = vsel %vm1246_vm6, %v9034_v25, 0.0 }
 0xf81   : > { %6487 = vpow2.f32 %v4633_v27  ;;  %4548 = vadd.xlane.f32.xlu1 %v4547_v6 }
 0xf82   : > { %6489 = vpow2.f32 %v4543_v16  ;;  %v4168_v16 = vpop.f32.mrf.mxu2 }
 0xf87   : > { %v9039_v8 = vpop.eup %6487 }
 0xf88   : > { %v4097_v13 = vpop.xlane.xlu1 %4096  ;;  %v4639_v59 = vsel %vm1246_vm6, %v9039_v8, 0.0  ;;  %v9043_v48 = vpop.eup %6489 }
 0xf89   : > { %6491 = vrcp.f32 %v4097_v13  ;;  %4640 = vadd.xlane.f32.xlu1 %v4639_v59  ;;  %v4550_v18 = vsel %vm1246_vm6, %v9043_v48, 0.0 }
 0xf8f   : > { %v6492_v9 = vpop.eup %6491 }
 0xf90   : > { %v4354_v36 = vpop.xlane.xlu1 %4353  ;;  %v4103_v53 = vmul.f32 %v6492_v9, %v8970_v29 }
 0xf91   : > { %v4357_v39 = vsub.f32 %v8976_v11, %v4354_v36  ;;  %4471 = vrot.lane.b32.xlu2 %v8635_v42, %s6670_s28  ;;  %4551 = vadd.xlane.f32.xlu1 %v4550_v18  ;;  %v3861_v11 = vpop.f32.mrf.mxu0 }
 0xf92   : > { %6046 = vmatmul.msk.f32.gmra.mxu0 %vm1246_vm6, %v4103_v53 }
 0xf93   : > { %v4362_v62 = vmul.f32 1.442695, %v4357_v39 }
 0xf95   : > { %6493 = vpow2.f32 %v4362_v62 }
 0xf98   : > { %v4626_v63 = vpop.xlane.xlu1 %4625 }
 0xf99   : > { %v4631_v29 = vsub.f32 %v8983_v3, %v4626_v63  ;;  %v3890_v37 = vpop.f32.mrf.mxu0 }
 0xf9a   : > { %v3891_v31 = vadd.f32 %v3890_v37, %v3855_v10 }
 0xf9b   : > { %v9052_v50 = vpop.eup %6493  ;;  %v4635_v42 = vmul.f32 1.442695, %v4631_v29 }
 0xf9c   : > { %v4370_v58 = vsel %vm1246_vm6, %v9052_v50, 0.0  ;;  %v9066_v28 = vadd.f32 %v3891_v31, %v8170_v57 }
 0xf9d   : > { %4371 = vadd.xlane.f32.xlu0 %v4370_v58  ;;  %6495 = vpow2.f32 %v4635_v42 }
 0xf9e   : > { %6497 = vpow2.f32 %v4637_v17 }
 0xf9f   : > { %6499 = vpow2.f32 %v4545_v38 }
 0xfa1   : > { %v3893_v3 = vpop.f32.mrf.mxu0 }
 0xfa2   : > { %v3894_v54 = vadd.f32 %v3893_v3, %v3858_v55 }
 0xfa3   : > { %v9061_v21 = vpop.eup %6495 }
 0xfa4   : > { %v4642_v46 = vsel %vm1246_vm6, %v9061_v21, 0.0  ;;  %v9079_v7 = vpop.eup %6497 }
 0xfa5   : > { %v4645_v60 = vsel %vm1246_vm6, %v9079_v7, 0.0  ;;  %v4171_v42 = vpop.f32.mrf.mxu2 }
 0xfa9   : > { %v3896_v2 = vpop.f32.mrf.mxu0 }
 0xfaa   : > { %4467 = vrot.lane.b32.xlu1 %v8668_v61, %s6670_s28  ;;  %v4736_v61 = vsel %vm769_vm5, %v9066_v28, 0.0  ;;  %v3897_v30 = vadd.f32 %v3896_v2, %v3861_v11 }
 0xfac   : > { %v9088_v22 = vadd.f32 %v3897_v30, %v8195_v43  ;;  %v4369_v43 = vpop.xlane.xlu1 %4368 }
 0xfae   : > { %v4742_v6 = vsel %vm769_vm5, %v9088_v22, 0.0 }
 0xfb1   : > { %4469 = vrot.lane.b32.xlu0 %v8645_v26, %s6670_s28  ;;  %v9073_v26 = vadd.f32 %v3894_v54, %v8189_v45  ;;  %v9083_v45 = vpop.eup %6499  ;;  %s5853_s28 = sshll.u32 %s512_s23, 2 }
 0xfb2   : > { %v4553_v51 = vsel %vm1246_vm6, %v9083_v45, 0.0  ;;  %s514_s20 = scalar_lea.vmem [#allocation2], %s5853_s28  ;;  %s6623_s28 = scalar_lea.hbm %s9599_s16, 8 }
 0xfb3   : > { %v4739_v57 = vsel %vm769_vm5, %v9073_v26, 0.0  ;;  %s5787_s26 = sshll.u32 %s514_s20, 4  ;;  %p6625_p1 = scmp.lt.s32.totalorder %s6623_s28, %s6619_s18  ;;  %s5788_s26 = int_to_ptr.vmem [resolvable:$true] %s5787_s26 }
 0xfb5   : > { %p6626_p2 = por %p6625_p1, %p6624_p0 }
 0xfb7   : > { %p6627_p3 = pnand %p6626_p2, %p6622_p13 }
 0xfba   : > { %4643 = vadd.xlane.f32.xlu2 %v4642_v46 }
 0xfc2   : > { %4737 = vadd.xlane.f32.xlu2 %v4736_v61 }
 0xfca   : > { %4740 = vadd.xlane.f32.xlu2 %v4739_v57 }
 0xfd4   : > { %4646 = vadd.xlane.f32.xlu1 %v4645_v60 }
 0xfdb   : > { %v4130_v1 = vpop.f32.mrf.mxu0  ;;  %4554 = vadd.xlane.f32.xlu0 %v4553_v51 }
 0xfdc   : > { %v4166_v33 = vadd.f32 %v4165_v35, %v4130_v1 }
 0xfde   : > { %v9091_v5 = vadd.f32 %v4166_v33, %v8263_v14 }
 0xfe0   : > { %v4745_v27 = vsel %vm769_vm5, %v9091_v5, 0.0 }
 0xfe1   : > { %4746 = vadd.xlane.f32.xlu2 %v4745_v27 }
 0xfe3   : > { %v4133_v13 = vpop.f32.mrf.mxu0  ;;  %4743 = vadd.xlane.f32.xlu0 %v4742_v6 }
 0xfe4   : > { %v4169_v59 = vadd.f32 %v4168_v16, %v4133_v13  ;;  %v4366_v9 = vpop.xlane.xlu0 %4365 }
 0xfe5   : > { %6501 = vrcp.f32 %v4366_v9 }
 0xfe6   : > { %v9098_v36 = vadd.f32 %v4169_v59, %v8278_v44  ;;  %6503 = vrcp.f32 %v4369_v43 }
 0xfe8   : > { %v4748_v14 = vsel %vm769_vm5, %v9098_v36, 0.0 }
 0xfeb   : > { %v6502_v18 = vpop.eup %6501  ;;  %4749 = vadd.xlane.f32.xlu0 %v4748_v14 }
 0xfec   : > { %v4376_v53 = vmul.f32 %v6502_v18, %v9018_v20  ;;  %v4280_v39 = vpop.xlane.xlu2 %4279  ;;  %v4277_v62 = vpop.xlane.xlu0 %4276 }
 0xfed   : > { %6505 = vrcp.f32 %v4277_v62  ;;  %v6504_v10 = vpop.eup %6503 }
 0xfee   : > { %6068 = vmatmul.msk.f32.vlgmr.msrb.gmra.mxu0 %vm1246_vm6, %v4376_v53  ;;  %6507 = vrcp.f32 %v4280_v39  ;;  %v4377_v44 = vmul.f32 %v6504_v10, %v8989_v23 }
 0xff3   : > { %v6506_v58 = vpop.eup %6505 }
 0xff4   : > { %v4472_v55 = vpop.permute.xlu2 %4471  ;;  %v4285_v63 = vmul.f32 %v6506_v58, %v9024_v12  ;;  %v6508_v20 = vpop.eup %6507 }
 0xff5   : > { %6089 = vmatpush.msk.msra.mxu0 %vm7142_vm12, %v4472_v55  ;;  %6095 = vmatpush.msk.msrb.mxu2 %vm761_vm11, %v4472_v55  ;;  %v4286_v29 = vmul.f32 %v6508_v20, %v9027_v34  ;;  %v4549_v11 = vpop.xlane.xlu1 %4548 }
 0xff6   : > { %6069 = vmatmul.msk.f32.gmra.mxu0 %vm1246_vm6, %v4377_v44  ;;  %6075 = vmatmul.msk.f32.gmra.mxu2 %vm1246_vm6, %v4285_v63 }
 0xff7   : > { %v4440_v18 = vpop.f32.mrf.mxu2 }
 0xffd   : > { %v4641_v3 = vpop.xlane.xlu1 %4640 }
 0xffe   : > { %6076 = vmatmul.msk.f32.gmra.mxu2 %vm1246_vm6, %v4286_v29 }
0x1005   : > { %v4552_v34 = vpop.xlane.xlu1 %4551 }
0x100f   : > { %v4136_v23 = vpop.f32.mrf.mxu0 }
0x1010   : > { %v4172_v37 = vadd.f32 %v4171_v42, %v4136_v23  ;;  %v4372_v31 = vpop.xlane.xlu0 %4371 }
0x1011   : > { %6509 = vrcp.f32 %v4372_v31 }
0x1012   : > { %v9115_v46 = vadd.f32 %v4172_v37, %v8285_v56  ;;  %6511 = vrcp.f32 %v4549_v11 }
0x1013   : > { %6513 = vrcp.f32 %v4641_v3 }
0x1014   : > { %v4751_v12 = vsel %vm769_vm5, %v9115_v46, 0.0  ;;  %6515 = vrcp.f32 %v4552_v34 }
0x1015   : > { %4752 = vadd.xlane.f32.xlu2 %v4751_v12 }
0x1017   : > { %v6510_v54 = vpop.eup %6509 }
0x1018   : > { %v4378_v61 = vmul.f32 %v6510_v54, %v9052_v50  ;;  %v6512_v19 = vpop.eup %6511 }
0x1019   : > { %v6514_v17 = vpop.eup %6513  ;;  %v4559_v56 = vmul.f32 %v6512_v19, %v9034_v25 }
0x101a   : > { %6070 = vmatmul.msk.f32.gmra.mxu0 %vm1246_vm6, %v4378_v61  ;;  %v4651_v57 = vmul.f32 %v6514_v17, %v9039_v8  ;;  %v6516_v38 = vpop.eup %6515 }
0x101b   : > { %v4560_v60 = vmul.f32 %v6516_v38, %v9043_v48 }
0x101c   : > { %v4468_v50 = vpop.permute.xlu1 %4467 }
0x1023   : > { %v4470_v52 = vpop.permute.xlu0 %4469 }
0x1024   : > { %6090 = vmatpush.msk.msra.mxu0 %vm7142_vm12, %v4470_v52  ;;  %6096 = vmatpush.msk.msrb.mxu2 %vm761_vm11, %v4470_v52 }
0x1026   : > { %6091 = vmatpush.msk.msra.mxu0 %vm7142_vm12, %v4468_v50  ;;  %6097 = vmatpush.msk.msrb.mxu2 %vm761_vm11, %v4468_v50  ;;  %v6104_v50 = vld [vmem:[%s9592_s9 + $0x38] sm:$0xff] }
0x1027   : > { %6092 = vmatmul.msk.f32.vlgmr.msra.gmra.mxu0 %vm1246_vm6, %v4651_v57  ;;  %6098 = vmatmul.msk.f32.vlgmr.msrb.gmra.mxu2 %vm1246_vm6, %v4559_v56 }
0x1028   : > { %5084 = vmatpush.msrb.mxu1 %v6104_v50 }
0x102d   : > { %v4644_v2 = vpop.xlane.xlu2 %4643 }
0x102e   : > { %6517 = vrcp.f32 %v4644_v2  ;;  %v6103_v2 = vld [vmem:[%s9592_s9 + $0x30] sm:$0xff] }
0x102f   : > { %6099 = vmatmul.msk.f32.gmra.mxu2 %vm1246_vm6, %v4560_v60  ;;  %5085 = vmatpush.msrb.mxu1 %v6103_v2 }
0x1034   : > { %v6518_v25 = vpop.eup %6517 }
0x1035   : > { %v4738_v8 = vpop.xlane.xlu2 %4737  ;;  %v4652_v35 = vmul.f32 %v6518_v25, %v9061_v21 }
0x1036   : > { %v4772_v47 = vmul.f32 %v4738_v8, %v6928_v0  ;;  %v6102_v8 = vld [vmem:[%s9592_s9 + $0x28] sm:$0xff] }
0x1037   : > { %6093 = vmatmul.msk.f32.gmra.mxu0 %vm1246_vm6, %v4652_v35  ;;  %5086 = vmatpush.msrb.mxu1 %v6102_v8 }
0x1038   : > { %v9139_v41 = vsub.f32 %v9066_v28, %v4772_v47  ;;  %v6101_v47 = vld [vmem:[%s9592_s9 + $0x20] sm:$0xff] }
0x1039   : > { %5087 = vmatpush.msrb.mxu1 %v6101_v47 }
0x103a   : > { %v4796_v30 = vmul.f32 %v9139_v41, %v9139_v41 }
0x103c   : > { %v4808_v51 = vsel %vm769_vm5, %v4796_v30, 0.0 }
0x103d   : > { %4809 = vadd.xlane.f32.xlu1 %v4808_v51  ;;  %v4741_v48 = vpop.xlane.xlu2 %4740 }
0x103e   : > { %v4773_v1 = vmul.f32 %v4741_v48, %v6928_v0 }
0x1040   : > { %v9146_v33 = vsub.f32 %v9073_v26, %v4773_v1 }
0x1042   : > { %v4797_v21 = vmul.f32 %v9146_v33, %v9146_v33 }
0x1044   : > { %v4811_v27 = vsel %vm769_vm5, %v4797_v21, 0.0 }
0x1045   : > { %4812 = vadd.xlane.f32.xlu2 %v4811_v27 }
0x1047   : > { %v4647_v6 = vpop.xlane.xlu1 %4646 }
0x1048   : > { %6519 = vrcp.f32 %v4647_v6 }
0x104e   : > { %v6520_v16 = vpop.eup %6519  ;;  %v4555_v13 = vpop.xlane.xlu0 %4554 }
0x104f   : > { %6521 = vrcp.f32 %v4555_v13  ;;  %v4653_v59 = vmul.f32 %v6520_v16, %v9079_v7 }
0x1051   : > { %6094 = vmatmul.msk.f32.gmra.mxu0 %vm1246_vm6, %v4653_v59 }
0x1054   : > { %v4747_v55 = vpop.xlane.xlu2 %4746 }
0x1055   : > { %v6522_v9 = vpop.eup %6521  ;;  %v4775_v29 = vmul.f32 %v4747_v55, %v6928_v0 }
0x1056   : > { %v4561_v43 = vmul.f32 %v6522_v9, %v9083_v45  ;;  %v4744_v14 = vpop.xlane.xlu0 %4743 }
0x1057   : > { %v4774_v39 = vmul.f32 %v4744_v14, %v6928_v0  ;;  %v9172_v42 = vsub.f32 %v9091_v5, %v4775_v29 }
0x1058   : > { %6100 = vmatmul.msk.f32.gmra.mxu2 %vm1246_vm6, %v4561_v43 }
0x1059   : > { %v9160_v58 = vsub.f32 %v9088_v22, %v4774_v39  ;;  %v4799_v37 = vmul.f32 %v9172_v42, %v9172_v42 }
0x105b   : > { %v4798_v45 = vmul.f32 %v9160_v58, %v9160_v58  ;;  %v4817_v31 = vsel %vm769_vm5, %v4799_v37, 0.0 }
0x105d   : > { %v4814_v44 = vsel %vm769_vm5, %v4798_v45, 0.0 }
0x105e   : > { %v4750_v3 = vpop.xlane.xlu0 %4749 }
0x105f   : > { %v4776_v61 = vmul.f32 %v4750_v3, %v6928_v0 }
0x1061   : > { %v9184_v19 = vsub.f32 %v9098_v36, %v4776_v61 }
0x1063   : > { %v4800_v52 = vmul.f32 %v9184_v19, %v9184_v19 }
0x1065   : > { %v4820_v56 = vsel %vm769_vm5, %v4800_v52, 0.0 }
0x106b   : > { %v4405_v53 = vpop.f32.mrf.mxu0 }
0x106c   : > { %v4441_v62 = vadd.f32 %v4440_v18, %v4405_v53 }
0x106e   : > { %v9157_v10 = vadd.f32 %v4441_v62, %v8296_v24 }
0x1070   : > { %v4754_v7 = vsel %vm769_vm5, %v9157_v10, 0.0 }
0x1071   : > { %4755 = vadd.xlane.f32.xlu0 %v4754_v7 }
0x1073   : > { %v4408_v63 = vpop.f32.mrf.mxu0 }
0x1079   : > { %4815 = vadd.xlane.f32.xlu0 %v4814_v44  ;;  %v4443_v20 = vpop.f32.mrf.mxu2 }
0x107a   : > { %v4444_v24 = vadd.f32 %v4443_v20, %v4408_v63  ;;  %v6601_v63 = vld [vmem:[%s9589_s6 + $0x4] sm:$0xf] }
0x107b   : > { %v9225_v20 = vperm.slane %v6601_v63, 2 }
0x107c   : > { %v9169_v11 = vadd.f32 %v4444_v24, %v8302_v40 }
0x107e   : > { %v4757_v23 = vsel %vm769_vm5, %v9169_v11, 0.0 }
0x107f   : > { %4758 = vadd.xlane.f32.xlu1 %v4757_v23  ;;  %v9227_v23 = vperm.slane %v6601_v63, 3 }
0x1081   : > { %v4446_v12 = vpop.f32.mrf.mxu2 }
0x1087   : > { %4818 = vadd.xlane.f32.xlu1 %v4817_v31 }
0x1088   : > { %v4753_v57 = vpop.xlane.xlu2 %4752 }
0x1089   : > { %v4777_v60 = vmul.f32 %v4753_v57, %v6928_v0 }
0x108b   : > { %v9208_v30 = vsub.f32 %v9115_v46, %v4777_v60 }
0x1097   : > { %v4411_v54 = vpop.f32.mrf.mxu0 }
0x1098   : > { %v4447_v40 = vadd.f32 %v4446_v12, %v4411_v54 }
0x109a   : > { %v9181_v34 = vadd.f32 %v4447_v40, %v8321_v49 }
0x109c   : > { %v4760_v17 = vsel %vm769_vm5, %v9181_v34, 0.0 }
0x109d   : > { %4761 = vadd.xlane.f32.xlu2 %v4760_v17 }
0x10a4   : > { %v4680_v49 = vpop.f32.mrf.mxu0 }
0x10a5   : > { %4821 = vadd.xlane.f32.xlu2 %v4820_v56 }
0x10aa   : > { %v4715_v38 = vpop.f32.mrf.mxu2 }
0x10ab   : > { %v4716_v25 = vadd.f32 %v4715_v38, %v4680_v49 }
0x10ad   : > { %v9202_v35 = vadd.f32 %v4716_v25, %v8333_v4  ;;  %v4801_v4 = vmul.f32 %v9208_v30, %v9208_v30 }
0x10af   : > { %v4763_v51 = vsel %vm769_vm5, %v9202_v35, 0.0  ;;  %v4823_v59 = vsel %vm769_vm5, %v4801_v4, 0.0 }
0x10b0   : > { %4764 = vadd.xlane.f32.xlu0 %v4763_v51  ;;  %v4810_v48 = vpop.xlane.xlu1 %4809 }
0x10b1   : > { %v4844_v1 = vmul.f32 %v4810_v48, %v6928_v0 }
0x10b2   : > { %v4718_v27 = vpop.f32.mrf.mxu2 }
0x10b3   : > { %v4856_v21 = vadd.f32 1e-05, %v4844_v1 }
0x10b4   : > { %v4683_v6 = vpop.f32.mrf.mxu0 }
0x10b5   : > { %6523 = vrsqrt.f32 %v4856_v21  ;;  %v4719_v16 = vadd.f32 %v4718_v27, %v4683_v6  ;;  %vm4874_vm12 = vweird.f32 %v4856_v21 }
0x10b7   : > { %v9216_v13 = vadd.f32 %v4719_v16, %v8349_v32 }
0x10b8   : > { %v4813_v9 = vpop.xlane.xlu2 %4812  ;;  %4824 = vadd.xlane.f32.xlu0 %v4823_v59 }
0x10b9   : > { %v4845_v43 = vmul.f32 %v4813_v9, %v6928_v0  ;;  %v4766_v14 = vsel %vm769_vm5, %v9216_v13, 0.0 }
0x10ba   : > { %4767 = vadd.xlane.f32.xlu1 %v4766_v14 }
0x10bb   : > { %v6524_v18 = vpop.eup %6523  ;;  %v4857_v53 = vadd.f32 1e-05, %v4845_v43 }
0x10bc   : > { %v4869_v39 = vmul.f32 %v6524_v18, %v4856_v21  ;;  %vm4875_vm11 = vweird.f32 %v6524_v18 }
0x10bd   : > { %6525 = vrsqrt.f32 %v4857_v53  ;;  %vm4876_vm6 = vmor %vm4874_vm12, %vm4875_vm11  ;;  %vm4884_vm15 = vweird.f32 %v4857_v53 }
0x10be   : > { %v4870_v62 = vmul.f32 %v6524_v18, %v4869_v39 }
0x10c0   : > { %v4871_v7 = vmul.f32 0.5, %v4870_v62 }
0x10c2   : > { %v4872_v45 = vsub.f32 1.5, %v4871_v7 }
0x10c3   : > { %v6526_v32 = vpop.eup %6525 }
0x10c4   : > { %v4873_v55 = vmul.f32 %v6524_v18, %v4872_v45  ;;  %v4879_v44 = vmul.f32 %v6526_v32, %v4857_v53  ;;  %vm4885_vm14 = vweird.f32 %v6526_v32 }
0x10c5   : > { %vm4886_vm0 = vmor %vm4884_vm15, %vm4885_vm14 }
0x10c6   : > { %v4877_v29 = vsel %vm4876_vm6, %v6524_v18, %v4873_v55  ;;  %v4880_v24 = vmul.f32 %v6526_v32, %v4879_v44 }
0x10c7   : > { %v4988_v37 = vmul.f32 %v4877_v29, %v9139_v41 }
0x10c8   : > { %v4881_v31 = vmul.f32 0.5, %v4880_v24 }
0x10c9   : > { %v5001_v3 = vmul.f32 %v9225_v20, %v4988_v37 }
0x10ca   : > { %v4882_v12 = vsub.f32 1.5, %v4881_v31 }
0x10cb   : > { %v5014_v54 = vadd.f32 %v9227_v23, %v5001_v3 }
0x10cc   : > { %v4883_v61 = vmul.f32 %v6526_v32, %v4882_v12 }
0x10cd   : > { %6106 = vmatmul.msk.f32.vlgmr.msrb.gmra.mxu1 %vm769_vm5, %v5014_v54 }
0x10ce   : > { %v4887_v40 = vsel %vm4886_vm0, %v6526_v32, %v4883_v61  ;;  %v4686_v41 = vpop.f32.mrf.mxu0 }
0x10cf   : > { %v4989_v17 = vmul.f32 %v4887_v40, %v9146_v33 }
0x10d1   : > { %v5002_v52 = vmul.f32 %v9225_v20, %v4989_v17 }
0x10d3   : > { %v5015_v56 = vadd.f32 %v9227_v23, %v5002_v52 }
0x10d5   : > { %6107 = vmatmul.msk.f32.gmra.mxu1 %vm769_vm5, %v5015_v56 }
0x10db   : > { %v4721_v57 = vpop.f32.mrf.mxu2 }
0x10dc   : > { %v4722_v50 = vadd.f32 %v4721_v57, %v4686_v41 }
0x10de   : > { %v9238_v49 = vadd.f32 %v4722_v50, %v8361_v15 }
0x10e0   : > { %v4769_v38 = vsel %vm769_vm5, %v9238_v49, 0.0 }
0x10e1   : > { %4770 = vadd.xlane.f32.xlu2 %v4769_v38 }
0x10e4   : > { %v4756_v2 = vpop.xlane.xlu0 %4755 }
0x10e5   : > { %v4778_v60 = vmul.f32 %v4756_v2, %v6928_v0 }
0x10e7   : > { %v9244_v33 = vsub.f32 %v9157_v10, %v4778_v60 }
0x10e9   : > { %v4802_v25 = vmul.f32 %v9244_v33, %v9244_v33 }
0x10eb   : > { %v4826_v8 = vsel %vm769_vm5, %v4802_v25, 0.0 }
0x10ec   : > { %v4816_v47 = vpop.xlane.xlu0 %4815  ;;  %4827 = vadd.xlane.f32.xlu1 %v4826_v8 }
0x10ed   : > { %v4846_v15 = vmul.f32 %v4816_v47, %v6928_v0 }
0x10ef   : > { %v4858_v51 = vadd.f32 1e-05, %v4846_v15 }
0x10f1   : > { %6527 = vrsqrt.f32 %v4858_v51  ;;  %vm4894_vm2 = vweird.f32 %v4858_v51 }
0x10f2   : > { %v4759_v48 = vpop.xlane.xlu1 %4758 }
0x10f3   : > { %v4779_v1 = vmul.f32 %v4759_v48, %v6928_v0 }
0x10f5   : > { %v9252_v21 = vsub.f32 %v9169_v11, %v4779_v1 }
0x10f7   : > { %v6528_v4 = vpop.eup %6527  ;;  %v4803_v6 = vmul.f32 %v9252_v21, %v9252_v21 }
0x10f8   : > { %v4889_v27 = vmul.f32 %v6528_v4, %v4858_v51  ;;  %vm4895_vm1 = vweird.f32 %v6528_v4 }
0x10f9   : > { %v4829_v59 = vsel %vm769_vm5, %v4803_v6, 0.0  ;;  %vm4896_vm3 = vmor %vm4894_vm2, %vm4895_vm1 }
0x10fa   : > { %v4890_v16 = vmul.f32 %v6528_v4, %v4889_v27  ;;  %4830 = vadd.xlane.f32.xlu0 %v4829_v59  ;;  %v4819_v9 = vpop.xlane.xlu1 %4818 }
0x10fb   : > { %v4847_v14 = vmul.f32 %v4819_v9, %v6928_v0 }
0x10fc   : > { %v4891_v43 = vmul.f32 0.5, %v4890_v16 }
0x10fd   : > { %v4859_v53 = vadd.f32 1e-05, %v4847_v14 }
0x10fe   : > { %v4892_v18 = vsub.f32 1.5, %v4891_v43 }
0x10ff   : > { %6529 = vrsqrt.f32 %v4859_v53  ;;  %vm4904_vm7 = vweird.f32 %v4859_v53 }
0x1100   : > { %v4893_v39 = vmul.f32 %v6528_v4, %v4892_v18 }
0x1102   : > { %v4897_v62 = vsel %vm4896_vm3, %v6528_v4, %v4893_v39 }
0x1103   : > { %v4990_v7 = vmul.f32 %v4897_v62, %v9160_v58 }
0x1105   : > { %v5003_v45 = vmul.f32 %v9225_v20, %v4990_v7  ;;  %v6530_v32 = vpop.eup %6529 }
0x1106   : > { %v4899_v55 = vmul.f32 %v6530_v32, %v4859_v53  ;;  %vm4905_vm4 = vweird.f32 %v6530_v32 }
0x1107   : > { %v5016_v44 = vadd.f32 %v9227_v23, %v5003_v45  ;;  %vm4906_vm8 = vmor %vm4904_vm7, %vm4905_vm4 }
0x1108   : > { %v4900_v63 = vmul.f32 %v6530_v32, %v4899_v55 }
0x1109   : > { %6108 = vmatmul.msk.f32.gmra.mxu1 %vm769_vm5, %v5016_v44 }
0x110a   : > { %v4901_v29 = vmul.f32 0.5, %v4900_v63 }
0x110c   : > { %v4902_v24 = vsub.f32 1.5, %v4901_v29 }
0x110e   : > { %v4903_v37 = vmul.f32 %v6530_v32, %v4902_v24 }
0x1110   : > { %v4762_v31 = vpop.xlane.xlu2 %4761  ;;  %v4907_v3 = vsel %vm4906_vm8, %v6530_v32, %v4903_v37  ;;  %v6133_v37 = vld [vmem:[%s9594_s11 + $0xf8] sm:$0xff] }
0x1111   : > { %v4780_v12 = vmul.f32 %v4762_v31, %v6928_v0  ;;  %v4991_v58 = vmul.f32 %v4907_v3, %v9172_v42  ;;  %v9302_v31 = vld [vmem:[%s9593_s10 + $0x1] ss:$0 sm:$0xff]  ;;  %5627 = vmatpush.msra.mxu3 %v6133_v37 }
0x1113   : > { %v9265_v54 = vsub.f32 %v9181_v34, %v4780_v12  ;;  %v5004_v61 = vmul.f32 %v9225_v20, %v4991_v58  ;;  %v6131_v12 = vld [vmem:[%s9594_s11 + $0xe8] sm:$0xff] }
0x1115   : > { %v4804_v40 = vmul.f32 %v9265_v54, %v9265_v54  ;;  %v5017_v17 = vadd.f32 %v9227_v23, %v5004_v61  ;;  %v6130_v61 = vld [vmem:[%s9594_s11 + $0xe0] sm:$0xff] }
0x1117   : > { %v4832_v52 = vsel %vm769_vm5, %v4804_v40, 0.0  ;;  %6109 = vmatmul.msk.f32.gmra.mxu1 %vm769_vm5, %v5017_v17  ;;  %v6129_v17 = vld [vmem:[%s9594_s11 + $0xd8] sm:$0xff] }
0x1118   : > { %v4822_v56 = vpop.xlane.xlu2 %4821  ;;  %4833 = vadd.xlane.f32.xlu2 %v4832_v52 }
0x1119   : > { %v4848_v41 = vmul.f32 %v4822_v56, %v6928_v0  ;;  %v6128_v56 = vld [vmem:[%s9594_s11 + $0xd0] sm:$0xff] }
0x111b   : > { %v4860_v57 = vadd.f32 1e-05, %v4848_v41 }
0x111d   : > { %6531 = vrsqrt.f32 %v4860_v57  ;;  %vm4914_vm10 = vweird.f32 %v4860_v57 }
0x1123   : > { %v6532_v42 = vpop.eup %6531  ;;  %v4765_v50 = vpop.xlane.xlu0 %4764 }
0x1124   : > { %v4909_v38 = vmul.f32 %v6532_v42, %v4860_v57  ;;  %v4781_v2 = vmul.f32 %v4765_v50, %v6928_v0  ;;  %vm4915_vm9 = vweird.f32 %v6532_v42 }
0x1125   : > { %vm4916_vm13 = vmor %vm4914_vm10, %vm4915_vm9 }
0x1126   : > { %v4910_v60 = vmul.f32 %v6532_v42, %v4909_v38  ;;  %v9276_v25 = vsub.f32 %v9202_v35, %v4781_v2 }
0x1128   : > { %v4911_v8 = vmul.f32 0.5, %v4910_v60  ;;  %v4805_v47 = vmul.f32 %v9276_v25, %v9276_v25  ;;  %v6126_v60 = vld [vmem:[%s9594_s11 + $0xc0] sm:$0xff] }
0x112a   : > { %v4912_v15 = vsub.f32 1.5, %v4911_v8  ;;  %v4835_v51 = vsel %vm769_vm5, %v4805_v47, 0.0 }
0x112b   : > { %v4825_v48 = vpop.xlane.xlu0 %4824  ;;  %4836 = vadd.xlane.f32.xlu1 %v4835_v51 }
0x112c   : > { %v4913_v1 = vmul.f32 %v6532_v42, %v4912_v15  ;;  %v4849_v4 = vmul.f32 %v4825_v48, %v6928_v0  ;;  %v6125_v15 = vld [vmem:[%s9594_s11 + $0xb8] sm:$0xff] }
0x112d   : > { %v4768_v27 = vpop.xlane.xlu1 %4767 }
0x112e   : > { %v4917_v6 = vsel %vm4916_vm13, %v6532_v42, %v4913_v1  ;;  %v4861_v16 = vadd.f32 1e-05, %v4849_v4  ;;  %v4782_v59 = vmul.f32 %v4768_v27, %v6928_v0  ;;  %v6127_v42 = vld [vmem:[%s9594_s11 + $0xc8] sm:$0xff]  ;;  %v6124_v1 = vld [vmem:[%s9594_s11 + $0xb0] sm:$0xff] }
0x112f   : > { %v4992_v9 = vmul.f32 %v4917_v6, %v9184_v19  ;;  %v6123_v6 = vld [vmem:[%s9594_s11 + $0xa8] sm:$0xff] }
0x1130   : > { %6533 = vrsqrt.f32 %v4861_v16  ;;  %v9285_v43 = vsub.f32 %v9216_v13, %v4782_v59  ;;  %vm4924_vm12 = vweird.f32 %v4861_v16 }
0x1131   : > { %v5005_v14 = vmul.f32 %v9225_v20, %v4992_v9 }
0x1132   : > { %v4806_v18 = vmul.f32 %v9285_v43, %v9285_v43 }
0x1133   : > { %v5018_v53 = vadd.f32 %v9227_v23, %v5005_v14  ;;  %v6122_v14 = vld [vmem:[%s9594_s11 + $0xa0] sm:$0xff] }
0x1134   : > { %v4838_v39 = vsel %vm769_vm5, %v4806_v18, 0.0 }
0x1135   : > { %6110 = vmatmul.msk.f32.gmra.mxu1 %vm769_vm5, %v5018_v53  ;;  %4839 = vadd.xlane.f32.xlu0 %v4838_v39  ;;  %v6121_v39 = vld [vmem:[%s9594_s11 + $0x98] sm:$0xff] }
0x1136   : > { %v6534_v62 = vpop.eup %6533 }
0x1137   : > { %v4919_v7 = vmul.f32 %v6534_v62, %v4861_v16  ;;  %vm4925_vm11 = vweird.f32 %v6534_v62 }
0x1138   : > { %vm4926_vm6 = vmor %vm4924_vm12, %vm4925_vm11 }
0x1139   : > { %v4920_v45 = vmul.f32 %v6534_v62, %v4919_v7 }
0x113b   : > { %v4921_v19 = vmul.f32 0.5, %v4920_v45 }
0x113d   : > { %v4922_v32 = vsub.f32 1.5, %v4921_v19 }
0x113f   : > { %v4923_v55 = vmul.f32 %v6534_v62, %v4922_v32 }
0x1141   : > { %v4927_v44 = vsel %vm4926_vm6, %v6534_v62, %v4923_v55  ;;  %v6120_v55 = vld [vmem:[%s9594_s11 + $0x90] sm:$0xff] }
0x1142   : > { %v4993_v63 = vmul.f32 %v4927_v44, %v9208_v30  ;;  %v6132_v30 = vld [vmem:[%s9594_s11 + $0xf0] sm:$0xff] }
0x1143   : > { %5628 = vmatpush.msra.mxu3 %v6132_v30 }
0x1144   : > { %v5006_v29 = vmul.f32 %v9225_v20, %v4993_v63 }
0x1145   : > { %5629 = vmatpush.msra.mxu3 %v6131_v12  ;;  %v6118_v12 = vld [vmem:[%s9594_s11 + $0x80] sm:$0xff] }
0x1146   : > { %v5019_v24 = vadd.f32 %v9227_v23, %v5006_v29  ;;  %v6119_v29 = vld [vmem:[%s9594_s11 + $0x88] sm:$0xff] }
0x1147   : > { %5630 = vmatpush.msra.mxu3 %v6130_v61 }
0x1148   : > { %6111 = vmatmul.msk.f32.gmra.mxu1 %vm769_vm5, %v5019_v24 }
0x1149   : > { %5631 = vmatpush.msra.mxu3 %v6129_v17 }
0x114a   : > { %v5089_v3 = vpop.f32.mrf.mxu1 }
0x114b   : > { %v9312_v58 = vadd.f32 %v9302_v31, %v5089_v3  ;;  %5632 = vmatpush.msra.mxu3 %v6128_v56 }
0x114d   : > { %v9318_v40 = vmul.f32 0.70710677, %v9312_v58  ;;  %5633 = vmatpush.msra.mxu3 %v6127_v42 }
0x114f   : > { %v9324_v52 = vand.u32 2147483647, %v9318_v40  ;;  %5634 = vmatpush.msra.mxu3 %v6126_v60  ;;  %vm5545_vm13 = vcmp.ge.f32.partialorder %v9318_v40, 0.0 }
0x1151   : > { %v5161_v41 = vmul.f32 0.3275911, %v9324_v52  ;;  %5635 = vmatpush.msra.mxu3 %v6125_v15  ;;  %v5473_v3 = vsub.f32 0.0, %v9324_v52 }
0x1152   : > { %v5092_v57 = vpop.f32.mrf.mxu1 }
0x1153   : > { %v5173_v50 = vadd.f32 1.0, %v5161_v41  ;;  %v9334_v38 = vadd.f32 %v9302_v31, %v5092_v57  ;;  %5636 = vmatpush.msra.mxu3 %v6124_v1  ;;  %v5485_v42 = vmul.f32 %v5473_v3, %v9324_v52 }
0x1154   : > { %v4771_v2 = vpop.xlane.xlu2 %4770 }
0x1155   : > { %6535 = vrcp.f32 %v5173_v50  ;;  %v9340_v8 = vmul.f32 0.70710677, %v9334_v38  ;;  %v4783_v47 = vmul.f32 %v4771_v2, %v6928_v0  ;;  %5637 = vmatpush.msra.mxu3 %v6123_v6  ;;  %v5196_v62 = vand.u32 2147483648, %v5173_v50 }
0x1156   : > { %v5194_v19 = vand.u32 2147483647, %v5173_v50  ;;  %vm5190_vm15 = vweird.f32 %v5173_v50  ;;  %v5497_v6 = vmul.f32 1.442695, %v5485_v42 }
0x1157   : > { %v9347_v51 = vand.u32 2147483647, %v9340_v8  ;;  %v9350_v48 = vsub.f32 %v9238_v49, %v4783_v47  ;;  %5638 = vmatpush.msra.mxu3 %v6122_v14  ;;  %v5197_v24 = vor.u32 1.1754944e-38, %v5196_v62 }
0x1158   : > { %vm5195_vm1 = vcmp.eq.f32.partialorder %v5194_v19, 8.507059e+37 }
0x1159   : > { %v5162_v4 = vmul.f32 0.3275911, %v9347_v51  ;;  %v4807_v27 = vmul.f32 %v9350_v48, %v9350_v48  ;;  %5639 = vmatpush.msra.mxu3 %v6121_v39 }
0x115b   : > { %v6536_v16 = vpop.eup %6535  ;;  %v5174_v9 = vadd.f32 1.0, %v5162_v4  ;;  %v4841_v18 = vsel %vm769_vm5, %v4807_v27, 0.0  ;;  %5640 = vmatpush.msra.mxu3 %v6120_v55 }
0x115c   : > { %v5186_v59 = vmul.f32 %v6536_v16, %v5173_v50  ;;  %4842 = vadd.xlane.f32.xlu2 %v4841_v18  ;;  %vm5191_vm14 = vweird.f32 %v6536_v16 }
0x115d   : > { %6537 = vrcp.f32 %v5174_v9  ;;  %vm5192_vm0 = vmor %vm5190_vm15, %vm5191_vm14  ;;  %5641 = vmatpush.msra.mxu3 %v6119_v29  ;;  %v5211_v50 = vand.u32 2147483648, %v5174_v9  ;;  %v5209_v60 = vand.u32 2147483647, %v5174_v9  ;;  %vm5205_vm3 = vweird.f32 %v5174_v9 }
0x115e   : > { %v5187_v53 = vsub.f32 1.0, %v5186_v59  ;;  %vm5546_vm14 = vcmp.ge.f32.partialorder %v9340_v8, 0.0 }
0x115f   : > { %v4828_v7 = vpop.xlane.xlu1 %4827  ;;  %5642 = vmatpush.msra.mxu3 %v6118_v12  ;;  %vm5210_vm7 = vcmp.eq.f32.partialorder %v5209_v60, 8.507059e+37 }
0x1160   : > { %v5188_v45 = vmul.f32 %v6536_v16, %v5187_v53  ;;  %v4850_v32 = vmul.f32 %v4828_v7, %v6928_v0  ;;  %v5474_v53 = vsub.f32 0.0, %v9347_v51 }
0x1162   : > { %v5189_v44 = vadd.f32 %v6536_v16, %v5188_v45  ;;  %v4862_v63 = vadd.f32 1e-05, %v4850_v32  ;;  %v5486_v29 = vmul.f32 %v5474_v53, %v9347_v51 }
0x1163   : > { %v6538_v37 = vpop.eup %6537 }
0x1164   : > { %v5193_v30 = vsel %vm5192_vm0, %v6536_v16, %v5189_v44  ;;  %6539 = vrsqrt.f32 %v4862_v63  ;;  %v5201_v17 = vmul.f32 %v6538_v37, %v5174_v9  ;;  %vm5206_vm2 = vweird.f32 %v6538_v37 }
0x1165   : > { %v5198_v61 = vsel %vm5195_vm1, %v5197_v24, %v5193_v30  ;;  %vm5207_vm4 = vmor %vm5205_vm3, %vm5206_vm2  ;;  %v5212_v16 = vor.u32 1.1754944e-38, %v5211_v50  ;;  %6541 = vpow2.f32 %v5497_v6  ;;  %vm4934_vm9 = vweird.f32 %v4862_v63 }
0x1166   : > { %v5365_v56 = vmul.f32 1.0614054, %v5198_v61  ;;  %v5202_v41 = vsub.f32 1.0, %v5201_v17 }
0x1168   : > { %v5377_v57 = vadd.f32 -1.4531521, %v5365_v56  ;;  %v5203_v2 = vmul.f32 %v6538_v37, %v5202_v41  ;;  %v5499_v41 = vmul.f32 1.442695, %v5486_v29  ;;  %v5126_v29 = vmul.f32 0.5, %v9334_v38 }
0x116a   : > { %v6540_v47 = vpop.eup %6539  ;;  %v5389_v15 = vmul.f32 %v5377_v57, %v5198_v61  ;;  %v5204_v4 = vadd.f32 %v6538_v37, %v5203_v2 }
0x116b   : > { %v4929_v1 = vmul.f32 %v6540_v47, %v4862_v63  ;;  %vm4935_vm8 = vweird.f32 %v6540_v47  ;;  %v6542_v17 = vpop.eup %6541 }
0x116c   : > { %v5401_v27 = vadd.f32 1.4214138, %v5389_v15  ;;  %v5208_v14 = vsel %vm5207_vm4, %v6538_v37, %v5204_v4  ;;  %vm4936_vm10 = vmor %vm4934_vm9, %vm4935_vm8 }
0x116d   : > { %v4930_v59 = vmul.f32 %v6540_v47, %v4929_v1  ;;  %v4831_v52 = vpop.xlane.xlu0 %4830  ;;  %v5213_v39 = vsel %vm5210_vm7, %v5212_v16, %v5208_v14  ;;  %v5125_v16 = vmul.f32 0.5, %v9312_v58 }
0x116e   : > { %v5413_v18 = vmul.f32 %v5401_v27, %v5198_v61  ;;  %v4851_v7 = vmul.f32 %v4831_v52, %v6928_v0  ;;  %v5366_v45 = vmul.f32 1.0614054, %v5213_v39 }
0x116f   : > { %v4931_v62 = vmul.f32 0.5, %v4930_v59 }
0x1170   : > { %v5425_v19 = vadd.f32 -0.28449672, %v5413_v18  ;;  %v4863_v32 = vadd.f32 1e-05, %v4851_v7  ;;  %v5378_v55 = vadd.f32 -1.4531521, %v5366_v45 }
0x1171   : > { %v4932_v9 = vsub.f32 1.5, %v4931_v62 }
0x1172   : > { %v5437_v44 = vmul.f32 %v5425_v19, %v5198_v61  ;;  %6543 = vrsqrt.f32 %v4863_v32  ;;  %v5390_v37 = vmul.f32 %v5378_v55, %v5213_v39  ;;  %vm4944_vm12 = vweird.f32 %v4863_v32 }
0x1173   : > { %v4933_v24 = vmul.f32 %v6540_v47, %v4932_v9  ;;  %6545 = vpow2.f32 %v5499_v41 }
0x1174   : > { %v5449_v30 = vadd.f32 0.2548296, %v5437_v44  ;;  %v5402_v12 = vadd.f32 1.4214138, %v5390_v37 }
0x1175   : > { %v4937_v3 = vsel %vm4936_vm10, %v6540_v47, %v4933_v24 }
0x1176   : > { %v5461_v56 = vmul.f32 %v5449_v30, %v5198_v61  ;;  %v4994_v57 = vmul.f32 %v4937_v3, %v9244_v33  ;;  %v5414_v42 = vmul.f32 %v5402_v12, %v5213_v39 }
0x1178   : > { %v5521_v50 = vmul.f32 %v6542_v17, %v5461_v56  ;;  %v5007_v2 = vmul.f32 %v9225_v20, %v4994_v57  ;;  %v6544_v60 = vpop.eup %6543  ;;  %v5426_v15 = vadd.f32 -0.28449672, %v5414_v42 }
0x1179   : > { %v4939_v63 = vmul.f32 %v6544_v60, %v4863_v32  ;;  %v6546_v18 = vpop.eup %6545  ;;  %vm4945_vm11 = vweird.f32 %v6544_v60 }
0x117a   : > { %v5533_v51 = vsub.f32 1.0, %v5521_v50  ;;  %v5020_v1 = vadd.f32 %v9227_v23, %v5007_v2  ;;  %v5438_v4 = vmul.f32 %v5426_v15, %v5213_v39  ;;  %vm4946_vm6 = vmor %vm4944_vm12, %vm4945_vm11 }
0x117b   : > { %v4940_v47 = vmul.f32 %v6544_v60, %v4939_v63 }
0x117c   : > { %v5557_v27 = vsub.f32 0.0, %v5533_v51  ;;  %6112 = vmatmul.msk.f32.gmra.mxu1 %vm769_vm5, %v5020_v1  ;;  %v5450_v61 = vadd.f32 0.2548296, %v5438_v4 }
0x117d   : > { %v4941_v6 = vmul.f32 0.5, %v4940_v47 }
0x117e   : > { %v5569_v33 = vsel %vm5545_vm13, %v5533_v51, %v5557_v27  ;;  %v5462_v14 = vmul.f32 %v5450_v61, %v5213_v39 }
0x117f   : > { %v5581_v59 = vadd.f32 1.0, %v5569_v33  ;;  %v4942_v53 = vsub.f32 1.5, %v4941_v6 }
0x1180   : > { %v5522_v62 = vmul.f32 %v6546_v18, %v5462_v14 }
0x1181   : > { %v5593_v52 = vmul.f32 %v5581_v59, %v5125_v16  ;;  %v4943_v7 = vmul.f32 %v6544_v60, %v4942_v53 }
0x1182   : > { %v5534_v45 = vsub.f32 1.0, %v5522_v62 }
0x1183   : > { %5643 = vmatmul.f32.vlgmr.msra.gmra.mxu3 %v5593_v52  ;;  %v4947_v19 = vsel %vm4946_vm6, %v6544_v60, %v4943_v7 }
0x1184   : > { %v4995_v40 = vmul.f32 %v4947_v19, %v9252_v21  ;;  %v5558_v9 = vsub.f32 0.0, %v5534_v45 }
0x1186   : > { %v5095_v55 = vpop.f32.mrf.mxu1  ;;  %v5008_v39 = vmul.f32 %v9225_v20, %v4995_v40  ;;  %v5570_v44 = vsel %vm5546_vm14, %v5534_v45, %v5558_v9 }
0x1187   : > { %v9392_v58 = vadd.f32 %v9302_v31, %v5095_v55  ;;  %v5582_v24 = vadd.f32 1.0, %v5570_v44 }
0x1188   : > { %v5021_v37 = vadd.f32 %v9227_v23, %v5008_v39 }
0x1189   : > { %v9397_v32 = vmul.f32 0.70710677, %v9392_v58  ;;  %v5594_v30 = vmul.f32 %v5582_v24, %v5126_v29 }
0x118a   : > { %6113 = vmatmul.msk.f32.gmra.mxu1 %vm769_vm5, %v5021_v37 }
0x118b   : > { %v5151_v21 = vand.u32 2147483647, %v9397_v32  ;;  %v4834_v8 = vpop.xlane.xlu2 %4833  ;;  %5646 = vmatmul.f32.gmra.mxu3 %v5594_v30 }
0x118c   : > { %v4852_v3 = vmul.f32 %v4834_v8, %v6928_v0 }
0x118d   : > { %v5163_v12 = vmul.f32 0.3275911, %v5151_v21  ;;  %v5475_v45 = vsub.f32 0.0, %v5151_v21 }
0x118e   : > { %v4864_v17 = vadd.f32 1e-05, %v4852_v3 }
0x118f   : > { %v5175_v56 = vadd.f32 1.0, %v5163_v12  ;;  %v5487_v29 = vmul.f32 %v5475_v45, %v5151_v21 }
0x1190   : > { %6547 = vrsqrt.f32 %v4864_v17  ;;  %vm4954_vm1 = vweird.f32 %v4864_v17 }
0x1191   : > { %6549 = vrcp.f32 %v5175_v56  ;;  %v5226_v27 = vand.u32 2147483648, %v5175_v56  ;;  %v5224_v61 = vand.u32 2147483647, %v5175_v56  ;;  %vm5220_vm2 = vweird.f32 %v5175_v56 }
0x1193   : > { %v5227_v53 = vor.u32 1.1754944e-38, %v5226_v27  ;;  %vm5225_vm7 = vcmp.eq.f32.partialorder %v5224_v61, 8.507059e+37 }
0x1194   : > { %v5098_v38 = vpop.f32.mrf.mxu1 }
0x1195   : > { %v9404_v57 = vadd.f32 %v9302_v31, %v5098_v38 }
0x1196   : > { %v6548_v41 = vpop.eup %6547 }
0x1197   : > { %v6550_v42 = vpop.eup %6549  ;;  %v4949_v50 = vmul.f32 %v6548_v41, %v4864_v17  ;;  %v9407_v60 = vmul.f32 0.70710677, %v9404_v57  ;;  %vm4955_vm15 = vweird.f32 %v6548_v41 }
0x1198   : > { %v5216_v2 = vmul.f32 %v6550_v42, %v5175_v56  ;;  %vm5221_vm0 = vweird.f32 %v6550_v42  ;;  %vm4956_vm3 = vmor %vm4954_vm1, %vm4955_vm15  ;;  %v5501_v56 = vmul.f32 1.442695, %v5487_v29  ;;  %vm5547_vm15 = vcmp.ge.f32.partialorder %v9397_v32, 0.0 }
0x1199   : > { %v4950_v15 = vmul.f32 %v6548_v41, %v4949_v50  ;;  %v9410_v63 = vand.u32 2147483647, %v9407_v60  ;;  %vm5222_vm4 = vmor %vm5220_vm2, %vm5221_vm0 }
0x119a   : > { %v5217_v51 = vsub.f32 1.0, %v5216_v2 }
0x119b   : > { %v4951_v1 = vmul.f32 0.5, %v4950_v15  ;;  %v5164_v47 = vmul.f32 0.3275911, %v9410_v63  ;;  %v5476_v61 = vsub.f32 0.0, %v9410_v63 }
0x119c   : > { %v5218_v4 = vmul.f32 %v6550_v42, %v5217_v51 }
0x119d   : > { %v4952_v33 = vsub.f32 1.5, %v4951_v1  ;;  %v5176_v6 = vadd.f32 1.0, %v5164_v47 }
0x119e   : > { %v4837_v16 = vpop.xlane.xlu1 %4836  ;;  %v5219_v59 = vadd.f32 %v6550_v42, %v5218_v4 }
0x119f   : > { %v4953_v14 = vmul.f32 %v6548_v41, %v4952_v33  ;;  %v4853_v18 = vmul.f32 %v4837_v16, %v6928_v0  ;;  %6551 = vrcp.f32 %v5176_v6  ;;  %v5239_v38 = vand.u32 2147483647, %v5176_v6 }
0x11a0   : > { %v5223_v7 = vsel %vm5222_vm4, %v6550_v42, %v5219_v59  ;;  %vm5235_vm9 = vweird.f32 %v5176_v6 }
0x11a1   : > { %v4957_v52 = vsel %vm4956_vm3, %v6548_v41, %v4953_v14  ;;  %v4865_v62 = vadd.f32 1e-05, %v4853_v18  ;;  %v5228_v40 = vsel %vm5225_vm7, %v5227_v53, %v5223_v7  ;;  %v5241_v41 = vand.u32 2147483648, %v5176_v6 }
0x11a2   : > { %v4996_v19 = vmul.f32 %v4957_v52, %v9265_v54  ;;  %v5367_v9 = vmul.f32 1.0614054, %v5228_v40  ;;  %vm5240_vm13 = vcmp.eq.f32.partialorder %v5239_v38, 8.507059e+37  ;;  %vm5548_vm3 = vcmp.ge.f32.partialorder %v9407_v60, 0.0 }
0x11a3   : > { %6553 = vrsqrt.f32 %v4865_v62  ;;  %v5242_v1 = vor.u32 1.1754944e-38, %v5241_v41  ;;  %vm4964_vm12 = vweird.f32 %v4865_v62 }
0x11a4   : > { %v5009_v55 = vmul.f32 %v9225_v20, %v4996_v19  ;;  %v5379_v39 = vadd.f32 -1.4531521, %v5367_v9  ;;  %v5488_v19 = vmul.f32 %v5476_v61, %v9410_v63 }
0x11a5   : > { %v6552_v44 = vpop.eup %6551 }
0x11a6   : > { %v5022_v24 = vadd.f32 %v9227_v23, %v5009_v55  ;;  %v5231_v37 = vmul.f32 %v6552_v44, %v5176_v6  ;;  %v5391_v30 = vmul.f32 %v5379_v39, %v5228_v40  ;;  %vm5236_vm8 = vweird.f32 %v6552_v44 }
0x11a7   : > { %vm5237_vm10 = vmor %vm5235_vm9, %vm5236_vm8 }
0x11a8   : > { %v4840_v8 = vpop.xlane.xlu0 %4839  ;;  %6114 = vmatmul.msk.f32.gmra.mxu1 %vm769_vm5, %v5022_v24  ;;  %v5232_v3 = vsub.f32 1.0, %v5231_v37  ;;  %v5403_v17 = vadd.f32 1.4214138, %v5391_v30 }
0x11a9   : > { %v4854_v12 = vmul.f32 %v4840_v8, %v6928_v0  ;;  %v6554_v54 = vpop.eup %6553 }
0x11aa   : > { %v5233_v42 = vmul.f32 %v6552_v44, %v5232_v3  ;;  %v4959_v50 = vmul.f32 %v6554_v54, %v4865_v62  ;;  %v5415_v21 = vmul.f32 %v5403_v17, %v5228_v40  ;;  %vm4965_vm11 = vweird.f32 %v6554_v54 }
0x11ab   : > { %v4866_v2 = vadd.f32 1e-05, %v4854_v12  ;;  %vm4966_vm6 = vmor %vm4964_vm12, %vm4965_vm11  ;;  %v5503_v12 = vmul.f32 1.442695, %v5488_v19 }
0x11ac   : > { %v4960_v15 = vmul.f32 %v6554_v54, %v4959_v50  ;;  %v5234_v51 = vadd.f32 %v6552_v44, %v5233_v42  ;;  %v5427_v4 = vadd.f32 -0.28449672, %v5415_v21 }
0x11ad   : > { %6555 = vrsqrt.f32 %v4866_v2  ;;  %vm4974_vm0 = vweird.f32 %v4866_v2 }
0x11ae   : > { %6557 = vpow2.f32 %v5501_v56  ;;  %v4961_v27 = vmul.f32 0.5, %v4960_v15  ;;  %v5238_v47 = vsel %vm5237_vm10, %v6552_v44, %v5234_v51  ;;  %v5439_v33 = vmul.f32 %v5427_v4, %v5228_v40 }
0x11af   : > { %v5243_v16 = vsel %vm5240_vm13, %v5242_v1, %v5238_v47  ;;  %6559 = vpow2.f32 %v5503_v12  ;;  %v5127_v51 = vmul.f32 0.5, %v9392_v58 }
0x11b0   : > { %v4962_v59 = vsub.f32 1.5, %v4961_v27  ;;  %v5368_v14 = vmul.f32 1.0614054, %v5243_v16  ;;  %v5451_v53 = vadd.f32 0.2548296, %v5439_v33 }
0x11b2   : > { %v5101_v18 = vpop.f32.mrf.mxu1  ;;  %v4963_v52 = vmul.f32 %v6554_v54, %v4962_v59  ;;  %v5380_v45 = vadd.f32 -1.4531521, %v5368_v14  ;;  %v5463_v55 = vmul.f32 %v5451_v53, %v5228_v40 }
0x11b3   : > { %v6556_v6 = vpop.eup %6555  ;;  %v9421_v7 = vadd.f32 %v9302_v31, %v5101_v18 }
0x11b4   : > { %v4969_v9 = vmul.f32 %v6556_v6, %v4866_v2  ;;  %v6558_v39 = vpop.eup %6557  ;;  %v4967_v44 = vsel %vm4966_vm6, %v6554_v54, %v4963_v52  ;;  %v5392_v24 = vmul.f32 %v5380_v45, %v5243_v16  ;;  %vm4975_vm14 = vweird.f32 %v6556_v6 }
0x11b5   : > { %v9425_v29 = vmul.f32 0.70710677, %v9421_v7  ;;  %v4997_v37 = vmul.f32 %v4967_v44, %v9276_v25  ;;  %v5523_v8 = vmul.f32 %v6558_v39, %v5463_v55  ;;  %vm4976_vm1 = vmor %vm4974_vm0, %vm4975_vm14  ;;  %v6560_v59 = vpop.eup %6559 }
0x11b6   : > { %v4970_v30 = vmul.f32 %v6556_v6, %v4969_v9  ;;  %v5404_v3 = vadd.f32 1.4214138, %v5392_v24 }
0x11b7   : > { %v9429_v62 = vand.u32 2147483647, %v9425_v29  ;;  %v5010_v63 = vmul.f32 %v9225_v20, %v4997_v37  ;;  %v5535_v56 = vsub.f32 1.0, %v5523_v8  ;;  %vm5549_vm14 = vcmp.ge.f32.partialorder %v9425_v29, 0.0 }
0x11b8   : > { %v4971_v17 = vmul.f32 0.5, %v4970_v30  ;;  %v5416_v54 = vmul.f32 %v5404_v3, %v5243_v16  ;;  %v5128_v30 = vmul.f32 0.5, %v9404_v57 }
0x11b9   : > { %v5165_v40 = vmul.f32 0.3275911, %v9429_v62  ;;  %v5023_v41 = vadd.f32 %v9227_v23, %v5010_v63  ;;  %v5559_v42 = vsub.f32 0.0, %v5535_v56 }
0x11ba   : > { %v4972_v38 = vsub.f32 1.5, %v4971_v17  ;;  %v5428_v50 = vadd.f32 -0.28449672, %v5416_v54 }
0x11bb   : > { %v5177_v25 = vadd.f32 1.0, %v5165_v40  ;;  %6115 = vmatmul.msk.f32.gmra.mxu1 %vm769_vm5, %v5023_v41  ;;  %v5571_v15 = vsel %vm5547_vm15, %v5535_v56, %v5559_v42  ;;  %v5477_v40 = vsub.f32 0.0, %v9429_v62 }
0x11bc   : > { %v4973_v21 = vmul.f32 %v6556_v6, %v4972_v38  ;;  %v5583_v4 = vadd.f32 1.0, %v5571_v15  ;;  %v5440_v27 = vmul.f32 %v5428_v50, %v5243_v16 }
0x11bd   : > { %6561 = vrcp.f32 %v5177_v25  ;;  %v5254_v19 = vand.u32 2147483647, %v5177_v25  ;;  %v5256_v9 = vand.u32 2147483648, %v5177_v25  ;;  %vm5250_vm4 = vweird.f32 %v5177_v25 }
0x11be   : > { %v4977_v1 = vsel %vm4976_vm1, %v6556_v6, %v4973_v21  ;;  %v5595_v61 = vmul.f32 %v5583_v4, %v5127_v51  ;;  %v5452_v33 = vadd.f32 0.2548296, %v5440_v27  ;;  %v5489_v42 = vmul.f32 %v5477_v40, %v9429_v62 }
0x11bf   : > { %v4998_v47 = vmul.f32 %v4977_v1, %v9285_v43  ;;  %v5257_v8 = vor.u32 1.1754944e-38, %v5256_v9  ;;  %vm5255_vm8 = vcmp.eq.f32.partialorder %v5254_v19, 8.507059e+37 }
0x11c0   : > { %5649 = vmatmul.f32.gmra.mxu3 %v5595_v61  ;;  %v5464_v14 = vmul.f32 %v5452_v33, %v5243_v16  ;;  %v5505_v51 = vmul.f32 1.442695, %v5489_v42 }
0x11c1   : > { %v5011_v32 = vmul.f32 %v9225_v20, %v4998_v47 }
0x11c2   : > { %v5524_v52 = vmul.f32 %v6560_v59, %v5464_v14 }
0x11c3   : > { %v6562_v2 = vpop.eup %6561  ;;  %v5024_v18 = vadd.f32 %v9227_v23, %v5011_v32 }
0x11c4   : > { %v5246_v53 = vmul.f32 %v6562_v2, %v5177_v25  ;;  %v5536_v43 = vsub.f32 1.0, %v5524_v52  ;;  %vm5251_vm2 = vweird.f32 %v6562_v2 }
0x11c5   : > { %v5104_v45 = vpop.f32.mrf.mxu1  ;;  %6116 = vmatmul.msk.f32.gmra.mxu1 %vm769_vm5, %v5024_v18  ;;  %vm5252_vm7 = vmor %vm5250_vm4, %vm5251_vm2 }
0x11c6   : > { %v5247_v58 = vsub.f32 1.0, %v5246_v53  ;;  %v9442_v6 = vadd.f32 %v9302_v31, %v5104_v45  ;;  %v5560_v16 = vsub.f32 0.0, %v5536_v43 }
0x11c8   : > { %v5248_v55 = vmul.f32 %v6562_v2, %v5247_v58  ;;  %v9445_v39 = vmul.f32 0.70710677, %v9442_v6  ;;  %v5572_v24 = vsel %vm5548_vm3, %v5536_v43, %v5560_v16 }
0x11c9   : > { %v5584_v3 = vadd.f32 1.0, %v5572_v24 }
0x11ca   : > { %v5154_v44 = vand.u32 2147483647, %v9445_v39  ;;  %v5249_v37 = vadd.f32 %v6562_v2, %v5248_v55  ;;  %vm5550_vm0 = vcmp.ge.f32.partialorder %v9445_v39, 0.0 }
0x11cb   : > { %v5596_v63 = vmul.f32 %v5584_v3, %v5128_v30 }
0x11cc   : > { %v5166_v12 = vmul.f32 0.3275911, %v5154_v44  ;;  %v5253_v17 = vsel %vm5252_vm7, %v6562_v2, %v5249_v37  ;;  %v5478_v43 = vsub.f32 0.0, %v5154_v44 }
0x11cd   : > { %v5258_v56 = vsel %vm5255_vm8, %v5257_v8, %v5253_v17  ;;  %5652 = vmatmul.f32.gmra.mxu3 %v5596_v63 }
0x11ce   : > { %v5178_v54 = vadd.f32 1.0, %v5166_v12  ;;  %v5369_v38 = vmul.f32 1.0614054, %v5258_v56  ;;  %v5490_v8 = vmul.f32 %v5478_v43, %v5154_v44 }
0x11cf   : > { %v4843_v60 = vpop.xlane.xlu2 %4842 }
0x11d0   : > { %6563 = vrcp.f32 %v5178_v54  ;;  %v5381_v41 = vadd.f32 -1.4531521, %v5369_v38  ;;  %v4855_v57 = vmul.f32 %v4843_v60, %v6928_v0  ;;  %v5271_v61 = vand.u32 2147483648, %v5178_v54 }
0x11d1   : > { %v5269_v32 = vand.u32 2147483647, %v5178_v54  ;;  %vm5265_vm10 = vweird.f32 %v5178_v54  ;;  %v5507_v38 = vmul.f32 1.442695, %v5490_v8 }
0x11d2   : > { %v5393_v25 = vmul.f32 %v5381_v41, %v5258_v56  ;;  %v4867_v50 = vadd.f32 1e-05, %v4855_v57  ;;  %v5272_v18 = vor.u32 1.1754944e-38, %v5271_v61 }
0x11d3   : > { %vm5270_vm11 = vcmp.eq.f32.partialorder %v5269_v32, 8.507059e+37 }
0x11d4   : > { %v5405_v21 = vadd.f32 1.4214138, %v5393_v25  ;;  %6565 = vrsqrt.f32 %v4867_v50  ;;  %vm4984_vm6 = vweird.f32 %v4867_v50 }
0x11d5   : > { %6567 = vpow2.f32 %v5505_v51 }
0x11d6   : > { %v6564_v15 = vpop.eup %6563  ;;  %v5417_v4 = vmul.f32 %v5405_v21, %v5258_v56  ;;  %6569 = vpow2.f32 %v5507_v38 }
0x11d7   : > { %v5261_v1 = vmul.f32 %v6564_v15, %v5178_v54  ;;  %vm5266_vm9 = vweird.f32 %v6564_v15  ;;  %v5129_v54 = vmul.f32 0.5, %v9421_v7 }
0x11d8   : > { %v5429_v47 = vadd.f32 -0.28449672, %v5417_v4  ;;  %vm5267_vm13 = vmor %vm5265_vm10, %vm5266_vm9 }
0x11d9   : > { %v5262_v27 = vsub.f32 1.0, %v5261_v1 }
0x11da   : > { %v5441_v59 = vmul.f32 %v5429_v47, %v5258_v56  ;;  %v6566_v14 = vpop.eup %6565 }
0x11db   : > { %v5263_v33 = vmul.f32 %v6564_v15, %v5262_v27  ;;  %v4979_v62 = vmul.f32 %v6566_v14, %v4867_v50  ;;  %v6568_v58 = vpop.eup %6567  ;;  %vm4985_vm12 = vweird.f32 %v6566_v14 }
0x11dc   : > { %v5453_v0 = vadd.f32 0.2548296, %v5441_v59  ;;  %vm4986_vm15 = vmor %vm4984_vm6, %vm4985_vm12  ;;  %v6570_v51 = vpop.eup %6569 }
0x11dd   : > { %v5264_v2 = vadd.f32 %v6564_v15, %v5263_v33  ;;  %v4980_v53 = vmul.f32 %v6566_v14, %v4979_v62 }
0x11de   : > { %v5465_v52 = vmul.f32 %v5453_v0, %v5258_v56 }
0x11df   : > { %v5268_v45 = vsel %vm5267_vm13, %v6564_v15, %v5264_v2  ;;  %v4981_v9 = vmul.f32 0.5, %v4980_v53 }
0x11e0   : > { %v5273_v19 = vsel %vm5270_vm11, %v5272_v18, %v5268_v45  ;;  %v5525_v55 = vmul.f32 %v6568_v58, %v5465_v52 }
0x11e1   : > { %v5370_v16 = vmul.f32 1.0614054, %v5273_v19  ;;  %v4982_v24 = vsub.f32 1.5, %v4981_v9 }
0x11e2   : > { %v5537_v37 = vsub.f32 1.0, %v5525_v55 }
0x11e3   : > { %v5382_v30 = vadd.f32 -1.4531521, %v5370_v16  ;;  %v4983_v3 = vmul.f32 %v6566_v14, %v4982_v24 }
0x11e4   : > { %v5561_v12 = vsub.f32 0.0, %v5537_v37 }
0x11e5   : > { %v5394_v17 = vmul.f32 %v5382_v30, %v5273_v19  ;;  %v4987_v63 = vsel %vm4986_vm15, %v6566_v14, %v4983_v3 }
0x11e6   : > { %v5573_v56 = vsel %vm5549_vm14, %v5537_v37, %v5561_v12  ;;  %v4999_v60 = vmul.f32 %v4987_v63, %v9350_v48 }
0x11e7   : > { %v5406_v40 = vadd.f32 1.4214138, %v5394_v17  ;;  %v5585_v41 = vadd.f32 1.0, %v5573_v56 }
0x11e8   : > { %v5012_v44 = vmul.f32 %v9225_v20, %v4999_v60  ;;  %v5130_v20 = vmul.f32 0.5, %v9442_v6 }
0x11e9   : > { %v5418_v42 = vmul.f32 %v5406_v40, %v5273_v19  ;;  %v5597_v57 = vmul.f32 %v5585_v41, %v5129_v54 }
0x11ea   : > { %v5025_v50 = vadd.f32 %v9227_v23, %v5012_v44 }
0x11eb   : > { %v5430_v25 = vadd.f32 -0.28449672, %v5418_v42  ;;  %5655 = vmatmul.f32.gmra.mxu3 %v5597_v57 }
0x11ec   : > { %6117 = vmatmul.msk.f32.gmra.mxu1 %vm769_vm5, %v5025_v50 }
0x11ed   : > { %v5442_v29 = vmul.f32 %v5430_v25, %v5273_v19 }
0x11ef   : > { %v5454_v21 = vadd.f32 0.2548296, %v5442_v29 }
0x11f1   : > { %v5466_v15 = vmul.f32 %v5454_v21, %v5273_v19 }
0x11f3   : > { %v5526_v7 = vmul.f32 %v6570_v51, %v5466_v15 }
0x11f5   : > { %v5538_v1 = vsub.f32 1.0, %v5526_v7 }
0x11f7   : > { %v5562_v4 = vsub.f32 0.0, %v5538_v1 }
0x11f9   : > { %v5107_v48 = vpop.f32.mrf.mxu1  ;;  %v5574_v27 = vsel %vm5550_vm0, %v5538_v1, %v5562_v4 }
0x11fa   : > { %v9462_v47 = vadd.f32 %v9302_v31, %v5107_v48  ;;  %v5586_v61 = vadd.f32 1.0, %v5574_v27 }
0x11fc   : > { %v9465_v23 = vmul.f32 0.70710677, %v9462_v47  ;;  %v5598_v33 = vmul.f32 %v5586_v61, %v5130_v20 }
0x11fe   : > { %v5155_v32 = vand.u32 2147483647, %v9465_v23  ;;  %5658 = vmatmul.f32.gmra.mxu3 %v5598_v33  ;;  %vm5551_vm13 = vcmp.ge.f32.partialorder %v9465_v23, 0.0 }
0x1200   : > { %v5167_v59 = vmul.f32 0.3275911, %v5155_v32  ;;  %v5479_v24 = vsub.f32 0.0, %v5155_v32 }
0x1202   : > { %v5179_v14 = vadd.f32 1.0, %v5167_v59  ;;  %v5491_v12 = vmul.f32 %v5479_v24, %v5155_v32 }
0x1204   : > { %6571 = vrcp.f32 %v5179_v14  ;;  %v5286_v45 = vand.u32 2147483648, %v5179_v14  ;;  %v5284_v43 = vand.u32 2147483647, %v5179_v14  ;;  %vm5280_vm2 = vweird.f32 %v5179_v14 }
0x1205   : > { %v5509_v54 = vmul.f32 1.442695, %v5491_v12 }
0x1206   : > { %v5287_v55 = vor.u32 1.1754944e-38, %v5286_v45  ;;  %vm5285_vm4 = vcmp.eq.f32.partialorder %v5284_v43, 8.507059e+37 }
0x1207   : > { %v5110_v62 = vpop.f32.mrf.mxu1 }
0x1208   : > { %v9469_v39 = vadd.f32 %v9302_v31, %v5110_v62 }
0x120a   : > { %v6572_v0 = vpop.eup %6571  ;;  %v9472_v2 = vmul.f32 0.70710677, %v9469_v39 }
0x120b   : > { %v5276_v6 = vmul.f32 %v6572_v0, %v5179_v14  ;;  %vm5281_vm1 = vweird.f32 %v6572_v0 }
0x120c   : > { %v5156_v53 = vand.u32 2147483647, %v9472_v2  ;;  %vm5282_vm3 = vmor %vm5280_vm2, %vm5281_vm1  ;;  %vm5552_vm12 = vcmp.ge.f32.partialorder %v9472_v2, 0.0 }
0x120d   : > { %v5277_v18 = vsub.f32 1.0, %v5276_v6 }
0x120e   : > { %v5168_v58 = vmul.f32 0.3275911, %v5156_v53  ;;  %v5480_v21 = vsub.f32 0.0, %v5156_v53 }
0x120f   : > { %v5278_v52 = vmul.f32 %v6572_v0, %v5277_v18 }
0x1210   : > { %v5180_v19 = vadd.f32 1.0, %v5168_v58  ;;  %v5492_v61 = vmul.f32 %v5480_v21, %v5156_v53  ;;  %v5131_v53 = vmul.f32 0.5, %v9462_v47 }
0x1211   : > { %v5279_v9 = vadd.f32 %v6572_v0, %v5278_v52 }
0x1212   : > { %6573 = vrcp.f32 %v5180_v19  ;;  %v5301_v38 = vand.u32 2147483648, %v5180_v19  ;;  %v5299_v41 = vand.u32 2147483647, %v5180_v19  ;;  %vm5295_vm8 = vweird.f32 %v5180_v19 }
0x1213   : > { %v5283_v16 = vsel %vm5282_vm3, %v6572_v0, %v5279_v9  ;;  %6575 = vpow2.f32 %v5509_v54  ;;  %v5511_v6 = vmul.f32 1.442695, %v5492_v61 }
0x1214   : > { %v5288_v37 = vsel %vm5285_vm4, %v5287_v55, %v5283_v16  ;;  %v5302_v25 = vor.u32 1.1754944e-38, %v5301_v38  ;;  %vm5300_vm10 = vcmp.eq.f32.partialorder %v5299_v41, 8.507059e+37 }
0x1215   : > { %v5371_v30 = vmul.f32 1.0614054, %v5288_v37  ;;  %6577 = vpow2.f32 %v5511_v6 }
0x1217   : > { %v5383_v8 = vadd.f32 -1.4531521, %v5371_v30 }
0x1218   : > { %v6574_v3 = vpop.eup %6573 }
0x1219   : > { %v5291_v17 = vmul.f32 %v6574_v3, %v5180_v19  ;;  %v5395_v63 = vmul.f32 %v5383_v8, %v5288_v37  ;;  %vm5296_vm7 = vweird.f32 %v6574_v3  ;;  %v6576_v20 = vpop.eup %6575 }
0x121a   : > { %vm5297_vm9 = vmor %vm5295_vm8, %vm5296_vm7 }
0x121b   : > { %v5292_v56 = vsub.f32 1.0, %v5291_v17  ;;  %v5407_v40 = vadd.f32 1.4214138, %v5395_v63 }
0x121d   : > { %v5293_v60 = vmul.f32 %v6574_v3, %v5292_v56  ;;  %v5419_v42 = vmul.f32 %v5407_v40, %v5288_v37 }
0x121f   : > { %v5431_v57 = vadd.f32 -0.28449672, %v5419_v42  ;;  %v5294_v44 = vadd.f32 %v6574_v3, %v5293_v60 }
0x1221   : > { %v5443_v50 = vmul.f32 %v5431_v57, %v5288_v37  ;;  %v5298_v29 = vsel %vm5297_vm9, %v6574_v3, %v5294_v44  ;;  %v5132_v57 = vmul.f32 0.5, %v9469_v39 }
0x1222   : > { %v5303_v15 = vsel %vm5300_vm10, %v5302_v25, %v5298_v29 }
0x1223   : > { %v5455_v51 = vadd.f32 0.2548296, %v5443_v50  ;;  %v5372_v7 = vmul.f32 1.0614054, %v5303_v15 }
0x1225   : > { %v5113_v1 = vpop.f32.mrf.mxu1  ;;  %v5467_v48 = vmul.f32 %v5455_v51, %v5288_v37  ;;  %v5384_v27 = vadd.f32 -1.4531521, %v5372_v7  ;;  %v6578_v37 = vpop.eup %6577 }
0x1226   : > { %v9476_v4 = vadd.f32 %v9302_v31, %v5113_v1 }
0x1227   : > { %v5527_v32 = vmul.f32 %v6576_v20, %v5467_v48  ;;  %v5396_v59 = vmul.f32 %v5384_v27, %v5303_v15  ;;  %v9496_v48 = vld [vmem:[%s9593_s10 + $0x1] ss:$0 sm:$0xff] }
0x1228   : > { %v9479_v33 = vmul.f32 0.70710677, %v9476_v4 }
0x1229   : > { %v5539_v62 = vsub.f32 1.0, %v5527_v32  ;;  %v5408_v0 = vadd.f32 1.4214138, %v5396_v59 }
0x122a   : > { %v5157_v14 = vand.u32 2147483647, %v9479_v33  ;;  %vm5553_vm7 = vcmp.ge.f32.partialorder %v9479_v33, 0.0 }
0x122b   : > { %v5563_v52 = vsub.f32 0.0, %v5539_v62  ;;  %v5420_v45 = vmul.f32 %v5408_v0, %v5303_v15 }
0x122c   : > { %v5169_v18 = vmul.f32 0.3275911, %v5157_v14  ;;  %v5481_v29 = vsub.f32 0.0, %v5157_v14 }
0x122d   : > { %v5575_v43 = vsel %vm5551_vm13, %v5539_v62, %v5563_v52  ;;  %v5432_v19 = vadd.f32 -0.28449672, %v5420_v45 }
0x122e   : > { %v5181_v58 = vadd.f32 1.0, %v5169_v18  ;;  %v5587_v9 = vadd.f32 1.0, %v5575_v43  ;;  %v5493_v20 = vmul.f32 %v5481_v29, %v5157_v14 }
0x122f   : > { %v5444_v16 = vmul.f32 %v5432_v19, %v5303_v15 }
0x1230   : > { %6579 = vrcp.f32 %v5181_v58  ;;  %v5599_v55 = vmul.f32 %v5587_v9, %v5131_v53  ;;  %v5316_v56 = vand.u32 2147483648, %v5181_v58  ;;  %v5314_v54 = vand.u32 2147483647, %v5181_v58 }
0x1231   : > { %v5456_v24 = vadd.f32 0.2548296, %v5444_v16  ;;  %vm5310_vm6 = vweird.f32 %v5181_v58  ;;  %v5513_v0 = vmul.f32 1.442695, %v5493_v20 }
0x1232   : > { %5661 = vmatmul.f32.gmra.mxu3 %v5599_v55  ;;  %v5317_v44 = vor.u32 1.1754944e-38, %v5316_v56  ;;  %vm5315_vm15 = vcmp.eq.f32.partialorder %v5314_v54, 8.507059e+37 }
0x1233   : > { %v5468_v30 = vmul.f32 %v5456_v24, %v5303_v15 }
0x1235   : > { %v5528_v12 = vmul.f32 %v6578_v37, %v5468_v30 }
0x1236   : > { %v6580_v8 = vpop.eup %6579 }
0x1237   : > { %v5306_v3 = vmul.f32 %v6580_v8, %v5181_v58  ;;  %v5540_v23 = vsub.f32 1.0, %v5528_v12  ;;  %vm5311_vm11 = vweird.f32 %v6580_v8 }
0x1238   : > { %v5116_v63 = vpop.f32.mrf.mxu1  ;;  %vm5312_vm14 = vmor %vm5310_vm6, %vm5311_vm11 }
0x1239   : > { %v5307_v17 = vsub.f32 1.0, %v5306_v3  ;;  %v9485_v40 = vadd.f32 %v9302_v31, %v5116_v63  ;;  %v5564_v38 = vsub.f32 0.0, %v5540_v23 }
0x123b   : > { %v5308_v47 = vmul.f32 %v6580_v8, %v5307_v17  ;;  %v9489_v60 = vmul.f32 0.70710677, %v9485_v40  ;;  %v5576_v41 = vsel %vm5552_vm12, %v5540_v23, %v5564_v38 }
0x123c   : > { %v5588_v31 = vadd.f32 1.0, %v5576_v41 }
0x123d   : > { %v5309_v42 = vadd.f32 %v6580_v8, %v5308_v47  ;;  %v5158_v25 = vand.u32 2147483647, %v9489_v60  ;;  %vm5554_vm13 = vcmp.ge.f32.partialorder %v9489_v60, 0.0 }
0x123e   : > { %v5600_v15 = vmul.f32 %v5588_v31, %v5132_v57 }
0x123f   : > { %v5313_v50 = vsel %vm5312_vm14, %v6580_v8, %v5309_v42  ;;  %v5170_v21 = vmul.f32 0.3275911, %v5158_v25  ;;  %v5482_v12 = vsub.f32 0.0, %v5158_v25 }
0x1240   : > { %v5318_v51 = vsel %vm5315_vm15, %v5317_v44, %v5313_v50  ;;  %5664 = vmatmul.f32.gmra.mxu3 %v5600_v15 }
0x1241   : > { %v5373_v2 = vmul.f32 1.0614054, %v5318_v51  ;;  %v5182_v7 = vadd.f32 1.0, %v5170_v21  ;;  %v5494_v41 = vmul.f32 %v5482_v12, %v5158_v25 }
0x1242   : > { %v5119_v1 = vpop.f32.mrf.mxu1 }
0x1243   : > { %v9499_v39 = vadd.f32 %v9496_v48, %v5119_v1  ;;  %v5385_v27 = vadd.f32 -1.4531521, %v5373_v2  ;;  %6581 = vrcp.f32 %v5182_v7  ;;  %v5331_v14 = vand.u32 2147483648, %v5182_v7 }
0x1244   : > { %6583 = vpow2.f32 %v5513_v0  ;;  %v5329_v55 = vand.u32 2147483647, %v5182_v7  ;;  %vm5325_vm1 = vweird.f32 %v5182_v7 }
0x1245   : > { %v9502_v61 = vmul.f32 0.70710677, %v9499_v39  ;;  %v5397_v32 = vmul.f32 %v5385_v27, %v5318_v51  ;;  %v5332_v30 = vor.u32 1.1754944e-38, %v5331_v14  ;;  %v5515_v27 = vmul.f32 1.442695, %v5494_v41 }
0x1246   : > { %vm5330_vm3 = vcmp.eq.f32.partialorder %v5329_v55, 8.507059e+37 }
0x1247   : > { %v9505_v59 = vand.u32 2147483647, %v9502_v61  ;;  %v5409_v62 = vadd.f32 1.4214138, %v5397_v32  ;;  %vm5555_vm11 = vcmp.ge.f32.partialorder %v9502_v61, 0.0 }
0x1249   : > { %v5171_v6 = vmul.f32 0.3275911, %v9505_v59  ;;  %v5421_v18 = vmul.f32 %v5409_v62, %v5318_v51  ;;  %v6582_v52 = vpop.eup %6581  ;;  %v5483_v0 = vsub.f32 0.0, %v9505_v59 }
0x124a   : > { %v5321_v45 = vmul.f32 %v6582_v52, %v5182_v7  ;;  %vm5326_vm0 = vweird.f32 %v6582_v52  ;;  %v6584_v37 = vpop.eup %6583 }
0x124b   : > { %v5183_v58 = vadd.f32 1.0, %v5171_v6  ;;  %v5433_v43 = vadd.f32 -0.28449672, %v5421_v18  ;;  %vm5327_vm2 = vmor %vm5325_vm1, %vm5326_vm0  ;;  %vm5693_vm1 = vcmask 785408  }
0x124c   : > { %v5322_v19 = vsub.f32 1.0, %v5321_v45 }
0x124d   : > { %6585 = vrcp.f32 %v5183_v58  ;;  %v5445_v53 = vmul.f32 %v5433_v43, %v5318_v51  ;;  %v5346_v42 = vand.u32 2147483648, %v5183_v58  ;;  %v5344_v31 = vand.u32 2147483647, %v5183_v58 }
0x124e   : > { %v5323_v9 = vmul.f32 %v6582_v52, %v5322_v19  ;;  %vm5340_vm8 = vweird.f32 %v5183_v58  ;;  %6587 = vpow2.f32 %v5515_v27 }
0x124f   : > { %v5457_v16 = vadd.f32 0.2548296, %v5445_v53  ;;  %v5347_v2 = vor.u32 1.1754944e-38, %v5346_v42  ;;  %vm5345_vm10 = vcmp.eq.f32.partialorder %v5344_v31, 8.507059e+37 }
0x1250   : > { %v5324_v24 = vadd.f32 %v6582_v52, %v5323_v9 }
0x1251   : > { %v5469_v8 = vmul.f32 %v5457_v16, %v5318_v51  ;;  %v5133_v51 = vmul.f32 0.5, %v9476_v4  ;;  %v5495_v4 = vmul.f32 %v5483_v0, %v9505_v59 }
0x1252   : > { %v5328_v17 = vsel %vm5327_vm2, %v6582_v52, %v5324_v24  ;;  %vm5748_vm2 = vcmask 1043456  }
0x1253   : > { %v6586_v3 = vpop.eup %6585  ;;  %v5529_v23 = vmul.f32 %v6584_v37, %v5469_v8  ;;  %v5333_v56 = vsel %vm5330_vm3, %v5332_v30, %v5328_v17  ;;  %v5517_v53 = vmul.f32 1.442695, %v5495_v4  ;;  %v5134_v17 = vmul.f32 0.5, %v9485_v40 }
0x1254   : > { %v5336_v63 = vmul.f32 %v6586_v3, %v5183_v58  ;;  %v5374_v47 = vmul.f32 1.0614054, %v5333_v56  ;;  %vm5341_vm4 = vweird.f32 %v6586_v3  ;;  %v6588_v14 = vpop.eup %6587 }
0x1255   : > { %v5541_v38 = vsub.f32 1.0, %v5529_v23  ;;  %vm5342_vm9 = vmor %vm5340_vm8, %vm5341_vm4  ;;  %6589 = vpow2.f32 %v5517_v53 }
0x1256   : > { %v5337_v54 = vsub.f32 1.0, %v5336_v63  ;;  %v5386_v57 = vadd.f32 -1.4531521, %v5374_v47 }
0x1257   : > { %v5565_v50 = vsub.f32 0.0, %v5541_v38 }
0x1258   : > { %v5338_v44 = vmul.f32 %v6586_v3, %v5337_v54  ;;  %v5398_v29 = vmul.f32 %v5386_v57, %v5333_v56 }
0x1259   : > { %v5577_v21 = vsel %vm5553_vm7, %v5541_v38, %v5565_v50 }
0x125a   : > { %v5339_v15 = vadd.f32 %v6586_v3, %v5338_v44  ;;  %v5589_v7 = vadd.f32 1.0, %v5577_v21  ;;  %v5410_v1 = vadd.f32 1.4214138, %v5398_v29 }
0x125b   : > { %v6590_v47 = vpop.eup %6589 }
0x125c   : > { %v5343_v25 = vsel %vm5342_vm9, %v6586_v3, %v5339_v15  ;;  %v5601_v20 = vmul.f32 %v5589_v7, %v5133_v51  ;;  %v5422_v32 = vmul.f32 %v5410_v1, %v5333_v56 }
0x125d   : > { %v5348_v62 = vsel %vm5345_vm10, %v5347_v2, %v5343_v25 }
0x125e   : > { %v5375_v6 = vmul.f32 1.0614054, %v5348_v62  ;;  %5667 = vmatmul.f32.gmra.mxu3 %v5601_v20  ;;  %v5434_v33 = vadd.f32 -0.28449672, %v5422_v32 }
0x1260   : > { %v5387_v18 = vadd.f32 -1.4531521, %v5375_v6  ;;  %v5446_v52 = vmul.f32 %v5434_v33, %v5333_v56 }
0x1262   : > { %v5399_v45 = vmul.f32 %v5387_v18, %v5348_v62  ;;  %v5458_v58 = vadd.f32 0.2548296, %v5446_v52 }
0x1264   : > { %v5411_v43 = vadd.f32 1.4214138, %v5399_v45  ;;  %v5470_v19 = vmul.f32 %v5458_v58, %v5333_v56 }
0x1266   : > { %v5423_v9 = vmul.f32 %v5411_v43, %v5348_v62  ;;  %v5530_v55 = vmul.f32 %v6588_v14, %v5470_v19 }
0x1268   : > { %v5435_v16 = vadd.f32 -0.28449672, %v5423_v9  ;;  %v5542_v24 = vsub.f32 1.0, %v5530_v55 }
0x1269   : > { %v5122_v30 = vpop.f32.mrf.mxu1 }
0x126a   : > { %v5447_v37 = vmul.f32 %v5435_v16, %v5348_v62  ;;  %v5566_v8 = vsub.f32 0.0, %v5542_v24  ;;  %v5123_v3 = vadd.f32 %v9496_v48, %v5122_v30  ;;  %v5135_v48 = vmul.f32 0.5, %v9499_v39 }
0x126c   : > { %v5459_v12 = vadd.f32 0.2548296, %v5447_v37  ;;  %v5578_v59 = vsel %vm5554_vm13, %v5542_v24, %v5566_v8  ;;  %v5148_v63 = vmul.f32 0.70710677, %v5123_v3  ;;  %v5136_v55 = vmul.f32 0.5, %v5123_v3  ;;  %v5644_v37 = vpop.f32.mrf.mxu3  ;;  %v5719_v3 = vld [vmem:[%s9597_s14 + $0x10] sm:$0xff] }
0x126d   : > { %v5590_v23 = vadd.f32 1.0, %v5578_v59 }
0x126e   : > { %v5471_v56 = vmul.f32 %v5459_v12, %v5348_v62  ;;  %v5160_v54 = vand.u32 2147483647, %v5148_v63  ;;  %vm5556_vm0 = vcmp.ge.f32.partialorder %v5148_v63, 0.0  ;;  %v5720_v63 = vld [vmem:[%s9597_s14 + $0x18] sm:$0xff] }
0x126f   : > { %v5602_v38 = vmul.f32 %v5590_v23, %v5134_v17  ;;  %5740 = vmatpush.msra.mxu2 %v5720_v63 }
0x1270   : > { %v5531_v41 = vmul.f32 %v6590_v47, %v5471_v56  ;;  %v5172_v42 = vmul.f32 0.3275911, %v5160_v54  ;;  %v5484_v61 = vsub.f32 0.0, %v5160_v54 }
0x1271   : > { %5670 = vmatmul.f32.gmra.mxu3 %v5602_v38  ;;  %5741 = vmatpush.msra.mxu2 %v5719_v3 }
0x1272   : > { %v5543_v57 = vsub.f32 1.0, %v5531_v41  ;;  %v5184_v44 = vadd.f32 1.0, %v5172_v42  ;;  %v5496_v62 = vmul.f32 %v5484_v61, %v5160_v54  ;;  %v5718_v41 = vld [vmem:[%s9597_s14 + $0x8] sm:$0xff]  ;;  %v6207_v42 = vld [vmem:[%s9595_s12 + $0x1] ss:$0 sm:$0xff] }
0x1273   : > { %5742 = vmatpush.msra.mxu2 %v5718_v41 }
0x1274   : > { %v5567_v31 = vsub.f32 0.0, %v5543_v57  ;;  %6591 = vrcp.f32 %v5184_v44  ;;  %v5361_v51 = vand.u32 2147483648, %v5184_v44  ;;  %v5359_v7 = vand.u32 2147483647, %v5184_v44  ;;  %v5647_v30 = vpop.f32.mrf.mxu3 }
0x1275   : > { %vm5355_vm6 = vweird.f32 %v5184_v44  ;;  %v5519_v33 = vmul.f32 1.442695, %v5496_v62  ;;  %v5648_v61 = vadd.f32 %v6207_v42, %v5647_v30 }
0x1276   : > { %v5579_v60 = vsel %vm5555_vm11, %v5543_v57, %v5567_v31  ;;  %v5362_v27 = vor.u32 1.1754944e-38, %v5361_v51  ;;  %vm5360_vm15 = vcmp.eq.f32.partialorder %v5359_v7, 8.507059e+37 }
0x1277   : > { %v5591_v50 = vadd.f32 1.0, %v5579_v60  ;;  %6593 = vpow2.f32 %v5519_v33 }
0x1279   : > { %v5603_v40 = vmul.f32 %v5591_v50, %v5135_v48 }
0x127a   : > { %v6592_v29 = vpop.eup %6591 }
0x127b   : > { %5673 = vmatmul.f32.gmra.mxu3 %v5603_v40  ;;  %v5351_v21 = vmul.f32 %v6592_v29, %v5184_v44  ;;  %vm5356_vm12 = vweird.f32 %v6592_v29 }
0x127c   : > { %vm5357_vm14 = vmor %vm5355_vm6, %vm5356_vm12  ;;  %v5650_v8 = vpop.f32.mrf.mxu3 }
0x127d   : > { %v5352_v15 = vsub.f32 1.0, %v5351_v21  ;;  %v6594_v43 = vpop.eup %6593 }
0x127f   : > { %v5353_v2 = vmul.f32 %v6592_v29, %v5352_v15 }
0x1281   : > { %v5354_v1 = vadd.f32 %v6592_v29, %v5353_v2 }
0x1283   : > { %v5358_v25 = vsel %vm5357_vm14, %v6592_v29, %v5354_v1 }
0x1284   : > { %v5363_v20 = vsel %vm5360_vm15, %v5362_v27, %v5358_v25  ;;  %v5653_v12 = vpop.f32.mrf.mxu3  ;;  %v5651_v25 = vadd.f32 %v6207_v42, %v5650_v8 }
0x1285   : > { %v5376_v32 = vmul.f32 1.0614054, %v5363_v20 }
0x1287   : > { %v5388_v39 = vadd.f32 -1.4531521, %v5376_v32  ;;  %v5681_v32 = vadd.f32 %v5648_v61, %v9073_v26 }
0x1289   : > { %v5400_v0 = vmul.f32 %v5388_v39, %v5363_v20 }
0x128b   : > { %v5412_v6 = vadd.f32 1.4214138, %v5400_v0 }
0x128c   : > { %v5656_v59 = vpop.f32.mrf.mxu3 }
0x128d   : > { %v5424_v18 = vmul.f32 %v5412_v6, %v5363_v20  ;;  %v5657_v1 = vadd.f32 %v6207_v42, %v5656_v59 }
0x128f   : > { %v5436_v52 = vadd.f32 -0.28449672, %v5424_v18 }
0x1291   : > { %v5448_v4 = vmul.f32 %v5436_v52, %v5363_v20 }
0x1293   : > { %v5460_v45 = vadd.f32 0.2548296, %v5448_v4 }
0x1294   : > { %v5659_v17 = vpop.f32.mrf.mxu3 }
0x1295   : > { %v5472_v58 = vmul.f32 %v5460_v45, %v5363_v20  ;;  %v5660_v2 = vadd.f32 %v6207_v42, %v5659_v17  ;;  %v5645_v20 = vadd.f32 %v6207_v42, %v5644_v37 }
0x1297   : > { %v5532_v19 = vmul.f32 %v6594_v43, %v5472_v58 }
0x1299   : > { %v5544_v14 = vsub.f32 1.0, %v5532_v19 }
0x129b   : > { %v5568_v53 = vsub.f32 0.0, %v5544_v14 }
0x129d   : > { %v5580_v9 = vsel %vm5556_vm0, %v5544_v14, %v5568_v53 }
0x129e   : > { %v5592_v16 = vadd.f32 1.0, %v5580_v9 }
0x12a0   : > { %v5604_v24 = vmul.f32 %v5592_v16, %v5136_v55 }
0x12a2   : > { %5676 = vmatmul.f32.gmra.mxu3 %v5604_v24 }
0x12b5   : > { %v5662_v23 = vpop.f32.mrf.mxu3 }
0x12b6   : > { %v5663_v15 = vadd.f32 %v6207_v42, %v5662_v23 }
0x12b8   : > { %v5686_v27 = vadd.f32 %v5663_v15, %v9157_v10  ;;  %v5680_v10 = vadd.f32 %v5645_v20, %v9066_v28  ;;  %v6208_v28 = vld [vmem:[%s9598_s15] ss:$0 sm:$0xff] }
0x12c3   : > { %v5665_v56 = vpop.f32.mrf.mxu3 }
0x12c4   : > { %v5666_v29 = vadd.f32 %v6207_v42, %v5665_v56 }
0x12c6   : > { %v5687_v7 = vadd.f32 %v5666_v29, %v9169_v11  ;;  %v5682_v11 = vadd.f32 %v5651_v25, %v9088_v22 }
0x12e1   : > { %v5668_v47 = vpop.f32.mrf.mxu3 }
0x12e2   : > { %v5669_v50 = vadd.f32 %v6207_v42, %v5668_v47 }
0x12e4   : > { %v5688_v51 = vadd.f32 %v5669_v50, %v9181_v34 }
0x12f4   : > { %v5671_v54 = vpop.f32.mrf.mxu3 }
0x12f5   : > { %v5672_v60 = vadd.f32 %v6207_v42, %v5671_v54 }
0x12f7   : > { %v5689_v21 = vadd.f32 %v5672_v60, %v9202_v35  ;;  %v5684_v35 = vadd.f32 %v5657_v1, %v9098_v36 }
0x12fe   : > { %v5674_v38 = vpop.f32.mrf.mxu3 }
0x12ff   : > { %v5675_v44 = vadd.f32 %v6207_v42, %v5674_v38 }
0x1301   : > { %v5690_v40 = vadd.f32 %v5675_v44, %v9216_v13  ;;  %v5685_v13 = vadd.f32 %v5660_v2, %v9115_v46  ;;  %v5692_v46 = vld [vmem:[%s9596_s13] sm:$0xf] }
0x1325   : > { %v5677_v57 = vpop.f32.mrf.mxu3 }
0x1326   : > { %v5678_v31 = vadd.f32 %v6207_v42, %v5677_v57 }
0x1328   : > { %v5691_v48 = vadd.f32 %v5678_v31, %v9238_v49  ;;  %v5654_v49 = vadd.f32 %v6207_v42, %v5653_v12 }
0x132a   : > { %5701 = vmatpush.msrb.mxu0 %v5691_v48  ;;  %v5683_v34 = vadd.f32 %v5654_v49, %v9091_v5  ;;  %v5717_v5 = vld [vmem:[%s9597_s14] sm:$0xff] }
0x132b   : > { %5743 = vmatpush.msra.mxu2 %v5717_v5 }
0x132c   : > { %5702 = vmatpush.msrb.mxu0 %v5690_v40 }
0x132e   : > { %5703 = vmatpush.msrb.mxu0 %v5689_v21 }
0x1330   : > { %5704 = vmatpush.msrb.mxu0 %v5688_v51 }
0x1332   : > { %5705 = vmatpush.msrb.mxu0 %v5687_v7 }
0x1334   : > { %5706 = vmatpush.msrb.mxu0 %v5686_v27 }
0x1336   : > { %5707 = vmatpush.msrb.mxu0 %v5685_v13 }
0x1338   : > { %5708 = vmatpush.msrb.mxu0 %v5684_v35 }
0x133a   : > { %5709 = vmatpush.msrb.mxu0 %v5683_v34 }
0x133c   : > { %5710 = vmatpush.msrb.mxu0 %v5682_v11 }
0x133e   : > { %5711 = vmatpush.msrb.mxu0 %v5681_v32 }
0x1340   : > { %5712 = vmatpush.msrb.mxu0 %v5680_v10 }
0x1341   : > { %6135 = vmatmul.msk.f32.vlgmr.msrb.gmra.mxu0 %vm5693_vm1, %v5692_v46 }
0x13be   : > { %v5714_v22 = vpop.f32.mrf.mxu0 }
0x13bf   : > { %6136 = vmatmul.msk.f32.vlgmr.msra.gmra.mxu2 %vm769_vm5, %v5714_v22 }
0x1442   : > { %v5745_v26 = vpop.f32.mrf.mxu2 }
0x1443   : > { %v5746_v36 = vadd.f32 %v6208_v28, %v5745_v26 }
0x1445   : > { %v5749_v39 = vsel %vm5748_vm2, %v5746_v36, -inf }
0x1446   : > { %5750 = vmax.xlane.f32.xlu1 %v5749_v39 }
0x14b9   : > { %v5751_v62 = vpop.xlane.xlu1 %5750 }
0x14ba   : > { %v5752_v0 = vsub.f32 %v5746_v36, %v5751_v62 }
0x14bc   : > { %v5753_v6 = vmul.f32 1.442695, %v5752_v0 }
0x14be   : > { %6595 = vpow2.f32 %v5753_v6 }
0x14c4   : > { %v6596_v33 = vpop.eup %6595 }
0x14c5   : > { %v5755_v18 = vsel %vm5748_vm2, %v6596_v33, 0.0 }
0x14c6   : > { %5756 = vadd.xlane.f32.xlu0 %v5755_v18 }
0x1539   : > { %v5757_v52 = vpop.xlane.xlu0 %5756 }
0x153a   : > { %6597 = vrcp.f32 %v5757_v52  ;;  %v5769_v43 = vand.u32 2147483648, %v5757_v52  ;;  %v5767_v14 = vand.u32 2147483647, %v5757_v52  ;;  %vm5763_vm3 = vweird.f32 %v5757_v52 }
0x153c   : > { %v5770_v9 = vor.u32 1.1754944e-38, %v5769_v43  ;;  %vm5768_vm7 = vcmp.eq.f32.partialorder %v5767_v14, 8.507059e+37 }
0x1540   : > { %v6598_v4 = vpop.eup %6597 }
0x1541   : > { %v5759_v45 = vmul.f32 %v6598_v4, %v5757_v52  ;;  %vm5764_vm5 = vweird.f32 %v6598_v4 }
0x1542   : > { %vm5765_vm4 = vmor %vm5763_vm3, %vm5764_vm5 }
0x1543   : > { %v5760_v58 = vsub.f32 1.0, %v5759_v45 }
0x1545   : > { %v5761_v19 = vmul.f32 %v6598_v4, %v5760_v58 }
0x1547   : > { %v5762_v53 = vadd.f32 %v6598_v4, %v5761_v19 }
0x1549   : > { %v5766_v55 = vsel %vm5765_vm4, %v6598_v4, %v5762_v53 }
0x154a   : > { %v5771_v16 = vsel %vm5768_vm7, %v5770_v9, %v5766_v55 }
0x154b   : > { %v5772_v24 = vmul.f32 %v6596_v33, %v5771_v16 }
0x154d   : > { %5773 = vst [vmem:[%s514_s20] sm:$0xf] %v5772_v24 }
0x154e   : > { %6630 = shalt.err (!%p6627_p3)
}
0x154f   : > { %6153 = dma.vmem_to_hbm [thread:$0]  (%p6795_p5), %s5788_s26, 64, %s5790_s27, %s5775_s25  }
0x1550 PF: > { %p6159_p4 = scmp.ge.s32.totalorder %s6665_s24, 2  ;;  %s5801_s20 = sand.u32 1, %s6653_s21  }
0x1551   : > { %s5802_s30 = scalar_lea.sflag [#allocation3], %s5801_s20 }
0x1552   : > { %p6156_p7 = pnand %p6159_p4, %p6799_p6 }
0x1554   : > { %p6157_p8 = pneg %p6156_p7 }
0x1556   : > { %6648 = dma.done.wait (%p6157_p8), %s5802_s30, 64  }
0x1557   : > { %6650 = vsyncadd (%p6157_p8), %s5802_s30, 4294967232  ;;  %s9617_s24 = sld [smem:[#allocation6_spill]]  ;;  %s9620_s21 = smov %s6657_s22 }
0x1558   : > { %s9618_s1 = sld [smem:[#allocation5_spill]] }
0x1559   : > { %s9619_s23 = sld [smem:[#allocation7_spill]] }
0x155d   : > { %p26_p9 = scmp.ge.s32.totalorder %s9617_s24, 4  }
0x155e   : > { %s9621_s22 = smov %s9618_s1 }
0x155f   :  { %28 = sbr.rel (!%p26_p9) target bundleno = 6 (0x6), region = 126 }
0x1564   :  { %5808 = vsyncpa [#allocation3], 1 }
0x1565   :  { %5810 = vsyncpa [#allocation3 + $0x1], 1 }

</bundles_post_ra>
